<compile_context>
chip_gen: v7x
topology: tpu7x:2x2x1
jax: 0.10.0
libtpu: 0.0.40
codegen_flags: <defaults>
</compile_context>

<pallas_src>
import jax
import jax.numpy as jnp
from jax.experimental import pallas as pl
from jax.experimental.pallas import tpu as pltpu

EPS = 1e-5
SLOPE = 0.2
_LB = 8  # interior column offset inside the staging scratches (sublane-aligned)


def _round_up(x, m):
    return ((x + m - 1) // m) * m


def _lrelu(x):
    return jnp.where(x > 0, x, SLOPE * x)


def _instance_norm(x_flat, inv_hw):
    """Two-pass InstanceNorm over a flattened (H*W, C) tile, all f32 math."""
    m = jnp.sum(x_flat, axis=0, keepdims=True) * inv_hw
    d = x_flat - m
    v = jnp.sum(d * d, axis=0, keepdims=True) * inv_hw
    return d * jax.lax.rsqrt(v + EPS)


def _stage_padded(pad_ref, interior, H, W, C):
    """Write `interior` (H, W, C) into pad_ref with a zeroed 1-px halo.

    Interior lands at rows [1, 1+H) and columns [_LB, _LB+W): sublane-aligned,
    so the dominant store is unmasked.  Halo zeroing is two full-width row
    stores plus two aligned 8-column-slab stores (same vst count as 1-column
    masked stores, but fully utilized).  Done every grid step -> megacore-safe.
    """
    Wscr = W + 2 * _LB
    zrow = jnp.zeros((1, Wscr, C), interior.dtype)
    pad_ref[0:1, :, :] = zrow
    pad_ref[H + 1:H + 2, :, :] = zrow
    zcol = jnp.zeros((H + 2, _LB, C), interior.dtype)
    pad_ref[:, 0:_LB, :] = zcol
    pad_ref[:, _LB + W:Wscr, :] = zcol
    pad_ref[1:1 + H, _LB:_LB + W, :] = interior


def _conv3x3_accumulate(pad_ref, w_ref, H, W, Cin, Cp):
    """9-tap MXU accumulate: sum_k tap_k (HW, Cin) @ w_ref[k] (Cin, Cp) -> f32.

    No materialized (H, W, 9*Cin) im2col buffer; each tap is a lane-dense slice
    of the staged scratch.  The 8 extra f32 adds hide under the vmatmul cadence
    (and accumulate in-place in the MRB on v7x).
    """
    HW = H * W
    acc = jnp.zeros((HW, Cp), jnp.float32)
    for k in range(9):
        ky, kx = divmod(k, 3)
        tap = pad_ref[ky:ky + H, _LB - 1 + kx:_LB - 1 + kx + W, :]
        acc = acc + jnp.dot(tap.reshape(HW, Cin), w_ref[k],
                            preferred_element_type=jnp.float32)
    return acc


def residual_block_kernel(x_ref, w1_ref, w2_ref, wd_ref, bd_ref, o_ref,
                          xpad_ref, ypad_ref):
    # Block shapes (Cip = Cin rounded up to 8, Cp = Cout rounded up to 128):
    #   x_ref:  (1, H, W, Cip)  bf16   raw input
    #   w1_ref: (9, Cip, Cp)    bf16   packed conv1 weight (per-tap slabs)
    #   w2_ref: (9, Cp, Cp)     bf16   packed conv2 weight (per-tap slabs)
    #   wd_ref: (Cip, Cp)       bf16   1x1 downsample weight
    #   bd_ref: (1, Cp)         f32    downsample bias
    #   o_ref:  (1, H, W, Cp)          lane-dense output
    #   xpad_ref (scratch): (H+2, W+16, Cip) bf16  conv1 staging (1-px halo)
    #   ypad_ref (scratch): (H+2, W+16, Cp)  bf16  conv2 staging (1-px halo)
    _, H, W, Cip = x_ref.shape
    Cp = o_ref.shape[-1]
    HW = H * W
    inv_hw = 1.0 / HW

    # ---- conv1: stage x into the zero-halo scratch, then 9-tap accumulate.
    #      conv1 bias is exactly cancelled by the following no-affine IN. ----
    _stage_padded(xpad_ref, x_ref[0], H, W, Cip)
    acc = _conv3x3_accumulate(xpad_ref, w1_ref, H, W, Cip, Cp)

    # ---- InstanceNorm2d + LeakyReLU(0.2) in f32; single cast to bf16 ----
    y = _lrelu(_instance_norm(acc, inv_hw)).astype(jnp.bfloat16)

    # ---- conv2: bf16 staging scratch + 9-tap accumulate (bias cancelled) ----
    _stage_padded(ypad_ref, y.reshape(H, W, Cp), H, W, Cp)
    acc2 = _instance_norm(
        _conv3x3_accumulate(ypad_ref, w2_ref, H, W, Cp, Cp), inv_hw)

    # ---- 1x1 downsample skip on the raw input (+ bias, NOT cancelled) ----
    skip = jnp.dot(x_ref[0].reshape(HW, Cip), wd_ref[...],
                   preferred_element_type=jnp.float32) + bd_ref[...]

    # ---- residual add + LeakyReLU(0.2); Dropout(0.25) == identity (eval) ----
    o_ref[0] = _lrelu(acc2 + skip).reshape(H, W, Cp).astype(o_ref.dtype)


def _pack_params(params, cin_p, cout, cp):
    """Pack raw HWIO conv weights for the kernel; drop the dead conv biases."""
    w1, b1, w2, b2, wd, bd = params
    del b1, b2  # exactly cancelled by the following no-affine InstanceNorms
    cin = w1.shape[2]
    w1p = jnp.zeros((3, 3, cin_p, cp), jnp.float32).at[:, :, :cin, :cout].set(w1)
    w1p = w1p.reshape(9, cin_p, cp).astype(jnp.bfloat16)
    w2p = jnp.zeros((3, 3, cp, cp), jnp.float32).at[:, :, :cout, :cout].set(w2)
    w2p = w2p.reshape(9, cp, cp).astype(jnp.bfloat16)
    wdp = jnp.zeros((cin_p, cp), jnp.float32).at[:cin, :cout].set(
        wd.reshape(cin, cout))
    wdp = wdp.astype(jnp.bfloat16)
    bdp = jnp.zeros((1, cp), jnp.float32).at[:, :cout].set(bd.reshape(1, cout))
    return w1p, w2p, wdp, bdp


def _vmem_limit_bytes(H, W, Cip, Cp, out_itemsize):
    """Per-step working set (double-buffered blocks + scratch + live values)."""
    bf = 2
    blk_in = H * W * Cip * bf
    blk_out = H * W * Cp * out_itemsize
    weights = (9 * Cip * Cp + 9 * Cp * Cp + Cip * Cp) * bf + Cp * 4
    scratch = (H + 2) * (W + 2 * _LB) * (Cip + Cp) * bf
    live = 3 * H * W * Cp * 4       # f32 acc / acc2 / skip values in flight
    est = 2 * (blk_in + blk_out + weights) + scratch + live
    # Cap at 64 MiB: safe on v7x (64 MiB physical VMEM).  v5e/v6e (128 MiB
    # physical) can raise this toward ~100 MiB for larger whole-image tiles.
    return int(min(max(32 * 1024 * 1024, est * 5 // 4), 64 * 1024 * 1024))


def residual_block(x_nchw, params, *, out_dtype=jnp.float32):
    """x_nchw: (N, Cin, H, W) f32 -> (N, Cout, H, W); params = raw HWIO weights.

    out_dtype=jnp.bfloat16 halves HBM writeback for bf16/NHWC-native consumers;
    f32 default keeps strict parity with the PyTorch reference.
    """
    w1 = params[0]
    N, Cin, H, W = x_nchw.shape
    Cout = w1.shape[-1]
    Cp = _round_up(Cout, 128)   # lane-dense channel padding (MXU N dim)
    Cip = _round_up(Cin, 8)     # contraction-dim alignment for conv1 / skip
    # Note: W (and the HW flatten) should be a multiple of 8 so the
    # (H,W,C)->(H*W,C) flattens are free relayouts; true for UNet power-of-2
    # feature maps.

    x_nhwc = jnp.transpose(x_nchw, (0, 2, 3, 1)).astype(jnp.bfloat16)
    if Cip != Cin:
        x_nhwc = jnp.pad(x_nhwc, ((0, 0), (0, 0), (0, 0), (0, Cip - Cin)))

    w1p, w2p, wdp, bdp = _pack_params(params, Cip, Cout, Cp)

    out_itemsize = jnp.dtype(out_dtype).itemsize
    vmem_limit = _vmem_limit_bytes(H, W, Cip, Cp, out_itemsize)

    out_padded = pl.pallas_call(
        residual_block_kernel,
        out_shape=jax.ShapeDtypeStruct((N, H, W, Cp), out_dtype),
        grid=(N,),
        in_specs=[
            pl.BlockSpec((1, H, W, Cip), lambda n: (n, 0, 0, 0)),
            pl.BlockSpec((9, Cip, Cp), lambda n: (0, 0, 0)),
            pl.BlockSpec((9, Cp, Cp), lambda n: (0, 0, 0)),
            pl.BlockSpec((Cip, Cp), lambda n: (0, 0)),
            pl.BlockSpec((1, Cp), lambda n: (0, 0)),
        ],
        out_specs=pl.BlockSpec((1, H, W, Cp), lambda n: (n, 0, 0, 0)),
        scratch_shapes=[
            pltpu.VMEM((H + 2, W + 2 * _LB, Cip), jnp.bfloat16),
            pltpu.VMEM((H + 2, W + 2 * _LB, Cp), jnp.bfloat16),
        ],
        compiler_params=pltpu.CompilerParams(
            # Batch axis is independent -> "parallel" shards images across the
            # two v7x TensorCores (single-TC no-op on v5e/v6e).
            dimension_semantics=("parallel",),
            vmem_limit_bytes=vmem_limit),
    )(x_nhwc, w1p, w2p, wdp, bdp)

    out = out_padded[..., :Cout]
    return jnp.transpose(out, (0, 3, 1, 2)).astype(x_nchw.dtype)


def init_params(key, cin, cout):
    """Deterministic synthetic weights matching nn.Conv2d shapes (stored HWIO)."""
    k = jax.random.split(key, 6)
    w1 = (0.1 * jax.random.normal(k[0], (3, 3, cin, cout))).astype(jnp.float32)
    b1 = (0.1 * jax.random.normal(k[1], (cout,))).astype(jnp.float32)
    w2 = (0.1 * jax.random.normal(k[2], (3, 3, cout, cout))).astype(jnp.float32)
    b2 = (0.1 * jax.random.normal(k[3], (cout,))).astype(jnp.float32)
    wd = (0.1 * jax.random.normal(k[4], (1, 1, cin, cout))).astype(jnp.float32)
    bd = (0.1 * jax.random.normal(k[5], (cout,))).astype(jnp.float32)
    return w1, b1, w2, b2, wd, bd


def reference(x_nchw, raw_params):
    """Plain-JAX f32 reference of the PyTorch forward (eval mode), biases kept."""
    w1, b1, w2, b2, wd, bd = raw_params
    x = jnp.transpose(x_nchw, (0, 2, 3, 1))

    def conv(x, w, b):
        y = jax.lax.conv_general_dilated(
            x, w, (1, 1), 'SAME',
            dimension_numbers=('NHWC', 'HWIO', 'NHWC'))
        return y + b

    def inorm(x):
        m = jnp.mean(x, axis=(1, 2), keepdims=True)
        v = jnp.mean((x - m) ** 2, axis=(1, 2), keepdims=True)
        return (x - m) * jax.lax.rsqrt(v + EPS)

    r = _lrelu(inorm(conv(x, w1, b1)))
    r = inorm(conv(r, w2, b2))
    skip = conv(x, wd, bd)
    r = _lrelu(r + skip)
    return jnp.transpose(r, (0, 3, 1, 2))


if __name__ == "__main__":
    N, Cin, Cout, H, W = 2, 4, 8, 16, 16
    key = jax.random.PRNGKey(0)
    kx_, kp = jax.random.split(key)
    x = jax.random.normal(kx_, (N, Cin, H, W), jnp.float32)
    params = init_params(kp, Cin, Cout)

    out = jax.block_until_ready(residual_block(x, params))
    ref = jax.block_until_ready(reference(x, params))

    assert out.shape == (N, Cout, H, W)
    err = jnp.abs(out - ref)
    # bf16 MXU inputs + bf16 staging (f32 accumulation, f32 norm math) vs the
    # full-f32 reference -> small, zero-mean rounding error.
    assert float(jnp.max(err)) < 8e-2, float(jnp.max(err))
    assert float(jnp.mean(err)) < 1e-2, float(jnp.mean(err))
    print("KERNEL_OK")
</pallas_src>

<mosaic_0001>
module attributes {stable_mosaic.version = 11 : i64} {
  func.func @residual_block_kernel(%arg0: i32, %arg1: memref<1x16x16x8xbf16, #tpu.memory_space<vmem>>, %arg2: memref<9x8x128xbf16, #tpu.memory_space<vmem>>, %arg3: memref<9x128x128xbf16, #tpu.memory_space<vmem>>, %arg4: memref<8x128xbf16, #tpu.memory_space<vmem>>, %arg5: memref<1x128xf32, #tpu.memory_space<vmem>>, %arg6: memref<1x16x16x128xf32, #tpu.memory_space<vmem>>, %arg7: memref<18x32x8xbf16, #tpu.memory_space<vmem>>, %arg8: memref<18x32x128xbf16, #tpu.memory_space<vmem>>) attributes {dimension_semantics = [#tpu.dimension_semantics<parallel>], iteration_bounds = array<i64: 2>, scalar_prefetch = 0 : i64, scratch_operands = 2 : i64, tpu.core_type = #tpu.core_type<tc>, window_params = [{transform_indices = @transform_0, window_bounds = array<i64: 1, 16, 16, 8>}, {pipeline_mode = #tpu.pipeline_mode<synchronous>, transform_indices = @transform_1, window_bounds = array<i64: 9, 8, 128>}, {pipeline_mode = #tpu.pipeline_mode<synchronous>, transform_indices = @transform_2, window_bounds = array<i64: 9, 128, 128>}, {pipeline_mode = #tpu.pipeline_mode<synchronous>, transform_indices = @transform_3, window_bounds = array<i64: 8, 128>}, {pipeline_mode = #tpu.pipeline_mode<synchronous>, transform_indices = @transform_4, window_bounds = array<i64: 1, 128>}, {transform_indices = @transform_5, window_bounds = array<i64: 1, 16, 16, 128>}]} {
    %c0 = arith.constant 0 : index
    %c0_0 = arith.constant 0 : index
    %c0_1 = arith.constant 0 : index
    %c0_2 = arith.constant 0 : index
    %0 = vector.load %arg1[%c0, %c0_0, %c0_1, %c0_2] : memref<1x16x16x8xbf16, #tpu.memory_space<vmem>>, vector<1x16x16x8xbf16>
    %1 = vector.shape_cast %0 : vector<1x16x16x8xbf16> to vector<16x16x8xbf16>
    %cst = arith.constant 0.000000e+00 : bf16
    %2 = vector.broadcast %cst : bf16 to vector<1x32x8xbf16>
    %c0_3 = arith.constant 0 : index
    %c0_4 = arith.constant 0 : index
    %c0_5 = arith.constant 0 : index
    %3 = vector.load %arg7[%c0_3, %c0_4, %c0_5] : memref<18x32x8xbf16, #tpu.memory_space<vmem>>, vector<1x32x8xbf16>
    tpu.vector_store %arg7[%c0_3, %c0_4, %c0_5], %2 {strides = array<i32>} : memref<18x32x8xbf16, #tpu.memory_space<vmem>>, vector<1x32x8xbf16>,
    %c17 = arith.constant 17 : index
    %c0_6 = arith.constant 0 : index
    %c0_7 = arith.constant 0 : index
    %4 = vector.load %arg7[%c17, %c0_6, %c0_7] : memref<18x32x8xbf16, #tpu.memory_space<vmem>>, vector<1x32x8xbf16>
    tpu.vector_store %arg7[%c17, %c0_6, %c0_7], %2 {strides = array<i32>} : memref<18x32x8xbf16, #tpu.memory_space<vmem>>, vector<1x32x8xbf16>,
    %cst_8 = arith.constant 0.000000e+00 : bf16
    %5 = vector.broadcast %cst_8 : bf16 to vector<18x8x8xbf16>
    %c0_9 = arith.constant 0 : index
    %c0_10 = arith.constant 0 : index
    %c0_11 = arith.constant 0 : index
    %6 = vector.load %arg7[%c0_9, %c0_10, %c0_11] : memref<18x32x8xbf16, #tpu.memory_space<vmem>>, vector<18x8x8xbf16>
    tpu.vector_store %arg7[%c0_9, %c0_10, %c0_11], %5 {strides = array<i32>} : memref<18x32x8xbf16, #tpu.memory_space<vmem>>, vector<18x8x8xbf16>,
    %c0_12 = arith.constant 0 : index
    %c24 = arith.constant 24 : index
    %c0_13 = arith.constant 0 : index
    %7 = vector.load %arg7[%c0_12, %c24, %c0_13] : memref<18x32x8xbf16, #tpu.memory_space<vmem>>, vector<18x8x8xbf16>
    tpu.vector_store %arg7[%c0_12, %c24, %c0_13], %5 {strides = array<i32>} : memref<18x32x8xbf16, #tpu.memory_space<vmem>>, vector<18x8x8xbf16>,
    %c1 = arith.constant 1 : index
    %c8 = arith.constant 8 : index
    %c0_14 = arith.constant 0 : index
    %8 = vector.load %arg7[%c1, %c8, %c0_14] : memref<18x32x8xbf16, #tpu.memory_space<vmem>>, vector<16x16x8xbf16>
    tpu.vector_store %arg7[%c1, %c8, %c0_14], %1 {strides = array<i32>} : memref<18x32x8xbf16, #tpu.memory_space<vmem>>, vector<16x16x8xbf16>,
    %cst_15 = arith.constant 0.000000e+00 : f32
    %9 = vector.broadcast %cst_15 : f32 to vector<256x128xf32>
    %c0_16 = arith.constant 0 : index
    %c7 = arith.constant 7 : index
    %c0_17 = arith.constant 0 : index
    %10 = vector.load %arg7[%c0_16, %c7, %c0_17] : memref<18x32x8xbf16, #tpu.memory_space<vmem>>, vector<16x16x8xbf16>
    %11 = vector.shape_cast %10 : vector<16x16x8xbf16> to vector<256x8xbf16>
    %c0_18 = arith.constant 0 : index
    %c0_19 = arith.constant 0 : index
    %c0_20 = arith.constant 0 : index
    %12 = vector.load %arg2[%c0_18, %c0_19, %c0_20] : memref<9x8x128xbf16, #tpu.memory_space<vmem>>, vector<1x8x128xbf16>
    %13 = vector.shape_cast %12 : vector<1x8x128xbf16> to vector<8x128xbf16>
    %cst_21 = arith.constant dense<0.000000e+00> : vector<256x128xf32>
    %14 = tpu.matmul %11, %13, %cst_21 {dimension_numbers = #tpu.dot_dimension_numbers<[1], [0], [0], [1], [0, 0, 1, 1], [], []>} : vector<256x8xbf16>, vector<8x128xbf16>, vector<256x128xf32> -> vector<256x128xf32>
    %15 = arith.addf %9, %14 : vector<256x128xf32>
    %c0_22 = arith.constant 0 : index
    %c8_23 = arith.constant 8 : index
    %c0_24 = arith.constant 0 : index
    %16 = vector.load %arg7[%c0_22, %c8_23, %c0_24] : memref<18x32x8xbf16, #tpu.memory_space<vmem>>, vector<16x16x8xbf16>
    %17 = vector.shape_cast %16 : vector<16x16x8xbf16> to vector<256x8xbf16>
    %c1_25 = arith.constant 1 : index
    %c0_26 = arith.constant 0 : index
    %c0_27 = arith.constant 0 : index
    %18 = vector.load %arg2[%c1_25, %c0_26, %c0_27] : memref<9x8x128xbf16, #tpu.memory_space<vmem>>, vector<1x8x128xbf16>
    %19 = vector.shape_cast %18 : vector<1x8x128xbf16> to vector<8x128xbf16>
    %cst_28 = arith.constant dense<0.000000e+00> : vector<256x128xf32>
    %20 = tpu.matmul %17, %19, %cst_28 {dimension_numbers = #tpu.dot_dimension_numbers<[1], [0], [0], [1], [0, 0, 1, 1], [], []>} : vector<256x8xbf16>, vector<8x128xbf16>, vector<256x128xf32> -> vector<256x128xf32>
    %21 = arith.addf %15, %20 : vector<256x128xf32>
    %c0_29 = arith.constant 0 : index
    %c9 = arith.constant 9 : index
    %c0_30 = arith.constant 0 : index
    %22 = vector.load %arg7[%c0_29, %c9, %c0_30] : memref<18x32x8xbf16, #tpu.memory_space<vmem>>, vector<16x16x8xbf16>
    %23 = vector.shape_cast %22 : vector<16x16x8xbf16> to vector<256x8xbf16>
    %c2 = arith.constant 2 : index
    %c0_31 = arith.constant 0 : index
    %c0_32 = arith.constant 0 : index
    %24 = vector.load %arg2[%c2, %c0_31, %c0_32] : memref<9x8x128xbf16, #tpu.memory_space<vmem>>, vector<1x8x128xbf16>
    %25 = vector.shape_cast %24 : vector<1x8x128xbf16> to vector<8x128xbf16>
    %cst_33 = arith.constant dense<0.000000e+00> : vector<256x128xf32>
    %26 = tpu.matmul %23, %25, %cst_33 {dimension_numbers = #tpu.dot_dimension_numbers<[1], [0], [0], [1], [0, 0, 1, 1], [], []>} : vector<256x8xbf16>, vector<8x128xbf16>, vector<256x128xf32> -> vector<256x128xf32>
    %27 = arith.addf %21, %26 : vector<256x128xf32>
    %c1_34 = arith.constant 1 : index
    %c7_35 = arith.constant 7 : index
    %c0_36 = arith.constant 0 : index
    %28 = vector.load %arg7[%c1_34, %c7_35, %c0_36] : memref<18x32x8xbf16, #tpu.memory_space<vmem>>, vector<16x16x8xbf16>
    %29 = vector.shape_cast %28 : vector<16x16x8xbf16> to vector<256x8xbf16>
    %c3 = arith.constant 3 : index
    %c0_37 = arith.constant 0 : index
    %c0_38 = arith.constant 0 : index
    %30 = vector.load %arg2[%c3, %c0_37, %c0_38] : memref<9x8x128xbf16, #tpu.memory_space<vmem>>, vector<1x8x128xbf16>
    %31 = vector.shape_cast %30 : vector<1x8x128xbf16> to vector<8x128xbf16>
    %cst_39 = arith.constant dense<0.000000e+00> : vector<256x128xf32>
    %32 = tpu.matmul %29, %31, %cst_39 {dimension_numbers = #tpu.dot_dimension_numbers<[1], [0], [0], [1], [0, 0, 1, 1], [], []>} : vector<256x8xbf16>, vector<8x128xbf16>, vector<256x128xf32> -> vector<256x128xf32>
    %33 = arith.addf %27, %32 : vector<256x128xf32>
    %c1_40 = arith.constant 1 : index
    %c8_41 = arith.constant 8 : index
    %c0_42 = arith.constant 0 : index
    %34 = vector.load %arg7[%c1_40, %c8_41, %c0_42] : memref<18x32x8xbf16, #tpu.memory_space<vmem>>, vector<16x16x8xbf16>
    %35 = vector.shape_cast %34 : vector<16x16x8xbf16> to vector<256x8xbf16>
    %c4 = arith.constant 4 : index
    %c0_43 = arith.constant 0 : index
    %c0_44 = arith.constant 0 : index
    %36 = vector.load %arg2[%c4, %c0_43, %c0_44] : memref<9x8x128xbf16, #tpu.memory_space<vmem>>, vector<1x8x128xbf16>
    %37 = vector.shape_cast %36 : vector<1x8x128xbf16> to vector<8x128xbf16>
    %cst_45 = arith.constant dense<0.000000e+00> : vector<256x128xf32>
    %38 = tpu.matmul %35, %37, %cst_45 {dimension_numbers = #tpu.dot_dimension_numbers<[1], [0], [0], [1], [0, 0, 1, 1], [], []>} : vector<256x8xbf16>, vector<8x128xbf16>, vector<256x128xf32> -> vector<256x128xf32>
    %39 = arith.addf %33, %38 : vector<256x128xf32>
    %c1_46 = arith.constant 1 : index
    %c9_47 = arith.constant 9 : index
    %c0_48 = arith.constant 0 : index
    %40 = vector.load %arg7[%c1_46, %c9_47, %c0_48] : memref<18x32x8xbf16, #tpu.memory_space<vmem>>, vector<16x16x8xbf16>
    %41 = vector.shape_cast %40 : vector<16x16x8xbf16> to vector<256x8xbf16>
    %c5 = arith.constant 5 : index
    %c0_49 = arith.constant 0 : index
    %c0_50 = arith.constant 0 : index
    %42 = vector.load %arg2[%c5, %c0_49, %c0_50] : memref<9x8x128xbf16, #tpu.memory_space<vmem>>, vector<1x8x128xbf16>
    %43 = vector.shape_cast %42 : vector<1x8x128xbf16> to vector<8x128xbf16>
    %cst_51 = arith.constant dense<0.000000e+00> : vector<256x128xf32>
    %44 = tpu.matmul %41, %43, %cst_51 {dimension_numbers = #tpu.dot_dimension_numbers<[1], [0], [0], [1], [0, 0, 1, 1], [], []>} : vector<256x8xbf16>, vector<8x128xbf16>, vector<256x128xf32> -> vector<256x128xf32>
    %45 = arith.addf %39, %44 : vector<256x128xf32>
    %c2_52 = arith.constant 2 : index
    %c7_53 = arith.constant 7 : index
    %c0_54 = arith.constant 0 : index
    %46 = vector.load %arg7[%c2_52, %c7_53, %c0_54] : memref<18x32x8xbf16, #tpu.memory_space<vmem>>, vector<16x16x8xbf16>
    %47 = vector.shape_cast %46 : vector<16x16x8xbf16> to vector<256x8xbf16>
    %c6 = arith.constant 6 : index
    %c0_55 = arith.constant 0 : index
    %c0_56 = arith.constant 0 : index
    %48 = vector.load %arg2[%c6, %c0_55, %c0_56] : memref<9x8x128xbf16, #tpu.memory_space<vmem>>, vector<1x8x128xbf16>
    %49 = vector.shape_cast %48 : vector<1x8x128xbf16> to vector<8x128xbf16>
    %cst_57 = arith.constant dense<0.000000e+00> : vector<256x128xf32>
    %50 = tpu.matmul %47, %49, %cst_57 {dimension_numbers = #tpu.dot_dimension_numbers<[1], [0], [0], [1], [0, 0, 1, 1], [], []>} : vector<256x8xbf16>, vector<8x128xbf16>, vector<256x128xf32> -> vector<256x128xf32>
    %51 = arith.addf %45, %50 : vector<256x128xf32>
    %c2_58 = arith.constant 2 : index
    %c8_59 = arith.constant 8 : index
    %c0_60 = arith.constant 0 : index
    %52 = vector.load %arg7[%c2_58, %c8_59, %c0_60] : memref<18x32x8xbf16, #tpu.memory_space<vmem>>, vector<16x16x8xbf16>
    %53 = vector.shape_cast %52 : vector<16x16x8xbf16> to vector<256x8xbf16>
    %c7_61 = arith.constant 7 : index
    %c0_62 = arith.constant 0 : index
    %c0_63 = arith.constant 0 : index
    %54 = vector.load %arg2[%c7_61, %c0_62, %c0_63] : memref<9x8x128xbf16, #tpu.memory_space<vmem>>, vector<1x8x128xbf16>
    %55 = vector.shape_cast %54 : vector<1x8x128xbf16> to vector<8x128xbf16>
    %cst_64 = arith.constant dense<0.000000e+00> : vector<256x128xf32>
    %56 = tpu.matmul %53, %55, %cst_64 {dimension_numbers = #tpu.dot_dimension_numbers<[1], [0], [0], [1], [0, 0, 1, 1], [], []>} : vector<256x8xbf16>, vector<8x128xbf16>, vector<256x128xf32> -> vector<256x128xf32>
    %57 = arith.addf %51, %56 : vector<256x128xf32>
    %c2_65 = arith.constant 2 : index
    %c9_66 = arith.constant 9 : index
    %c0_67 = arith.constant 0 : index
    %58 = vector.load %arg7[%c2_65, %c9_66, %c0_67] : memref<18x32x8xbf16, #tpu.memory_space<vmem>>, vector<16x16x8xbf16>
    %59 = vector.shape_cast %58 : vector<16x16x8xbf16> to vector<256x8xbf16>
    %c8_68 = arith.constant 8 : index
    %c0_69 = arith.constant 0 : index
    %c0_70 = arith.constant 0 : index
    %60 = vector.load %arg2[%c8_68, %c0_69, %c0_70] : memref<9x8x128xbf16, #tpu.memory_space<vmem>>, vector<1x8x128xbf16>
    %61 = vector.shape_cast %60 : vector<1x8x128xbf16> to vector<8x128xbf16>
    %cst_71 = arith.constant dense<0.000000e+00> : vector<256x128xf32>
    %62 = tpu.matmul %59, %61, %cst_71 {dimension_numbers = #tpu.dot_dimension_numbers<[1], [0], [0], [1], [0, 0, 1, 1], [], []>} : vector<256x8xbf16>, vector<8x128xbf16>, vector<256x128xf32> -> vector<256x128xf32>
    %63 = arith.addf %57, %62 : vector<256x128xf32>
    %cst_72 = arith.constant dense<0.000000e+00> : vector<128xf32>
    %64 = vector.multi_reduction <add>, %63, %cst_72 [0] : vector<256x128xf32> to vector<128xf32>
    %65 = vector.shape_cast %64 : vector<128xf32> to vector<1x128xf32>
    %cst_73 = arith.constant 3.906250e-03 : f32
    %66 = vector.broadcast %cst_73 : f32 to vector<1x128xf32>
    %67 = arith.mulf %65, %66 : vector<1x128xf32>
    %68 = vector.broadcast %67 : vector<1x128xf32> to vector<256x128xf32>
    %69 = arith.subf %63, %68 : vector<256x128xf32>
    %70 = arith.mulf %69, %69 : vector<256x128xf32>
    %cst_74 = arith.constant dense<0.000000e+00> : vector<128xf32>
    %71 = vector.multi_reduction <add>, %70, %cst_74 [0] : vector<256x128xf32> to vector<128xf32>
    %72 = vector.shape_cast %71 : vector<128xf32> to vector<1x128xf32>
    %cst_75 = arith.constant 3.906250e-03 : f32
    %73 = vector.broadcast %cst_75 : f32 to vector<1x128xf32>
    %74 = arith.mulf %72, %73 : vector<1x128xf32>
    %cst_76 = arith.constant 9.99999974E-6 : f32
    %75 = vector.broadcast %cst_76 : f32 to vector<1x128xf32>
    %76 = arith.addf %74, %75 : vector<1x128xf32>
    %77 = math.rsqrt %76 : vector<1x128xf32>
    %78 = vector.broadcast %77 : vector<1x128xf32> to vector<256x128xf32>
    %79 = arith.mulf %69, %78 : vector<256x128xf32>
    %cst_77 = arith.constant 0.000000e+00 : f32
    %80 = vector.broadcast %cst_77 : f32 to vector<256x128xf32>
    %81 = arith.cmpf ogt, %79, %80 : vector<256x128xf32>
    %cst_78 = arith.constant 2.000000e-01 : f32
    %82 = vector.broadcast %cst_78 : f32 to vector<256x128xf32>
    %83 = arith.mulf %82, %79 : vector<256x128xf32>
    %84 = arith.select %81, %79, %83 : vector<256x128xi1>, vector<256x128xf32>
    %85 = arith.truncf %84 : vector<256x128xf32> to vector<256x128xbf16>
    %86 = vector.shape_cast %85 : vector<256x128xbf16> to vector<16x16x128xbf16>
    %cst_79 = arith.constant 0.000000e+00 : bf16
    %87 = vector.broadcast %cst_79 : bf16 to vector<1x32x128xbf16>
    %c0_80 = arith.constant 0 : index
    %c0_81 = arith.constant 0 : index
    %c0_82 = arith.constant 0 : index
    %88 = vector.load %arg8[%c0_80, %c0_81, %c0_82] : memref<18x32x128xbf16, #tpu.memory_space<vmem>>, vector<1x32x128xbf16>
    tpu.vector_store %arg8[%c0_80, %c0_81, %c0_82], %87 {strides = array<i32>} : memref<18x32x128xbf16, #tpu.memory_space<vmem>>, vector<1x32x128xbf16>,
    %c17_83 = arith.constant 17 : index
    %c0_84 = arith.constant 0 : index
    %c0_85 = arith.constant 0 : index
    %89 = vector.load %arg8[%c17_83, %c0_84, %c0_85] : memref<18x32x128xbf16, #tpu.memory_space<vmem>>, vector<1x32x128xbf16>
    tpu.vector_store %arg8[%c17_83, %c0_84, %c0_85], %87 {strides = array<i32>} : memref<18x32x128xbf16, #tpu.memory_space<vmem>>, vector<1x32x128xbf16>,
    %cst_86 = arith.constant 0.000000e+00 : bf16
    %90 = vector.broadcast %cst_86 : bf16 to vector<18x8x128xbf16>
    %c0_87 = arith.constant 0 : index
    %c0_88 = arith.constant 0 : index
    %c0_89 = arith.constant 0 : index
    %91 = vector.load %arg8[%c0_87, %c0_88, %c0_89] : memref<18x32x128xbf16, #tpu.memory_space<vmem>>, vector<18x8x128xbf16>
    tpu.vector_store %arg8[%c0_87, %c0_88, %c0_89], %90 {strides = array<i32>} : memref<18x32x128xbf16, #tpu.memory_space<vmem>>, vector<18x8x128xbf16>,
    %c0_90 = arith.constant 0 : index
    %c24_91 = arith.constant 24 : index
    %c0_92 = arith.constant 0 : index
    %92 = vector.load %arg8[%c0_90, %c24_91, %c0_92] : memref<18x32x128xbf16, #tpu.memory_space<vmem>>, vector<18x8x128xbf16>
    tpu.vector_store %arg8[%c0_90, %c24_91, %c0_92], %90 {strides = array<i32>} : memref<18x32x128xbf16, #tpu.memory_space<vmem>>, vector<18x8x128xbf16>,
    %c1_93 = arith.constant 1 : index
    %c8_94 = arith.constant 8 : index
    %c0_95 = arith.constant 0 : index
    %93 = vector.load %arg8[%c1_93, %c8_94, %c0_95] : memref<18x32x128xbf16, #tpu.memory_space<vmem>>, vector<16x16x128xbf16>
    tpu.vector_store %arg8[%c1_93, %c8_94, %c0_95], %86 {strides = array<i32>} : memref<18x32x128xbf16, #tpu.memory_space<vmem>>, vector<16x16x128xbf16>,
    %cst_96 = arith.constant 0.000000e+00 : f32
    %94 = vector.broadcast %cst_96 : f32 to vector<256x128xf32>
    %c0_97 = arith.constant 0 : index
    %c7_98 = arith.constant 7 : index
    %c0_99 = arith.constant 0 : index
    %95 = vector.load %arg8[%c0_97, %c7_98, %c0_99] : memref<18x32x128xbf16, #tpu.memory_space<vmem>>, vector<16x16x128xbf16>
    %96 = vector.shape_cast %95 : vector<16x16x128xbf16> to vector<256x128xbf16>
    %c0_100 = arith.constant 0 : index
    %c0_101 = arith.constant 0 : index
    %c0_102 = arith.constant 0 : index
    %97 = vector.load %arg3[%c0_100, %c0_101, %c0_102] : memref<9x128x128xbf16, #tpu.memory_space<vmem>>, vector<1x128x128xbf16>
    %98 = vector.shape_cast %97 : vector<1x128x128xbf16> to vector<128x128xbf16>
    %cst_103 = arith.constant dense<0.000000e+00> : vector<256x128xf32>
    %99 = tpu.matmul %96, %98, %cst_103 {dimension_numbers = #tpu.dot_dimension_numbers<[1], [0], [0], [1], [0, 0, 1, 1], [], []>} : vector<256x128xbf16>, vector<128x128xbf16>, vector<256x128xf32> -> vector<256x128xf32>
    %100 = arith.addf %94, %99 : vector<256x128xf32>
    %c0_104 = arith.constant 0 : index
    %c8_105 = arith.constant 8 : index
    %c0_106 = arith.constant 0 : index
    %101 = vector.load %arg8[%c0_104, %c8_105, %c0_106] : memref<18x32x128xbf16, #tpu.memory_space<vmem>>, vector<16x16x128xbf16>
    %102 = vector.shape_cast %101 : vector<16x16x128xbf16> to vector<256x128xbf16>
    %c1_107 = arith.constant 1 : index
    %c0_108 = arith.constant 0 : index
    %c0_109 = arith.constant 0 : index
    %103 = vector.load %arg3[%c1_107, %c0_108, %c0_109] : memref<9x128x128xbf16, #tpu.memory_space<vmem>>, vector<1x128x128xbf16>
    %104 = vector.shape_cast %103 : vector<1x128x128xbf16> to vector<128x128xbf16>
    %cst_110 = arith.constant dense<0.000000e+00> : vector<256x128xf32>
    %105 = tpu.matmul %102, %104, %cst_110 {dimension_numbers = #tpu.dot_dimension_numbers<[1], [0], [0], [1], [0, 0, 1, 1], [], []>} : vector<256x128xbf16>, vector<128x128xbf16>, vector<256x128xf32> -> vector<256x128xf32>
    %106 = arith.addf %100, %105 : vector<256x128xf32>
    %c0_111 = arith.constant 0 : index
    %c9_112 = arith.constant 9 : index
    %c0_113 = arith.constant 0 : index
    %107 = vector.load %arg8[%c0_111, %c9_112, %c0_113] : memref<18x32x128xbf16, #tpu.memory_space<vmem>>, vector<16x16x128xbf16>
    %108 = vector.shape_cast %107 : vector<16x16x128xbf16> to vector<256x128xbf16>
    %c2_114 = arith.constant 2 : index
    %c0_115 = arith.constant 0 : index
    %c0_116 = arith.constant 0 : index
    %109 = vector.load %arg3[%c2_114, %c0_115, %c0_116] : memref<9x128x128xbf16, #tpu.memory_space<vmem>>, vector<1x128x128xbf16>
    %110 = vector.shape_cast %109 : vector<1x128x128xbf16> to vector<128x128xbf16>
    %cst_117 = arith.constant dense<0.000000e+00> : vector<256x128xf32>
    %111 = tpu.matmul %108, %110, %cst_117 {dimension_numbers = #tpu.dot_dimension_numbers<[1], [0], [0], [1], [0, 0, 1, 1], [], []>} : vector<256x128xbf16>, vector<128x128xbf16>, vector<256x128xf32> -> vector<256x128xf32>
    %112 = arith.addf %106, %111 : vector<256x128xf32>
    %c1_118 = arith.constant 1 : index
    %c7_119 = arith.constant 7 : index
    %c0_120 = arith.constant 0 : index
    %113 = vector.load %arg8[%c1_118, %c7_119, %c0_120] : memref<18x32x128xbf16, #tpu.memory_space<vmem>>, vector<16x16x128xbf16>
    %114 = vector.shape_cast %113 : vector<16x16x128xbf16> to vector<256x128xbf16>
    %c3_121 = arith.constant 3 : index
    %c0_122 = arith.constant 0 : index
    %c0_123 = arith.constant 0 : index
    %115 = vector.load %arg3[%c3_121, %c0_122, %c0_123] : memref<9x128x128xbf16, #tpu.memory_space<vmem>>, vector<1x128x128xbf16>
    %116 = vector.shape_cast %115 : vector<1x128x128xbf16> to vector<128x128xbf16>
    %cst_124 = arith.constant dense<0.000000e+00> : vector<256x128xf32>
    %117 = tpu.matmul %114, %116, %cst_124 {dimension_numbers = #tpu.dot_dimension_numbers<[1], [0], [0], [1], [0, 0, 1, 1], [], []>} : vector<256x128xbf16>, vector<128x128xbf16>, vector<256x128xf32> -> vector<256x128xf32>
    %118 = arith.addf %112, %117 : vector<256x128xf32>
    %c1_125 = arith.constant 1 : index
    %c8_126 = arith.constant 8 : index
    %c0_127 = arith.constant 0 : index
    %119 = vector.load %arg8[%c1_125, %c8_126, %c0_127] : memref<18x32x128xbf16, #tpu.memory_space<vmem>>, vector<16x16x128xbf16>
    %120 = vector.shape_cast %119 : vector<16x16x128xbf16> to vector<256x128xbf16>
    %c4_128 = arith.constant 4 : index
    %c0_129 = arith.constant 0 : index
    %c0_130 = arith.constant 0 : index
    %121 = vector.load %arg3[%c4_128, %c0_129, %c0_130] : memref<9x128x128xbf16, #tpu.memory_space<vmem>>, vector<1x128x128xbf16>
    %122 = vector.shape_cast %121 : vector<1x128x128xbf16> to vector<128x128xbf16>
    %cst_131 = arith.constant dense<0.000000e+00> : vector<256x128xf32>
    %123 = tpu.matmul %120, %122, %cst_131 {dimension_numbers = #tpu.dot_dimension_numbers<[1], [0], [0], [1], [0, 0, 1, 1], [], []>} : vector<256x128xbf16>, vector<128x128xbf16>, vector<256x128xf32> -> vector<256x128xf32>
    %124 = arith.addf %118, %123 : vector<256x128xf32>
    %c1_132 = arith.constant 1 : index
    %c9_133 = arith.constant 9 : index
    %c0_134 = arith.constant 0 : index
    %125 = vector.load %arg8[%c1_132, %c9_133, %c0_134] : memref<18x32x128xbf16, #tpu.memory_space<vmem>>, vector<16x16x128xbf16>
    %126 = vector.shape_cast %125 : vector<16x16x128xbf16> to vector<256x128xbf16>
    %c5_135 = arith.constant 5 : index
    %c0_136 = arith.constant 0 : index
    %c0_137 = arith.constant 0 : index
    %127 = vector.load %arg3[%c5_135, %c0_136, %c0_137] : memref<9x128x128xbf16, #tpu.memory_space<vmem>>, vector<1x128x128xbf16>
    %128 = vector.shape_cast %127 : vector<1x128x128xbf16> to vector<128x128xbf16>
    %cst_138 = arith.constant dense<0.000000e+00> : vector<256x128xf32>
    %129 = tpu.matmul %126, %128, %cst_138 {dimension_numbers = #tpu.dot_dimension_numbers<[1], [0], [0], [1], [0, 0, 1, 1], [], []>} : vector<256x128xbf16>, vector<128x128xbf16>, vector<256x128xf32> -> vector<256x128xf32>
    %130 = arith.addf %124, %129 : vector<256x128xf32>
    %c2_139 = arith.constant 2 : index
    %c7_140 = arith.constant 7 : index
    %c0_141 = arith.constant 0 : index
    %131 = vector.load %arg8[%c2_139, %c7_140, %c0_141] : memref<18x32x128xbf16, #tpu.memory_space<vmem>>, vector<16x16x128xbf16>
    %132 = vector.shape_cast %131 : vector<16x16x128xbf16> to vector<256x128xbf16>
    %c6_142 = arith.constant 6 : index
    %c0_143 = arith.constant 0 : index
    %c0_144 = arith.constant 0 : index
    %133 = vector.load %arg3[%c6_142, %c0_143, %c0_144] : memref<9x128x128xbf16, #tpu.memory_space<vmem>>, vector<1x128x128xbf16>
    %134 = vector.shape_cast %133 : vector<1x128x128xbf16> to vector<128x128xbf16>
    %cst_145 = arith.constant dense<0.000000e+00> : vector<256x128xf32>
    %135 = tpu.matmul %132, %134, %cst_145 {dimension_numbers = #tpu.dot_dimension_numbers<[1], [0], [0], [1], [0, 0, 1, 1], [], []>} : vector<256x128xbf16>, vector<128x128xbf16>, vector<256x128xf32> -> vector<256x128xf32>
    %136 = arith.addf %130, %135 : vector<256x128xf32>
    %c2_146 = arith.constant 2 : index
    %c8_147 = arith.constant 8 : index
    %c0_148 = arith.constant 0 : index
    %137 = vector.load %arg8[%c2_146, %c8_147, %c0_148] : memref<18x32x128xbf16, #tpu.memory_space<vmem>>, vector<16x16x128xbf16>
    %138 = vector.shape_cast %137 : vector<16x16x128xbf16> to vector<256x128xbf16>
    %c7_149 = arith.constant 7 : index
    %c0_150 = arith.constant 0 : index
    %c0_151 = arith.constant 0 : index
    %139 = vector.load %arg3[%c7_149, %c0_150, %c0_151] : memref<9x128x128xbf16, #tpu.memory_space<vmem>>, vector<1x128x128xbf16>
    %140 = vector.shape_cast %139 : vector<1x128x128xbf16> to vector<128x128xbf16>
    %cst_152 = arith.constant dense<0.000000e+00> : vector<256x128xf32>
    %141 = tpu.matmul %138, %140, %cst_152 {dimension_numbers = #tpu.dot_dimension_numbers<[1], [0], [0], [1], [0, 0, 1, 1], [], []>} : vector<256x128xbf16>, vector<128x128xbf16>, vector<256x128xf32> -> vector<256x128xf32>
    %142 = arith.addf %136, %141 : vector<256x128xf32>
    %c2_153 = arith.constant 2 : index
    %c9_154 = arith.constant 9 : index
    %c0_155 = arith.constant 0 : index
    %143 = vector.load %arg8[%c2_153, %c9_154, %c0_155] : memref<18x32x128xbf16, #tpu.memory_space<vmem>>, vector<16x16x128xbf16>
    %144 = vector.shape_cast %143 : vector<16x16x128xbf16> to vector<256x128xbf16>
    %c8_156 = arith.constant 8 : index
    %c0_157 = arith.constant 0 : index
    %c0_158 = arith.constant 0 : index
    %145 = vector.load %arg3[%c8_156, %c0_157, %c0_158] : memref<9x128x128xbf16, #tpu.memory_space<vmem>>, vector<1x128x128xbf16>
    %146 = vector.shape_cast %145 : vector<1x128x128xbf16> to vector<128x128xbf16>
    %cst_159 = arith.constant dense<0.000000e+00> : vector<256x128xf32>
    %147 = tpu.matmul %144, %146, %cst_159 {dimension_numbers = #tpu.dot_dimension_numbers<[1], [0], [0], [1], [0, 0, 1, 1], [], []>} : vector<256x128xbf16>, vector<128x128xbf16>, vector<256x128xf32> -> vector<256x128xf32>
    %148 = arith.addf %142, %147 : vector<256x128xf32>
    %cst_160 = arith.constant dense<0.000000e+00> : vector<128xf32>
    %149 = vector.multi_reduction <add>, %148, %cst_160 [0] : vector<256x128xf32> to vector<128xf32>
    %150 = vector.shape_cast %149 : vector<128xf32> to vector<1x128xf32>
    %cst_161 = arith.constant 3.906250e-03 : f32
    %151 = vector.broadcast %cst_161 : f32 to vector<1x128xf32>
    %152 = arith.mulf %150, %151 : vector<1x128xf32>
    %153 = vector.broadcast %152 : vector<1x128xf32> to vector<256x128xf32>
    %154 = arith.subf %148, %153 : vector<256x128xf32>
    %155 = arith.mulf %154, %154 : vector<256x128xf32>
    %cst_162 = arith.constant dense<0.000000e+00> : vector<128xf32>
    %156 = vector.multi_reduction <add>, %155, %cst_162 [0] : vector<256x128xf32> to vector<128xf32>
    %157 = vector.shape_cast %156 : vector<128xf32> to vector<1x128xf32>
    %cst_163 = arith.constant 3.906250e-03 : f32
    %158 = vector.broadcast %cst_163 : f32 to vector<1x128xf32>
    %159 = arith.mulf %157, %158 : vector<1x128xf32>
    %cst_164 = arith.constant 9.99999974E-6 : f32
    %160 = vector.broadcast %cst_164 : f32 to vector<1x128xf32>
    %161 = arith.addf %159, %160 : vector<1x128xf32>
    %162 = math.rsqrt %161 : vector<1x128xf32>
    %163 = vector.broadcast %162 : vector<1x128xf32> to vector<256x128xf32>
    %164 = arith.mulf %154, %163 : vector<256x128xf32>
    %c0_165 = arith.constant 0 : index
    %c0_166 = arith.constant 0 : index
    %c0_167 = arith.constant 0 : index
    %c0_168 = arith.constant 0 : index
    %165 = vector.load %arg1[%c0_165, %c0_166, %c0_167, %c0_168] : memref<1x16x16x8xbf16, #tpu.memory_space<vmem>>, vector<1x16x16x8xbf16>
    %166 = vector.shape_cast %165 : vector<1x16x16x8xbf16> to vector<16x16x8xbf16>
    %167 = vector.shape_cast %166 : vector<16x16x8xbf16> to vector<256x8xbf16>
    %c0_169 = arith.constant 0 : index
    %c0_170 = arith.constant 0 : index
    %168 = vector.load %arg4[%c0_169, %c0_170] : memref<8x128xbf16, #tpu.memory_space<vmem>>, vector<8x128xbf16>
    %cst_171 = arith.constant dense<0.000000e+00> : vector<256x128xf32>
    %169 = tpu.matmul %167, %168, %cst_171 {dimension_numbers = #tpu.dot_dimension_numbers<[1], [0], [0], [1], [0, 0, 1, 1], [], []>} : vector<256x8xbf16>, vector<8x128xbf16>, vector<256x128xf32> -> vector<256x128xf32>
    %c0_172 = arith.constant 0 : index
    %c0_173 = arith.constant 0 : index
    %170 = vector.load %arg5[%c0_172, %c0_173] : memref<1x128xf32, #tpu.memory_space<vmem>>, vector<1x128xf32>
    %171 = vector.broadcast %170 : vector<1x128xf32> to vector<256x128xf32>
    %172 = arith.addf %169, %171 : vector<256x128xf32>
    %173 = arith.addf %164, %172 : vector<256x128xf32>
    %cst_174 = arith.constant 0.000000e+00 : f32
    %174 = vector.broadcast %cst_174 : f32 to vector<256x128xf32>
    %175 = arith.cmpf ogt, %173, %174 : vector<256x128xf32>
    %cst_175 = arith.constant 2.000000e-01 : f32
    %176 = vector.broadcast %cst_175 : f32 to vector<256x128xf32>
    %177 = arith.mulf %176, %173 : vector<256x128xf32>
    %178 = arith.select %175, %173, %177 : vector<256x128xi1>, vector<256x128xf32>
    %179 = vector.shape_cast %178 : vector<256x128xf32> to vector<16x16x128xf32>
    %c0_176 = arith.constant 0 : index
    %c0_177 = arith.constant 0 : index
    %c0_178 = arith.constant 0 : index
    %c0_179 = arith.constant 0 : index
    %180 = vector.load %arg6[%c0_176, %c0_177, %c0_178, %c0_179] : memref<1x16x16x128xf32, #tpu.memory_space<vmem>>, vector<1x16x16x128xf32>
    %181 = vector.shape_cast %180 : vector<1x16x16x128xf32> to vector<16x16x128xf32>
    %182 = vector.shape_cast %179 : vector<16x16x128xf32> to vector<1x16x16x128xf32>
    tpu.vector_store %arg6[%c0_176, %c0_177, %c0_178, %c0_179], %182 {strides = array<i32>} : memref<1x16x16x128xf32, #tpu.memory_space<vmem>>, vector<1x16x16x128xf32>,
    return
  }
  func.func @transform_0(%arg0: i32) -> (i32, i32, i32, i32) {
    %c0_i32 = arith.constant 0 : i32
    %c0_i32_0 = arith.constant 0 : i32
    %c0_i32_1 = arith.constant 0 : i32
    %c0_i32_2 = arith.constant 0 : i32
    return %arg0, %c0_i32, %c0_i32_0, %c0_i32_1 : i32, i32, i32, i32
  }
  func.func @transform_1(%arg0: i32) -> (i32, i32, i32) {
    %c0_i32 = arith.constant 0 : i32
    %c0_i32_0 = arith.constant 0 : i32
    %c0_i32_1 = arith.constant 0 : i32
    %c0_i32_2 = arith.constant 0 : i32
    return %c0_i32, %c0_i32_0, %c0_i32_1 : i32, i32, i32
  }
  func.func @transform_2(%arg0: i32) -> (i32, i32, i32) {
    %c0_i32 = arith.constant 0 : i32
    %c0_i32_0 = arith.constant 0 : i32
    %c0_i32_1 = arith.constant 0 : i32
    %c0_i32_2 = arith.constant 0 : i32
    return %c0_i32, %c0_i32_0, %c0_i32_1 : i32, i32, i32
  }
  func.func @transform_3(%arg0: i32) -> (i32, i32) {
    %c0_i32 = arith.constant 0 : i32
    %c0_i32_0 = arith.constant 0 : i32
    %c0_i32_1 = arith.constant 0 : i32
    return %c0_i32, %c0_i32_0 : i32, i32
  }
  func.func @transform_4(%arg0: i32) -> (i32, i32) {
    %c0_i32 = arith.constant 0 : i32
    %c0_i32_0 = arith.constant 0 : i32
    %c0_i32_1 = arith.constant 0 : i32
    return %c0_i32, %c0_i32_0 : i32, i32
  }
  func.func @transform_5(%arg0: i32) -> (i32, i32, i32, i32) {
    %c0_i32 = arith.constant 0 : i32
    %c0_i32_0 = arith.constant 0 : i32
    %c0_i32_1 = arith.constant 0 : i32
    %c0_i32_2 = arith.constant 0 : i32
    return %arg0, %c0_i32, %c0_i32_0, %c0_i32_1 : i32, i32, i32, i32
  }
}

</mosaic_0001>

<bundles_post_ra>
// kernel: tpu_custom_call.1
= control target key start
LH: loop header
LB: loop body
LE: loop exit
PB: predicated region body
PF: predicated region fallthrough
CT: control target
= control target key end

     0   :  { %10 = vsyncpa [#allocation5], 0  ;;  %s15490_s0 = inlined_call_operand.vmem [shape: bf16[2,16,16,8], index: 0, kind: input, shape index: {}]   ;;  %s15491_s1 = inlined_call_operand.vmem [shape: bf16[9,8,128], index: 1, kind: input, shape index: {}]   ;;  %s15492_s2 = inlined_call_operand.hbm [shape: bf16[9,128,128], index: 2, kind: input, shape index: {}]   ;;  %s15493_s3 = inlined_call_operand.vmem [shape: bf16[8,128], index: 3, kind: input, shape index: {}]   ;;  %s15494_s4 = inlined_call_operand.vmem [shape: f32[1,128], index: 4, kind: input, shape index: {}]   ;;  %s15495_s5 = inlined_call_operand.hbm [shape: f32[2,16,16,128], index: 5, kind: output, shape index: {}]  }
   0x1   :  { %11 = vsyncpa [#allocation6], 0 }
   0x2   :  { %13 = vsyncpa [#allocation6 + $0x1], 0  ;;  %s12639_s18 = smov 0   ;;  %s12641_s19 = smov 0  }
   0x3   :  { %s12643_s20 = smov 0   ;;  %s12645_s21 = smov 0  }
   0x4 LB: > { %s12660_s22 = sadd.s32 4294967295, %s12600_s21   ;;  %s10322_s23 = sadd.s32 4294967294, %s12600_s21   ;;  %s12600_s21 = sphi %s12645_s21, %s15750_s21   ;;  %s12596_s20 = sphi %s12643_s20, %s15749_s20   ;;  %s12592_s19 = sphi %s12641_s19, %s15748_s19   ;;  %s12588_s18 = sphi %s12639_s18, %s15747_s18  }
   0x5   : > { %s12664_s24 = sadd.s32 1, %s12600_s21   ;;  %s136_s25 = sadd.s32 1, %s12596_s20 }
   0x6   : > { %s133_s26 = ssub.s32 %s12600_s21, %s12664_s24  ;;  %p146_p0 = scmp.ne.s32.totalorder %s12596_s20, %s12592_s19 }
   0x7   : > { %p134_p1 = scmp.eq.s32.totalorder %s133_s26, 0  ;;  %p147_p2 = scmp.eq.s32.totalorder %s12660_s22, 1 }
   0x8   : > { %p152_p3 = scmp.ne.s32.totalorder %s12592_s19, %s12588_s18  ;;  %p153_p4 = scmp.eq.s32.totalorder %s10322_s23, 1 }
   0x9   : > { %s12675_s27 = scalar_select %p134_p1, %s12596_s20, %s136_s25  }
   0xa   : > { %p12677_p5 = por %p147_p2, %p146_p0  ;;  %p12681_p6 = por %p153_p4, %p152_p3 }
   0xb   : > { %p10323_p7 = scmp.ge.s32.totalorder %s12600_s21, 1  ;;  %p160_p8 = scmp.lt.s32.totalorder %s12600_s21, 3 }
   0xc   : > { %s15512_s28 = scalar_select %p12677_p5, 1, 0 }
   0xd   : > { %s15513_s29 = scalar_select %p12681_p6, 1, 0 }
   0xe   : > { %p15496_p9 = scmp.eq.s32.totalorder %s12660_s22, 0  ;;  %p12688_p10 = pnand %p10323_p7, %p160_p8 }
   0xf   : > { %s12602_s6 = smov [#allocation4]   ;;  %s12506_s11 = scalar_lea.hbm %s15492_s2, 9216 }
  0x10   : > { %s15514_s30 = scalar_select %p12688_p10, 1, 0 }
  0x11   : > { %s175_s7 = sshll.u32 %s12602_s6, 4  ;;  %p12316_p11 = pneg %p12688_p10  ;;  %s176_s7 = int_to_ptr.vmem [resolvable:$true] %s175_s7 }
  0x12   : > { %p12507_p13 = scmp.ne.s32.totalorder %s15492_s2, %s12506_s11  ;;  %p12513_p3 = scmp.lt.u32.totalorder %s12506_s11, %s15492_s2 }
  0x13   : > { %p12696_p12 = pnand %p15496_p9, %p12316_p11 }
  0x15   : > { %p12508_p0 = pneg %p12696_p12 }
  0x17   : > { %p12509_p1 = pnand %p12508_p0, %p12507_p13 }
  0x19   : > { %p12510_p2 = pneg %p12509_p1 }
  0x1b   : > { %p12515_p4 = pnand %p12513_p3, %p12510_p2 }
  0x1d   : > { %12518 = shalt.err (!%p12515_p4)
}
  0x1e   : > { %s12519_s16 = scalar_lea.vmem %s176_s7, 9216  ;;  %p12527_p9 = scmp.lt.s32.totalorder %s176_s7, %s176_s7 }
  0x1f   : > { %p12520_p7 = scmp.ne.s32.totalorder %s176_s7, %s12519_s16  ;;  %p12528_p6 = scmp.lt.s32.totalorder %s12519_s16, %s12519_s16 }
  0x21   : > { %p12522_p8 = pnand %p12520_p7, %p12508_p0  ;;  %p12529_p5 = por %p12528_p6, %p12527_p9 }
  0x23   : > { %p12523_p11 = pneg %p12522_p8 }
  0x25   : > { %p12530_p10 = pnand %p12529_p5, %p12523_p11 }
  0x27   : > { %12533 = shalt.err (!%p12530_p10)
}
  0x28   : > { %s12603_s17 = smov 64   ;;  %s12604_s23 = smov 4  }
  0x29   : > { %12319 = dma.hbm_to_vmem [thread:$0]  (!%p12696_p12), %s15492_s2, 9216, %s176_s7, [#allocation5], %s12603_s17, %s12603_s17, %s12604_s23  }
  0x2a   : > { %p15516_p13 = scmp.ne.s32.totalorder %s15514_s30, 0 }
  0x2c   : > { %205 = sbr.rel (%p15516_p13) target bundleno = 1989 (0x7c5), region = 40 }
  0x33   : > { %p15517_p1 = scmp.eq.s32.totalorder %s12660_s22, 0 }
  0x35   : > { %12579 = dma.done.wait (%p15517_p1), [#allocation5], 9216   ;;  %p15518_p0 = pmov %p15517_p1 }
  0x36   : > { %vm15499_vm0 = vcmask 64512   ;;  %vm277_vm1 = vcmask 60416   ;;  %v12605_v0 = vmov 0   ;;  %vm296_vm2 = vcmask 64516   ;;  %p233_p5 = scmp.lt.s32.totalorder %s12660_s22, 1  ;;  %s230_s16 = sand.u32 1, %s12592_s19  }
  0x37   : > { %12581 = vsyncadd (%p15518_p0), [#allocation5], 4294958080  ;;  %272 = vst.msk [vmem:[#allocation2] sm:$0xff] %vm15499_vm0, %v12605_v0  ;;  %vm15502_vm3 = vcmask 1043456   ;;  %v10363_v1 = vld [vmem:[%s15491_s1 + $0x4] sm:$0xf] }
  0x38   : > { %273 = vst.msk [vmem:[#allocation2 + $0x8] sm:$0xff] %vm15499_vm0, %v12605_v0  ;;  %275 = vst.msk [vmem:[#allocation2 + $0x110] sm:$0xff] %vm15499_vm0, %v12605_v0  ;;  %s234_s30 = scalar_select %p233_p5, %s12660_s22, 1  ;;  %v781_v2 = vld [vmem:[%s15491_s1] sm:$0xf]  ;;  %12299 = vmatprep.subr.msk.bf16.mxu0 %vm15502_vm3, %v10363_v1  ;;  %v931_v3 = vsel %vm15502_vm3, %v10363_v1, 0  ;;  %12300 = vmatprep.subr.msk.bf16.mxu1 %vm15502_vm3, %v10363_v1 }
  0x39   : > { %276 = vst.msk [vmem:[#allocation2 + $0x118] sm:$0xff] %vm15499_vm0, %v12605_v0  ;;  %4980 = vst [vmem:[#allocation3] sm:$0xff] %v12605_v0  ;;  %11014 = vmatpush3.bf16.msra.mxu0 %v931_v3  ;;  %11786 = vmatpush3.bf16.msra.mxu1 %v931_v3  ;;  %v1143_v28 = vsel %vm15502_vm3, %v781_v2, 0  ;;  %v12930_v44 = vld [vmem:[%s15491_s1 + $0x8] sm:$0xf]  ;;  %s10328_s17 = sshll.u32 %s230_s16, 8 }
  0x3a   : > { %279 = vst.msk [vmem:[#allocation2 + $0x10] sm:$0xf] %vm277_vm1, %v12605_v0  ;;  %280 = vst.msk [vmem:[#allocation2 + $0x20] sm:$0xf] %vm277_vm1, %v12605_v0  ;;  %s10625_s6 = sshll.u32 %s234_s30, 7  ;;  %12301 = vmatprep.subr.msk.bf16.mxu0 %vm15502_vm3, %v781_v2  ;;  %s15359_s23 = scalar_lea.vmem [#allocation7], %s10328_s17 }
  0x3b   : > { %281 = vst.msk [vmem:[#allocation2 + $0x30] sm:$0xf] %vm277_vm1, %v12605_v0  ;;  %282 = vst.msk [vmem:[#allocation2 + $0x40] sm:$0xf] %vm277_vm1, %v12605_v0  ;;  %s12849_s9 = scalar_lea.vmem %s15490_s0, %s10625_s6  ;;  %vm15501_vm4 = vsmask.f32 4352 }
  0x3c   : > { %283 = vst.msk [vmem:[#allocation2 + $0x50] sm:$0xf] %vm277_vm1, %v12605_v0  ;;  %284 = vst.msk [vmem:[#allocation2 + $0x60] sm:$0xf] %vm277_vm1, %v12605_v0  ;;  %v12365_v8 = vld [vmem:[%s12849_s9] ss:$0 sps:$4 sm:$0xff]  }
  0x3d   : > { %285 = vst.msk [vmem:[#allocation2 + $0x70] sm:$0xf] %vm277_vm1, %v12605_v0  ;;  %286 = vst.msk [vmem:[#allocation2 + $0x80] sm:$0xf] %vm277_vm1, %v12605_v0  ;;  %v12366_v9 = vld [vmem:[%s12849_s9 + $0x4] ss:$0 sps:$4 sm:$0xff]  }
  0x3e   : > { %287 = vst.msk [vmem:[#allocation2 + $0x90] sm:$0xf] %vm277_vm1, %v12605_v0  ;;  %288 = vst.msk [vmem:[#allocation2 + $0xa0] sm:$0xf] %vm277_vm1, %v12605_v0  ;;  %v12861_v5 = vld [vmem:[#allocation2] sm:$0xf0] }
  0x3f   : > { %289 = vst.msk [vmem:[#allocation2 + $0xb0] sm:$0xf] %vm277_vm1, %v12605_v0  ;;  %290 = vst.msk [vmem:[#allocation2 + $0xc0] sm:$0xf] %vm277_vm1, %v12605_v0  ;;  %v12859_v4 = vld [vmem:[#allocation2 + $0x8] sm:$0xf] }
  0x40   : > { %291 = vst.msk [vmem:[#allocation2 + $0xd0] sm:$0xf] %vm277_vm1, %v12605_v0  ;;  %292 = vst.msk [vmem:[#allocation2 + $0xe0] sm:$0xf] %vm277_vm1, %v12605_v0  ;;  %v831_v6 = vrot.slane %v12861_v5, 4  ;;  %v832_v7 = vrot.slane %v12859_v4, 4 }
  0x41   : > { %293 = vst.msk [vmem:[#allocation2 + $0xf0] sm:$0xf] %vm277_vm1, %v12605_v0  ;;  %294 = vst.msk [vmem:[#allocation2 + $0x100] sm:$0xf] %vm277_vm1, %v12605_v0  ;;  %v12367_v11 = vld [vmem:[%s12849_s9 + $0x8] ss:$0 sps:$4 sm:$0xff]  }
  0x42   : > { %4981 = vst [vmem:[#allocation3 + $0x8] sm:$0xff] %v12605_v0  ;;  %4983 = vst [vmem:[#allocation3 + $0x110] sm:$0xff] %v12605_v0  ;;  %v833_v10 = vsel %vm15502_vm3, %v831_v6, %v832_v7  ;;  %v12368_v12 = vld [vmem:[%s12849_s9 + $0xc] ss:$0 sps:$4 sm:$0xff]   ;;  %v12369_v13 = vld [vmem:[%s12849_s9 + $0x10] ss:$0 sps:$4 sm:$0xff]  }
  0x43   : > { %4984 = vst [vmem:[#allocation3 + $0x118] sm:$0xff] %v12605_v0  ;;  %4986 = vst [vmem:[#allocation3 + $0x10] sm:$0xf] %v12605_v0  ;;  %11015 = vmatprep.mubr.msk.bf16.mxu0 %vm15499_vm0, %v833_v10  ;;  %v12370_v14 = vld [vmem:[%s12849_s9 + $0x14] ss:$0 sps:$4 sm:$0xff]   ;;  %v518_v51 = vshrl.u32 %v12859_v4, 16 }
  0x44   : > { %4987 = vst [vmem:[#allocation3 + $0x20] sm:$0xf] %v12605_v0  ;;  %4988 = vst [vmem:[#allocation3 + $0x30] sm:$0xf] %v12605_v0  ;;  %v12371_v15 = vld [vmem:[%s12849_s9 + $0x18] ss:$0 sps:$4 sm:$0xff]  }
  0x45   : > { %4989 = vst [vmem:[#allocation3 + $0x40] sm:$0xf] %v12605_v0  ;;  %4990 = vst [vmem:[#allocation3 + $0x50] sm:$0xf] %v12605_v0  ;;  %v12372_v16 = vld [vmem:[%s12849_s9 + $0x1c] ss:$0 sps:$4 sm:$0xff]  }
  0x46   : > { %4991 = vst [vmem:[#allocation3 + $0x60] sm:$0xf] %v12605_v0  ;;  %4992 = vst [vmem:[#allocation3 + $0x70] sm:$0xf] %v12605_v0  ;;  %v12373_v17 = vld [vmem:[%s12849_s9 + $0x20] ss:$0 sps:$4 sm:$0xff]  }
  0x47   : > { %4993 = vst [vmem:[#allocation3 + $0x80] sm:$0xf] %v12605_v0  ;;  %4994 = vst [vmem:[#allocation3 + $0x90] sm:$0xf] %v12605_v0  ;;  %v12374_v18 = vld [vmem:[%s12849_s9 + $0x24] ss:$0 sps:$4 sm:$0xff]  }
  0x48   : > { %4995 = vst [vmem:[#allocation3 + $0xa0] sm:$0xf] %v12605_v0  ;;  %4996 = vst [vmem:[#allocation3 + $0xb0] sm:$0xf] %v12605_v0  ;;  %v12375_v19 = vld [vmem:[%s12849_s9 + $0x28] ss:$0 sps:$4 sm:$0xff]  }
  0x49   : > { %4997 = vst [vmem:[#allocation3 + $0xc0] sm:$0xf] %v12605_v0  ;;  %4998 = vst [vmem:[#allocation3 + $0xd0] sm:$0xf] %v12605_v0  ;;  %v12376_v20 = vld [vmem:[%s12849_s9 + $0x2c] ss:$0 sps:$4 sm:$0xff]  }
  0x4a   : > { %4999 = vst [vmem:[#allocation3 + $0xe0] sm:$0xf] %v12605_v0  ;;  %5000 = vst [vmem:[#allocation3 + $0xf0] sm:$0xf] %v12605_v0  ;;  %v12377_v21 = vld [vmem:[%s12849_s9 + $0x30] ss:$0 sps:$4 sm:$0xff]  }
  0x4b   : > { %5001 = vst [vmem:[#allocation3 + $0x100] sm:$0xf] %v12605_v0  ;;  %5004 = vst [vmem:[#allocation3 + $0x18] sm:$0xf0] %v12605_v0  ;;  %v12378_v22 = vld [vmem:[%s12849_s9 + $0x34] ss:$0 sps:$4 sm:$0xff]  }
  0x4c   : > { %5005 = vst [vmem:[#allocation3 + $0x28] sm:$0xf0] %v12605_v0  ;;  %5006 = vst [vmem:[#allocation3 + $0x38] sm:$0xf0] %v12605_v0  ;;  %v521_v54 = vshll.u32 %v12859_v4, 16  ;;  %v520_v3 = vrot.slane %v518_v51, 3 }
  0x4d   : > { %5007 = vst [vmem:[#allocation3 + $0x48] sm:$0xf0] %v12605_v0  ;;  %5008 = vst [vmem:[#allocation3 + $0x58] sm:$0xf0] %v12605_v0  ;;  %v12380_v6 = vld [vmem:[%s12849_s9 + $0x3c] ss:$0 sps:$4 sm:$0xff]  }
  0x4e   : > { %5009 = vst [vmem:[#allocation3 + $0x68] sm:$0xf0] %v12605_v0  ;;  %5010 = vst [vmem:[#allocation3 + $0x78] sm:$0xf0] %v12605_v0  ;;  %v523_v4 = vrot.slane %v521_v54, 4  ;;  %s10626_s25 = sshll.u32 %s12660_s22, 12 }
  0x4f   : > { %5011 = vst [vmem:[#allocation3 + $0x88] sm:$0xf0] %v12605_v0  ;;  %5012 = vst [vmem:[#allocation3 + $0x98] sm:$0xf0] %v12605_v0  ;;  %vm15500_vm5 = vsmask.f32 3328  ;;  %s15440_s6 = scalar_lea.hbm %s15495_s5, %s10626_s25 }
  0x50   : > { %5013 = vst [vmem:[#allocation3 + $0xa8] sm:$0xf0] %v12605_v0  ;;  %5014 = vst [vmem:[#allocation3 + $0xb8] sm:$0xf0] %v12605_v0  ;;  %s10248_s26 = sshll.u32 %s15359_s23, 4  ;;  %s15449_s7 = scalar_lea.sflag [#allocation6], %s230_s16  ;;  %s15442_s26 = int_to_ptr.vmem [resolvable:$true] %s10248_s26 }
  0x51   : > { %5015 = vst [vmem:[#allocation3 + $0xc8] sm:$0xf0] %v12605_v0  ;;  %5016 = vst [vmem:[#allocation3 + $0xd8] sm:$0xf0] %v12605_v0  ;;  %s12534_s8 = scalar_lea.vmem %s15442_s26, 4096  ;;  %p15745_p9 = scmp.ne.s32.totalorder %s15512_s28, 0 }
  0x52   : > { %5017 = vst [vmem:[#allocation3 + $0xe8] sm:$0xf0] %v12605_v0  ;;  %5018 = vst [vmem:[#allocation3 + $0xf8] sm:$0xf0] %v12605_v0  ;;  %p12535_p6 = scmp.ne.s32.totalorder %s15442_s26, %s12534_s8  ;;  %s12606_s10 = smov [#allocation7]  }
  0x53   : > { %5019 = vst [vmem:[#allocation3 + $0x108] sm:$0xf0] %v12605_v0  ;;  %278 = vst.msk [vmem:[#allocation2] sm:$0xf] %vm277_vm1, %v12605_v0  ;;  %s12538_s11 = sshll.u32 %s12606_s10, 4  ;;  %s12539_s11 = int_to_ptr.vmem [resolvable:$false] %s12538_s11 }
  0x54   : > { %297 = vst.msk [vmem:[#allocation2 + $0x8] sm:$0xf0] %vm296_vm2, %v12605_v0  ;;  %298 = vst.msk [vmem:[#allocation2 + $0x18] sm:$0xf0] %vm296_vm2, %v12605_v0  ;;  %p12536_p10 = pnand %p12535_p6, %p15745_p9  ;;  %s12540_s12 = scalar_lea.vmem %s12539_s11, 8192 }
  0x55   : > { %299 = vst.msk [vmem:[#allocation2 + $0x28] sm:$0xf0] %vm296_vm2, %v12605_v0  ;;  %300 = vst.msk [vmem:[#allocation2 + $0x38] sm:$0xf0] %vm296_vm2, %v12605_v0  ;;  %p12541_p2 = scmp.lt.s32.totalorder %s15442_s26, %s12539_s11  ;;  %p12542_p3 = scmp.lt.s32.totalorder %s12540_s12, %s12534_s8 }
  0x56   : > { %301 = vst.msk [vmem:[#allocation2 + $0x48] sm:$0xf0] %vm296_vm2, %v12605_v0  ;;  %302 = vst.msk [vmem:[#allocation2 + $0x58] sm:$0xf0] %vm296_vm2, %v12605_v0  ;;  %p12537_p12 = pneg %p12536_p10 }
  0x57   : > { %303 = vst.msk [vmem:[#allocation2 + $0x68] sm:$0xf0] %vm296_vm2, %v12605_v0  ;;  %304 = vst.msk [vmem:[#allocation2 + $0x78] sm:$0xf0] %vm296_vm2, %v12605_v0  ;;  %p12543_p4 = por %p12542_p3, %p12541_p2 }
  0x58   : > { %305 = vst.msk [vmem:[#allocation2 + $0x88] sm:$0xf0] %vm296_vm2, %v12605_v0  ;;  %306 = vst.msk [vmem:[#allocation2 + $0x98] sm:$0xf0] %vm296_vm2, %v12605_v0 }
  0x59   : > { %307 = vst.msk [vmem:[#allocation2 + $0xa8] sm:$0xf0] %vm296_vm2, %v12605_v0  ;;  %308 = vst.msk [vmem:[#allocation2 + $0xb8] sm:$0xf0] %vm296_vm2, %v12605_v0  ;;  %p12544_p7 = pnand %p12543_p4, %p12537_p12 }
  0x5a   : > { %309 = vst.msk [vmem:[#allocation2 + $0xc8] sm:$0xf0] %vm296_vm2, %v12605_v0  ;;  %310 = vst.msk [vmem:[#allocation2 + $0xd8] sm:$0xf0] %vm296_vm2, %v12605_v0  ;;  %v476_v42 = vld [vmem:[#allocation2] sm:$0xf8] }
  0x5b   : > { %311 = vst.msk [vmem:[#allocation2 + $0xe8] sm:$0xf0] %vm296_vm2, %v12605_v0  ;;  %312 = vst.msk [vmem:[#allocation2 + $0xf8] sm:$0xf0] %vm296_vm2, %v12605_v0  ;;  %v510_v50 = vshrl.u32 %v476_v42, 16  ;;  %v513_v57 = vshll.u32 %v476_v42, 16 }
  0x5c   : > { %313 = vst.msk [vmem:[#allocation2 + $0x108] sm:$0xf0] %vm296_vm2, %v12605_v0  ;;  %314 = vst.msk [vmem:[#allocation2 + $0x118] sm:$0xf0] %vm296_vm2, %v12605_v0 }
  0x5d   : > { %295 = vst.msk [vmem:[#allocation2 + $0x110] sm:$0xf] %vm277_vm1, %v12605_v0  ;;  %4985 = vst [vmem:[#allocation3] sm:$0xf] %v12605_v0  ;;  %v512_v58 = vrot.slane %v510_v50, 3  ;;  %v515_v2 = vrot.slane %v513_v57, 4 }
  0x5e   : > { %5002 = vst [vmem:[#allocation3 + $0x110] sm:$0xf] %v12605_v0  ;;  %5003 = vst [vmem:[#allocation3 + $0x8] sm:$0xf0] %v12605_v0  ;;  %v1646_v57 = vsel %vm15502_vm3, %v12930_v44, 0 }
  0x5f   : > { %5020 = vst [vmem:[#allocation3 + $0x118] sm:$0xf0] %v12605_v0  ;;  %444 = vst.msk [vmem:[#allocation2 + $0x10] sm:$0xf0] %vm296_vm2, %v12365_v8  ;;  %v12379_v0 = vld [vmem:[%s12849_s9 + $0x38] ss:$0 sps:$4 sm:$0xff]  }
  0x60   : > { %445 = vst.msk [vmem:[#allocation2 + $0x18] sm:$0xf] %vm277_vm1, %v12366_v9  ;;  %447 = vst.msk [vmem:[#allocation2 + $0x28] sm:$0xf] %vm277_vm1, %v12368_v12 }
  0x61   : > { %446 = vst.msk [vmem:[#allocation2 + $0x20] sm:$0xf0] %vm296_vm2, %v12367_v11  ;;  %448 = vst.msk [vmem:[#allocation2 + $0x30] sm:$0xf0] %vm296_vm2, %v12369_v13  ;;  %v12381_v13 = vld [vmem:[%s12849_s9 + $0x40] ss:$0 sps:$4 sm:$0xff]  }
  0x62   : > { %449 = vst.msk [vmem:[#allocation2 + $0x38] sm:$0xf] %vm277_vm1, %v12370_v14  ;;  %451 = vst.msk [vmem:[#allocation2 + $0x48] sm:$0xf] %vm277_vm1, %v12372_v16 }
  0x63   : > { %450 = vst.msk [vmem:[#allocation2 + $0x40] sm:$0xf0] %vm296_vm2, %v12371_v15  ;;  %452 = vst.msk [vmem:[#allocation2 + $0x50] sm:$0xf0] %vm296_vm2, %v12373_v17 }
  0x64   : > { %453 = vst.msk [vmem:[#allocation2 + $0x58] sm:$0xf] %vm277_vm1, %v12374_v18  ;;  %455 = vst.msk [vmem:[#allocation2 + $0x68] sm:$0xf] %vm277_vm1, %v12376_v20  ;;  %v12382_v18 = vld [vmem:[%s12849_s9 + $0x44] ss:$0 sps:$4 sm:$0xff]   ;;  %v524_v20 = vor.u32 %v523_v4, %v520_v3 }
  0x65   : > { %454 = vst.msk [vmem:[#allocation2 + $0x60] sm:$0xf0] %vm296_vm2, %v12375_v19  ;;  %456 = vst.msk [vmem:[#allocation2 + $0x70] sm:$0xf0] %vm296_vm2, %v12377_v21  ;;  %v516_v19 = vor.u32 %v515_v2, %v512_v58 }
  0x66   : > { %v12895_v24 = vld [vmem:[#allocation2 + $0x10] sm:$0xf0]  ;;  %457 = vst.msk [vmem:[#allocation2 + $0x78] sm:$0xf] %vm277_vm1, %v12378_v22  ;;  %459 = vst.msk [vmem:[#allocation2 + $0x88] sm:$0xf] %vm277_vm1, %v12380_v6 }
  0x67   : > { %v12893_v23 = vld [vmem:[#allocation2 + $0x18] sm:$0xf]  ;;  %v834_v25 = vrot.slane %v12895_v24, 4  ;;  %v12906_v29 = vld [vmem:[#allocation2 + $0x28] sm:$0xf] }
  0x68   : > { %v835_v26 = vrot.slane %v12893_v23, 4  ;;  %v12901_v27 = vld [vmem:[#allocation2 + $0x20] sm:$0xf0]  ;;  %v838_v32 = vrot.slane %v12906_v29, 4  ;;  %v12914_v34 = vld [vmem:[#allocation2 + $0x30] sm:$0xf0] }
  0x69   : > { %v837_v30 = vrot.slane %v12901_v27, 4  ;;  %v12911_v33 = vld [vmem:[#allocation2 + $0x38] sm:$0xf]  ;;  %v840_v36 = vrot.slane %v12914_v34, 4  ;;  %v12919_v38 = vld [vmem:[#allocation2 + $0x48] sm:$0xf] }
  0x6a   : > { %v836_v31 = vsel %vm15502_vm3, %v834_v25, %v835_v26  ;;  %v841_v37 = vrot.slane %v12911_v33, 4  ;;  %v12921_v39 = vld [vmem:[#allocation2 + $0x40] sm:$0xf0]  ;;  %v844_v41 = vrot.slane %v12919_v38, 4  ;;  %v12935_v47 = vld [vmem:[#allocation2 + $0x50] sm:$0xf0] }
  0x6b   : > { %11016 = vmatmul.mubr.msk.bf16.vlgmr.msra.gmra.mrb[0].mxu0 %vm15499_vm0, %v836_v31  ;;  %v839_v35 = vsel %vm15502_vm3, %v837_v30, %v838_v32  ;;  %v843_v40 = vrot.slane %v12921_v39, 4  ;;  %v12933_v46 = vld [vmem:[#allocation2 + $0x58] sm:$0xf]  ;;  %v12939_v48 = vld [vmem:[#allocation2 + $0x68] sm:$0xf]  ;;  %v846_v52 = vrot.slane %v12935_v47, 4 }
  0x6c   : > { %11048 = vmatpush3.bf16.msra.mxu0 %v1143_v28  ;;  %11019 = vmatprep.mubr.msk.bf16.mxu0 %vm15499_vm0, %v839_v35  ;;  %v842_v43 = vsel %vm15502_vm3, %v840_v36, %v841_v37  ;;  %v12941_v49 = vld [vmem:[#allocation2 + $0x60] sm:$0xf0]  ;;  %v847_v53 = vrot.slane %v12933_v46, 4  ;;  %v850_v56 = vrot.slane %v12939_v48, 4  ;;  %v12953_v60 = vld [vmem:[#allocation2 + $0x70] sm:$0xf0]  ;;  %v525_v37 = vsel %vm15501_vm4, %v516_v19, %v524_v20 }
  0x6d   : > { %v845_v45 = vsel %vm15502_vm3, %v843_v40, %v844_v41  ;;  %12302 = vmatprep.subr.msk.bf16.mxu0 %vm15502_vm3, %v12930_v44  ;;  %v849_v55 = vrot.slane %v12941_v49, 4  ;;  %v12951_v59 = vld [vmem:[#allocation2 + $0x78] sm:$0xf]  ;;  %v478_v61 = vld [vmem:[#allocation2 + $0x10] sm:$0xf8]  ;;  %v535_v7 = vshrl.u32 %v12893_v23, 16 }
  0x6e   : > { %v848_v62 = vsel %vm15502_vm3, %v846_v52, %v847_v53  ;;  %v480_v63 = vld [vmem:[#allocation2 + $0x20] sm:$0xf8]  ;;  %v538_v8 = vshll.u32 %v12893_v23, 16  ;;  %458 = vst.msk [vmem:[#allocation2 + $0x80] sm:$0xf0] %vm296_vm2, %v12379_v0  ;;  %v527_v9 = vshrl.u32 %v478_v61, 16 }
  0x6f   : > { %v851_v1 = vsel %vm15502_vm3, %v849_v55, %v850_v56  ;;  %v530_v10 = vshll.u32 %v478_v61, 16  ;;  %v544_v11 = vshrl.u32 %v480_v63, 16  ;;  %v547_v12 = vshll.u32 %v480_v63, 16  ;;  %460 = vst.msk [vmem:[#allocation2 + $0x90] sm:$0xf0] %vm296_vm2, %v12381_v13 }
  0x70   : > { %v852_v14 = vrot.slane %v12953_v60, 4  ;;  %v853_v15 = vrot.slane %v12951_v59, 4  ;;  %v552_v16 = vshrl.u32 %v12906_v29, 16  ;;  %v555_v17 = vshll.u32 %v12906_v29, 16  ;;  %v482_v23 = vld [vmem:[#allocation2 + $0x30] sm:$0xf8] }
  0x71   : > { %v537_v21 = vrot.slane %v535_v7, 3  ;;  %v540_v22 = vrot.slane %v538_v8, 4  ;;  %461 = vst.msk [vmem:[#allocation2 + $0x98] sm:$0xf] %vm277_vm1, %v12382_v18  ;;  %v529_v25 = vrot.slane %v527_v9, 3  ;;  %v532_v26 = vrot.slane %v530_v10, 4 }
  0x72   : > { %v546_v28 = vrot.slane %v544_v11, 3  ;;  %v549_v30 = vrot.slane %v547_v12, 4  ;;  %v12383_v31 = vld [vmem:[%s12849_s9 + $0x48] ss:$0 sps:$4 sm:$0xff]   ;;  %v854_v29 = vsel %vm15502_vm3, %v852_v14, %v853_v15  ;;  %v554_v32 = vrot.slane %v552_v16, 3 }
  0x73   : > { %11020 = vmatmul.mubr.msk.bf16.gmra.mrb[4].mxu0 %vm15499_vm0, %v842_v43  ;;  %v557_v35 = vrot.slane %v555_v17, 4  ;;  %v12384_v36 = vld [vmem:[%s12849_s9 + $0x4c] ss:$0 sps:$4 sm:$0xff]   ;;  %v484_v40 = vld [vmem:[#allocation2 + $0x40] sm:$0xf8]  ;;  %v541_v41 = vor.u32 %v540_v22, %v537_v21  ;;  %v561_v42 = vshrl.u32 %v482_v23, 16  ;;  %v533_v43 = vor.u32 %v532_v26, %v529_v25 }
  0x74   : > { %11023 = vmatprep.mubr.msk.bf16.mxu0 %vm15499_vm0, %v845_v45  ;;  %462 = vst.msk [vmem:[#allocation2 + $0xa0] sm:$0xf0] %vm296_vm2, %v12383_v31  ;;  %v564_v45 = vshll.u32 %v482_v23, 16  ;;  %v569_v50 = vshrl.u32 %v12911_v33, 16  ;;  %v572_v51 = vshll.u32 %v12911_v33, 16  ;;  %v550_v53 = vor.u32 %v549_v30, %v546_v28 }
  0x75   : > { %463 = vst.msk [vmem:[#allocation2 + $0xa8] sm:$0xf] %vm277_vm1, %v12384_v36  ;;  %v12385_v52 = vld [vmem:[%s12849_s9 + $0x50] ss:$0 sps:$4 sm:$0xff]   ;;  %v558_v54 = vor.u32 %v557_v35, %v554_v32  ;;  %v578_v55 = vshrl.u32 %v484_v40, 16  ;;  %v581_v56 = vshll.u32 %v484_v40, 16  ;;  %v542_v4 = vsel %vm15501_vm4, %v533_v43, %v541_v41 }
  0x76   : > { %v586_v58 = vshrl.u32 %v12919_v38, 16  ;;  %v589_v61 = vshll.u32 %v12919_v38, 16  ;;  %464 = vst.msk [vmem:[#allocation2 + $0xb0] sm:$0xf0] %vm296_vm2, %v12385_v52  ;;  %v486_v33 = vld [vmem:[#allocation2 + $0x50] sm:$0xf8] }
  0x77   : > { %v488_v63 = vld [vmem:[#allocation2 + $0x60] sm:$0xf8]  ;;  %v563_v0 = vrot.slane %v561_v42, 3  ;;  %v571_v2 = vrot.slane %v569_v50, 3  ;;  %v574_v3 = vrot.slane %v572_v51, 4  ;;  %v559_v44 = vsel %vm15501_vm4, %v550_v53, %v558_v54 }
  0x78   : > { %v580_v6 = vrot.slane %v578_v55, 3  ;;  %v583_v7 = vrot.slane %v581_v56, 4  ;;  %v12387_v8 = vld [vmem:[%s12849_s9 + $0x58] ss:$0 sps:$4 sm:$0xff]   ;;  %v12388_v38 = vld [vmem:[%s12849_s9 + $0x5c] ss:$0 sps:$4 sm:$0xff]  }
  0x79   : > { %v588_v9 = vrot.slane %v586_v58, 3  ;;  %v591_v10 = vrot.slane %v589_v61, 4  ;;  %v595_v11 = vshrl.u32 %v486_v33, 16  ;;  %v598_v12 = vshll.u32 %v486_v33, 16  ;;  %466 = vst.msk [vmem:[#allocation2 + $0xc0] sm:$0xf0] %vm296_vm2, %v12387_v8 }
  0x7a   : > { %v603_v13 = vshrl.u32 %v12933_v46, 16  ;;  %v606_v14 = vshll.u32 %v12933_v46, 16  ;;  %v612_v15 = vshrl.u32 %v488_v63, 16  ;;  %v615_v16 = vshll.u32 %v488_v63, 16  ;;  %467 = vst.msk [vmem:[#allocation2 + $0xc8] sm:$0xf] %vm277_vm1, %v12388_v38 }
  0x7b   : > { %11024 = vmatmul.mubr.msk.bf16.gmra.mrb[8].mxu0 %vm15499_vm0, %v848_v62  ;;  %v12386_v62 = vld [vmem:[%s12849_s9 + $0x54] ss:$0 sps:$4 sm:$0xff]   ;;  %v620_v17 = vshrl.u32 %v12939_v48, 16  ;;  %v623_v18 = vshll.u32 %v12939_v48, 16  ;;  %v12389_v19 = vld [vmem:[%s12849_s9 + $0x60] ss:$0 sps:$4 sm:$0xff]   ;;  %v575_v46 = vor.u32 %v574_v3, %v571_v2  ;;  %v584_v21 = vor.u32 %v583_v7, %v580_v6 }
  0x7c   : > { %11027 = vmatprep.mubr.msk.bf16.mxu0 %vm15499_vm0, %v851_v1  ;;  %v566_v1 = vrot.slane %v564_v45, 4  ;;  %465 = vst.msk [vmem:[#allocation2 + $0xb8] sm:$0xf] %vm277_vm1, %v12386_v62  ;;  %v592_v22 = vor.u32 %v591_v10, %v588_v9  ;;  %v597_v23 = vrot.slane %v595_v11, 3  ;;  %v600_v25 = vrot.slane %v598_v12, 4 }
  0x7d   : > { %v12390_v26 = vld [vmem:[%s12849_s9 + $0x64] ss:$0 sps:$4 sm:$0xff]   ;;  %468 = vst.msk [vmem:[#allocation2 + $0xd0] sm:$0xf0] %vm296_vm2, %v12389_v19  ;;  %v605_v28 = vrot.slane %v603_v13, 3  ;;  %v608_v30 = vrot.slane %v606_v14, 4 }
  0x7e   : > { %v567_v20 = vor.u32 %v566_v1, %v563_v0  ;;  %v490_v31 = vld [vmem:[#allocation2 + $0x70] sm:$0xf8]  ;;  %v12391_v48 = vld [vmem:[%s12849_s9 + $0x68] ss:$0 sps:$4 sm:$0xff]   ;;  %v617_v32 = vrot.slane %v615_v16, 4  ;;  %v622_v35 = vrot.slane %v620_v17, 3  ;;  %v593_v42 = vsel %vm15501_vm4, %v584_v21, %v592_v22 }
  0x7f   : > { %v625_v36 = vrot.slane %v623_v18, 4  ;;  %469 = vst.msk [vmem:[#allocation2 + $0xd8] sm:$0xf] %vm277_vm1, %v12390_v26  ;;  %v12393_v41 = vld [vmem:[%s12849_s9 + $0x70] ss:$0 sps:$4 sm:$0xff]   ;;  %v601_v51 = vor.u32 %v600_v25, %v597_v23  ;;  %v609_v52 = vor.u32 %v608_v30, %v605_v28  ;;  %v629_v53 = vshrl.u32 %v490_v31, 16 }
  0x80   : > { %v576_v40 = vsel %vm15501_vm4, %v567_v20, %v575_v46  ;;  %470 = vst.msk [vmem:[#allocation2 + $0xe0] sm:$0xf0] %vm296_vm2, %v12391_v48  ;;  %v492_v43 = vld [vmem:[#allocation2 + $0x80] sm:$0xf8]  ;;  %v493_v45 = vld [vmem:[#allocation2 + $0x88] sm:$0xf] }
  0x81   : > { %v12394_v50 = vld [vmem:[%s12849_s9 + $0x74] ss:$0 sps:$4 sm:$0xff]   ;;  %472 = vst.msk [vmem:[#allocation2 + $0xf0] sm:$0xf0] %vm296_vm2, %v12393_v41  ;;  %v632_v54 = vshll.u32 %v490_v31, 16  ;;  %v637_v58 = vshrl.u32 %v12951_v59, 16  ;;  %v610_v1 = vsel %vm15501_vm4, %v601_v51, %v609_v52 }
  0x82   : > { %v13020_v55 = vld [vmem:[%s15491_s1 + $0xc] sm:$0xf]  ;;  %v640_v61 = vshll.u32 %v12951_v59, 16  ;;  %473 = vst.msk [vmem:[#allocation2 + $0xf8] sm:$0xf] %vm277_vm1, %v12394_v50  ;;  %v646_v62 = vshrl.u32 %v492_v43, 16 }
  0x83   : > { %11028 = vmatmul.mubr.msk.bf16.gmra.mrb[12].mxu0 %vm15499_vm0, %v854_v29  ;;  %v614_v29 = vrot.slane %v612_v15, 3  ;;  %v649_v33 = vshll.u32 %v492_v43, 16  ;;  %v654_v63 = vshrl.u32 %v493_v45, 16  ;;  %v657_v0 = vshll.u32 %v493_v45, 16  ;;  %v494_v3 = vld [vmem:[#allocation2 + $0x90] sm:$0xf8] }
  0x84   : > { %11049 = vmatprep.mubr.msk.bf16.mxu0 %vm15499_vm0, %v525_v37  ;;  %v12392_v37 = vld [vmem:[%s12849_s9 + $0x6c] ss:$0 sps:$4 sm:$0xff]   ;;  %v631_v2 = vrot.slane %v629_v53, 3  ;;  %v634_v6 = vrot.slane %v632_v54, 4  ;;  %v639_v7 = vrot.slane %v637_v58, 3  ;;  %v642_v8 = vrot.slane %v640_v61, 4 }
  0x85   : > { %471 = vst.msk [vmem:[#allocation2 + $0xe8] sm:$0xf] %vm277_vm1, %v12392_v37  ;;  %v618_v56 = vor.u32 %v617_v32, %v614_v29  ;;  %v648_v59 = vrot.slane %v646_v62, 3  ;;  %v651_v38 = vrot.slane %v649_v33, 4  ;;  %v656_v9 = vrot.slane %v654_v63, 3 }
  0x86   : > { %v659_v10 = vrot.slane %v657_v0, 4  ;;  %v496_v11 = vld [vmem:[#allocation2 + $0xa0] sm:$0xf8]  ;;  %v663_v12 = vshrl.u32 %v494_v3, 16  ;;  %v666_v13 = vshll.u32 %v494_v3, 16  ;;  %v635_v17 = vor.u32 %v634_v6, %v631_v2 }
  0x87   : > { %v497_v16 = vld [vmem:[#allocation2 + $0xa8] sm:$0xf]  ;;  %v643_v18 = vor.u32 %v642_v8, %v639_v7  ;;  %v680_v19 = vshrl.u32 %v496_v11, 16  ;;  %v683_v20 = vshll.u32 %v496_v11, 16  ;;  %v652_v46 = vor.u32 %v651_v38, %v648_v59  ;;  %v498_v32 = vld [vmem:[#allocation2 + $0xb0] sm:$0xf8] }
  0x88   : > { %v660_v21 = vor.u32 %v659_v10, %v656_v9  ;;  %v688_v22 = vshrl.u32 %v497_v16, 16  ;;  %v691_v23 = vshll.u32 %v497_v16, 16  ;;  %v665_v25 = vrot.slane %v663_v12, 3  ;;  %v500_v41 = vld [vmem:[#allocation2 + $0xc0] sm:$0xf8] }
  0x89   : > { %v668_v26 = vrot.slane %v666_v13, 4  ;;  %v644_v31 = vsel %vm15501_vm4, %v635_v17, %v643_v18  ;;  %v682_v48 = vrot.slane %v680_v19, 3  ;;  %v685_v29 = vrot.slane %v683_v20, 4  ;;  %v502_v7 = vld [vmem:[#allocation2 + $0xd0] sm:$0xf8] }
  0x8a   : > { %v690_v37 = vrot.slane %v688_v22, 3  ;;  %v697_v50 = vshrl.u32 %v498_v32, 16  ;;  %v700_v51 = vshll.u32 %v498_v32, 16  ;;  %v714_v54 = vshrl.u32 %v500_v41, 16  ;;  %v503_v59 = vld [vmem:[#allocation2 + $0xd8] sm:$0xf] }
  0x8b   : > { %11050 = vmatmul.mubr.msk.bf16.vlgmr.msra.gmra.mrb[0].mxu0 %vm15499_vm0, %v542_v4  ;;  %v495_v4 = vld [vmem:[#allocation2 + $0x98] sm:$0xf]  ;;  %v669_v43 = vor.u32 %v668_v26, %v665_v25  ;;  %v686_v61 = vor.u32 %v685_v29, %v682_v48  ;;  %v504_v38 = vld [vmem:[#allocation2 + $0xe0] sm:$0xf8]  ;;  %v731_v12 = vshrl.u32 %v502_v7, 16  ;;  %v734_v13 = vshll.u32 %v502_v7, 16 }
  0x8c   : > { %11082 = vmatpush3.bf16.msra.mxu0 %v1646_v57  ;;  %11053 = vmatprep.mubr.msk.bf16.mxu0 %vm15499_vm0, %v559_v44  ;;  %v626_v57 = vor.u32 %v625_v36, %v622_v35  ;;  %v671_v14 = vshrl.u32 %v495_v4, 16  ;;  %v674_v15 = vshll.u32 %v495_v4, 16  ;;  %v499_v35 = vld [vmem:[#allocation2 + $0xb8] sm:$0xf]  ;;  %v661_v36 = vsel %vm15501_vm4, %v652_v46, %v660_v21  ;;  %v505_v9 = vld [vmem:[#allocation2 + $0xe8] sm:$0xf] }
  0x8d   : > { %12303 = vmatprep.subr.msk.bf16.mxu0 %vm15502_vm3, %v13020_v55  ;;  %v705_v52 = vshrl.u32 %v499_v35, 16  ;;  %v708_v53 = vshll.u32 %v499_v35, 16  ;;  %v699_v63 = vrot.slane %v697_v50, 3  ;;  %v702_v0 = vrot.slane %v700_v51, 4  ;;  %v507_v35 = vld [vmem:[#allocation2 + $0xf8] sm:$0xf] }
  0x8e   : > { %v627_v44 = vsel %vm15501_vm4, %v618_v56, %v626_v57  ;;  %v673_v28 = vrot.slane %v671_v14, 3  ;;  %v676_v30 = vrot.slane %v674_v15, 4  ;;  %v717_v56 = vshll.u32 %v500_v41, 16 }
  0x8f   : > { %v710_v2 = vrot.slane %v708_v53, 4  ;;  %v716_v3 = vrot.slane %v714_v54, 3  ;;  %v703_v10 = vor.u32 %v702_v0, %v699_v63  ;;  %v739_v16 = vshrl.u32 %v503_v59, 16  ;;  %v1307_v63 = vld [vmem:[#allocation2 + $0x18] sm:$0x1f] }
  0x90   : > { %v677_v45 = vor.u32 %v676_v30, %v673_v28  ;;  %v719_v4 = vrot.slane %v717_v56, 4  ;;  %v742_v17 = vshll.u32 %v503_v59, 16  ;;  %v748_v18 = vshrl.u32 %v504_v38, 16  ;;  %v506_v30 = vld [vmem:[#allocation2 + $0xf0] sm:$0xf8] }
  0x91   : > { %v751_v19 = vshll.u32 %v504_v38, 16  ;;  %v756_v20 = vshrl.u32 %v505_v9, 16  ;;  %v759_v46 = vshll.u32 %v505_v9, 16  ;;  %v733_v22 = vrot.slane %v731_v12, 3 }
  0x92   : > { %v678_v33 = vsel %vm15501_vm4, %v669_v43, %v677_v45  ;;  %v720_v14 = vor.u32 %v719_v4, %v716_v3  ;;  %v736_v25 = vrot.slane %v734_v13, 4  ;;  %v741_v26 = vrot.slane %v739_v16, 3  ;;  %v1308_v4 = vld [vmem:[#allocation2 + $0x28] sm:$0x1f] }
  0x93   : > { %11054 = vmatmul.mubr.msk.bf16.gmra.mrb[4].mxu0 %vm15499_vm0, %v576_v40  ;;  %v693_v40 = vrot.slane %v691_v23, 4  ;;  %v744_v28 = vrot.slane %v742_v17, 4  ;;  %v753_v48 = vrot.slane %v751_v19, 4  ;;  %v758_v29 = vrot.slane %v756_v20, 3 }
  0x94   : > { %11057 = vmatprep.mubr.msk.bf16.mxu0 %vm15499_vm0, %v593_v42  ;;  %v501_v42 = vld [vmem:[#allocation2 + $0xc8] sm:$0xf]  ;;  %v761_v32 = vrot.slane %v759_v46, 4  ;;  %v765_v41 = vshrl.u32 %v506_v30, 16  ;;  %v737_v43 = vor.u32 %v736_v25, %v733_v22  ;;  %v773_v50 = vshrl.u32 %v507_v35, 16 }
  0x95   : > { %v722_v57 = vshrl.u32 %v501_v42, 16  ;;  %v725_v58 = vshll.u32 %v501_v42, 16  ;;  %v694_v62 = vor.u32 %v693_v40, %v690_v37  ;;  %v1324_v37 = vshrl.u32 %v12861_v5, 16 }
  0x96   : > { %v1327_v40 = vshll.u32 %v12861_v5, 16  ;;  %v768_v42 = vshll.u32 %v506_v30, 16  ;;  %v745_v45 = vor.u32 %v744_v28, %v741_v26  ;;  %v776_v51 = vshll.u32 %v507_v35, 16  ;;  %v12395_v35 = vld [vmem:[%s12849_s9 + $0x78] ss:$0 sps:$4 sm:$0xff]  }
  0x97   : > { %v727_v6 = vrot.slane %v725_v58, 4  ;;  %v695_v8 = vsel %vm15501_vm4, %v686_v61, %v694_v62  ;;  %v762_v53 = vor.u32 %v761_v32, %v758_v29  ;;  %v775_v62 = vrot.slane %v773_v50, 3  ;;  %474 = vst.msk [vmem:[#allocation2 + $0x100] sm:$0xf0] %vm296_vm2, %v12395_v35  ;;  %v1311_v50 = vld [vmem:[#allocation2 + $0x58] sm:$0x1f] }
  0x98   : > { %v770_v58 = vrot.slane %v768_v42, 4  ;;  %v746_v61 = vsel %vm15501_vm4, %v737_v43, %v745_v45  ;;  %v778_v5 = vrot.slane %v776_v51, 4  ;;  %v1352_v59 = vshll.u32 %v1307_v63, 16  ;;  %v12396_v42 = vld [vmem:[%s12849_s9 + $0x7c] ss:$0 sps:$4 sm:$0xff]  }
  0x99   : > { %v1358_v38 = vshrl.u32 %v12901_v27, 16  ;;  %v1369_v12 = vshll.u32 %v1308_v4, 16  ;;  %v1375_v28 = vshrl.u32 %v12914_v34, 16  ;;  %v1378_v30 = vshll.u32 %v12914_v34, 16  ;;  %475 = vst.msk [vmem:[#allocation2 + $0x108] sm:$0xf] %vm277_vm1, %v12396_v42 }
  0x9a   : > { %v779_v9 = vor.u32 %v778_v5, %v775_v62  ;;  %v1354_v17 = vrot.slane %v1352_v59, 5  ;;  %v2196_v43 = vsel %vm15502_vm3, %v13020_v55, 0  ;;  %v1409_v62 = vshrl.u32 %v12935_v47, 16  ;;  %v13075_v5 = vld [vmem:[%s15491_s1 + $0x10] sm:$0xf] }
  0x9b   : > { %11058 = vmatmul.mubr.msk.bf16.gmra.mrb[8].mxu0 %vm15499_vm0, %v610_v1  ;;  %v707_v1 = vrot.slane %v705_v52, 3  ;;  %v1377_v34 = vrot.slane %v1375_v28, 4  ;;  %v1380_v45 = vrot.slane %v1378_v30, 5  ;;  %v1412_v55 = vshll.u32 %v12935_v47, 16  ;;  %v791_v28 = vld [vmem:[#allocation2 + $0x90] sm:$0xf0] }
  0x9c   : > { %11061 = vmatprep.mubr.msk.bf16.mxu0 %vm15499_vm0, %v627_v44  ;;  %v724_v44 = vrot.slane %v722_v57, 3  ;;  %v767_v57 = vrot.slane %v765_v41, 3  ;;  %v1315_v30 = vld [vmem:[#allocation2 + $0x98] sm:$0x1f] }
  0x9d   : > { %v711_v11 = vor.u32 %v710_v2, %v707_v1  ;;  %v1329_v1 = vrot.slane %v1327_v40, 5 }
  0x9e   : > { %v728_v15 = vor.u32 %v727_v6, %v724_v44  ;;  %v1341_v44 = vshrl.u32 %v12895_v24, 16  ;;  %v1344_v6 = vshll.u32 %v12895_v24, 16  ;;  %v771_v7 = vor.u32 %v770_v58, %v767_v57 }
  0x9f   : > { %v712_v21 = vsel %vm15501_vm4, %v703_v10, %v711_v11  ;;  %v1361_v10 = vshll.u32 %v12901_v27, 16  ;;  %v1366_v11 = vshrl.u32 %v1308_v4, 16  ;;  %v1310_v27 = vld [vmem:[#allocation2 + $0x48] sm:$0x1f] }
  0xa0   : > { %v729_v23 = vsel %vm15501_vm4, %v720_v14, %v728_v15  ;;  %v1343_v15 = vrot.slane %v1341_v44, 4  ;;  %v1346_v16 = vrot.slane %v1344_v6, 5  ;;  %v780_v19 = vsel %vm15501_vm4, %v771_v7, %v779_v9  ;;  %v1313_v9 = vld [vmem:[#allocation2 + $0x78] sm:$0x1f] }
  0xa1   : > { %v1363_v20 = vrot.slane %v1361_v10, 5  ;;  %v1368_v46 = vrot.slane %v1366_v11, 4  ;;  %v1400_v40 = vshrl.u32 %v1310_v27, 16  ;;  %v1403_v41 = vshll.u32 %v1310_v27, 16 }
  0xa2   : > { %v1347_v25 = vor.u32 %v1346_v16, %v1343_v15  ;;  %v1411_v7 = vrot.slane %v1409_v62, 4  ;;  %v1314_v16 = vld [vmem:[#allocation2 + $0x88] sm:$0x1f]  ;;  %v793_v62 = vld [vmem:[#allocation2 + $0xb0] sm:$0xf0] }
  0xa3   : > { %11062 = vmatmul.mubr.msk.bf16.gmra.mrb[12].mxu0 %vm15499_vm0, %v644_v31  ;;  %v750_v31 = vrot.slane %v748_v18, 3  ;;  %v1360_v18 = vrot.slane %v1358_v38, 4  ;;  %v1402_v58 = vrot.slane %v1400_v40, 4 }
  0xa4   : > { %11065 = vmatprep.mubr.msk.bf16.mxu0 %vm15499_vm0, %v661_v36  ;;  %v1306_v36 = vld [vmem:[#allocation2 + $0x8] sm:$0x1f] }
  0xa5   : > { %v754_v52 = vor.u32 %v753_v48, %v750_v31  ;;  %v1332_v54 = vshrl.u32 %v1306_v36, 16  ;;  %v1335_v56 = vshll.u32 %v1306_v36, 16  ;;  %v1364_v31 = vor.u32 %v1363_v20, %v1360_v18 }
  0xa6   : > { %v1392_v36 = vshrl.u32 %v12921_v39, 16  ;;  %v1443_v18 = vshrl.u32 %v12953_v60, 16  ;;  %v1451_v20 = vshrl.u32 %v1313_v9, 16 }
  0xa7   : > { %v763_v0 = vsel %vm15501_vm4, %v754_v52, %v762_v53  ;;  %v1334_v2 = vrot.slane %v1332_v54, 4  ;;  %v1337_v3 = vrot.slane %v1335_v56, 5 }
  0xa8   : > { %v1394_v56 = vrot.slane %v1392_v36, 4  ;;  %v1453_v35 = vrot.slane %v1451_v20, 4 }
  0xa9   : > { %v1338_v14 = vor.u32 %v1337_v3, %v1334_v2  ;;  %v1426_v2 = vshrl.u32 %v12941_v49, 16  ;;  %v1429_v3 = vshll.u32 %v12941_v49, 16 }
  0xab   : > { %11066 = vmatmul.mubr.msk.bf16.gmra.mrb[16].mxu0 %vm15499_vm0, %v678_v33  ;;  %v1326_v33 = vrot.slane %v1324_v37, 4  ;;  %v1395_v37 = vshll.u32 %v12921_v39, 16  ;;  %v1312_v39 = vld [vmem:[#allocation2 + $0x68] sm:$0x1f]  ;;  %v1428_v11 = vrot.slane %v1426_v2, 4 }
  0xac   : > { %11069 = vmatprep.mubr.msk.bf16.mxu0 %vm15499_vm0, %v695_v8  ;;  %v1349_v8 = vshrl.u32 %v1307_v63, 16  ;;  %v1420_v63 = vshll.u32 %v1311_v50, 16  ;;  %v1434_v44 = vshrl.u32 %v1312_v39, 16  ;;  %v1437_v6 = vshll.u32 %v1312_v39, 16  ;;  %v794_v2 = vld [vmem:[#allocation2 + $0xc0] sm:$0xf0] }
  0xad   : > { %v1330_v13 = vor.u32 %v1329_v1, %v1326_v33  ;;  %v1397_v57 = vrot.slane %v1395_v37, 5  ;;  %v1417_v33 = vshrl.u32 %v1311_v50, 16  ;;  %v1485_v50 = vshrl.u32 %v1315_v30, 16 }
  0xae   : > { %v1351_v24 = vrot.slane %v1349_v8, 4  ;;  %v1414_v8 = vrot.slane %v1412_v55, 5  ;;  %v1422_v38 = vrot.slane %v1420_v63, 5  ;;  %v1436_v49 = vrot.slane %v1434_v44, 4  ;;  %v1317_v55 = vld [vmem:[#allocation2 + $0xb8] sm:$0x1f] }
  0xaf   : > { %v1339_v22 = vsel %vm15500_vm5, %v1330_v13, %v1338_v14  ;;  %v1398_v4 = vor.u32 %v1397_v57, %v1394_v56  ;;  %v1419_v59 = vrot.slane %v1417_v33, 4  ;;  %v790_v13 = vld [vmem:[#allocation2 + $0x80] sm:$0xf0]  ;;  %v1439_v15 = vrot.slane %v1437_v6, 5  ;;  %v1318_v44 = vld [vmem:[#allocation2 + $0xc8] sm:$0x1f] }
  0xb0   : > { %v1355_v26 = vor.u32 %v1354_v17, %v1351_v24  ;;  %v1415_v24 = vor.u32 %v1414_v8, %v1411_v7 }
  0xb1   : > { %v1423_v17 = vor.u32 %v1422_v38, %v1419_v59  ;;  %v1440_v27 = vor.u32 %v1439_v15, %v1436_v49  ;;  %v1511_v59 = vshrl.u32 %v793_v62, 16  ;;  %v1514_v38 = vshll.u32 %v793_v62, 16 }
  0xb2   : > { %v1356_v51 = vsel %vm15500_vm5, %v1347_v25, %v1355_v26  ;;  %v1468_v25 = vshrl.u32 %v1314_v16, 16  ;;  %v1471_v26 = vshll.u32 %v1314_v16, 16  ;;  %v1531_v49 = vshll.u32 %v794_v2, 16 }
  0xb3   : > { %11070 = vmatmul.mubr.msk.bf16.gmra.mrb[20].mxu0 %vm15499_vm0, %v712_v21  ;;  %v1371_v21 = vrot.slane %v1369_v12, 5  ;;  %v1431_v12 = vrot.slane %v1429_v3, 5  ;;  %v1536_v15 = vshrl.u32 %v1318_v44, 16  ;;  %v1513_v20 = vrot.slane %v1511_v59, 4  ;;  %v13108_v59 = vld [vmem:[#allocation2 + $0x38] sm:$0xf] }
  0xb4   : > { %11073 = vmatprep.mubr.msk.bf16.mxu0 %vm15499_vm0, %v729_v23  ;;  %v1309_v23 = vld [vmem:[#allocation2 + $0x38] sm:$0x1f]  ;;  %v1473_v42 = vrot.slane %v1471_v26, 5  ;;  %v1533_v26 = vrot.slane %v1531_v49, 5 }
  0xb5   : > { %v1372_v48 = vor.u32 %v1371_v21, %v1368_v46  ;;  %v1383_v29 = vshrl.u32 %v1309_v23, 16  ;;  %v1386_v32 = vshll.u32 %v1309_v23, 16  ;;  %v1454_v46 = vshll.u32 %v1313_v9, 16 }
  0xb6   : > { %v1460_v21 = vshrl.u32 %v790_v13, 16  ;;  %v1432_v23 = vor.u32 %v1431_v12, %v1428_v11  ;;  %v1519_v11 = vshrl.u32 %v1317_v55, 16  ;;  %v1522_v12 = vshll.u32 %v1317_v55, 16 }
  0xb7   : > { %v1373_v52 = vsel %vm15500_vm5, %v1364_v31, %v1372_v48  ;;  %v1385_v53 = vrot.slane %v1383_v29, 4  ;;  %v1388_v54 = vrot.slane %v1386_v32, 5  ;;  %v1424_v31 = vsel %vm15500_vm5, %v1415_v24, %v1423_v17  ;;  %v792_v32 = vld [vmem:[#allocation2 + $0xa0] sm:$0xf0] }
  0xb8   : > { %v1445_v48 = vrot.slane %v1443_v18, 4  ;;  %v1456_v36 = vrot.slane %v1454_v46, 5  ;;  %v1441_v40 = vsel %vm15500_vm5, %v1432_v23, %v1440_v27  ;;  %v1497_v39 = vshll.u32 %v792_v32, 16  ;;  %v1319_v18 = vld [vmem:[#allocation2 + $0xd8] sm:$0x1f] }
  0xb9   : > { %v1389_v1 = vor.u32 %v1388_v54, %v1385_v53  ;;  %v1494_v54 = vshrl.u32 %v792_v32, 16  ;;  %v1539_v17 = vshll.u32 %v1318_v44, 16  ;;  %v1516_v46 = vrot.slane %v1514_v38, 5 }
  0xba   : > { %v1457_v53 = vor.u32 %v1456_v36, %v1453_v35  ;;  %v1521_v23 = vrot.slane %v1519_v11, 4  ;;  %v1524_v27 = vrot.slane %v1522_v12, 5  ;;  %v1553_v32 = vshrl.u32 %v1319_v18, 16 }
  0xbb   : > { %11074 = vmatmul.mubr.msk.bf16.gmra.mrb[24].mxu0 %vm15499_vm0, %v746_v61  ;;  %v1405_v61 = vrot.slane %v1403_v41, 5  ;;  %v1470_v41 = vrot.slane %v1468_v25, 4  ;;  %v1556_v35 = vshll.u32 %v1319_v18, 16 }
  0xbc   : > { %11077 = vmatprep.mubr.msk.bf16.mxu0 %vm15499_vm0, %v763_v0  ;;  %v1381_v0 = vor.u32 %v1380_v45, %v1377_v34  ;;  %v1477_v34 = vshrl.u32 %v791_v28, 16  ;;  %v1480_v45 = vshll.u32 %v791_v28, 16  ;;  %v1538_v28 = vrot.slane %v1536_v15, 4 }
  0xbd   : > { %v1406_v47 = vor.u32 %v1405_v61, %v1402_v58  ;;  %v1474_v57 = vor.u32 %v1473_v42, %v1470_v41  ;;  %v1517_v41 = vor.u32 %v1516_v46, %v1513_v20  ;;  %v1525_v42 = vor.u32 %v1524_v27, %v1521_v23  ;;  %v1847_v20 = vld [vmem:[#allocation2 + $0x40] sm:$0xf8] }
  0xbe   : > { %v1390_v10 = vsel %vm15500_vm5, %v1381_v0, %v1389_v1  ;;  %v1479_v33 = vrot.slane %v1477_v34, 4  ;;  %v1482_v63 = vrot.slane %v1480_v45, 5  ;;  %v1487_v0 = vrot.slane %v1485_v50, 4 }
  0xbf   : > { %v1407_v14 = vsel %vm15500_vm5, %v1398_v4, %v1406_v47  ;;  %v1496_v4 = vrot.slane %v1494_v54, 4  ;;  %v1499_v47 = vrot.slane %v1497_v39, 5  ;;  %v1558_v54 = vrot.slane %v1556_v35, 5 }
  0xc0   : > { %v1483_v9 = vor.u32 %v1482_v63, %v1479_v33  ;;  %v1841_v33 = vld [vmem:[#allocation2 + $0x10] sm:$0xf8]  ;;  %v1916_v23 = vshrl.u32 %v13108_v59, 16 }
  0xc1   : > { %v1500_v16 = vor.u32 %v1499_v47, %v1496_v4  ;;  %v1877_v11 = vshll.u32 %v1841_v33, 16 }
  0xc3   : > { %11078 = vmatmul.mubr.msk.bf16.gmra.mrb[28].mxu0 %vm15499_vm0, %v780_v19  ;;  %v1446_v19 = vshll.u32 %v12953_v60, 16  ;;  %v1462_v60 = vrot.slane %v1460_v21, 4  ;;  %v1320_v21 = vld [vmem:[#allocation2 + $0xe8] sm:$0x1f]  ;;  %v1879_v27 = vrot.slane %v1877_v11, 4 }
  0xc4   : > { %11083 = vmatprep.mubr.msk.bf16.mxu0 %vm15499_vm0, %v1339_v22  ;;  %v1463_v22 = vshll.u32 %v790_v13, 16  ;;  %v795_v13 = vld [vmem:[#allocation2 + $0xd0] sm:$0xf0] }
  0xc5   : > { %v1448_v29 = vrot.slane %v1446_v19, 5  ;;  %v796_v19 = vld [vmem:[#allocation2 + $0xe0] sm:$0xf0] }
  0xc6   : > { %v1465_v37 = vrot.slane %v1463_v22, 5  ;;  %v1562_v36 = vshrl.u32 %v796_v19, 16 }
  0xc8   : > { %v1466_v56 = vor.u32 %v1465_v37, %v1462_v60  ;;  %v1565_v60 = vshll.u32 %v796_v19, 16  ;;  %v1570_v37 = vshrl.u32 %v1320_v21, 16  ;;  %v1564_v39 = vrot.slane %v1562_v36, 4 }
  0xca   : > { %v1475_v6 = vsel %vm15500_vm5, %v1466_v56, %v1474_v57  ;;  %v1567_v56 = vrot.slane %v1565_v60, 5  ;;  %v1572_v57 = vrot.slane %v1570_v37, 4  ;;  %v2538_v60 = vsel %vm15502_vm3, %v13075_v5, 0  ;;  %v1849_v37 = vld [vmem:[#allocation2 + $0x50] sm:$0xf8] }
  0xcb   : > { %11084 = vmatmul.mubr.msk.bf16.vlgmr.msra.gmra.mrb[0].mxu0 %vm15499_vm0, %v1356_v51  ;;  %v1488_v51 = vshll.u32 %v1315_v30, 16  ;;  %v1545_v30 = vshrl.u32 %v795_v13, 16 }
  0xcc   : > { %11116 = vmatpush3.bf16.msra.mxu0 %v2196_v43  ;;  %11087 = vmatprep.mubr.msk.bf16.mxu0 %vm15499_vm0, %v1373_v52  ;;  %v1316_v43 = vld [vmem:[#allocation2 + $0xa8] sm:$0x1f]  ;;  %v1449_v52 = vor.u32 %v1448_v29, %v1445_v48  ;;  %v1541_v48 = vrot.slane %v1539_v17, 5  ;;  %v1548_v29 = vshll.u32 %v795_v13, 16  ;;  %v1568_v44 = vor.u32 %v1567_v56, %v1564_v39 }
  0xcd   : > { %12304 = vmatprep.subr.msk.bf16.mxu0 %vm15502_vm3, %v13075_v5  ;;  %v1502_v58 = vshrl.u32 %v1316_v43, 16  ;;  %v1505_v61 = vshll.u32 %v1316_v43, 16  ;;  %v1490_v1 = vrot.slane %v1488_v51, 5  ;;  %v797_v43 = vld [vmem:[#allocation2 + $0xf0] sm:$0xf0]  ;;  %v1547_v50 = vrot.slane %v1545_v30, 4 }
  0xce   : > { %v1458_v3 = vsel %vm15500_vm5, %v1449_v52, %v1457_v53  ;;  %v1542_v45 = vor.u32 %v1541_v48, %v1538_v28  ;;  %v1550_v51 = vrot.slane %v1548_v29, 5  ;;  %v1321_v52 = vld [vmem:[#allocation2 + $0xf8] sm:$0x1f]  ;;  %v1555_v53 = vrot.slane %v1553_v32, 4  ;;  %v13119_v30 = vld [vmem:[#allocation2 + $0x48] sm:$0xf] }
  0xcf   : > { %v1504_v7 = vrot.slane %v1502_v58, 4  ;;  %v1507_v8 = vrot.slane %v1505_v61, 5  ;;  %v1526_v61 = vsel %vm15500_vm5, %v1517_v41, %v1525_v42  ;;  %v1579_v62 = vshrl.u32 %v797_v43, 16 }
  0xd0   : > { %v1582_v55 = vshll.u32 %v797_v43, 16  ;;  %v1551_v4 = vor.u32 %v1550_v51, %v1547_v50  ;;  %v1559_v47 = vor.u32 %v1558_v54, %v1555_v53  ;;  %v1919_v28 = vshll.u32 %v13108_v59, 16 }
  0xd1   : > { %v1508_v24 = vor.u32 %v1507_v8, %v1504_v7  ;;  %v13106_v7 = vld [vmem:[#allocation2 + $0x28] sm:$0xf]  ;;  %v1845_v8 = vld [vmem:[#allocation2 + $0x30] sm:$0xf8]  ;;  %v1581_v38 = vrot.slane %v1579_v62, 4  ;;  %v1918_v42 = vrot.slane %v1916_v23, 3 }
  0xd2   : > { %v1899_v18 = vshrl.u32 %v13106_v7, 16  ;;  %v1902_v19 = vshll.u32 %v13106_v7, 16  ;;  %v1925_v43 = vshrl.u32 %v1847_v20, 16  ;;  %v1921_v51 = vrot.slane %v1919_v28, 4  ;;  %v13132_v62 = vld [vmem:[#allocation2 + $0x68] sm:$0xf] }
  0xd3   : > { %11088 = vmatmul.mubr.msk.bf16.gmra.mrb[4].mxu0 %vm15499_vm0, %v1390_v10  ;;  %v1491_v10 = vor.u32 %v1490_v1, %v1487_v0  ;;  %v13103_v0 = vld [vmem:[#allocation2 + $0x18] sm:$0xf]  ;;  %v1843_v1 = vld [vmem:[#allocation2 + $0x20] sm:$0xf8]  ;;  %v1933_v53 = vshrl.u32 %v13119_v30, 16  ;;  %v1936_v54 = vshll.u32 %v13119_v30, 16 }
  0xd4   : > { %11091 = vmatprep.mubr.msk.bf16.mxu0 %vm15499_vm0, %v1407_v14  ;;  %v1528_v14 = vshrl.u32 %v794_v2, 16  ;;  %v1587_v2 = vshrl.u32 %v1321_v52, 16  ;;  %v1882_v12 = vshrl.u32 %v13103_v0, 16  ;;  %v1885_v13 = vshll.u32 %v13103_v0, 16  ;;  %v13150_v23 = vld [vmem:[%s15491_s1 + $0x14] sm:$0xf] }
  0xd5   : > { %v1492_v22 = vsel %vm15500_vm5, %v1483_v9, %v1491_v10  ;;  %v1584_v9 = vrot.slane %v1582_v55, 5  ;;  %v1874_v10 = vshrl.u32 %v1841_v33, 16  ;;  %v1891_v15 = vshrl.u32 %v1843_v1, 16  ;;  %v1853_v33 = vld [vmem:[#allocation2 + $0x70] sm:$0xf8] }
  0xd6   : > { %v1530_v25 = vrot.slane %v1528_v14, 4  ;;  %v1589_v14 = vrot.slane %v1587_v2, 4  ;;  %v1901_v35 = vrot.slane %v1899_v18, 3  ;;  %v1904_v36 = vrot.slane %v1902_v19, 4  ;;  %v1855_v18 = vld [vmem:[#allocation2 + $0x80] sm:$0xf8] }
  0xd7   : > { %v1876_v46 = vrot.slane %v1874_v10, 3  ;;  %v1893_v29 = vrot.slane %v1891_v15, 3  ;;  %v1942_v39 = vshrl.u32 %v1849_v37, 16  ;;  %v1945_v56 = vshll.u32 %v1849_v37, 16 }
  0xd8   : > { %v1534_v34 = vor.u32 %v1533_v26, %v1530_v25  ;;  %v1884_v25 = vrot.slane %v1882_v12, 3  ;;  %v1887_v26 = vrot.slane %v1885_v13, 4  ;;  %v1976_v15 = vshrl.u32 %v1853_v33, 16 }
  0xda   : > { %v1543_v63 = vsel %vm15500_vm5, %v1534_v34, %v1542_v45  ;;  %v13125_v34 = vld [vmem:[#allocation2 + $0x58] sm:$0xf]  ;;  %v1880_v45 = vor.u32 %v1879_v27, %v1876_v46  ;;  %v1888_v50 = vor.u32 %v1887_v26, %v1884_v25  ;;  %v13145_v46 = vld [vmem:[#allocation2 + $0x88] sm:$0xf] }
  0xdb   : > { %11092 = vmatmul.mubr.msk.bf16.gmra.mrb[8].mxu0 %vm15499_vm0, %v1424_v31  ;;  %v1509_v31 = vsel %vm15500_vm5, %v1500_v16, %v1508_v24  ;;  %v1894_v16 = vshll.u32 %v1843_v1, 16  ;;  %v1560_v24 = vsel %vm15500_vm5, %v1551_v4, %v1559_v47  ;;  %v1950_v5 = vshrl.u32 %v13125_v34, 16 }
  0xdc   : > { %11095 = vmatprep.mubr.msk.bf16.mxu0 %vm15499_vm0, %v1441_v40  ;;  %v1573_v40 = vshll.u32 %v1320_v21, 16  ;;  %v1908_v21 = vshrl.u32 %v1845_v8, 16  ;;  %v1889_v55 = vsel %vm15501_vm4, %v1880_v45, %v1888_v50  ;;  %v1905_v1 = vor.u32 %v1904_v36, %v1901_v35 }
  0xdd   : > { %v1896_v32 = vrot.slane %v1894_v16, 4  ;;  %v1922_v4 = vor.u32 %v1921_v51, %v1918_v42  ;;  %v1952_v10 = vrot.slane %v1950_v5, 3  ;;  %v1979_v16 = vshll.u32 %v1853_v33, 16  ;;  %v13164_v5 = vld [vmem:[#allocation2 + $0xa8] sm:$0xf] }
  0xde   : > { %v1575_v58 = vrot.slane %v1573_v40, 5  ;;  %v1910_v40 = vrot.slane %v1908_v21, 3  ;;  %v1978_v35 = vrot.slane %v1976_v15, 3  ;;  %v1993_v36 = vshrl.u32 %v1855_v18, 16  ;;  %v1861_v33 = vld [vmem:[#allocation2 + $0xb0] sm:$0xf8] }
  0xdf   : > { %v1981_v37 = vrot.slane %v1979_v16, 4  ;;  %v1996_v42 = vshll.u32 %v1855_v18, 16  ;;  %v2004_v45 = vshll.u32 %v13145_v46, 16  ;;  %v1863_v15 = vld [vmem:[#allocation2 + $0xc0] sm:$0xf8] }
  0xe3   : > { %11096 = vmatmul.mubr.msk.bf16.gmra.mrb[12].mxu0 %vm15499_vm0, %v1458_v3  ;;  %v1590_v3 = vshll.u32 %v1321_v52, 16  ;;  %v1928_v52 = vshll.u32 %v1847_v20, 16 }
  0xe4   : > { %11099 = vmatprep.mubr.msk.bf16.mxu0 %vm15499_vm0, %v1475_v6  ;;  %v1576_v6 = vor.u32 %v1575_v58, %v1572_v57  ;;  %v1953_v57 = vshll.u32 %v13125_v34, 16  ;;  %v1851_v58 = vld [vmem:[#allocation2 + $0x60] sm:$0xf8] }
  0xe5   : > { %v1592_v49 = vrot.slane %v1590_v3, 5  ;;  %v1927_v3 = vrot.slane %v1925_v43, 3  ;;  %v1930_v47 = vrot.slane %v1928_v52, 4  ;;  %v1959_v11 = vshrl.u32 %v1851_v58, 16 }
  0xe6   : > { %v1577_v17 = vsel %vm15500_vm5, %v1568_v44, %v1576_v6  ;;  %v1935_v44 = vrot.slane %v1933_v53, 3  ;;  %v1938_v6 = vrot.slane %v1936_v54, 4  ;;  %v1955_v12 = vrot.slane %v1953_v57, 4  ;;  %v1859_v54 = vld [vmem:[#allocation2 + $0xa0] sm:$0xf8] }
  0xe7   : > { %v1593_v48 = vor.u32 %v1592_v49, %v1589_v14  ;;  %v1962_v13 = vshll.u32 %v1851_v58, 16  ;;  %v1967_v14 = vshrl.u32 %v13132_v62, 16  ;;  %v1970_v49 = vshll.u32 %v13132_v62, 16 }
  0xe8   : > { %v1931_v21 = vor.u32 %v1930_v47, %v1927_v3  ;;  %v1956_v25 = vor.u32 %v1955_v12, %v1952_v10  ;;  %v1961_v26 = vrot.slane %v1959_v11, 3  ;;  %v2001_v43 = vshrl.u32 %v13145_v46, 16 }
  0xe9   : > { %v1964_v28 = vrot.slane %v1962_v13, 4  ;;  %v1982_v58 = vor.u32 %v1981_v37, %v1978_v35  ;;  %v2006_v3 = vrot.slane %v2004_v45, 4  ;;  %v2035_v10 = vshrl.u32 %v13164_v5, 16 }
  0xea   : > { %v2038_v11 = vshll.u32 %v13164_v5, 16  ;;  %v2044_v12 = vshrl.u32 %v1861_v33, 16  ;;  %v2047_v13 = vshll.u32 %v1861_v33, 16  ;;  %v2061_v35 = vshrl.u32 %v1863_v15, 16 }
  0xeb   : > { %11100 = vmatmul.mubr.msk.bf16.gmra.mrb[16].mxu0 %vm15499_vm0, %v1492_v22  ;;  %v1911_v22 = vshll.u32 %v1845_v8, 16  ;;  %v13136_v8 = vld [vmem:[#allocation2 + $0x78] sm:$0xf] }
  0xec   : > { %11103 = vmatprep.mubr.msk.bf16.mxu0 %vm15499_vm0, %v1509_v31  ;;  %v1585_v31 = vor.u32 %v1584_v9, %v1581_v38  ;;  %v1944_v38 = vrot.slane %v1942_v39, 3  ;;  %v1947_v9 = vrot.slane %v1945_v56, 4  ;;  %v1965_v56 = vor.u32 %v1964_v28, %v1961_v26 }
  0xed   : > { %v1913_v41 = vrot.slane %v1911_v22, 4  ;;  %v1939_v22 = vor.u32 %v1938_v6, %v1935_v44  ;;  %v2037_v26 = vrot.slane %v2035_v10, 3  ;;  %v2040_v28 = vrot.slane %v2038_v11, 4 }
  0xee   : > { %v1948_v27 = vor.u32 %v1947_v9, %v1944_v38  ;;  %v2027_v38 = vshrl.u32 %v1859_v54, 16  ;;  %v2030_v9 = vshll.u32 %v1859_v54, 16 }
  0xef   : > { %v1914_v2 = vor.u32 %v1913_v41, %v1910_v40  ;;  %v1940_v53 = vsel %vm15501_vm4, %v1931_v21, %v1939_v22  ;;  %v13177_v21 = vld [vmem:[#allocation2 + $0xc8] sm:$0xf]  ;;  %v1865_v22 = vld [vmem:[#allocation2 + $0xd0] sm:$0xf8]  ;;  %v2041_v54 = vor.u32 %v2040_v28, %v2037_v26 }
  0xf0   : > { %v1957_v39 = vsel %vm15501_vm4, %v1948_v27, %v1956_v25  ;;  %v2032_v25 = vrot.slane %v2030_v9, 4  ;;  %v2081_v45 = vshll.u32 %v1865_v22, 16  ;;  %v13192_v9 = vld [vmem:[#allocation2 + $0xf8] sm:$0xf] }
  0xf1   : > { %v1923_v20 = vsel %vm15501_vm4, %v1914_v2, %v1922_v4  ;;  %v2003_v2 = vrot.slane %v2001_v43, 3  ;;  %v2078_v43 = vshrl.u32 %v1865_v22, 16 }
  0xf3   : > { %11104 = vmatmul.mubr.msk.bf16.gmra.mrb[20].mxu0 %vm15499_vm0, %v1526_v61  ;;  %v1594_v61 = vsel %vm15500_vm5, %v1585_v31, %v1593_v48  ;;  %v1857_v31 = vld [vmem:[#allocation2 + $0x90] sm:$0xf8]  ;;  %v13153_v48 = vld [vmem:[#allocation2 + $0x98] sm:$0xf]  ;;  %v2007_v18 = vor.u32 %v2006_v3, %v2003_v2  ;;  %v2080_v2 = vrot.slane %v2078_v43, 3  ;;  %v2083_v3 = vrot.slane %v2081_v45, 4 }
  0xf4   : > { %11107 = vmatprep.mubr.msk.bf16.mxu0 %vm15499_vm0, %v1543_v63  ;;  %v1897_v63 = vor.u32 %v1896_v32, %v1893_v29  ;;  %v1969_v29 = vrot.slane %v1967_v14, 3  ;;  %v1972_v32 = vrot.slane %v1970_v49, 4  ;;  %v2010_v50 = vshrl.u32 %v1857_v31, 16 }
  0xf5   : > { %v2013_v51 = vshll.u32 %v1857_v31, 16  ;;  %v2021_v52 = vshll.u32 %v13153_v48, 16  ;;  %v2046_v31 = vrot.slane %v2044_v12, 3 }
  0xf6   : > { %v1906_v19 = vsel %vm15501_vm4, %v1897_v63, %v1905_v1  ;;  %v1973_v57 = vor.u32 %v1972_v32, %v1969_v29  ;;  %v13167_v63 = vld [vmem:[#allocation2 + $0xb8] sm:$0xf]  ;;  %v1998_v1 = vrot.slane %v1996_v42, 4  ;;  %v2012_v4 = vrot.slane %v2010_v50, 3 }
  0xf7   : > { %v2015_v47 = vrot.slane %v2013_v51, 4  ;;  %v2023_v6 = vrot.slane %v2021_v52, 4  ;;  %v2052_v14 = vshrl.u32 %v13167_v63, 16  ;;  %v2049_v29 = vrot.slane %v2047_v13, 4 }
  0xf8   : > { %v1974_v49 = vsel %vm15501_vm4, %v1965_v56, %v1973_v57  ;;  %v2072_v42 = vshll.u32 %v13177_v21, 16 }
  0xf9   : > { %v2054_v32 = vrot.slane %v2052_v14, 3  ;;  %v2050_v56 = vor.u32 %v2049_v29, %v2046_v31  ;;  %v13202_v29 = vld [vmem:[#allocation2 + $0x108] sm:$0xf] }
  0xfa   : > { %v2137_v43 = vshrl.u32 %v13202_v29, 16  ;;  %v2140_v45 = vshll.u32 %v13202_v29, 16 }
  0xfb   : > { %11108 = vmatmul.mubr.msk.bf16.gmra.mrb[24].mxu0 %vm15499_vm0, %v1560_v24  ;;  %v1984_v24 = vshrl.u32 %v13136_v8, 16 }
  0xfc   : > { %11111 = vmatprep.mubr.msk.bf16.mxu0 %vm15499_vm0, %v1577_v17  ;;  %v1987_v17 = vshll.u32 %v13136_v8, 16 }
  0xfd   : > { %v1986_v40 = vrot.slane %v1984_v24, 3  ;;  %v2055_v24 = vshll.u32 %v13167_v63, 16 }
  0xfe   : > { %v1989_v41 = vrot.slane %v1987_v17, 4 }
  0xff   : > { %v2057_v37 = vrot.slane %v2055_v24, 4 }
 0x101   : > { %v2058_v57 = vor.u32 %v2057_v37, %v2054_v32 }
 0x103   : > { %11112 = vmatmul.mubr.msk.bf16.gmra.mrb[28].mxu0 %vm15499_vm0, %v1594_v61  ;;  %v1990_v61 = vor.u32 %v1989_v41, %v1986_v40  ;;  %v2064_v40 = vshll.u32 %v1863_v15, 16  ;;  %v2069_v41 = vshrl.u32 %v13177_v21, 16  ;;  %v2059_v13 = vsel %vm15501_vm4, %v2050_v56, %v2058_v57 }
 0x104   : > { %11117 = vmatprep.mubr.msk.bf16.mxu0 %vm15499_vm0, %v1889_v55  ;;  %v1995_v55 = vrot.slane %v1993_v36, 3  ;;  %v13180_v36 = vld [vmem:[#allocation2 + $0xd8] sm:$0xf]  ;;  %v2120_v15 = vshrl.u32 %v13192_v9, 16  ;;  %v2142_v56 = vrot.slane %v2140_v45, 4 }
 0x105   : > { %v1991_v16 = vsel %vm15501_vm4, %v1982_v58, %v1990_v61  ;;  %v2089_v52 = vshll.u32 %v13180_v36, 16  ;;  %v2063_v58 = vrot.slane %v2061_v35, 3  ;;  %v2066_v61 = vrot.slane %v2064_v40, 4 }
 0x106   : > { %v1999_v17 = vor.u32 %v1998_v1, %v1995_v55  ;;  %v13190_v55 = vld [vmem:[#allocation2 + $0xe8] sm:$0xf]  ;;  %v2071_v33 = vrot.slane %v2069_v41, 3  ;;  %v2074_v1 = vrot.slane %v2072_v42, 4  ;;  %v2122_v32 = vrot.slane %v2120_v15, 3 }
 0x107   : > { %v2103_v10 = vshrl.u32 %v13190_v55, 16  ;;  %v2106_v11 = vshll.u32 %v13190_v55, 16  ;;  %v2067_v24 = vor.u32 %v2066_v61, %v2063_v58  ;;  %v13212_v61 = vld [vmem:[#allocation2 + $0x10] sm:$0xf0] }
 0x108   : > { %v2008_v50 = vsel %vm15501_vm4, %v1999_v17, %v2007_v18  ;;  %v2075_v17 = vor.u32 %v2074_v1, %v2071_v33  ;;  %v2084_v18 = vor.u32 %v2083_v3, %v2080_v2  ;;  %v2439_v2 = vrot.slane %v13212_v61, 4  ;;  %v13236_v15 = vld [vmem:[#allocation2 + $0x50] sm:$0xf0] }
 0x109   : > { %v2108_v26 = vrot.slane %v2106_v11, 4  ;;  %v2440_v3 = vrot.slane %v13103_v0, 4  ;;  %v2446_v0 = vrot.slane %v13108_v59, 4  ;;  %v2449_v59 = vrot.slane %v13119_v30, 4 }
 0x10a   : > { %v2076_v37 = vsel %vm15501_vm4, %v2067_v24, %v2075_v17  ;;  %v2452_v24 = vrot.slane %v13125_v34, 4 }
 0x10b   : > { %11118 = vmatmul.mubr.msk.bf16.vlgmr.msra.gmra.mrb[0].mxu0 %vm15499_vm0, %v1906_v19  ;;  %v2016_v19 = vor.u32 %v2015_v47, %v2012_v4  ;;  %v1869_v4 = vld [vmem:[#allocation2 + $0xf0] sm:$0xf8] }
 0x10c   : > { %11150 = vmatpush3.bf16.msra.mxu0 %v2538_v60  ;;  %11121 = vmatprep.mubr.msk.bf16.mxu0 %vm15499_vm0, %v1923_v20  ;;  %v2018_v60 = vshrl.u32 %v13153_v48, 16  ;;  %v2029_v20 = vrot.slane %v2027_v38, 3  ;;  %v2112_v14 = vshrl.u32 %v1869_v4, 16 }
 0x10d   : > { %12305 = vmatprep.subr.msk.bf16.mxu0 %vm15502_vm3, %v13150_v23 }
 0x10e   : > { %v2020_v44 = vrot.slane %v2018_v60, 3  ;;  %v2086_v60 = vshrl.u32 %v13180_v36, 16  ;;  %v2114_v28 = vrot.slane %v2112_v14, 3 }
 0x110   : > { %v2024_v27 = vor.u32 %v2023_v6, %v2020_v44  ;;  %v2088_v47 = vrot.slane %v2086_v60, 3  ;;  %v2091_v44 = vrot.slane %v2089_v52, 4 }
 0x112   : > { %v2025_v51 = vsel %vm15501_vm4, %v2016_v19, %v2024_v27  ;;  %v2092_v19 = vor.u32 %v2091_v44, %v2088_v47  ;;  %v1871_v27 = vld [vmem:[#allocation2 + $0x100] sm:$0xf8]  ;;  %v2441_v44 = vsel %vm15502_vm3, %v2439_v2, %v2440_v3  ;;  %v2479_v2 = vrot.slane %v13190_v55, 4 }
 0x113   : > { %11122 = vmatmul.mubr.msk.bf16.gmra.mrb[4].mxu0 %vm15499_vm0, %v1940_v53  ;;  %v2033_v53 = vor.u32 %v2032_v25, %v2029_v20  ;;  %v2105_v25 = vrot.slane %v2103_v10, 3  ;;  %v2129_v41 = vshrl.u32 %v1871_v27, 16  ;;  %v2132_v42 = vshll.u32 %v1871_v27, 16 }
 0x114   : > { %11125 = vmatprep.mubr.msk.bf16.mxu0 %vm15499_vm0, %v1957_v39  ;;  %v1867_v39 = vld [vmem:[#allocation2 + $0xe0] sm:$0xf8]  ;;  %v2093_v40 = vsel %vm15501_vm4, %v2084_v18, %v2092_v19  ;;  %v2443_v10 = vrot.slane %v13106_v7, 4  ;;  %v2458_v27 = vrot.slane %v13136_v8, 4  ;;  %v2464_v8 = vrot.slane %v13153_v48, 4 }
 0x115   : > { %v2095_v6 = vshrl.u32 %v1867_v39, 16  ;;  %v2098_v38 = vshll.u32 %v1867_v39, 16  ;;  %v2042_v12 = vsel %vm15501_vm4, %v2033_v53, %v2041_v54  ;;  %v2131_v53 = vrot.slane %v2129_v41, 3  ;;  %v13253_v19 = vld [vmem:[#allocation2 + $0x60] sm:$0xf0] }
 0x116   : > { %v2134_v54 = vrot.slane %v2132_v42, 4  ;;  %v2139_v39 = vrot.slane %v2137_v43, 3  ;;  %v2454_v30 = vrot.slane %v13253_v19, 4  ;;  %v13277_v41 = vld [vmem:[#allocation2 + $0xa0] sm:$0xf0]  ;;  %v2470_v48 = vrot.slane %v13167_v63, 4 }
 0x117   : > { %v2097_v20 = vrot.slane %v2095_v6, 3  ;;  %v2100_v22 = vrot.slane %v2098_v38, 4  ;;  %v13222_v6 = vld [vmem:[#allocation2 + $0x30] sm:$0xf0]  ;;  %v2466_v43 = vrot.slane %v13277_v41, 4  ;;  %v2476_v63 = vrot.slane %v13180_v36, 4 }
 0x118   : > { %v2135_v33 = vor.u32 %v2134_v54, %v2131_v53  ;;  %v2143_v1 = vor.u32 %v2142_v56, %v2139_v39  ;;  %v2445_v11 = vrot.slane %v13222_v6, 4  ;;  %v13279_v42 = vld [vmem:[#allocation2 + $0xb0] sm:$0xf0]  ;;  %v13300_v56 = vld [vmem:[#allocation2 + $0xe0] sm:$0xf0]  ;;  %v2753_v36 = vshll.u32 %v13212_v61, 16 }
 0x119   : > { %v2469_v45 = vrot.slane %v13279_v42, 4 }
 0x11a   : > { %v2144_v47 = vsel %vm15501_vm4, %v2135_v33, %v2143_v1  ;;  %v2447_v14 = vsel %vm15502_vm3, %v2445_v11, %v2446_v0  ;;  %v13303_v33 = vld [vmem:[#allocation2 + $0xf0] sm:$0xf0]  ;;  %v2478_v1 = vrot.slane %v13300_v56, 4  ;;  %v2734_v11 = vld [vmem:[#allocation2 + $0x28] sm:$0x1f] }
 0x11b   : > { %11126 = vmatmul.mubr.msk.bf16.gmra.mrb[8].mxu0 %vm15499_vm0, %v1974_v49  ;;  %v2115_v49 = vshll.u32 %v1869_v4, 16  ;;  %v13218_v4 = vld [vmem:[#allocation2 + $0x20] sm:$0xf0] }
 0x11c   : > { %11129 = vmatprep.mubr.msk.bf16.mxu0 %vm15499_vm0, %v1991_v16  ;;  %v2123_v16 = vshll.u32 %v13192_v9, 16  ;;  %v2442_v38 = vrot.slane %v13218_v4, 4 }
 0x11d   : > { %v2117_v31 = vrot.slane %v2115_v49, 4  ;;  %v13234_v49 = vld [vmem:[#allocation2 + $0x40] sm:$0xf0] }
 0x11e   : > { %v2125_v35 = vrot.slane %v2123_v16, 4  ;;  %v13241_v16 = vld [vmem:[%s15491_s1 + $0x18] sm:$0xf]  ;;  %v2448_v7 = vrot.slane %v13234_v49, 4 }
 0x11f   : > { %v2118_v60 = vor.u32 %v2117_v31, %v2114_v28  ;;  %v13265_v28 = vld [vmem:[#allocation2 + $0x80] sm:$0xf0]  ;;  %v13267_v31 = vld [vmem:[#allocation2 + $0x90] sm:$0xf0] }
 0x120   : > { %v2126_v52 = vor.u32 %v2125_v35, %v2122_v32  ;;  %v2450_v17 = vsel %vm15502_vm3, %v2448_v7, %v2449_v59  ;;  %v2460_v32 = vrot.slane %v13265_v28, 4  ;;  %v2463_v35 = vrot.slane %v13267_v31, 4  ;;  %v13315_v7 = vld [vmem:[#allocation2 + $0x100] sm:$0xf0] }
 0x121   : > { %v2767_v59 = vshrl.u32 %v13218_v4, 16 }
 0x122   : > { %v2127_v58 = vsel %vm15501_vm4, %v2118_v60, %v2126_v52  ;;  %v13289_v60 = vld [vmem:[#allocation2 + $0xc0] sm:$0xf0]  ;;  %v13291_v52 = vld [vmem:[#allocation2 + $0xd0] sm:$0xf0] }
 0x123   : > { %11130 = vmatmul.mubr.msk.bf16.gmra.mrb[12].mxu0 %vm15499_vm0, %v2008_v50  ;;  %v2101_v50 = vor.u32 %v2100_v22, %v2097_v20  ;;  %v13255_v20 = vld [vmem:[#allocation2 + $0x70] sm:$0xf0]  ;;  %v2455_v22 = vrot.slane %v13132_v62, 4  ;;  %v2461_v62 = vrot.slane %v13145_v46, 4  ;;  %v2467_v46 = vrot.slane %v13164_v5, 4 }
 0x124   : > { %11133 = vmatprep.mubr.msk.bf16.mxu0 %vm15499_vm0, %v2025_v51  ;;  %v2109_v51 = vor.u32 %v2108_v26, %v2105_v25  ;;  %v2457_v34 = vrot.slane %v13255_v20, 4  ;;  %v2472_v53 = vrot.slane %v13289_v60, 4  ;;  %v2473_v5 = vrot.slane %v13177_v21, 4 }
 0x125   : > { %v2456_v25 = vsel %vm15502_vm3, %v2454_v30, %v2455_v22  ;;  %v2475_v54 = vrot.slane %v13291_v52, 4  ;;  %v2750_v21 = vshrl.u32 %v13212_v61, 16  ;;  %v2770_v61 = vshll.u32 %v13218_v4, 16 }
 0x126   : > { %v2110_v57 = vsel %vm15501_vm4, %v2101_v50, %v2109_v51  ;;  %v2459_v26 = vsel %vm15502_vm3, %v2457_v34, %v2458_v27  ;;  %v2468_v50 = vsel %vm15502_vm3, %v2466_v43, %v2467_v46  ;;  %v2471_v51 = vsel %vm15502_vm3, %v2469_v45, %v2470_v48  ;;  %v2737_v48 = vld [vmem:[#allocation2 + $0x58] sm:$0x1f] }
 0x127   : > { %v2474_v39 = vsel %vm15502_vm3, %v2472_v53, %v2473_v5  ;;  %v2752_v0 = vrot.slane %v2750_v21, 4  ;;  %v2784_v34 = vshrl.u32 %v13222_v6, 16  ;;  %v2787_v27 = vshll.u32 %v13222_v6, 16 }
 0x128   : > { %v2769_v4 = vrot.slane %v2767_v59, 4  ;;  %v2801_v6 = vshrl.u32 %v13234_v49, 16  ;;  %v2804_v53 = vshll.u32 %v13234_v49, 16 }
 0x129   : > { %v2786_v43 = vrot.slane %v2784_v34, 4  ;;  %v2789_v46 = vrot.slane %v2787_v27, 5 }
 0x12b   : > { %11134 = vmatmul.mubr.msk.bf16.gmra.mrb[16].mxu0 %vm15499_vm0, %v2042_v12  ;;  %v2444_v12 = vsel %vm15502_vm3, %v2442_v38, %v2443_v10  ;;  %v2482_v38 = vrot.slane %v13192_v9, 4  ;;  %v2480_v10 = vsel %vm15502_vm3, %v2478_v1, %v2479_v2  ;;  %v2484_v9 = vrot.slane %v13315_v7, 4 }
 0x12c   : > { %11137 = vmatprep.mubr.msk.bf16.mxu0 %vm15499_vm0, %v2059_v13  ;;  %v3072_v13 = vsel %vm15502_vm3, %v13150_v23, 0  ;;  %v2451_v23 = vrot.slane %v13236_v15, 4  ;;  %v2790_v1 = vor.u32 %v2789_v46, %v2786_v43  ;;  %v2741_v43 = vld [vmem:[#allocation2 + $0x98] sm:$0x1f] }
 0x12e   : > { %v2453_v18 = vsel %vm15502_vm3, %v2451_v23, %v2452_v24  ;;  %v2775_v23 = vshrl.u32 %v2734_v11, 16  ;;  %v2778_v24 = vshll.u32 %v2734_v11, 16 }
 0x133   : > { %11138 = vmatmul.mubr.msk.bf16.gmra.mrb[20].mxu0 %vm15499_vm0, %v2076_v37  ;;  %v2462_v37 = vsel %vm15502_vm3, %v2460_v32, %v2461_v62  ;;  %v2772_v32 = vrot.slane %v2770_v61, 5  ;;  %v2777_v62 = vrot.slane %v2775_v23, 4  ;;  %v2739_v61 = vld [vmem:[#allocation2 + $0x78] sm:$0x1f] }
 0x134   : > { %11141 = vmatprep.mubr.msk.bf16.mxu0 %vm15499_vm0, %v2093_v40  ;;  %v2465_v40 = vsel %vm15502_vm3, %v2463_v35, %v2464_v8  ;;  %v2780_v35 = vrot.slane %v2778_v24, 5  ;;  %v13342_v23 = vld [vmem:[%s15491_s1 + $0x1c] sm:$0xf] }
 0x13b   : > { %11142 = vmatmul.mubr.msk.bf16.gmra.mrb[24].mxu0 %vm15499_vm0, %v2110_v57  ;;  %v2477_v57 = vsel %vm15502_vm3, %v2475_v54, %v2476_v63  ;;  %v2818_v63 = vshrl.u32 %v13236_v15, 16 }
 0x13c   : > { %11145 = vmatprep.mubr.msk.bf16.mxu0 %vm15499_vm0, %v2127_v58  ;;  %v2733_v58 = vld [vmem:[#allocation2 + $0x18] sm:$0x1f] }
 0x13d   : > { %v2758_v3 = vshrl.u32 %v2733_v58, 16  ;;  %v2820_v49 = vrot.slane %v2818_v63, 4 }
 0x143   : > { %11146 = vmatmul.mubr.msk.bf16.gmra.mrb[28].mxu0 %vm15499_vm0, %v2144_v47  ;;  %v2761_v47 = vshll.u32 %v2733_v58, 16  ;;  %v2829_v58 = vshll.u32 %v2737_v48, 16 }
 0x144   : > { %11151 = vmatprep.mubr.msk.bf16.mxu0 %vm15499_vm0, %v2441_v44  ;;  %v2481_v44 = vrot.slane %v13303_v33, 4 }
 0x146   : > { %v2483_v55 = vsel %vm15502_vm3, %v2481_v44, %v2482_v38  ;;  %v2738_v38 = vld [vmem:[#allocation2 + $0x68] sm:$0x1f] }
 0x147   : > { %v2846_v59 = vshll.u32 %v2738_v38, 16 }
 0x14b   : > { %11152 = vmatmul.mubr.msk.bf16.vlgmr.msra.gmra.mrb[0].mxu0 %vm15499_vm0, %v2444_v12  ;;  %v2755_v12 = vrot.slane %v2753_v36, 5  ;;  %v2803_v36 = vrot.slane %v2801_v6, 4  ;;  %v2889_v6 = vshll.u32 %v13267_v31, 16 }
 0x14c   : > { %11184 = vmatpush3.bf16.msra.mxu0 %v3072_v13  ;;  %11155 = vmatprep.mubr.msk.bf16.mxu0 %vm15499_vm0, %v2447_v14  ;;  %v2760_v13 = vrot.slane %v2758_v3, 4  ;;  %v2763_v14 = vrot.slane %v2761_v47, 5  ;;  %v2806_v3 = vrot.slane %v2804_v53, 5  ;;  %v2894_v53 = vshrl.u32 %v2741_v43, 16 }
 0x14d   : > { %12306 = vmatprep.subr.msk.bf16.mxu0 %vm15502_vm3, %v13241_v16  ;;  %v2756_v30 = vor.u32 %v2755_v12, %v2752_v0  ;;  %v2831_v0 = vrot.slane %v2829_v58, 5  ;;  %v3623_v12 = vsel %vm15502_vm3, %v13241_v16, 0 }
 0x14e   : > { %v2764_v22 = vor.u32 %v2763_v14, %v2760_v13  ;;  %v2835_v13 = vshrl.u32 %v13253_v19, 16  ;;  %v2838_v14 = vshll.u32 %v13253_v19, 16  ;;  %v2807_v24 = vor.u32 %v2806_v3, %v2803_v36 }
 0x14f   : > { %v2855_v19 = vshll.u32 %v13255_v20, 16  ;;  %v2891_v36 = vrot.slane %v2889_v6, 5  ;;  %v2896_v3 = vrot.slane %v2894_v53, 4 }
 0x150   : > { %v2837_v34 = vrot.slane %v2835_v13, 4  ;;  %v2840_v27 = vrot.slane %v2838_v14, 5  ;;  %v2920_v14 = vshrl.u32 %v13279_v42, 16 }
 0x153   : > { %11156 = vmatmul.mubr.msk.bf16.gmra.mrb[4].mxu0 %vm15499_vm0, %v2450_v17  ;;  %v2735_v17 = vld [vmem:[#allocation2 + $0x38] sm:$0x1f] }
 0x154   : > { %11159 = vmatprep.mubr.msk.bf16.mxu0 %vm15499_vm0, %v2453_v18  ;;  %v2485_v18 = vrot.slane %v13202_v29, 4 }
 0x156   : > { %v2486_v8 = vsel %vm15502_vm3, %v2484_v9, %v2485_v18  ;;  %v2852_v18 = vshrl.u32 %v13255_v20, 16  ;;  %v2841_v20 = vor.u32 %v2840_v27, %v2837_v34 }
 0x15b   : > { %11160 = vmatmul.mubr.msk.bf16.gmra.mrb[8].mxu0 %vm15499_vm0, %v2456_v25  ;;  %v2792_v25 = vshrl.u32 %v2735_v17, 16 }
 0x15c   : > { %11163 = vmatprep.mubr.msk.bf16.mxu0 %vm15499_vm0, %v2459_v26  ;;  %v2795_v26 = vshll.u32 %v2735_v17, 16 }
 0x15d   : > { %v2794_v29 = vrot.slane %v2792_v25, 4 }
 0x15e   : > { %v2797_v45 = vrot.slane %v2795_v26, 5  ;;  %v2848_v26 = vrot.slane %v2846_v59, 5 }
 0x160   : > { %v2798_v2 = vor.u32 %v2797_v45, %v2794_v29  ;;  %v2869_v29 = vshrl.u32 %v13265_v28, 16  ;;  %v2872_v45 = vshll.u32 %v13265_v28, 16 }
 0x162   : > { %v2874_v58 = vrot.slane %v2872_v45, 5 }
 0x163   : > { %11164 = vmatmul.mubr.msk.bf16.gmra.mrb[12].mxu0 %vm15499_vm0, %v2462_v37  ;;  %v2765_v37 = vsel %vm15500_vm5, %v2756_v30, %v2764_v22  ;;  %v2860_v30 = vshrl.u32 %v2739_v61, 16  ;;  %v2863_v22 = vshll.u32 %v2739_v61, 16 }
 0x164   : > { %11167 = vmatprep.mubr.msk.bf16.mxu0 %vm15499_vm0, %v2465_v40  ;;  %v2736_v40 = vld [vmem:[#allocation2 + $0x48] sm:$0x1f] }
 0x165   : > { %v2809_v5 = vshrl.u32 %v2736_v40, 16  ;;  %v2812_v54 = vshll.u32 %v2736_v40, 16  ;;  %v2865_v40 = vrot.slane %v2863_v22, 5 }
 0x167   : > { %v2811_v47 = vrot.slane %v2809_v5, 4  ;;  %v2814_v44 = vrot.slane %v2812_v54, 5  ;;  %v2897_v5 = vshll.u32 %v2741_v43, 16 }
 0x169   : > { %v2815_v16 = vor.u32 %v2814_v44, %v2811_v47  ;;  %v2899_v47 = vrot.slane %v2897_v5, 5 }
 0x16b   : > { %11168 = vmatmul.mubr.msk.bf16.gmra.mrb[16].mxu0 %vm15499_vm0, %v2468_v50  ;;  %v2773_v50 = vor.u32 %v2772_v32, %v2769_v4  ;;  %v2816_v4 = vsel %vm15500_vm5, %v2807_v24, %v2815_v16  ;;  %v2900_v13 = vor.u32 %v2899_v47, %v2896_v3  ;;  %v2988_v3 = vshrl.u32 %v13303_v33, 16 }
 0x16c   : > { %11171 = vmatprep.mubr.msk.bf16.mxu0 %vm15499_vm0, %v2471_v51  ;;  %v2781_v51 = vor.u32 %v2780_v35, %v2777_v62  ;;  %v2740_v62 = vld [vmem:[#allocation2 + $0x88] sm:$0x1f]  ;;  %v2854_v35 = vrot.slane %v2852_v18, 4  ;;  %v2991_v47 = vshll.u32 %v13303_v33, 16  ;;  %v3005_v33 = vshrl.u32 %v13315_v7, 16 }
 0x16e   : > { %v2782_v21 = vsel %vm15500_vm5, %v2773_v50, %v2781_v51  ;;  %v2880_v50 = vshll.u32 %v2740_v62, 16  ;;  %v2886_v51 = vshrl.u32 %v13267_v31, 16  ;;  %v2906_v31 = vshll.u32 %v13277_v41, 16 }
 0x170   : > { %v2888_v28 = vrot.slane %v2886_v51, 4  ;;  %v2908_v16 = vrot.slane %v2906_v31, 5 }
 0x173   : > { %11172 = vmatmul.mubr.msk.bf16.gmra.mrb[20].mxu0 %vm15499_vm0, %v2474_v39  ;;  %v2821_v39 = vshll.u32 %v13236_v15, 16  ;;  %v2799_v15 = vsel %vm15500_vm5, %v2790_v1, %v2798_v2  ;;  %v2882_v2 = vrot.slane %v2880_v50, 5 }
 0x174   : > { %11175 = vmatprep.mubr.msk.bf16.mxu0 %vm15499_vm0, %v2477_v57  ;;  %v2826_v57 = vshrl.u32 %v2737_v48, 16  ;;  %v2877_v48 = vshrl.u32 %v2740_v62, 16 }
 0x176   : > { %v2828_v11 = vrot.slane %v2826_v57, 4  ;;  %v2871_v57 = vrot.slane %v2869_v29, 4  ;;  %v2879_v1 = vrot.slane %v2877_v48, 4 }
 0x178   : > { %v2832_v9 = vor.u32 %v2831_v0, %v2828_v11  ;;  %v2743_v11 = vld [vmem:[#allocation2 + $0xb8] sm:$0x1f]  ;;  %v2875_v0 = vor.u32 %v2874_v58, %v2871_v57  ;;  %v2971_v58 = vshrl.u32 %v13300_v56, 16 }
 0x179   : > { %v2928_v59 = vshrl.u32 %v2743_v11, 16  ;;  %v2931_v61 = vshll.u32 %v2743_v11, 16 }
 0x17b   : > { %11176 = vmatmul.mubr.msk.bf16.gmra.mrb[24].mxu0 %vm15499_vm0, %v2480_v10  ;;  %v2823_v10 = vrot.slane %v2821_v39, 5  ;;  %v2930_v34 = vrot.slane %v2928_v59, 4  ;;  %v2933_v27 = vrot.slane %v2931_v61, 5  ;;  %v3268_v59 = vld [vmem:[#allocation2 + $0x20] sm:$0xf8] }
 0x17c   : > { %11179 = vmatprep.mubr.msk.bf16.mxu0 %vm15499_vm0, %v2483_v55  ;;  %v2843_v55 = vshrl.u32 %v2738_v38, 16  ;;  %v2903_v38 = vshrl.u32 %v13277_v41, 16  ;;  %v13384_v61 = vld [vmem:[#allocation2 + $0x28] sm:$0xf] }
 0x17d   : > { %v2824_v17 = vor.u32 %v2823_v10, %v2820_v49 }
 0x17e   : > { %v2845_v25 = vrot.slane %v2843_v55, 4  ;;  %v2923_v55 = vshll.u32 %v13279_v42, 16  ;;  %v2905_v24 = vrot.slane %v2903_v38, 4  ;;  %v2937_v42 = vshrl.u32 %v13289_v60, 16 }
 0x17f   : > { %v2833_v32 = vsel %vm15500_vm5, %v2824_v17, %v2832_v9 }
 0x180   : > { %v2849_v46 = vor.u32 %v2848_v26, %v2845_v25  ;;  %v2925_v22 = vrot.slane %v2923_v55, 5  ;;  %v2745_v25 = vld [vmem:[#allocation2 + $0xd8] sm:$0x1f]  ;;  %v2909_v26 = vor.u32 %v2908_v16, %v2905_v24  ;;  %v2939_v45 = vrot.slane %v2937_v42, 4 }
 0x181   : > { %v2965_v43 = vshll.u32 %v2745_v25, 16  ;;  %v3008_v24 = vshll.u32 %v13315_v7, 16 }
 0x182   : > { %v2850_v39 = vsel %vm15500_vm5, %v2841_v20, %v2849_v46  ;;  %v2934_v46 = vor.u32 %v2933_v27, %v2930_v34  ;;  %v3309_v34 = vshrl.u32 %v13384_v61, 16  ;;  %v3312_v27 = vshll.u32 %v13384_v61, 16 }
 0x183   : > { %11180 = vmatmul.mubr.msk.bf16.gmra.mrb[28].mxu0 %vm15499_vm0, %v2486_v8  ;;  %v2857_v8 = vrot.slane %v2855_v19, 5  ;;  %v2744_v19 = vld [vmem:[#allocation2 + $0xc8] sm:$0x1f]  ;;  %v2967_v5 = vrot.slane %v2965_v43, 5 }
 0x184   : > { %11185 = vmatprep.mubr.msk.bf16.mxu0 %vm15499_vm0, %v2765_v37  ;;  %v2862_v37 = vrot.slane %v2860_v30, 4  ;;  %v2922_v30 = vrot.slane %v2920_v14, 4  ;;  %v2945_v62 = vshrl.u32 %v2744_v19, 16  ;;  %v3314_v43 = vrot.slane %v3312_v27, 4 }
 0x185   : > { %v2858_v54 = vor.u32 %v2857_v8, %v2854_v35  ;;  %v2948_v35 = vshll.u32 %v2744_v19, 16  ;;  %v2954_v8 = vshrl.u32 %v13291_v52, 16  ;;  %v3304_v19 = vshll.u32 %v3268_v59, 16 }
 0x186   : > { %v2866_v63 = vor.u32 %v2865_v40, %v2862_v37  ;;  %v2957_v37 = vshll.u32 %v13291_v52, 16  ;;  %v2962_v40 = vshrl.u32 %v2745_v25, 16  ;;  %v2926_v20 = vor.u32 %v2925_v22, %v2922_v30 }
 0x187   : > { %v2947_v50 = vrot.slane %v2945_v62, 4  ;;  %v2950_v51 = vrot.slane %v2948_v35, 5  ;;  %v2956_v6 = vrot.slane %v2954_v8, 4  ;;  %v3007_v25 = vrot.slane %v3005_v33, 4  ;;  %v13393_v8 = vld [vmem:[#allocation2 + $0x38] sm:$0xf] }
 0x188   : > { %v2867_v44 = vsel %vm15500_vm5, %v2858_v54, %v2866_v63  ;;  %v2964_v53 = vrot.slane %v2962_v40, 4  ;;  %v2935_v54 = vsel %vm15500_vm5, %v2926_v20, %v2934_v46  ;;  %v2746_v63 = vld [vmem:[#allocation2 + $0xe8] sm:$0x1f]  ;;  %v3306_v35 = vrot.slane %v3304_v19, 4  ;;  %v3272_v20 = vld [vmem:[#allocation2 + $0x40] sm:$0xf8] }
 0x189   : > { %v2951_v57 = vor.u32 %v2950_v51, %v2947_v50  ;;  %v3311_v40 = vrot.slane %v3309_v34, 3  ;;  %v13396_v46 = vld [vmem:[#allocation2 + $0x48] sm:$0xf]  ;;  %v3326_v51 = vshrl.u32 %v13393_v8, 16 }
 0x18b   : > { %11186 = vmatmul.mubr.msk.bf16.vlgmr.msra.gmra.mrb[0].mxu0 %vm15499_vm0, %v2782_v21  ;;  %v2742_v21 = vld [vmem:[#allocation2 + $0xa8] sm:$0x1f] }
 0x18c   : > { %11218 = vmatpush3.bf16.msra.mxu0 %v3623_v12  ;;  %11189 = vmatprep.mubr.msk.bf16.mxu0 %vm15499_vm0, %v2799_v15  ;;  %v2911_v49 = vshrl.u32 %v2742_v21, 16  ;;  %v2914_v10 = vshll.u32 %v2742_v21, 16  ;;  %v2883_v12 = vor.u32 %v2882_v2, %v2879_v1  ;;  %v2892_v15 = vor.u32 %v2891_v36, %v2888_v28 }
 0x18d   : > { %12307 = vmatprep.subr.msk.bf16.mxu0 %vm15502_vm3, %v13342_v23  ;;  %v2974_v1 = vshll.u32 %v13300_v56, 16  ;;  %v2968_v21 = vor.u32 %v2967_v5, %v2964_v53  ;;  %v2979_v28 = vshrl.u32 %v2746_v63, 16  ;;  %v2982_v36 = vshll.u32 %v2746_v63, 16 }
 0x18e   : > { %v2913_v41 = vrot.slane %v2911_v49, 4  ;;  %v2916_v17 = vrot.slane %v2914_v10, 5  ;;  %v2884_v9 = vsel %vm15500_vm5, %v2875_v0, %v2883_v12  ;;  %v2901_v18 = vsel %vm15500_vm5, %v2892_v15, %v2900_v13  ;;  %v2748_v12 = vld [vmem:[#allocation2 + $0x108] sm:$0x1f] }
 0x18f   : > { %v2973_v49 = vrot.slane %v2971_v58, 4  ;;  %v2976_v11 = vrot.slane %v2974_v1, 5  ;;  %v2981_v0 = vrot.slane %v2979_v28, 4  ;;  %v2984_v56 = vrot.slane %v2982_v36, 5 }
 0x190   : > { %v2990_v15 = vrot.slane %v2988_v3, 4  ;;  %v2993_v13 = vrot.slane %v2991_v47, 5  ;;  %v3013_v16 = vshrl.u32 %v2748_v12, 16  ;;  %v3338_v53 = vshll.u32 %v3272_v20, 16 }
 0x191   : > { %v3343_v5 = vshrl.u32 %v13396_v46, 16  ;;  %v3328_v1 = vrot.slane %v3326_v51, 3 }
 0x192   : > { %v2994_v30 = vor.u32 %v2993_v13, %v2990_v15  ;;  %v3340_v36 = vrot.slane %v3338_v53, 4 }
 0x193   : > { %11190 = vmatmul.mubr.msk.bf16.gmra.mrb[4].mxu0 %vm15499_vm0, %v2816_v4  ;;  %v2917_v4 = vor.u32 %v2916_v17, %v2913_v41  ;;  %v3016_v41 = vshll.u32 %v2748_v12, 16  ;;  %v2977_v17 = vor.u32 %v2976_v11, %v2973_v49  ;;  %v3345_v3 = vrot.slane %v3343_v5, 3  ;;  %v3276_v49 = vld [vmem:[#allocation2 + $0x60] sm:$0xf8] }
 0x194   : > { %11193 = vmatprep.mubr.msk.bf16.mxu0 %vm15499_vm0, %v2833_v32  ;;  %v2940_v32 = vshll.u32 %v13289_v60, 16  ;;  %v2959_v60 = vrot.slane %v2957_v37, 5 }
 0x195   : > { %v2918_v29 = vsel %vm15500_vm5, %v2909_v26, %v2917_v4  ;;  %v3010_v26 = vrot.slane %v3008_v24, 5  ;;  %v3015_v4 = vrot.slane %v3013_v16, 4  ;;  %v3018_v42 = vrot.slane %v3016_v41, 5  ;;  %v3278_v16 = vld [vmem:[#allocation2 + $0x70] sm:$0xf8] }
 0x196   : > { %v2942_v48 = vrot.slane %v2940_v32, 5  ;;  %v2960_v2 = vor.u32 %v2959_v60, %v2956_v6  ;;  %v3270_v32 = vld [vmem:[#allocation2 + $0x30] sm:$0xf8]  ;;  %v3329_v6 = vshll.u32 %v13393_v8, 16  ;;  %v3335_v60 = vshrl.u32 %v3272_v20, 16 }
 0x197   : > { %v3019_v50 = vor.u32 %v3018_v42, %v3015_v4  ;;  %v3965_v41 = vsel %vm15502_vm3, %v13342_v23, 0  ;;  %v3386_v27 = vshrl.u32 %v3278_v16, 16 }
 0x198   : > { %v2943_v52 = vor.u32 %v2942_v48, %v2939_v45  ;;  %v2969_v10 = vsel %vm15500_vm5, %v2960_v2, %v2968_v21  ;;  %v3321_v45 = vshll.u32 %v3270_v32, 16  ;;  %v3011_v48 = vor.u32 %v3010_v26, %v3007_v25  ;;  %v3274_v21 = vld [vmem:[#allocation2 + $0x50] sm:$0xf8] }
 0x199   : > { %v3331_v2 = vrot.slane %v3329_v6, 4  ;;  %v3337_v28 = vrot.slane %v3335_v60, 3  ;;  %v3389_v25 = vshll.u32 %v3278_v16, 16  ;;  %v3388_v6 = vrot.slane %v3386_v27, 3 }
 0x19a   : > { %v2952_v31 = vsel %vm15500_vm5, %v2943_v52, %v2951_v57  ;;  %v3323_v57 = vrot.slane %v3321_v45, 4  ;;  %v3020_v58 = vsel %vm15500_vm5, %v3011_v48, %v3019_v50 }
 0x19b   : > { %11194 = vmatmul.mubr.msk.bf16.gmra.mrb[8].mxu0 %vm15499_vm0, %v2850_v39  ;;  %v2747_v39 = vld [vmem:[#allocation2 + $0xf8] sm:$0x1f]  ;;  %v3332_v11 = vor.u32 %v3331_v2, %v3328_v1  ;;  %v3341_v15 = vor.u32 %v3340_v36, %v3337_v28  ;;  %v3391_v60 = vrot.slane %v3389_v25, 4  ;;  %v13441_v28 = vld [vmem:[#allocation2 + $0xa8] sm:$0xf] }
 0x19c   : > { %11197 = vmatprep.mubr.msk.bf16.mxu0 %vm15499_vm0, %v2867_v44  ;;  %v2996_v44 = vshrl.u32 %v2747_v39, 16  ;;  %v2999_v38 = vshll.u32 %v2747_v39, 16  ;;  %v3315_v39 = vor.u32 %v3314_v43, %v3311_v40 }
 0x19d   : > { %v3392_v36 = vor.u32 %v3391_v60, %v3388_v6 }
 0x19e   : > { %v2998_v14 = vrot.slane %v2996_v44, 4  ;;  %v3001_v55 = vrot.slane %v2999_v38, 5  ;;  %v13405_v44 = vld [vmem:[#allocation2 + $0x58] sm:$0xf] }
 0x19f   : > { %v3360_v12 = vshrl.u32 %v13405_v44, 16 }
 0x1a0   : > { %v3002_v22 = vor.u32 %v3001_v55, %v2998_v14  ;;  %v3363_v14 = vshll.u32 %v13405_v44, 16  ;;  %v3369_v55 = vshrl.u32 %v3276_v49, 16 }
 0x1a1   : > { %v3362_v19 = vrot.slane %v3360_v12, 3  ;;  %v3448_v12 = vshll.u32 %v13441_v28, 16 }
 0x1a2   : > { %v3003_v37 = vsel %vm15500_vm5, %v2994_v30, %v3002_v22  ;;  %v13419_v30 = vld [vmem:[#allocation2 + $0x78] sm:$0xf]  ;;  %v3365_v34 = vrot.slane %v3363_v14, 4  ;;  %v3371_v26 = vrot.slane %v3369_v55, 3 }
 0x1a3   : > { %11198 = vmatmul.mubr.msk.bf16.gmra.mrb[12].mxu0 %vm15499_vm0, %v2884_v9  ;;  %v2985_v9 = vor.u32 %v2984_v56, %v2981_v0  ;;  %v3352_v0 = vshrl.u32 %v3274_v21, 16  ;;  %v3355_v56 = vshll.u32 %v3274_v21, 16  ;;  %v3397_v23 = vshll.u32 %v13419_v30, 16  ;;  %v3284_v21 = vld [vmem:[#allocation2 + $0xa0] sm:$0xf8] }
 0x1a4   : > { %11201 = vmatprep.mubr.msk.bf16.mxu0 %vm15499_vm0, %v2901_v18  ;;  %v3301_v18 = vshrl.u32 %v3268_v59, 16  ;;  %v3372_v59 = vshll.u32 %v3276_v49, 16  ;;  %v3366_v43 = vor.u32 %v3365_v34, %v3362_v19  ;;  %v3450_v34 = vrot.slane %v3448_v12, 4 }
 0x1a5   : > { %v2986_v7 = vsel %vm15500_vm5, %v2977_v17, %v2985_v9  ;;  %v3354_v9 = vrot.slane %v3352_v0, 3  ;;  %v3399_v5 = vrot.slane %v3397_v23, 4  ;;  %v3440_v0 = vshll.u32 %v3284_v21, 16 }
 0x1a6   : > { %v3303_v62 = vrot.slane %v3301_v18, 3  ;;  %v3357_v18 = vrot.slane %v3355_v56, 4  ;;  %v3374_v4 = vrot.slane %v3372_v59, 4  ;;  %v3445_v56 = vshrl.u32 %v13441_v28, 16 }
 0x1a7   : > { %v3442_v19 = vrot.slane %v3440_v0, 4 }
 0x1a8   : > { %v3307_v63 = vor.u32 %v3306_v35, %v3303_v62  ;;  %v3394_v62 = vshrl.u32 %v13419_v30, 16  ;;  %v13424_v35 = vld [vmem:[#allocation2 + $0x88] sm:$0xf]  ;;  %v3358_v40 = vor.u32 %v3357_v18, %v3354_v9  ;;  %v3375_v45 = vor.u32 %v3374_v4, %v3371_v26  ;;  %v3288_v4 = vld [vmem:[#allocation2 + $0xc0] sm:$0xf8] }
 0x1a9   : > { %v3411_v50 = vshrl.u32 %v13424_v35, 16  ;;  %v3414_v51 = vshll.u32 %v13424_v35, 16 }
 0x1aa   : > { %v3316_v38 = vsel %vm15501_vm4, %v3307_v63, %v3315_v39  ;;  %v3396_v53 = vrot.slane %v3394_v62, 3  ;;  %v3367_v63 = vsel %vm15501_vm4, %v3358_v40, %v3366_v43  ;;  %v3290_v40 = vld [vmem:[#allocation2 + $0xd0] sm:$0xf8] }
 0x1ab   : > { %11202 = vmatmul.mubr.msk.bf16.gmra.mrb[16].mxu0 %vm15499_vm0, %v2918_v29  ;;  %v3318_v29 = vshrl.u32 %v3270_v32, 16  ;;  %v3413_v1 = vrot.slane %v3411_v50, 3  ;;  %v3416_v2 = vrot.slane %v3414_v51, 4  ;;  %v3488_v60 = vshrl.u32 %v3290_v40, 16 }
 0x1ac   : > { %11205 = vmatprep.mubr.msk.bf16.mxu0 %vm15499_vm0, %v2935_v54  ;;  %v3346_v54 = vshll.u32 %v13396_v46, 16 }
 0x1ad   : > { %v3320_v52 = vrot.slane %v3318_v29, 3  ;;  %v3417_v14 = vor.u32 %v3416_v2, %v3413_v1 }
 0x1ae   : > { %v3348_v47 = vrot.slane %v3346_v54, 4  ;;  %v3282_v54 = vld [vmem:[#allocation2 + $0x90] sm:$0xf8] }
 0x1b0   : > { %v3349_v13 = vor.u32 %v3348_v47, %v3345_v3  ;;  %v3400_v3 = vor.u32 %v3399_v5, %v3396_v53  ;;  %v3420_v47 = vshrl.u32 %v3282_v54, 16  ;;  %v3491_v53 = vshll.u32 %v3290_v40, 16  ;;  %v13461_v5 = vld [vmem:[#allocation2 + $0xd8] sm:$0xf] }
 0x1b2   : > { %v3350_v22 = vsel %vm15501_vm4, %v3341_v15, %v3349_v13  ;;  %v3286_v15 = vld [vmem:[#allocation2 + $0xb0] sm:$0xf8]  ;;  %v3401_v55 = vsel %vm15501_vm4, %v3392_v36, %v3400_v3  ;;  %v3422_v59 = vrot.slane %v3420_v47, 3  ;;  %v3292_v36 = vld [vmem:[#allocation2 + $0xe0] sm:$0xf8]  ;;  %v13467_v47 = vrot.slane %v3488_v60, 3 }
 0x1b3   : > { %11206 = vmatmul.mubr.msk.bf16.gmra.mrb[20].mxu0 %vm15499_vm0, %v2952_v31  ;;  %v3324_v31 = vor.u32 %v3323_v57, %v3320_v52  ;;  %v13438_v57 = vld [vmem:[#allocation2 + $0x98] sm:$0xf]  ;;  %v3457_v9 = vshll.u32 %v3286_v15, 16  ;;  %v13465_v3 = vld [vmem:[#allocation2 + $0xe8] sm:$0xf] }
 0x1b4   : > { %11209 = vmatprep.mubr.msk.bf16.mxu0 %vm15499_vm0, %v2969_v10  ;;  %v13408_v10 = vld [vmem:[#allocation2 + $0x68] sm:$0xf]  ;;  %v3431_v49 = vshll.u32 %v13438_v57, 16  ;;  %v12493_v60 = vld [vmem:[#allocation2 + $0xa0] sm:$0xf0] }
 0x1b5   : > { %v3377_v33 = vshrl.u32 %v13408_v10, 16  ;;  %v3380_v24 = vshll.u32 %v13408_v10, 16  ;;  %v3333_v17 = vsel %vm15501_vm4, %v3324_v31, %v3332_v11  ;;  %v3428_v31 = vshrl.u32 %v13438_v57, 16 }
 0x1b6   : > { %v3437_v11 = vshrl.u32 %v3284_v21, 16  ;;  %v3459_v23 = vrot.slane %v3457_v9, 4 }
 0x1b7   : > { %v3379_v42 = vrot.slane %v3377_v33, 3  ;;  %v3382_v32 = vrot.slane %v3380_v24, 4  ;;  %v13450_v24 = vld [vmem:[#allocation2 + $0xb8] sm:$0xf]  ;;  %v3430_v16 = vrot.slane %v3428_v31, 3  ;;  %v3496_v31 = vshrl.u32 %v13461_v5, 16 }
 0x1b8   : > { %v3439_v18 = vrot.slane %v3437_v11, 3  ;;  %v3462_v25 = vshrl.u32 %v13450_v24, 16  ;;  %v3465_v26 = vshll.u32 %v13450_v24, 16  ;;  %v12489_v11 = vld [vmem:[#allocation2 + $0x80] sm:$0xf0] }
 0x1b9   : > { %v3383_v48 = vor.u32 %v3382_v32, %v3379_v42  ;;  %v13455_v42 = vld [vmem:[#allocation2 + $0xc8] sm:$0xf]  ;;  %v855_v0 = vrot.slane %v12489_v11, 4 }
 0x1ba   : > { %v3443_v43 = vor.u32 %v3442_v19, %v3439_v18  ;;  %v3467_v50 = vrot.slane %v3465_v26, 4  ;;  %v3479_v51 = vshrl.u32 %v13455_v42, 16  ;;  %v3482_v6 = vshll.u32 %v13455_v42, 16  ;;  %v13481_v26 = vld [vmem:[#allocation2 + $0xf8] sm:$0xf] }
 0x1bb   : > { %11210 = vmatmul.mubr.msk.bf16.gmra.mrb[24].mxu0 %vm15499_vm0, %v2986_v7  ;;  %v3280_v7 = vld [vmem:[#allocation2 + $0x80] sm:$0xf8] }
 0x1bc   : > { %11213 = vmatprep.mubr.msk.bf16.mxu0 %vm15499_vm0, %v3003_v37  ;;  %v13429_v37 = vld [vmem:[%s15491_s1 + $0x20] sm:$0xf]  ;;  %v3403_v20 = vshrl.u32 %v3280_v7, 16  ;;  %v3406_v29 = vshll.u32 %v3280_v7, 16  ;;  %v3481_v2 = vrot.slane %v3479_v51, 3  ;;  %v3484_v21 = vrot.slane %v3482_v6, 4 }
 0x1bd   : > { %v13489_v51 = vld [vmem:[#allocation2 + $0x108] sm:$0xf] }
 0x1be   : > { %v3405_v39 = vrot.slane %v3403_v20, 3  ;;  %v3408_v52 = vrot.slane %v3406_v29, 4  ;;  %v3471_v29 = vshrl.u32 %v3288_v4, 16  ;;  %v3485_v18 = vor.u32 %v3484_v21, %v3481_v2  ;;  %v12496_v21 = vld [vmem:[#allocation2 + $0xb8] sm:$0xf] }
 0x1c0   : > { %v3409_v13 = vor.u32 %v3408_v52, %v3405_v39  ;;  %v3473_v39 = vrot.slane %v3471_v29, 3 }
 0x1c2   : > { %v3418_v27 = vsel %vm15501_vm4, %v3409_v13, %v3417_v14  ;;  %v12492_v14 = vld [vmem:[#allocation2 + $0x98] sm:$0xf] }
 0x1c3   : > { %11214 = vmatmul.mubr.msk.bf16.gmra.mrb[28].mxu0 %vm15499_vm0, %v3020_v58  ;;  %v3384_v58 = vsel %vm15501_vm4, %v3375_v45, %v3383_v48  ;;  %v3474_v45 = vshll.u32 %v3288_v4, 16  ;;  %v3464_v48 = vrot.slane %v3462_v25, 3 }
 0x1c4   : > { %11219 = vmatprep.mubr.msk.bf16.mxu0 %vm15499_vm0, %v3316_v38  ;;  %v3423_v38 = vshll.u32 %v3282_v54, 16 }
 0x1c5   : > { %v3476_v52 = vrot.slane %v3474_v45, 4  ;;  %v3468_v1 = vor.u32 %v3467_v50, %v3464_v48  ;;  %v3530_v48 = vshrl.u32 %v13481_v26, 16  ;;  %v3533_v50 = vshll.u32 %v13481_v26, 16 }
 0x1c6   : > { %v3425_v33 = vrot.slane %v3423_v38, 4  ;;  %v13469_v38 = vrot.slane %v3491_v53, 4  ;;  %v861_v53 = vrot.slane %v12493_v60, 4 }
 0x1c7   : > { %v3477_v9 = vor.u32 %v3476_v52, %v3473_v39  ;;  %v12495_v39 = vld [vmem:[#allocation2 + $0xb0] sm:$0xf0] }
 0x1c8   : > { %v3426_v32 = vor.u32 %v3425_v33, %v3422_v59  ;;  %v3505_v59 = vshrl.u32 %v3292_v36, 16  ;;  %v3508_v33 = vshll.u32 %v3292_v36, 16  ;;  %v864_v52 = vrot.slane %v12495_v39, 4  ;;  %v12501_v39 = vld [vmem:[#allocation2 + $0xe0] sm:$0xf0] }
 0x1c9   : > { %v3486_v40 = vsel %vm15501_vm4, %v3477_v9, %v3485_v18  ;;  %v865_v36 = vrot.slane %v12496_v21, 4 }
 0x1cb   : > { %11220 = vmatmul.mubr.msk.bf16.vlgmr.msra.gmra.mrb[0].mxu0 %vm15499_vm0, %v3333_v17  ;;  %v3454_v17 = vshrl.u32 %v3286_v15, 16  ;;  %v12491_v15 = vld [vmem:[#allocation2 + $0x90] sm:$0xf0] }
 0x1cc   : > { %11252 = vmatpush3.bf16.msra.mxu0 %v3965_v41  ;;  %11223 = vmatprep.mubr.msk.bf16.mxu0 %vm15499_vm0, %v3350_v22  ;;  %v3433_v41 = vrot.slane %v3431_v49, 4  ;;  %v3447_v22 = vrot.slane %v3445_v56, 3  ;;  %v3499_v49 = vshll.u32 %v13461_v5, 16  ;;  %v12490_v56 = vld [vmem:[#allocation2 + $0x88] sm:$0xf]  ;;  %v858_v13 = vrot.slane %v12491_v15, 4 }
 0x1cd   : > { %12308 = vmatprep.subr.msk.bf16.mxu0 %vm15502_vm3, %v13429_v37  ;;  %v3456_v62 = vrot.slane %v3454_v17, 3  ;;  %v856_v12 = vrot.slane %v12490_v56, 4  ;;  %v3294_v17 = vld [vmem:[#allocation2 + $0xf0] sm:$0xf8]  ;;  %v3535_v56 = vrot.slane %v3533_v50, 4 }
 0x1ce   : > { %v3434_v7 = vor.u32 %v3433_v41, %v3430_v16  ;;  %v3451_v20 = vor.u32 %v3450_v34, %v3447_v22  ;;  %v3513_v16 = vshrl.u32 %v13465_v3, 16  ;;  %v3516_v41 = vshll.u32 %v13465_v3, 16 }
 0x1cf   : > { %v857_v19 = vsel %vm15502_vm3, %v855_v0, %v856_v12  ;;  %v3498_v34 = vrot.slane %v3496_v31, 3  ;;  %v3522_v4 = vshrl.u32 %v3294_v17, 16  ;;  %v3525_v45 = vshll.u32 %v3294_v17, 16 }
 0x1d0   : > { %v3435_v54 = vsel %vm15501_vm4, %v3426_v32, %v3434_v7  ;;  %11031 = vmatprep.mubr.msk.bf16.mxu1 %vm15499_vm0, %v857_v19  ;;  %v3507_v32 = vrot.slane %v3505_v59, 3  ;;  %v3510_v7 = vrot.slane %v3508_v33, 4  ;;  %v3550_v31 = vshll.u32 %v13489_v51, 16 }
 0x1d1   : > { %v3524_v6 = vrot.slane %v3522_v4, 3  ;;  %v3527_v11 = vrot.slane %v3525_v45, 4  ;;  %v3532_v0 = vrot.slane %v3530_v48, 3  ;;  %v866_v12 = vsel %vm15502_vm3, %v864_v52, %v865_v36  ;;  %v12503_v36 = vld [vmem:[#allocation2 + $0xf0] sm:$0xf0] }
 0x1d2   : > { %v873_v52 = vrot.slane %v12501_v39, 4 }
 0x1d3   : > { %11224 = vmatmul.mubr.msk.bf16.gmra.mrb[4].mxu0 %vm15499_vm0, %v3367_v63  ;;  %v3460_v63 = vor.u32 %v3459_v23, %v3456_v62  ;;  %v3515_v62 = vrot.slane %v3513_v16, 3  ;;  %v3518_v23 = vrot.slane %v3516_v41, 4  ;;  %v3552_v16 = vrot.slane %v3550_v31, 4  ;;  %v13501_v41 = vld [vmem:[#allocation2 + $0x118] sm:$0xf] }
 0x1d4   : > { %11227 = vmatprep.mubr.msk.bf16.mxu0 %vm15499_vm0, %v3384_v58  ;;  %v3452_v58 = vsel %vm15501_vm4, %v3443_v43, %v3451_v20  ;;  %v3494_v43 = vor.u32 %v13469_v38, %v13467_v47  ;;  %v3296_v20 = vld [vmem:[#allocation2 + $0x100] sm:$0xf8]  ;;  %v3547_v38 = vshrl.u32 %v13489_v51, 16  ;;  %v3528_v17 = vor.u32 %v3527_v11, %v3524_v6 }
 0x1d5   : > { %v3469_v25 = vsel %vm15501_vm4, %v3460_v63, %v3468_v1  ;;  %v3519_v1 = vor.u32 %v3518_v23, %v3515_v62  ;;  %v3539_v2 = vshrl.u32 %v3296_v20, 16  ;;  %v3542_v47 = vshll.u32 %v3296_v20, 16  ;;  %v12500_v23 = vld [vmem:[#allocation2 + $0xd8] sm:$0xf] }
 0x1d6   : > { %v3549_v33 = vrot.slane %v3547_v38, 3  ;;  %v3536_v9 = vor.u32 %v3535_v56, %v3532_v0  ;;  %v3564_v4 = vshrl.u32 %v13501_v41, 16  ;;  %v12504_v38 = vld [vmem:[#allocation2 + $0xf8] sm:$0xf]  ;;  %v3867_v11 = vrot.slane %v13384_v61, 4 }
 0x1d7   : > { %v3544_v59 = vrot.slane %v3542_v47, 4  ;;  %v876_v47 = vrot.slane %v12503_v36, 4  ;;  %v877_v31 = vrot.slane %v12504_v38, 4  ;;  %v13598_v36 = vld [vmem:[#allocation2 + $0xf0] sm:$0xf0] }
 0x1d8   : > { %v3553_v20 = vor.u32 %v3552_v16, %v3549_v33  ;;  %v3537_v48 = vsel %vm15501_vm4, %v3528_v17, %v3536_v9  ;;  %v3566_v60 = vrot.slane %v3564_v4, 3  ;;  %v3873_v33 = vrot.slane %v13396_v46, 4  ;;  %v13553_v4 = vld [vmem:[#allocation2 + $0x80] sm:$0xf0]  ;;  %v4160_v38 = vld [vmem:[#allocation2 + $0x28] sm:$0x1f] }
 0x1d9   : > { %v878_v56 = vsel %vm15502_vm3, %v876_v47, %v877_v31  ;;  %v4499_v17 = vsel %vm15502_vm3, %v13429_v37, 0  ;;  %v3876_v46 = vrot.slane %v13405_v44, 4  ;;  %v3882_v44 = vrot.slane %v13419_v30, 4  ;;  %v13601_v31 = vld [vmem:[#allocation2 + $0x100] sm:$0xf0] }
 0x1da   : > { %v3888_v30 = vrot.slane %v13438_v57, 4  ;;  %v3894_v57 = vrot.slane %v13450_v24, 4  ;;  %v3900_v24 = vrot.slane %v13461_v5, 4 }
 0x1db   : > { %11228 = vmatmul.mubr.msk.bf16.gmra.mrb[8].mxu0 %vm15499_vm0, %v3401_v55  ;;  %v859_v55 = vrot.slane %v12492_v14, 4  ;;  %v3298_v14 = vld [vmem:[#allocation2 + $0x110] sm:$0xf8] }
 0x1dc   : > { %11231 = vmatprep.mubr.msk.bf16.mxu0 %vm15499_vm0, %v3418_v27  ;;  %v3501_v27 = vrot.slane %v3499_v49, 4  ;;  %v3556_v18 = vshrl.u32 %v3298_v14, 16  ;;  %v3559_v19 = vshll.u32 %v3298_v14, 16  ;;  %v13527_v14 = vld [vmem:[#allocation2 + $0x40] sm:$0xf0] }
 0x1dd   : > { %v860_v22 = vsel %vm15502_vm3, %v858_v13, %v859_v55  ;;  %v3541_v55 = vrot.slane %v3539_v2, 3 }
 0x1de   : > { %11032 = vmatmul.mubr.msk.bf16.vlgmr.msra.gmra.mrb[0].mxu1 %vm15499_vm0, %v860_v22  ;;  %v3502_v29 = vor.u32 %v3501_v27, %v3498_v34  ;;  %v12497_v22 = vld [vmem:[#allocation2 + $0xc0] sm:$0xf0]  ;;  %v12498_v27 = vld [vmem:[#allocation2 + $0xc8] sm:$0xf]  ;;  %v3558_v50 = vrot.slane %v3556_v18, 3  ;;  %v3561_v6 = vrot.slane %v3559_v19, 4 }
 0x1df   : > { %v867_v34 = vrot.slane %v12497_v22, 4  ;;  %v13539_v18 = vld [vmem:[#allocation2 + $0x50] sm:$0xf0]  ;;  %v13541_v19 = vld [vmem:[#allocation2 + $0x60] sm:$0xf0] }
 0x1e0   : > { %v3503_v15 = vsel %vm15501_vm4, %v3494_v43, %v3502_v29  ;;  %v3545_v43 = vor.u32 %v3544_v59, %v3541_v55  ;;  %v3562_v2 = vor.u32 %v3561_v6, %v3558_v50  ;;  %v3870_v55 = vrot.slane %v13393_v8, 4  ;;  %v13575_v50 = vld [vmem:[#allocation2 + $0xb0] sm:$0xf0]  ;;  %v13577_v6 = vld [vmem:[#allocation2 + $0xc0] sm:$0xf0] }
 0x1e1   : > { %v3872_v59 = vrot.slane %v13527_v14, 4  ;;  %v3875_v8 = vrot.slane %v13539_v18, 4  ;;  %v3878_v22 = vrot.slane %v13541_v19, 4 }
 0x1e3   : > { %11232 = vmatmul.mubr.msk.bf16.gmra.mrb[12].mxu0 %vm15499_vm0, %v3435_v54  ;;  %v12494_v54 = vld [vmem:[#allocation2 + $0xa8] sm:$0xf]  ;;  %v3874_v9 = vsel %vm15502_vm3, %v3872_v59, %v3873_v33  ;;  %v3877_v37 = vsel %vm15502_vm3, %v3875_v8, %v3876_v46 }
 0x1e4   : > { %11235 = vmatprep.mubr.msk.bf16.mxu0 %vm15499_vm0, %v3452_v58  ;;  %v862_v63 = vrot.slane %v12494_v54, 4  ;;  %v3511_v58 = vor.u32 %v3510_v7, %v3507_v32  ;;  %v3567_v32 = vshll.u32 %v13501_v41, 16  ;;  %v12499_v7 = vld [vmem:[#allocation2 + $0xd0] sm:$0xf0]  ;;  %v3554_v54 = vsel %vm15501_vm4, %v3545_v43, %v3553_v20  ;;  %v13565_v43 = vld [vmem:[#allocation2 + $0xa0] sm:$0xf0] }
 0x1e5   : > { %v870_v62 = vrot.slane %v12499_v7, 4  ;;  %v3884_v7 = vrot.slane %v13553_v4, 4 }
 0x1e6   : > { %v863_v49 = vsel %vm15502_vm3, %v861_v53, %v862_v63  ;;  %v3520_v13 = vsel %vm15501_vm4, %v3511_v58, %v3519_v1  ;;  %v3569_v53 = vrot.slane %v3567_v32, 4  ;;  %v13513_v63 = vld [vmem:[#allocation2 + $0x20] sm:$0xf0]  ;;  %v12502_v58 = vld [vmem:[#allocation2 + $0xe8] sm:$0xf] }
 0x1e7   : > { %11035 = vmatprep.mubr.msk.bf16.mxu1 %vm15499_vm0, %v863_v49  ;;  %v874_v1 = vrot.slane %v12502_v58, 4  ;;  %v3866_v49 = vrot.slane %v13513_v63, 4  ;;  %v13589_v58 = vld [vmem:[#allocation2 + $0xe0] sm:$0xf0]  ;;  %v4177_v5 = vshrl.u32 %v13513_v63, 16 }
 0x1e8   : > { %11036 = vmatmul.mubr.msk.bf16.gmra.mrb[4].mxu1 %vm15499_vm0, %v866_v12  ;;  %v3570_v21 = vor.u32 %v3569_v53, %v3566_v60  ;;  %v3893_v60 = vrot.slane %v13575_v50, 4  ;;  %v3896_v53 = vrot.slane %v13577_v6, 4 }
 0x1e9   : > { %v875_v0 = vsel %vm15502_vm3, %v873_v52, %v874_v1  ;;  %v13587_v52 = vld [vmem:[#allocation2 + $0xd0] sm:$0xf0]  ;;  %v4179_v59 = vrot.slane %v4177_v5, 4 }
 0x1ea   : > { %v3571_v12 = vsel %vm15501_vm4, %v3562_v2, %v3570_v21  ;;  %v3899_v1 = vrot.slane %v13587_v52, 4  ;;  %v3902_v2 = vrot.slane %v13589_v58, 4 }
 0x1eb   : > { %11236 = vmatmul.mubr.msk.bf16.gmra.mrb[16].mxu0 %vm15499_vm0, %v3469_v25  ;;  %v868_v25 = vrot.slane %v12498_v27, 4 }
 0x1ec   : > { %11239 = vmatprep.mubr.msk.bf16.mxu0 %vm15499_vm0, %v3486_v40  ;;  %v871_v40 = vrot.slane %v12500_v23, 4  ;;  %v3901_v21 = vsel %vm15502_vm3, %v3899_v1, %v3900_v24 }
 0x1ed   : > { %v869_v29 = vsel %vm15502_vm3, %v867_v34, %v868_v25  ;;  %v3879_v34 = vrot.slane %v13408_v10, 4  ;;  %v13551_v25 = vld [vmem:[#allocation2 + $0x70] sm:$0xf0]  ;;  %v3885_v10 = vrot.slane %v13424_v35, 4  ;;  %v3891_v35 = vrot.slane %v13441_v28, 4 }
 0x1ee   : > { %11039 = vmatprep.mubr.msk.bf16.mxu1 %vm15499_vm0, %v869_v29  ;;  %v872_v45 = vsel %vm15502_vm3, %v870_v62, %v871_v40  ;;  %v3881_v32 = vrot.slane %v13551_v25, 4  ;;  %v13563_v40 = vld [vmem:[#allocation2 + $0x90] sm:$0xf0]  ;;  %v3890_v29 = vrot.slane %v13565_v43, 4  ;;  %v3897_v28 = vrot.slane %v13455_v42, 4 }
 0x1ef   : > { %v3880_v27 = vsel %vm15502_vm3, %v3878_v22, %v3879_v34  ;;  %v3886_v23 = vsel %vm15502_vm3, %v3884_v7, %v3885_v10  ;;  %v3887_v20 = vrot.slane %v13563_v40, 4  ;;  %v3903_v42 = vrot.slane %v13465_v3, 4  ;;  %v4162_v34 = vld [vmem:[#allocation2 + $0x48] sm:$0x1f] }
 0x1f0   : > { %11040 = vmatmul.mubr.msk.bf16.gmra.mrb[8].mxu1 %vm15499_vm0, %v872_v45  ;;  %v3883_v62 = vsel %vm15502_vm3, %v3881_v32, %v3882_v44  ;;  %v3898_v39 = vsel %vm15502_vm3, %v3896_v53, %v3897_v28  ;;  %v4180_v3 = vshll.u32 %v13513_v63, 16  ;;  %v4211_v44 = vshrl.u32 %v13527_v14, 16  ;;  %v4164_v53 = vld [vmem:[#allocation2 + $0x68] sm:$0x1f] }
 0x1f1   : > { %11043 = vmatprep.mubr.msk.bf16.mxu1 %vm15499_vm0, %v875_v0  ;;  %v3889_v45 = vsel %vm15502_vm3, %v3887_v20, %v3888_v30  ;;  %v3904_v47 = vsel %vm15502_vm3, %v3902_v2, %v3903_v42  ;;  %v4185_v0 = vshrl.u32 %v4160_v38, 16  ;;  %v4214_v7 = vshll.u32 %v13527_v14, 16 }
 0x1f2   : > { %v4182_v33 = vrot.slane %v4180_v3, 5  ;;  %v4219_v10 = vshrl.u32 %v4162_v34, 16  ;;  %v4228_v14 = vshrl.u32 %v13539_v18, 16  ;;  %v4245_v2 = vshrl.u32 %v13541_v19, 16 }
 0x1f3   : > { %11240 = vmatmul.mubr.msk.bf16.gmra.mrb[20].mxu0 %vm15499_vm0, %v3503_v15  ;;  %v3868_v15 = vsel %vm15502_vm3, %v3866_v49, %v3867_v11  ;;  %v3905_v49 = vrot.slane %v13598_v36, 4  ;;  %v3906_v11 = vrot.slane %v13481_v26, 4  ;;  %v4248_v42 = vshll.u32 %v13541_v19, 16 }
 0x1f4   : > { %11243 = vmatprep.mubr.msk.bf16.mxu0 %vm15499_vm0, %v3520_v13  ;;  %v13525_v13 = vld [vmem:[#allocation2 + $0x30] sm:$0xf0]  ;;  %v4230_v5 = vrot.slane %v4228_v14, 4  ;;  %v4265_v19 = vshll.u32 %v13551_v25, 16 }
 0x1f5   : > { %v3869_v61 = vrot.slane %v13525_v13, 4  ;;  %v4194_v8 = vshrl.u32 %v13525_v13, 16  ;;  %v4197_v63 = vshll.u32 %v13525_v13, 16 }
 0x1f7   : > { %v3871_v16 = vsel %vm15502_vm3, %v3869_v61, %v3870_v55  ;;  %v3907_v61 = vsel %vm15502_vm3, %v3905_v49, %v3906_v11  ;;  %v4161_v55 = vld [vmem:[#allocation2 + $0x38] sm:$0x1f]  ;;  %v4196_v13 = vrot.slane %v4194_v8, 4 }
 0x1f8   : > { %11044 = vmatmul.mubr.msk.bf16.gmra.mrb[12].mxu1 %vm15499_vm0, %v878_v56  ;;  %v4188_v56 = vshll.u32 %v4160_v38, 16  ;;  %v4202_v46 = vshrl.u32 %v4161_v55, 16  ;;  %v4205_v22 = vshll.u32 %v4161_v55, 16 }
 0x1fa   : > { %v4204_v20 = vrot.slane %v4202_v46, 4  ;;  %v4207_v30 = vrot.slane %v4205_v22, 5 }
 0x1fb   : > { %11244 = vmatmul.mubr.msk.bf16.gmra.mrb[24].mxu0 %vm15499_vm0, %v3537_v48  ;;  %v3892_v48 = vsel %vm15502_vm3, %v3890_v29, %v3891_v35 }
 0x1fc   : > { %11247 = vmatprep.mubr.msk.bf16.mxu0 %vm15499_vm0, %v3554_v54  ;;  %v3895_v54 = vsel %vm15502_vm3, %v3893_v60, %v3894_v57  ;;  %v4216_v60 = vrot.slane %v4214_v7, 5 }
 0x203   : > { %11248 = vmatmul.mubr.msk.bf16.gmra.mrb[28].mxu0 %vm15499_vm0, %v3571_v12  ;;  %v3908_v12 = vrot.slane %v13601_v31, 4 }
 0x204   : > { %11253 = vmatprep.mubr.msk.bf16.mxu0 %vm15499_vm0, %v3868_v15  ;;  %v3909_v15 = vrot.slane %v13489_v51, 4 }
 0x206   : > { %v3910_v26 = vsel %vm15502_vm3, %v3908_v12, %v3909_v15  ;;  %v4165_v12 = vld [vmem:[#allocation2 + $0x78] sm:$0x1f]  ;;  %v4250_v15 = vrot.slane %v4248_v42, 5 }
 0x20b   : > { %11254 = vmatmul.mubr.msk.bf16.vlgmr.msra.gmra.mrb[0].mxu0 %vm15499_vm0, %v3871_v16  ;;  %v4187_v16 = vrot.slane %v4185_v0, 4 }
 0x20c   : > { %11286 = vmatpush3.bf16.msra.mxu0 %v4499_v17  ;;  %11257 = vmatprep.mubr.msk.bf16.mxu0 %vm15499_vm0, %v3874_v9  ;;  %v4190_v17 = vrot.slane %v4188_v56, 5  ;;  %v13613_v9 = vld [vmem:[#allocation2 + $0x110] sm:$0xf0] }
 0x20d   : > { %v3911_v51 = vrot.slane %v13613_v9, 4 }
 0x20e   : > { %v4191_v32 = vor.u32 %v4190_v17, %v4187_v16  ;;  %v4270_v16 = vshrl.u32 %v4165_v12, 16  ;;  %v4273_v17 = vshll.u32 %v4165_v12, 16 }
 0x210   : > { %v4275_v7 = vrot.slane %v4273_v17, 5 }
 0x213   : > { %11258 = vmatmul.mubr.msk.bf16.gmra.mrb[4].mxu0 %vm15499_vm0, %v3877_v37  ;;  %v3912_v37 = vrot.slane %v13501_v41, 4  ;;  %v4221_v41 = vrot.slane %v4219_v10, 4 }
 0x214   : > { %11261 = vmatprep.mubr.msk.bf16.mxu0 %vm15499_vm0, %v3880_v27  ;;  %v4183_v27 = vor.u32 %v4182_v33, %v4179_v59  ;;  %v4262_v33 = vshrl.u32 %v13551_v25, 16  ;;  %v4272_v25 = vrot.slane %v4270_v16, 4 }
 0x215   : > { %v3913_v29 = vsel %vm15502_vm3, %v3911_v51, %v3912_v37  ;;  %v4282_v51 = vshll.u32 %v13553_v4, 16 }
 0x216   : > { %v4192_v35 = vsel %vm15500_vm5, %v4183_v27, %v4191_v32  ;;  %v4264_v32 = vrot.slane %v4262_v33, 4  ;;  %v4347_v33 = vshrl.u32 %v13577_v6, 16 }
 0x21b   : > { %11262 = vmatmul.mubr.msk.bf16.gmra.mrb[8].mxu0 %vm15499_vm0, %v3883_v62  ;;  %v4222_v62 = vshll.u32 %v4162_v34, 16  ;;  %v4279_v34 = vshrl.u32 %v13553_v4, 16  ;;  %v4296_v4 = vshrl.u32 %v13563_v40, 16 }
 0x21c   : > { %11265 = vmatprep.mubr.msk.bf16.mxu0 %vm15499_vm0, %v3886_v23  ;;  %v4199_v23 = vrot.slane %v4197_v63, 5 }
 0x21d   : > { %v4224_v57 = vrot.slane %v4222_v62, 5 }
 0x21e   : > { %v4200_v28 = vor.u32 %v4199_v23, %v4196_v13  ;;  %v4167_v13 = vld [vmem:[#allocation2 + $0x98] sm:$0x1f]  ;;  %v4281_v23 = vrot.slane %v4279_v34, 4 }
 0x21f   : > { %v4225_v49 = vor.u32 %v4224_v57, %v4221_v41  ;;  %v4304_v41 = vshrl.u32 %v4167_v13, 16  ;;  %v4307_v57 = vshll.u32 %v4167_v13, 16  ;;  %v4171_v34 = vld [vmem:[#allocation2 + $0xd8] sm:$0x1f] }
 0x220   : > { %v4375_v13 = vshll.u32 %v4171_v34, 16 }
 0x223   : > { %11266 = vmatmul.mubr.msk.bf16.gmra.mrb[12].mxu0 %vm15499_vm0, %v3889_v45  ;;  %v4163_v45 = vld [vmem:[#allocation2 + $0x58] sm:$0x1f] }
 0x224   : > { %11269 = vmatprep.mubr.msk.bf16.mxu0 %vm15499_vm0, %v3892_v48  ;;  %v4213_v48 = vrot.slane %v4211_v44, 4  ;;  %v4236_v1 = vshrl.u32 %v4163_v45, 16  ;;  %v4239_v24 = vshll.u32 %v4163_v45, 16  ;;  %v4267_v44 = vrot.slane %v4265_v19, 5 }
 0x225   : > { %v4350_v19 = vshll.u32 %v13577_v6, 16  ;;  %v4364_v6 = vshrl.u32 %v13587_v52, 16 }
 0x226   : > { %v4217_v38 = vor.u32 %v4216_v60, %v4213_v48  ;;  %v4238_v0 = vrot.slane %v4236_v1, 4  ;;  %v4241_v56 = vrot.slane %v4239_v24, 5  ;;  %v4268_v45 = vor.u32 %v4267_v44, %v4264_v32  ;;  %v4172_v44 = vld [vmem:[#allocation2 + $0xe8] sm:$0x1f] }
 0x227   : > { %v4276_v48 = vor.u32 %v4275_v7, %v4272_v25  ;;  %v4299_v60 = vshll.u32 %v13563_v40, 16 }
 0x228   : > { %v4226_v59 = vsel %vm15500_vm5, %v4217_v38, %v4225_v49  ;;  %v4242_v63 = vor.u32 %v4241_v56, %v4238_v0  ;;  %v4169_v38 = vld [vmem:[#allocation2 + $0xb8] sm:$0x1f]  ;;  %v4330_v0 = vshrl.u32 %v13575_v50, 16 }
 0x229   : > { %v4277_v24 = vsel %vm15500_vm5, %v4268_v45, %v4276_v48  ;;  %v4301_v42 = vrot.slane %v4299_v60, 5  ;;  %v4338_v56 = vshrl.u32 %v4169_v38, 16  ;;  %v4341_v12 = vshll.u32 %v4169_v38, 16 }
 0x22b   : > { %11270 = vmatmul.mubr.msk.bf16.gmra.mrb[16].mxu0 %vm15499_vm0, %v3895_v54  ;;  %v4208_v54 = vor.u32 %v4207_v30, %v4204_v20  ;;  %v4284_v20 = vrot.slane %v4282_v51, 5  ;;  %v4349_v51 = vrot.slane %v4347_v33, 4  ;;  %v4175_v33 = vld [vmem:[#allocation2 + $0x118] sm:$0x1f] }
 0x22c   : > { %11273 = vmatprep.mubr.msk.bf16.mxu0 %vm15499_vm0, %v3898_v39  ;;  %v4231_v39 = vshll.u32 %v13539_v18, 16  ;;  %v4247_v18 = vrot.slane %v4245_v2, 4  ;;  %v4298_v2 = vrot.slane %v4296_v4, 4  ;;  %v4366_v4 = vrot.slane %v4364_v6, 4 }
 0x22d   : > { %v4209_v11 = vsel %vm15500_vm5, %v4200_v28, %v4208_v54  ;;  %v4316_v28 = vshll.u32 %v13565_v43, 16 }
 0x22e   : > { %v4233_v3 = vrot.slane %v4231_v39, 5  ;;  %v4251_v46 = vor.u32 %v4250_v15, %v4247_v18  ;;  %v4285_v39 = vor.u32 %v4284_v20, %v4281_v23  ;;  %v4170_v18 = vld [vmem:[#allocation2 + $0xc8] sm:$0x1f]  ;;  %v4302_v15 = vor.u32 %v4301_v42, %v4298_v2 }
 0x22f   : > { %v4318_v49 = vrot.slane %v4316_v28, 5  ;;  %v4355_v16 = vshrl.u32 %v4170_v18, 16  ;;  %v4358_v17 = vshll.u32 %v4170_v18, 16  ;;  %v4381_v23 = vshrl.u32 %v13589_v58, 16 }
 0x230   : > { %v4234_v8 = vor.u32 %v4233_v3, %v4230_v5  ;;  %v4384_v20 = vshll.u32 %v13589_v58, 16  ;;  %v4398_v58 = vshrl.u32 %v13598_v36, 16 }
 0x231   : > { %v4360_v32 = vrot.slane %v4358_v17, 5  ;;  %v4435_v17 = vshll.u32 %v13613_v9, 16 }
 0x232   : > { %v4243_v10 = vsel %vm15500_vm5, %v4234_v8, %v4242_v63  ;;  %v4343_v63 = vrot.slane %v4341_v12, 5 }
 0x233   : > { %11274 = vmatmul.mubr.msk.bf16.gmra.mrb[20].mxu0 %vm15499_vm0, %v3901_v21  ;;  %v4253_v21 = vshrl.u32 %v4164_v53, 16 }
 0x234   : > { %11277 = vmatprep.mubr.msk.bf16.mxu0 %vm15499_vm0, %v3904_v47  ;;  %v4256_v47 = vshll.u32 %v4164_v53, 16  ;;  %v4313_v53 = vshrl.u32 %v13565_v43, 16  ;;  %v4333_v43 = vshll.u32 %v13575_v50, 16  ;;  %v4340_v50 = vrot.slane %v4338_v56, 4 }
 0x236   : > { %v4258_v55 = vrot.slane %v4256_v47, 5  ;;  %v4309_v47 = vrot.slane %v4307_v57, 5  ;;  %v4315_v40 = vrot.slane %v4313_v53, 4  ;;  %v4335_v8 = vrot.slane %v4333_v43, 5 }
 0x237   : > { %v4344_v7 = vor.u32 %v4343_v63, %v4340_v50  ;;  %v4377_v57 = vrot.slane %v4375_v13, 5  ;;  %v4383_v53 = vrot.slane %v4381_v23, 4 }
 0x23b   : > { %11278 = vmatmul.mubr.msk.bf16.gmra.mrb[24].mxu0 %vm15499_vm0, %v3907_v61  ;;  %v4255_v61 = vrot.slane %v4253_v21, 4  ;;  %v4306_v21 = vrot.slane %v4304_v41, 4 }
 0x23c   : > { %11281 = vmatprep.mubr.msk.bf16.mxu0 %vm15499_vm0, %v3910_v26  ;;  %v4166_v26 = vld [vmem:[#allocation2 + $0x88] sm:$0x1f] }
 0x23d   : > { %v4259_v22 = vor.u32 %v4258_v55, %v4255_v61  ;;  %v4287_v37 = vshrl.u32 %v4166_v26, 16  ;;  %v4290_v27 = vshll.u32 %v4166_v26, 16  ;;  %v4310_v61 = vor.u32 %v4309_v47, %v4306_v21 }
 0x23e   : > { %v4319_v55 = vor.u32 %v4318_v49, %v4315_v40  ;;  %v4332_v26 = vrot.slane %v4330_v0, 4  ;;  %v4415_v49 = vshrl.u32 %v13601_v31, 16  ;;  %v4400_v0 = vrot.slane %v4398_v58, 4 }
 0x23f   : > { %v4260_v62 = vsel %vm15500_vm5, %v4251_v46, %v4259_v22  ;;  %v4289_v30 = vrot.slane %v4287_v37, 4  ;;  %v4311_v46 = vsel %vm15500_vm5, %v4302_v15, %v4310_v61  ;;  %v4352_v37 = vrot.slane %v4350_v19, 5 }
 0x240   : > { %v4336_v25 = vor.u32 %v4335_v8, %v4332_v26  ;;  %v4417_v15 = vrot.slane %v4415_v49, 4  ;;  %v4440_v26 = vshrl.u32 %v4175_v33, 16  ;;  %v4443_v8 = vshll.u32 %v4175_v33, 16 }
 0x242   : > { %v4345_v48 = vsel %vm15500_vm5, %v4336_v25, %v4344_v7 }
 0x243   : > { %11282 = vmatmul.mubr.msk.bf16.gmra.mrb[28].mxu0 %vm15499_vm0, %v3913_v29  ;;  %v4292_v29 = vrot.slane %v4290_v27, 5  ;;  %v4357_v27 = vrot.slane %v4355_v16, 4 }
 0x244   : > { %11287 = vmatprep.mubr.msk.bf16.mxu0 %vm15499_vm0, %v4192_v35  ;;  %v4168_v35 = vld [vmem:[#allocation2 + $0xa8] sm:$0x1f] }
 0x245   : > { %v4321_v54 = vshrl.u32 %v4168_v35, 16  ;;  %v4324_v14 = vshll.u32 %v4168_v35, 16  ;;  %v4293_v1 = vor.u32 %v4292_v29, %v4289_v30  ;;  %v4389_v30 = vshrl.u32 %v4172_v44, 16 }
 0x246   : > { %v4392_v29 = vshll.u32 %v4172_v44, 16  ;;  %v4353_v35 = vor.u32 %v4352_v37, %v4349_v51  ;;  %v4361_v45 = vor.u32 %v4360_v32, %v4357_v27  ;;  %v4442_v51 = vrot.slane %v4440_v26, 4 }
 0x247   : > { %v4326_v5 = vrot.slane %v4324_v14, 5  ;;  %v4294_v3 = vsel %vm15500_vm5, %v4285_v39, %v4293_v1  ;;  %v4391_v28 = vrot.slane %v4389_v30, 4  ;;  %v4173_v14 = vld [vmem:[#allocation2 + $0xf8] sm:$0x1f]  ;;  %v4174_v1 = vld [vmem:[#allocation2 + $0x108] sm:$0x1f] }
 0x248   : > { %v4362_v39 = vsel %vm15500_vm5, %v4353_v35, %v4361_v45  ;;  %v4406_v2 = vshrl.u32 %v4173_v14, 16  ;;  %v4409_v42 = vshll.u32 %v4173_v14, 16  ;;  %v4445_v37 = vrot.slane %v4443_v8, 5 }
 0x24a   : > { %v4408_v56 = vrot.slane %v4406_v2, 4  ;;  %v4411_v12 = vrot.slane %v4409_v42, 5  ;;  %v4446_v44 = vor.u32 %v4445_v37, %v4442_v51 }
 0x24b   : > { %11288 = vmatmul.mubr.msk.bf16.vlgmr.msra.gmra.mrb[0].mxu0 %vm15499_vm0, %v4209_v11  ;;  %v4323_v11 = vrot.slane %v4321_v54, 4  ;;  %v4394_v54 = vrot.slane %v4392_v29, 5 }
 0x24c   : > { %11291 = vmatprep.mubr.msk.bf16.mxu0 %vm15499_vm0, %v4226_v59  ;;  %v4412_v16 = vor.u32 %v4411_v12, %v4408_v56 }
 0x24d   : > { %v4327_v59 = vor.u32 %v4326_v5, %v4323_v11  ;;  %v4395_v40 = vor.u32 %v4394_v54, %v4391_v28  ;;  %v4418_v11 = vshll.u32 %v13601_v31, 16  ;;  %v4423_v5 = vshrl.u32 %v4174_v1, 16 }
 0x24e   : > { %v4432_v31 = vshrl.u32 %v13613_v9, 16 }
 0x24f   : > { %v4328_v22 = vsel %vm15500_vm5, %v4319_v55, %v4327_v59  ;;  %v4420_v61 = vrot.slane %v4418_v11, 5  ;;  %v4425_v55 = vrot.slane %v4423_v5, 4 }
 0x251   : > { %v4421_v50 = vor.u32 %v4420_v61, %v4417_v15 }
 0x253   : > { %11292 = vmatmul.mubr.msk.bf16.gmra.mrb[4].mxu0 %vm15499_vm0, %v4243_v10  ;;  %v4367_v10 = vshll.u32 %v13587_v52, 16  ;;  %v4386_v52 = vrot.slane %v4384_v20, 5 }
 0x254   : > { %11295 = vmatprep.mubr.msk.bf16.mxu0 %vm15499_vm0, %v4260_v62  ;;  %v4372_v62 = vshrl.u32 %v4171_v34, 16  ;;  %v4437_v34 = vrot.slane %v4435_v17, 5 }
 0x255   : > { %v4369_v60 = vrot.slane %v4367_v10, 5  ;;  %v4387_v38 = vor.u32 %v4386_v52, %v4383_v53 }
 0x256   : > { %v4374_v41 = vrot.slane %v4372_v62, 4 }
 0x257   : > { %v4370_v21 = vor.u32 %v4369_v60, %v4366_v4  ;;  %v4396_v18 = vsel %vm15500_vm5, %v4387_v38, %v4395_v40 }
 0x258   : > { %v4378_v47 = vor.u32 %v4377_v57, %v4374_v41 }
 0x25b   : > { %11296 = vmatmul.mubr.msk.bf16.gmra.mrb[8].mxu0 %vm15499_vm0, %v4277_v24  ;;  %v4401_v24 = vshll.u32 %v13598_v36, 16  ;;  %v4379_v36 = vsel %vm15500_vm5, %v4370_v21, %v4378_v47 }
 0x25c   : > { %11299 = vmatprep.mubr.msk.bf16.mxu0 %vm15499_vm0, %v4294_v3  ;;  %v4426_v3 = vshll.u32 %v4174_v1, 16 }
 0x25d   : > { %v4403_v43 = vrot.slane %v4401_v24, 5 }
 0x25e   : > { %v4428_v59 = vrot.slane %v4426_v3, 5 }
 0x25f   : > { %v4404_v19 = vor.u32 %v4403_v43, %v4400_v0 }
 0x260   : > { %v4429_v63 = vor.u32 %v4428_v59, %v4425_v55 }
 0x262   : > { %v4430_v27 = vsel %vm15500_vm5, %v4421_v50, %v4429_v63 }
 0x263   : > { %11300 = vmatmul.mubr.msk.bf16.gmra.mrb[12].mxu0 %vm15499_vm0, %v4311_v46  ;;  %v4413_v46 = vsel %vm15500_vm5, %v4404_v19, %v4412_v16 }
 0x264   : > { %11303 = vmatprep.mubr.msk.bf16.mxu0 %vm15499_vm0, %v4328_v22  ;;  %v4434_v22 = vrot.slane %v4432_v31, 4 }
 0x266   : > { %v4438_v32 = vor.u32 %v4437_v34, %v4434_v22 }
 0x268   : > { %v4447_v9 = vsel %vm15500_vm5, %v4438_v32, %v4446_v44 }
 0x26b   : > { %11304 = vmatmul.mubr.msk.bf16.gmra.mrb[16].mxu0 %vm15499_vm0, %v4345_v48 }
 0x26c   : > { %11307 = vmatprep.mubr.msk.bf16.mxu0 %vm15499_vm0, %v4362_v39 }
 0x273   : > { %11308 = vmatmul.mubr.msk.bf16.gmra.mrb[20].mxu0 %vm15499_vm0, %v4379_v36 }
 0x274   : > { %11311 = vmatprep.mubr.msk.bf16.mxu0 %vm15499_vm0, %v4396_v18 }
 0x27b   : > { %11312 = vmatmul.mubr.msk.bf16.gmra.mrb[24].mxu0 %vm15499_vm0, %v4413_v46 }
 0x27c   : > { %11315 = vmatprep.mubr.msk.bf16.mxu0 %vm15499_vm0, %v4430_v27 }
 0x283   : > { %11316 = vmatmul.mubr.msk.bf16.gmra.mrb[28].mxu0 %vm15499_vm0, %v4447_v9 }
 0x2b1   : > { %v11033_v25 = vpop.f32.mrb[0].mxu1 }
 0x2b2   : > { %v1031_v7 = vpop.f32.mrb[1].mxu1 }
 0x2b3   : > { %v11034_v6 = vpop.f32.mrb[2].mxu1 }
 0x2b4   : > { %v1034_v10 = vpop.f32.mrb[3].mxu1 }
 0x2bb   : > { %v11037_v62 = vpop.f32.mrb[4].mxu1 }
 0x2bc   : > { %v1047_v13 = vpop.f32.mrb[5].mxu1 }
 0x2bd   : > { %v11038_v23 = vpop.f32.mrb[6].mxu1 }
 0x2be   : > { %v1050_v20 = vpop.f32.mrb[7].mxu1 }
 0x2c3   : > { %v13683_v30 = vpop.f32.mrb[8].mxu1 }
 0x2c4   : > { %v13685_v29 = vpop.f32.mrb[9].mxu1 }
 0x2c5   : > { %v13687_v35 = vpop.f32.mrb[10].mxu1 }
 0x2c6   : > { %v13689_v45 = vpop.f32.mrb[11].mxu1 }
 0x2cb   : > { %v13691_v48 = vpop.f32.mrb[12].mxu1 }
 0x2cc   : > { %v13693_v4 = vpop.f32.mrb[13].mxu1 }
 0x2cd   : > { %v13695_v60 = vpop.f32.mrb[14].mxu1 }
 0x2ce   : > { %v13697_v41 = vpop.f32.mrb[15].mxu1 }
 0x31e   : > { %v13699_v57 = vpop.f32.mrb[0].mxu0 }
 0x31f   : > { %v13701_v53 = vpop.f32.mrb[1].mxu0 }
 0x320   : > { %v13703_v52 = vpop.f32.mrb[2].mxu0 }
 0x321   : > { %v13705_v28 = vpop.f32.mrb[3].mxu0 }
 0x322   : > { %v4694_v54 = vadd.f32 %v13705_v28, %v13701_v53 }
 0x324   : > { %v4695_v14 = vadd.f32 %v13699_v57, %v4694_v54 }
 0x326   : > { %v13710_v39 = vpop.f32.mrb[4].mxu0  ;;  %v4696_v1 = vadd.f32 %v13703_v52, %v4695_v14 }
 0x327   : > { %v13713_v58 = vpop.f32.mrb[5].mxu0 }
 0x328   : > { %v4697_v24 = vadd.f32 %v4696_v1, %v13713_v58  ;;  %v13716_v2 = vpop.f32.mrb[6].mxu0 }
 0x329   : > { %v13718_v42 = vpop.f32.mrb[7].mxu0 }
 0x32a   : > { %v4698_v21 = vadd.f32 %v4697_v24, %v13718_v42 }
 0x32c   : > { %v4699_v47 = vadd.f32 %v13710_v39, %v4698_v21 }
 0x32e   : > { %v13722_v38 = vpop.f32.mrb[8].mxu0  ;;  %v4700_v40 = vadd.f32 %v13716_v2, %v4699_v47 }
 0x32f   : > { %v13725_v49 = vpop.f32.mrb[9].mxu0 }
 0x330   : > { %v4701_v11 = vadd.f32 %v4700_v40, %v13725_v49  ;;  %v13728_v5 = vpop.f32.mrb[10].mxu0 }
 0x331   : > { %v13730_v3 = vpop.f32.mrb[11].mxu0 }
 0x332   : > { %v4702_v0 = vadd.f32 %v4701_v11, %v13730_v3 }
 0x334   : > { %v4703_v43 = vadd.f32 %v13722_v38, %v4702_v0 }
 0x336   : > { %v13734_v56 = vpop.f32.mrb[12].mxu0  ;;  %v4704_v12 = vadd.f32 %v13728_v5, %v4703_v43 }
 0x337   : > { %v13737_v36 = vpop.f32.mrb[13].mxu0 }
 0x338   : > { %v4705_v18 = vadd.f32 %v4704_v12, %v13737_v36  ;;  %v13740_v15 = vpop.f32.mrb[14].mxu0 }
 0x339   : > { %v13742_v61 = vpop.f32.mrb[15].mxu0 }
 0x33a   : > { %v4706_v55 = vadd.f32 %v4705_v18, %v13742_v61 }
 0x33c   : > { %v4707_v59 = vadd.f32 %v13734_v56, %v4706_v55 }
 0x33e   : > { %v11305_v33 = vpop.f32.mrb[16].mxu0  ;;  %v4708_v19 = vadd.f32 %v13740_v15, %v4707_v59 }
 0x33f   : > { %v13747_v16 = vadd.f32 %v11305_v33, %v11033_v25  ;;  %v4599_v31 = vpop.f32.mrb[17].mxu0 }
 0x340   : > { %v13749_v17 = vadd.f32 %v4599_v31, %v1031_v7  ;;  %v11306_v26 = vpop.f32.mrb[18].mxu0 }
 0x341   : > { %v13751_v8 = vadd.f32 %v11306_v26, %v11034_v6  ;;  %v4602_v50 = vpop.f32.mrb[19].mxu0 }
 0x342   : > { %v4709_v63 = vadd.f32 %v13749_v17, %v4708_v19  ;;  %v13754_v46 = vadd.f32 %v4602_v50, %v1034_v10 }
 0x344   : > { %v4710_v22 = vadd.f32 %v13754_v46, %v4709_v63 }
 0x346   : > { %v4711_v34 = vadd.f32 %v13747_v16, %v4710_v22  ;;  %v11309_v51 = vpop.f32.mrb[20].mxu0 }
 0x347   : > { %v13758_v37 = vadd.f32 %v11309_v51, %v11037_v62  ;;  %v4615_v27 = vpop.f32.mrb[21].mxu0 }
 0x348   : > { %v13760_v32 = vadd.f32 %v4615_v27, %v1047_v13  ;;  %v4712_v44 = vadd.f32 %v13751_v8, %v4711_v34  ;;  %v11310_v9 = vpop.f32.mrb[22].mxu0 }
 0x349   : > { %v13763_v25 = vadd.f32 %v11310_v9, %v11038_v23  ;;  %v4618_v7 = vpop.f32.mrb[23].mxu0 }
 0x34a   : > { %v4713_v6 = vadd.f32 %v13760_v32, %v4712_v44  ;;  %v13766_v10 = vadd.f32 %v4618_v7, %v1050_v20  ;;  %v12397_v44 = vld [vmem:[#allocation4 + $0x40] sm:$0xff]  }
 0x34b   : > { %11319 = vmatprep.subr.bf16.mxu1 %v12397_v44 }
 0x34c   : > { %v4714_v54 = vadd.f32 %v13766_v10, %v4713_v6  ;;  %11320 = vmatpush3.bf16.msra.mxu1 %v12397_v44  ;;  %v12398_v6 = vld [vmem:[#allocation4 + $0x48] sm:$0xff]  }
 0x34d   : > { %11321 = vmatprep.subr.bf16.mxu1 %v12398_v6 }
 0x34e   : > { %v4715_v14 = vadd.f32 %v13758_v37, %v4714_v54  ;;  %v11313_v1 = vpop.f32.mrb[24].mxu0 }
 0x34f   : > { %v13771_v62 = vadd.f32 %v11313_v1, %v13683_v30  ;;  %v4631_v13 = vpop.f32.mrb[25].mxu0 }
 0x350   : > { %v11796_v24 = vadd.f32 %v4631_v13, %v13685_v29  ;;  %v4716_v21 = vadd.f32 %v13763_v25, %v4715_v14  ;;  %v11314_v23 = vpop.f32.mrb[26].mxu0  ;;  %11322 = vmatpush3.bf16.msra.mxu1 %v12398_v6 }
 0x351   : > { %v11797_v47 = vadd.f32 %v11314_v23, %v13687_v35  ;;  %v4634_v40 = vpop.f32.mrb[27].mxu0 }
 0x352   : > { %v4717_v11 = vadd.f32 %v11796_v24, %v4716_v21  ;;  %v11798_v20 = vadd.f32 %v4634_v40, %v13689_v45 }
 0x354   : > { %v4718_v0 = vadd.f32 %v11798_v20, %v4717_v11 }
 0x356   : > { %v4719_v43 = vadd.f32 %v13771_v62, %v4718_v0  ;;  %v11317_v12 = vpop.f32.mrb[28].mxu0 }
 0x357   : > { %v11799_v18 = vadd.f32 %v11317_v12, %v13691_v48  ;;  %v4647_v30 = vpop.f32.mrb[29].mxu0  ;;  %v12403_v12 = vld [vmem:[#allocation4 + $0x70] sm:$0xff]  }
 0x358   : > { %v11800_v55 = vadd.f32 %v4647_v30, %v13693_v4  ;;  %v4720_v59 = vadd.f32 %v11797_v47, %v4719_v43  ;;  %v11318_v29 = vpop.f32.mrb[30].mxu0 }
 0x359   : > { %v11801_v33 = vadd.f32 %v11318_v29, %v13695_v60  ;;  %v4650_v19 = vpop.f32.mrb[31].mxu0  ;;  %v5438_v29 = vld [vmem:[#allocation3] sm:$0xf0] }
 0x35a   : > { %v4721_v31 = vadd.f32 %v11800_v55, %v4720_v59  ;;  %v11802_v35 = vadd.f32 %v4650_v19, %v13697_v41  ;;  %v12404_v59 = vld [vmem:[#allocation4 + $0x78] sm:$0xff]   ;;  %v5486_v19 = vrot.slane %v5438_v29, 4 }
 0x35c   : > { %v4722_v26 = vadd.f32 %v11802_v35, %v4721_v31 }
 0x35e   : > { %v4723_v50 = vadd.f32 %v11799_v18, %v4722_v26 }
 0x360   : > { %v4724_v45 = vadd.f32 %v11801_v33, %v4723_v50 }
 0x362   : > { %v4725_v63 = vrot.slane %v4724_v45, 4 }
 0x364   : > { %v4726_v22 = vadd.f32 %v4725_v63, %v4724_v45  ;;  %v13889_v63 = vld [vmem:[#allocation4] sm:$0xff]  }
 0x366   : > { %v4727_v34 = vrot.slane %v4726_v22, 2 }
 0x368   : > { %v4728_v51 = vadd.f32 %v4727_v34, %v4726_v22 }
 0x36a   : > { %v4729_v27 = vrot.slane %v4728_v51, 1 }
 0x36c   : > { %v4730_v48 = vadd.f32 %v4729_v27, %v4728_v51 }
 0x36e   : > { %v4731_v9 = vmul.f32 0.00390625, %v4730_v48 }
 0x370   : > { %v13783_v4 = vsub.f32 %v13701_v53, %v4731_v9  ;;  %v13786_v60 = vsub.f32 %v13705_v28, %v4731_v9  ;;  %v13789_v41 = vsub.f32 %v13699_v57, %v4731_v9  ;;  %v13792_v7 = vsub.f32 %v13703_v52, %v4731_v9 }
 0x371   : > { %v13795_v54 = vsub.f32 %v13713_v58, %v4731_v9  ;;  %v13798_v14 = vsub.f32 %v13718_v42, %v4731_v9  ;;  %v13801_v1 = vsub.f32 %v13710_v39, %v4731_v9  ;;  %v13804_v53 = vsub.f32 %v13716_v2, %v4731_v9 }
 0x372   : > { %v13807_v28 = vsub.f32 %v13725_v49, %v4731_v9  ;;  %v13810_v57 = vsub.f32 %v13730_v3, %v4731_v9  ;;  %v13813_v52 = vsub.f32 %v13722_v38, %v4731_v9  ;;  %v13816_v58 = vsub.f32 %v13728_v5, %v4731_v9 }
 0x373   : > { %v13819_v42 = vsub.f32 %v13737_v36, %v4731_v9  ;;  %v13822_v39 = vsub.f32 %v13742_v61, %v4731_v9  ;;  %v13825_v2 = vsub.f32 %v13734_v56, %v4731_v9  ;;  %v13828_v49 = vsub.f32 %v13740_v15, %v4731_v9  ;;  %v12399_v61 = vld [vmem:[#allocation4 + $0x50] sm:$0xff]  }
 0x374   : > { %v13831_v38 = vsub.f32 %v13749_v17, %v4731_v9  ;;  %v13834_v5 = vsub.f32 %v13754_v46, %v4731_v9  ;;  %v13837_v3 = vsub.f32 %v13747_v16, %v4731_v9  ;;  %v13840_v36 = vsub.f32 %v13751_v8, %v4731_v9  ;;  %11323 = vmatprep.subr.bf16.mxu1 %v12399_v61 }
 0x375   : > { %v13843_v56 = vsub.f32 %v13760_v32, %v4731_v9  ;;  %v13846_v15 = vsub.f32 %v13766_v10, %v4731_v9  ;;  %v13849_v13 = vsub.f32 %v13758_v37, %v4731_v9  ;;  %v13852_v17 = vsub.f32 %v13763_v25, %v4731_v9  ;;  %11324 = vmatpush3.bf16.msra.mxu1 %v12399_v61  ;;  %v12400_v25 = vld [vmem:[#allocation4 + $0x58] sm:$0xff]  }
 0x376   : > { %v13854_v46 = vsub.f32 %v11796_v24, %v4731_v9  ;;  %v13856_v16 = vsub.f32 %v11798_v20, %v4731_v9  ;;  %v13859_v8 = vsub.f32 %v13771_v62, %v4731_v9  ;;  %v13861_v21 = vsub.f32 %v11797_v47, %v4731_v9  ;;  %11325 = vmatprep.subr.bf16.mxu1 %v12400_v25  ;;  %v12401_v47 = vld [vmem:[#allocation4 + $0x60] sm:$0xff]   ;;  %v12402_v20 = vld [vmem:[#allocation4 + $0x68] sm:$0xff]  }
 0x377   : > { %v13863_v32 = vsub.f32 %v11800_v55, %v4731_v9  ;;  %v13865_v10 = vsub.f32 %v11802_v35, %v4731_v9  ;;  %v13867_v23 = vsub.f32 %v11799_v18, %v4731_v9  ;;  %v13869_v37 = vsub.f32 %v11801_v33, %v4731_v9  ;;  %v13879_v18 = vld [vmem:[#allocation3 + $0x8] sm:$0xf] }
 0x378   : > { %v4764_v24 = vmul.f32 %v13783_v4, %v13783_v4  ;;  %v4765_v62 = vmul.f32 %v13786_v60, %v13786_v60  ;;  %v4766_v40 = vmul.f32 %v13789_v41, %v13789_v41  ;;  %v4767_v0 = vmul.f32 %v13792_v7, %v13792_v7 }
 0x379   : > { %11326 = vmatpush3.bf16.msra.mxu1 %v12400_v25  ;;  %v4768_v30 = vmul.f32 %v13795_v54, %v13795_v54  ;;  %v5487_v33 = vrot.slane %v13879_v18, 4  ;;  %v4769_v31 = vmul.f32 %v13798_v14, %v13798_v14  ;;  %v4770_v50 = vmul.f32 %v13801_v1, %v13801_v1 }
 0x37a   : > { %11327 = vmatprep.subr.bf16.mxu1 %v12401_v47  ;;  %v4796_v11 = vadd.f32 %v4765_v62, %v4764_v24  ;;  %v4771_v22 = vmul.f32 %v13804_v53, %v13804_v53  ;;  %v4772_v51 = vmul.f32 %v13807_v28, %v13807_v28  ;;  %v4773_v48 = vmul.f32 %v13810_v57, %v13810_v57 }
 0x37b   : > { %v5488_v26 = vsel %vm15502_vm3, %v5486_v19, %v5487_v33  ;;  %v4774_v9 = vmul.f32 %v13813_v52, %v13813_v52  ;;  %v4775_v61 = vmul.f32 %v13816_v58, %v13816_v58  ;;  %v4776_v24 = vmul.f32 %v13819_v42, %v13819_v42 }
 0x37c   : > { %v4797_v43 = vadd.f32 %v4796_v11, %v4766_v40  ;;  %11335 = vmatprep.mubr.bf16.mxu1 %v5488_v26  ;;  %v4778_v11 = vmul.f32 %v13825_v2, %v13825_v2  ;;  %v4782_v29 = vmul.f32 %v13837_v3, %v13837_v3  ;;  %v4783_v19 = vmul.f32 %v13840_v36, %v13840_v36 }
 0x37d   : > { %11328 = vmatpush3.bf16.msra.mxu1 %v12401_v47  ;;  %v4777_v47 = vmul.f32 %v13822_v39, %v13822_v39 }
 0x37e   : > { %11329 = vmatprep.subr.bf16.mxu1 %v12402_v20  ;;  %v4798_v55 = vadd.f32 %v4797_v43, %v4767_v0  ;;  %v4779_v0 = vmul.f32 %v13828_v49, %v13828_v49 }
 0x380   : > { %v4799_v35 = vadd.f32 %v4798_v55, %v4768_v30  ;;  %v4781_v55 = vmul.f32 %v13834_v5, %v13834_v5 }
 0x381   : > { %11330 = vmatpush3.bf16.msra.mxu1 %v12402_v20 }
 0x382   : > { %11331 = vmatprep.subr.bf16.mxu1 %v12403_v12  ;;  %v4800_v45 = vadd.f32 %v4799_v35, %v4769_v31  ;;  %v4784_v35 = vmul.f32 %v13843_v56, %v13843_v56 }
 0x384   : > { %v4801_v34 = vadd.f32 %v4800_v45, %v4770_v50  ;;  %v4785_v50 = vmul.f32 %v13846_v15, %v13846_v15 }
 0x385   : > { %11332 = vmatpush3.bf16.msra.mxu1 %v12403_v12  ;;  %v4780_v12 = vmul.f32 %v13831_v38, %v13831_v38 }
 0x386   : > { %11333 = vmatprep.subr.bf16.mxu1 %v12404_v59  ;;  %v4802_v27 = vadd.f32 %v4801_v34, %v4771_v22  ;;  %v4786_v22 = vmul.f32 %v13849_v13, %v13849_v13 }
 0x388   : > { %v4803_v44 = vadd.f32 %v4802_v27, %v4772_v51  ;;  %v4787_v51 = vmul.f32 %v13852_v17, %v13852_v17 }
 0x389   : > { %11334 = vmatpush3.bf16.msra.mxu1 %v12404_v59 }
 0x38a   : > { %11367 = vmatprep.subr.bf16.mxu1 %v13889_v63  ;;  %v4804_v6 = vadd.f32 %v4803_v44, %v4773_v48  ;;  %v4788_v48 = vmul.f32 %v13854_v46, %v13854_v46 }
 0x38c   : > { %v4805_v25 = vadd.f32 %v4804_v6, %v4774_v9  ;;  %v4789_v9 = vmul.f32 %v13856_v16, %v13856_v16 }
 0x38e   : > { %v4806_v62 = vadd.f32 %v4805_v25, %v4775_v61  ;;  %v4790_v61 = vmul.f32 %v13859_v8, %v13859_v8 }
 0x390   : > { %v4807_v40 = vadd.f32 %v4806_v62, %v4776_v24  ;;  %v4791_v24 = vmul.f32 %v13861_v21, %v13861_v21 }
 0x392   : > { %v4808_v20 = vadd.f32 %v4807_v40, %v4777_v47  ;;  %v4792_v47 = vmul.f32 %v13863_v32, %v13863_v32 }
 0x394   : > { %v4809_v43 = vadd.f32 %v4808_v20, %v4778_v11  ;;  %v4793_v11 = vmul.f32 %v13865_v10, %v13865_v10 }
 0x396   : > { %v4810_v30 = vadd.f32 %v4809_v43, %v4779_v0  ;;  %v4794_v0 = vmul.f32 %v13867_v23, %v13867_v23 }
 0x398   : > { %v4811_v59 = vadd.f32 %v4810_v30, %v4780_v12  ;;  %v4795_v12 = vmul.f32 %v13869_v37, %v13869_v37 }
 0x39a   : > { %v4812_v33 = vadd.f32 %v4811_v59, %v4781_v55 }
 0x39c   : > { %v4813_v31 = vadd.f32 %v4812_v33, %v4782_v29 }
 0x39e   : > { %v4814_v26 = vadd.f32 %v4813_v31, %v4783_v19 }
 0x3a0   : > { %v4815_v45 = vadd.f32 %v4814_v26, %v4784_v35 }
 0x3a2   : > { %v4816_v34 = vadd.f32 %v4815_v45, %v4785_v50 }
 0x3a4   : > { %v4817_v27 = vadd.f32 %v4816_v34, %v4786_v22 }
 0x3a6   : > { %v4818_v44 = vadd.f32 %v4817_v27, %v4787_v51 }
 0x3a8   : > { %v4819_v6 = vadd.f32 %v4818_v44, %v4788_v48 }
 0x3aa   : > { %v4820_v25 = vadd.f32 %v4819_v6, %v4789_v9 }
 0x3ac   : > { %v4821_v62 = vadd.f32 %v4820_v25, %v4790_v61 }
 0x3ae   : > { %v4822_v40 = vadd.f32 %v4821_v62, %v4791_v24 }
 0x3b0   : > { %v4823_v20 = vadd.f32 %v4822_v40, %v4792_v47 }
 0x3b2   : > { %v4824_v43 = vadd.f32 %v4823_v20, %v4793_v11 }
 0x3b4   : > { %v4825_v30 = vadd.f32 %v4824_v43, %v4794_v0 }
 0x3b6   : > { %v4826_v55 = vadd.f32 %v4825_v30, %v4795_v12 }
 0x3b8   : > { %v4827_v59 = vrot.slane %v4826_v55, 4 }
 0x3ba   : > { %v4828_v29 = vadd.f32 %v4827_v59, %v4826_v55 }
 0x3bc   : > { %v4829_v33 = vrot.slane %v4828_v29, 2 }
 0x3be   : > { %v4830_v19 = vadd.f32 %v4829_v33, %v4828_v29 }
 0x3c0   : > { %v4831_v31 = vrot.slane %v4830_v19, 1 }
 0x3c2   : > { %v4832_v35 = vadd.f32 %v4831_v31, %v4830_v19 }
 0x3c4   : > { %v4833_v26 = vmul.f32 0.00390625, %v4832_v35 }
 0x3c6   : > { %v4834_v50 = vadd.f32 1e-05, %v4833_v26 }
 0x3c8   : > { %12485 = vrsqrt.f32 %v4834_v50 }
 0x3d2   : > { %v12486_v45 = vpop.eup %12485 }
 0x3d3   : > { %v4864_v22 = vmul.f32 %v12486_v45, %v13863_v32  ;;  %v4865_v34 = vmul.f32 %v12486_v45, %v13865_v10  ;;  %v13945_v6 = vmul.f32 %v12486_v45, %v13783_v4  ;;  %v13948_v61 = vmul.f32 %v12486_v45, %v13786_v60 }
 0x3d4   : > { %v13951_v24 = vmul.f32 %v12486_v45, %v13789_v41  ;;  %v13954_v32 = vmul.f32 %v12486_v45, %v13792_v7  ;;  %v13957_v10 = vmul.f32 %v12486_v45, %v13795_v54  ;;  %v13960_v62 = vmul.f32 %v12486_v45, %v13798_v14 }
 0x3d5   : > { %vm4896_vm6 = vcmp.gt.f32.partialorder %v4864_v22, 0.0  ;;  %vm4897_vm7 = vcmp.gt.f32.partialorder %v4865_v34, 0.0  ;;  %v4928_v51 = vmul.f32 0.2, %v4864_v22  ;;  %v4929_v27 = vmul.f32 0.2, %v4865_v34 }
 0x3d6   : > { %v13963_v47 = vmul.f32 %v12486_v45, %v13801_v1  ;;  %v13966_v4 = vmul.f32 %v12486_v45, %v13804_v53  ;;  %v13969_v60 = vmul.f32 %v12486_v45, %v13807_v28  ;;  %v13972_v41 = vmul.f32 %v12486_v45, %v13810_v57 }
 0x3d7   : > { %v4960_v48 = vsel %vm4896_vm6, %v4864_v22, %v4928_v51  ;;  %v4961_v44 = vsel %vm4897_vm7, %v4865_v34, %v4929_v27  ;;  %v13975_v7 = vmul.f32 %v12486_v45, %v13813_v52  ;;  %v13978_v54 = vmul.f32 %v12486_v45, %v13816_v58 }
 0x3d8   : > { %v4978_v9 = vpack.c.bf16 %v4961_v44, %v4960_v48  ;;  %v13981_v14 = vmul.f32 %v12486_v45, %v13869_v37  ;;  %v13984_v1 = vmul.f32 %v12486_v45, %v13819_v42  ;;  %v13987_v53 = vmul.f32 %v12486_v45, %v13822_v39 }
 0x3d9   : > { %v13990_v28 = vmul.f32 %v12486_v45, %v13825_v2  ;;  %v13993_v57 = vmul.f32 %v12486_v45, %v13828_v49  ;;  %v13996_v52 = vmul.f32 %v12486_v45, %v13831_v38  ;;  %v13999_v58 = vmul.f32 %v12486_v45, %v13834_v5 }
 0x3da   : > { %v5051_v25 = vrot.slane %v4978_v9, 4  ;;  %v14002_v37 = vmul.f32 %v12486_v45, %v13837_v3  ;;  %v14005_v42 = vmul.f32 %v12486_v45, %v13840_v36  ;;  %v14008_v39 = vmul.f32 %v12486_v45, %v13843_v56 }
 0x3db   : > { %v14011_v2 = vmul.f32 %v12486_v45, %v13846_v15  ;;  %v14014_v49 = vmul.f32 %v12486_v45, %v13849_v13  ;;  %v14017_v38 = vmul.f32 %v12486_v45, %v13852_v17  ;;  %v14020_v5 = vmul.f32 %v12486_v45, %v13854_v46 }
 0x3dc   : > { %5098 = vst [vmem:[#allocation3 + $0xf8] ss:$-4 sps:$4 sm:$0xff] %v5051_v25   ;;  %v14023_v3 = vmul.f32 %v12486_v45, %v13856_v16  ;;  %v14026_v36 = vmul.f32 %v12486_v45, %v13859_v8  ;;  %v14029_v56 = vmul.f32 %v12486_v45, %v13861_v21  ;;  %v14032_v15 = vmul.f32 %v12486_v45, %v13867_v23 }
 0x3dd   : > { %vm4868_vm8 = vcmp.gt.f32.partialorder %v13945_v6, 0.0  ;;  %vm4869_vm9 = vcmp.gt.f32.partialorder %v13948_v61, 0.0  ;;  %vm4870_vm10 = vcmp.gt.f32.partialorder %v13951_v24, 0.0  ;;  %vm4871_vm11 = vcmp.gt.f32.partialorder %v13954_v32, 0.0 }
 0x3de   : > { %vm4872_vm12 = vcmp.gt.f32.partialorder %v13957_v10, 0.0  ;;  %vm4873_vm13 = vcmp.gt.f32.partialorder %v13960_v62, 0.0  ;;  %vm4874_vm14 = vcmp.gt.f32.partialorder %v13963_v47, 0.0  ;;  %vm4875_vm15 = vcmp.gt.f32.partialorder %v13966_v4, 0.0 }
 0x3df   : > { %vm4879_vm7 = vcmp.gt.f32.partialorder %v13978_v54, 0.0  ;;  %v4900_v13 = vmul.f32 0.2, %v13945_v6  ;;  %v4901_v17 = vmul.f32 0.2, %v13948_v61  ;;  %vm4884_vm1 = vcmp.gt.f32.partialorder %v13996_v52, 0.0 }
 0x3e0   : > { %vm4885_vm2 = vcmp.gt.f32.partialorder %v13999_v58, 0.0  ;;  %v4902_v46 = vmul.f32 0.2, %v13951_v24  ;;  %v4903_v16 = vmul.f32 0.2, %v13954_v32  ;;  %vm4890_vm3 = vcmp.gt.f32.partialorder %v14014_v49, 0.0 }
 0x3e1   : > { %v4904_v8 = vmul.f32 0.2, %v13957_v10  ;;  %v4905_v21 = vmul.f32 0.2, %v13960_v62  ;;  %v4906_v23 = vmul.f32 0.2, %v13963_v47  ;;  %v14068_v11 = vsel %vm4868_vm8, %v13945_v6, %v4900_v13 }
 0x3e2   : > { %v4907_v40 = vmul.f32 0.2, %v13966_v4  ;;  %vm4893_vm5 = vcmp.gt.f32.partialorder %v14023_v3, 0.0  ;;  %vm4894_vm0 = vcmp.gt.f32.partialorder %v14026_v36, 0.0  ;;  %v4908_v20 = vmul.f32 0.2, %v13969_v60 }
 0x3e3   : > { %v4909_v0 = vmul.f32 0.2, %v13972_v41  ;;  %v4910_v43 = vmul.f32 0.2, %v13975_v7  ;;  %v14080_v12 = vsel %vm4869_vm9, %v13948_v61, %v4901_v17  ;;  %vm4895_vm8 = vcmp.gt.f32.partialorder %v14029_v56, 0.0 }
 0x3e4   : > { %vm4898_vm6 = vcmp.gt.f32.partialorder %v14032_v15, 0.0  ;;  %vm4899_vm4 = vcmp.gt.f32.partialorder %v13981_v14, 0.0  ;;  %v4911_v30 = vmul.f32 0.2, %v13978_v54  ;;  %v4912_v55 = vmul.f32 0.2, %v13984_v1 }
 0x3e5   : > { %v4913_v59 = vmul.f32 0.2, %v13987_v53  ;;  %v4934_v29 = vsel %vm4870_vm10, %v13951_v24, %v4902_v46  ;;  %v4914_v33 = vmul.f32 0.2, %v13990_v28  ;;  %v4915_v19 = vmul.f32 0.2, %v13993_v57 }
 0x3e6   : > { %v4916_v31 = vmul.f32 0.2, %v13996_v52  ;;  %v4935_v35 = vsel %vm4871_vm11, %v13954_v32, %v4903_v16  ;;  %v4917_v26 = vmul.f32 0.2, %v13999_v58  ;;  %v4918_v50 = vmul.f32 0.2, %v14002_v37 }
 0x3e7   : > { %v4919_v45 = vmul.f32 0.2, %v14005_v42  ;;  %v4936_v22 = vsel %vm4872_vm12, %v13957_v10, %v4904_v8  ;;  %v4920_v34 = vmul.f32 0.2, %v14008_v39  ;;  %v4921_v51 = vmul.f32 0.2, %v14011_v2 }
 0x3e8   : > { %v4922_v27 = vmul.f32 0.2, %v14014_v49  ;;  %v4937_v48 = vsel %vm4873_vm13, %v13960_v62, %v4905_v21  ;;  %v4923_v44 = vmul.f32 0.2, %v14017_v38  ;;  %v4924_v9 = vmul.f32 0.2, %v14020_v5 }
 0x3e9   : > { %v4925_v6 = vmul.f32 0.2, %v14023_v3  ;;  %v4938_v61 = vsel %vm4874_vm14, %v13963_v47, %v4906_v23  ;;  %v4926_v25 = vmul.f32 0.2, %v14026_v36  ;;  %v4927_v24 = vmul.f32 0.2, %v14029_v56 }
 0x3ea   : > { %v4930_v32 = vmul.f32 0.2, %v14032_v15  ;;  %v4939_v10 = vsel %vm4875_vm15, %v13966_v4, %v4907_v40  ;;  %v4931_v62 = vmul.f32 0.2, %v13981_v14  ;;  %vm15519_vm9 = vcmp.gt.f32.partialorder %v13969_v60, 0.0 }
 0x3eb   : > { %v4940_v13 = vsel %vm15519_vm9, %v13969_v60, %v4908_v20  ;;  %vm15520_vm10 = vcmp.gt.f32.partialorder %v13972_v41, 0.0  ;;  %vm15521_vm11 = vcmp.gt.f32.partialorder %v13975_v7, 0.0  ;;  %v4943_v46 = vsel %vm4879_vm7, %v13978_v54, %v4911_v30 }
 0x3ec   : > { %v4941_v47 = vsel %vm15520_vm10, %v13972_v41, %v4909_v0  ;;  %v4942_v17 = vsel %vm15521_vm11, %v13975_v7, %v4910_v43  ;;  %vm15522_vm12 = vcmp.gt.f32.partialorder %v13984_v1, 0.0  ;;  %vm15523_vm13 = vcmp.gt.f32.partialorder %v13987_v53, 0.0 }
 0x3ed   : > { %v4944_v4 = vsel %vm15522_vm12, %v13984_v1, %v4912_v55  ;;  %v4945_v60 = vsel %vm15523_vm13, %v13987_v53, %v4913_v59  ;;  %vm15524_vm14 = vcmp.gt.f32.partialorder %v13990_v28, 0.0  ;;  %vm15525_vm15 = vcmp.gt.f32.partialorder %v13993_v57, 0.0 }
 0x3ee   : > { %v4946_v41 = vsel %vm15524_vm14, %v13990_v28, %v4914_v33  ;;  %v4947_v7 = vsel %vm15525_vm15, %v13993_v57, %v4915_v19  ;;  %v4948_v54 = vsel %vm4884_vm1, %v13996_v52, %v4916_v31  ;;  %v4949_v1 = vsel %vm4885_vm2, %v13999_v58, %v4917_v26 }
 0x3ef   : > { %vm15526_vm7 = vcmp.gt.f32.partialorder %v14002_v37, 0.0  ;;  %vm15527_vm9 = vcmp.gt.f32.partialorder %v14005_v42, 0.0  ;;  %vm15528_vm10 = vcmp.gt.f32.partialorder %v14008_v39, 0.0  ;;  %vm15529_vm11 = vcmp.gt.f32.partialorder %v14011_v2, 0.0 }
 0x3f0   : > { %v4950_v53 = vsel %vm15526_vm7, %v14002_v37, %v4918_v50  ;;  %v4951_v28 = vsel %vm15527_vm9, %v14005_v42, %v4919_v45  ;;  %v4952_v57 = vsel %vm15528_vm10, %v14008_v39, %v4920_v34  ;;  %v4953_v52 = vsel %vm15529_vm11, %v14011_v2, %v4921_v51 }
 0x3f1   : > { %v4954_v58 = vsel %vm4890_vm3, %v14014_v49, %v4922_v27  ;;  %vm15530_vm1 = vcmp.gt.f32.partialorder %v14017_v38, 0.0  ;;  %vm15531_vm2 = vcmp.gt.f32.partialorder %v14020_v5, 0.0  ;;  %v4957_v39 = vsel %vm4893_vm5, %v14023_v3, %v4925_v6 }
 0x3f2   : > { %v4955_v37 = vsel %vm15530_vm1, %v14017_v38, %v4923_v44  ;;  %v4956_v42 = vsel %vm15531_vm2, %v14020_v5, %v4924_v9  ;;  %v4958_v2 = vsel %vm4894_vm0, %v14026_v36, %v4926_v25  ;;  %v4959_v49 = vsel %vm4895_vm8, %v14029_v56, %v4927_v24 }
 0x3f3   : > { %v4962_v38 = vsel %vm4898_vm6, %v14032_v15, %v4930_v32  ;;  %v4963_v5 = vsel %vm4899_vm4, %v13981_v14, %v4931_v62  ;;  %v4964_v16 = vpack.c.bf16 %v14080_v12, %v14068_v11  ;;  %v4965_v3 = vpack.c.bf16 %v4935_v35, %v4934_v29 }
 0x3f4   : > { %v4966_v8 = vpack.c.bf16 %v4937_v48, %v4936_v22  ;;  %v4967_v21 = vpack.c.bf16 %v4939_v10, %v4938_v61  ;;  %v4968_v23 = vpack.c.bf16 %v4941_v47, %v4940_v13  ;;  %v4969_v36 = vpack.c.bf16 %v4943_v46, %v4942_v17  ;;  %v12406_v10 = vld [vmem:[#allocation4 + $0x8] sm:$0xff]  }
 0x3f5   : > { %v4970_v40 = vpack.c.bf16 %v4945_v60, %v4944_v4  ;;  %v4971_v20 = vpack.c.bf16 %v4947_v7, %v4946_v41  ;;  %v4972_v0 = vpack.c.bf16 %v4949_v1, %v4948_v54  ;;  %v4973_v56 = vpack.c.bf16 %v4951_v28, %v4950_v53  ;;  %v12407_v60 = vld [vmem:[#allocation4 + $0x10] sm:$0xff]   ;;  %v12408_v53 = vld [vmem:[#allocation4 + $0x18] sm:$0xff]  }
 0x3f6   : > { %v4974_v43 = vpack.c.bf16 %v4953_v52, %v4952_v57  ;;  %v4975_v30 = vpack.c.bf16 %v4955_v37, %v4954_v58  ;;  %v4976_v55 = vpack.c.bf16 %v4957_v39, %v4956_v42  ;;  %v4977_v15 = vpack.c.bf16 %v4959_v49, %v4958_v2  ;;  %v12409_v42 = vld [vmem:[#allocation4 + $0x20] sm:$0xff]  }
 0x3f7   : > { %v4979_v59 = vpack.c.bf16 %v4963_v5, %v4962_v38  ;;  %v5037_v33 = vrot.slane %v4964_v16, 4  ;;  %v5038_v19 = vrot.slane %v4965_v3, 4  ;;  %v5039_v14 = vrot.slane %v4966_v8, 4  ;;  %v12410_v5 = vld [vmem:[#allocation4 + $0x28] sm:$0xff]  }
 0x3f8   : > { %v5040_v31 = vrot.slane %v4967_v21, 4  ;;  %v5041_v26 = vrot.slane %v4968_v23, 4  ;;  %v5042_v11 = vrot.slane %v4969_v36, 4  ;;  %v5043_v12 = vrot.slane %v4970_v40, 4  ;;  %v12411_v40 = vld [vmem:[#allocation4 + $0x30] sm:$0xff]  }
 0x3f9   : > { %v5044_v29 = vrot.slane %v4971_v20, 4  ;;  %v5045_v35 = vrot.slane %v4972_v0, 4  ;;  %v5046_v50 = vrot.slane %v4973_v56, 4  ;;  %5070 = vst [vmem:[#allocation3 + $0x18] ss:$-4 sps:$4 sm:$0xff] %v5037_v33   ;;  %v5047_v45 = vrot.slane %v4974_v43, 4 }
 0x3fa   : > { %5072 = vst [vmem:[#allocation3 + $0x28] ss:$-4 sps:$4 sm:$0xff] %v5038_v19   ;;  %v5048_v22 = vrot.slane %v4975_v30, 4  ;;  %v5049_v34 = vrot.slane %v4976_v55, 4  ;;  %v5050_v51 = vrot.slane %v4977_v15, 4  ;;  %v5052_v27 = vrot.slane %v4979_v59, 4 }
 0x3fb   : > { %5074 = vst [vmem:[#allocation3 + $0x38] ss:$-4 sps:$4 sm:$0xff] %v5039_v14   ;;  %5076 = vst [vmem:[#allocation3 + $0x48] ss:$-4 sps:$4 sm:$0xff] %v5040_v31   ;;  %vm15532_vm0 = vcmask 1043456   ;;  %v12412_v30 = vld [vmem:[#allocation4 + $0x38] sm:$0xff]  }
 0x3fc   : > { %5078 = vst [vmem:[#allocation3 + $0x58] ss:$-4 sps:$4 sm:$0xff] %v5041_v26   ;;  %5080 = vst [vmem:[#allocation3 + $0x68] ss:$-4 sps:$4 sm:$0xff] %v5042_v11   ;;  %v14255_v31 = vld [vmem:[#allocation4 + $0x80] sm:$0xff]  }
 0x3fd   : > { %5082 = vst [vmem:[#allocation3 + $0x78] ss:$-4 sps:$4 sm:$0xff] %v5043_v12   ;;  %5084 = vst [vmem:[#allocation3 + $0x88] ss:$-4 sps:$4 sm:$0xff] %v5044_v29   ;;  %vm15546_vm1 = vsmask.f32 4352 }
 0x3fe   : > { %5086 = vst [vmem:[#allocation3 + $0x98] ss:$-4 sps:$4 sm:$0xff] %v5045_v35   ;;  %5088 = vst [vmem:[#allocation3 + $0xa8] ss:$-4 sps:$4 sm:$0xff] %v5046_v50  }
 0x3ff   : > { %5090 = vst [vmem:[#allocation3 + $0xb8] ss:$-4 sps:$4 sm:$0xff] %v5047_v45   ;;  %5092 = vst [vmem:[#allocation3 + $0xc8] ss:$-4 sps:$4 sm:$0xff] %v5048_v22  }
 0x400   : > { %5094 = vst [vmem:[#allocation3 + $0xd8] ss:$-4 sps:$4 sm:$0xff] %v5049_v34   ;;  %5096 = vst [vmem:[#allocation3 + $0xe8] ss:$-4 sps:$4 sm:$0xff] %v5050_v51   ;;  %v14190_v48 = vld [vmem:[#allocation3 + $0x18] sm:$0xf] }
 0x401   : > { %5100 = vst [vmem:[#allocation3 + $0x108] ss:$-4 sps:$4 sm:$0xff] %v5052_v27   ;;  %v14192_v44 = vld [vmem:[#allocation3 + $0x10] sm:$0xf0]  ;;  %v14194_v9 = vld [vmem:[#allocation3 + $0x28] sm:$0xf]  ;;  %vm15533_vm3 = vmmov %vm15532_vm0 }
 0x402   : > { %v5489_v6 = vrot.slane %v14192_v44, 4  ;;  %v5490_v61 = vrot.slane %v14190_v48, 4  ;;  %v14198_v25 = vld [vmem:[#allocation3 + $0x20] sm:$0xf0]  ;;  %v5493_v24 = vrot.slane %v14194_v9, 4  ;;  %vm15534_vm4 = vmmov %vm15532_vm0 }
 0x403   : > { %v5492_v32 = vrot.slane %v14198_v25, 4  ;;  %v14204_v47 = vld [vmem:[#allocation3 + $0x38] sm:$0xf]  ;;  %v14206_v17 = vld [vmem:[#allocation3 + $0x30] sm:$0xf0]  ;;  %vm15535_vm5 = vmmov %vm15532_vm0 }
 0x404   : > { %v5491_v62 = vsel %vm15532_vm0, %v5489_v6, %v5490_v61  ;;  %v14209_v46 = vld [vmem:[#allocation3 + $0x48] sm:$0xf]  ;;  %v14211_v4 = vld [vmem:[#allocation3 + $0x40] sm:$0xf0]  ;;  %v5495_v41 = vrot.slane %v14206_v17, 4  ;;  %v5496_v7 = vrot.slane %v14204_v47, 4  ;;  %vm15536_vm6 = vmmov %vm15532_vm0 }
 0x405   : > { %11336 = vmatmul.mubr.bf16.vlgmr.msra.gmra.mrb[16].mxu1 %v5491_v62  ;;  %v5494_v13 = vsel %vm15533_vm3, %v5492_v32, %v5493_v24  ;;  %v5498_v54 = vrot.slane %v14211_v4, 4  ;;  %v5499_v1 = vrot.slane %v14209_v46, 4  ;;  %v14219_v57 = vld [vmem:[#allocation3 + $0x58] sm:$0xf]  ;;  %v14221_v52 = vld [vmem:[#allocation3 + $0x50] sm:$0xf0]  ;;  %vm15537_vm8 = vmmov %vm15532_vm0 }
 0x406   : > { %11368 = vmatpush3.bf16.msra.mxu1 %v13889_v63  ;;  %11339 = vmatprep.mubr.bf16.mxu1 %v5494_v13  ;;  %v5497_v63 = vsel %vm15534_vm4, %v5495_v41, %v5496_v7  ;;  %v14223_v58 = vld [vmem:[#allocation3 + $0x68] sm:$0xf]  ;;  %v14225_v37 = vld [vmem:[#allocation3 + $0x60] sm:$0xf0]  ;;  %v5501_v39 = vrot.slane %v14221_v52, 4  ;;  %v5502_v2 = vrot.slane %v14219_v57, 4  ;;  %vm15538_vm12 = vmmov %vm15532_vm0 }
 0x407   : > { %11369 = vmatprep.subr.bf16.mxu1 %v12406_v10  ;;  %v5500_v28 = vsel %vm15535_vm5, %v5498_v54, %v5499_v1  ;;  %v5504_v49 = vrot.slane %v14225_v37, 4  ;;  %v5505_v38 = vrot.slane %v14223_v58, 4  ;;  %v14233_v8 = vld [vmem:[#allocation3 + $0x78] sm:$0xf]  ;;  %v14235_v21 = vld [vmem:[#allocation3 + $0x70] sm:$0xf0]  ;;  %vm15539_vm13 = vmmov %vm15532_vm0 }
 0x408   : > { %v5503_v16 = vsel %vm15536_vm6, %v5501_v39, %v5502_v2  ;;  %v14237_v23 = vld [vmem:[#allocation3 + $0x88] sm:$0xf]  ;;  %v14239_v36 = vld [vmem:[#allocation3 + $0x80] sm:$0xf0]  ;;  %v5507_v20 = vrot.slane %v14235_v21, 4  ;;  %v5508_v0 = vrot.slane %v14233_v8, 4  ;;  %vm15540_vm14 = vmmov %vm15532_vm0 }
 0x409   : > { %v5506_v3 = vsel %vm15537_vm8, %v5504_v49, %v5505_v38  ;;  %v5510_v56 = vrot.slane %v14239_v36, 4  ;;  %v5511_v43 = vrot.slane %v14237_v23, 4  ;;  %v14247_v59 = vld [vmem:[#allocation3 + $0x98] sm:$0xf]  ;;  %v14249_v33 = vld [vmem:[#allocation3 + $0x90] sm:$0xf0]  ;;  %vm15541_vm15 = vmmov %vm15532_vm0 }
 0x40a   : > { %11370 = vmatpush3.bf16.msra.mxu1 %v12406_v10  ;;  %v5509_v55 = vsel %vm15538_vm12, %v5507_v20, %v5508_v0  ;;  %v14251_v19 = vld [vmem:[#allocation3 + $0xa8] sm:$0xf]  ;;  %v14253_v14 = vld [vmem:[#allocation3 + $0xa0] sm:$0xf0]  ;;  %v5513_v26 = vrot.slane %v14249_v33, 4  ;;  %v5514_v11 = vrot.slane %v14247_v59, 4  ;;  %vm15542_vm7 = vmmov %vm15532_vm0 }
 0x40b   : > { %11371 = vmatprep.subr.bf16.mxu1 %v12407_v60  ;;  %v5512_v15 = vsel %vm15539_vm13, %v5510_v56, %v5511_v43  ;;  %v5516_v12 = vrot.slane %v14253_v14, 4  ;;  %v5517_v29 = vrot.slane %v14251_v19, 4  ;;  %v14264_v45 = vld [vmem:[#allocation3 + $0xb8] sm:$0xf]  ;;  %v14266_v22 = vld [vmem:[#allocation3 + $0xb0] sm:$0xf0]  ;;  %vm15543_vm9 = vmmov %vm15532_vm0 }
 0x40c   : > { %v5515_v35 = vsel %vm15540_vm14, %v5513_v26, %v5514_v11  ;;  %v14268_v34 = vld [vmem:[#allocation3 + $0xc8] sm:$0xf]  ;;  %v14270_v51 = vld [vmem:[#allocation3 + $0xc0] sm:$0xf0]  ;;  %v5519_v27 = vrot.slane %v14266_v22, 4  ;;  %v5520_v6 = vrot.slane %v14264_v45, 4  ;;  %vm15544_vm10 = vmmov %vm15532_vm0 }
 0x40d   : > { %11340 = vmatmul.mubr.bf16.gmra.mrb[20].mxu1 %v5497_v63  ;;  %v5518_v50 = vsel %vm15541_vm15, %v5516_v12, %v5517_v29  ;;  %v5522_v61 = vrot.slane %v14270_v51, 4  ;;  %v5523_v24 = vrot.slane %v14268_v34, 4  ;;  %v5102_v32 = vld [vmem:[#allocation3] sm:$0xf8]  ;;  %v14278_v13 = vld [vmem:[#allocation3 + $0xd8] sm:$0xf]  ;;  %vm15545_vm11 = vmmov %vm15532_vm0 }
 0x40e   : > { %11343 = vmatprep.mubr.bf16.mxu1 %v5500_v28  ;;  %11372 = vmatpush3.bf16.msra.mxu1 %v12407_v60  ;;  %v5521_v10 = vsel %vm15542_vm7, %v5519_v27, %v5520_v6  ;;  %v14280_v60 = vld [vmem:[#allocation3 + $0xd0] sm:$0xf0]  ;;  %v5143_v41 = vshrl.u32 %v13879_v18, 16  ;;  %v5146_v7 = vshll.u32 %v13879_v18, 16  ;;  %v14284_v54 = vld [vmem:[#allocation3 + $0xe8] sm:$0xf]  ;;  %vm15547_vm2 = vmmov %vm15532_vm0 }
 0x40f   : > { %11373 = vmatprep.subr.bf16.mxu1 %v12408_v53  ;;  %v5524_v62 = vsel %vm15543_vm9, %v5522_v61, %v5523_v24  ;;  %v14286_v1 = vld [vmem:[#allocation3 + $0xe0] sm:$0xf0]  ;;  %v5138_v63 = vshll.u32 %v5102_v32, 16  ;;  %v5525_v28 = vrot.slane %v14280_v60, 4  ;;  %v5529_v2 = vrot.slane %v14284_v54, 4  ;;  %vm15548_vm0 = vmmov %vm15546_vm1 }
 0x410   : > { %v5528_v39 = vrot.slane %v14286_v1, 4  ;;  %v14294_v20 = vld [vmem:[#allocation3 + $0xf8] sm:$0xf]  ;;  %v14296_v0 = vld [vmem:[#allocation3 + $0xf0] sm:$0xf0]  ;;  %v5160_v26 = vshrl.u32 %v14190_v48, 16  ;;  %vm15549_vm3 = vmmov %vm15548_vm0 }
 0x411   : > { %v5140_v38 = vrot.slane %v5138_v63, 4  ;;  %v5163_v11 = vshll.u32 %v14190_v48, 16  ;;  %v5531_v12 = vrot.slane %v14296_v0, 4  ;;  %v5532_v29 = vrot.slane %v14294_v20, 4  ;;  %vm15550_vm4 = vmmov %vm15548_vm0 }
 0x412   : > { %11374 = vmatpush3.bf16.msra.mxu1 %v12408_v53  ;;  %v5135_v53 = vshrl.u32 %v5102_v32, 16  ;;  %v5177_v27 = vshrl.u32 %v14194_v9, 16  ;;  %v5180_v6 = vshll.u32 %v14194_v9, 16  ;;  %vm15551_vm5 = vmmov %vm15548_vm0 }
 0x413   : > { %11375 = vmatprep.subr.bf16.mxu1 %v12409_v42  ;;  %vm15552_vm6 = vmmov %vm15548_vm0 }
 0x414   : > { %v5137_v49 = vrot.slane %v5135_v53, 3  ;;  %v5179_v63 = vrot.slane %v5177_v27, 3  ;;  %vm15553_vm8 = vmmov %vm15548_vm0 }
 0x415   : > { %11344 = vmatmul.mubr.bf16.gmra.mrb[24].mxu1 %v5503_v16  ;;  %v5148_v16 = vrot.slane %v5146_v7, 4  ;;  %v5108_v7 = vld [vmem:[#allocation3 + $0x30] sm:$0xf8]  ;;  %vm15554_vm12 = vmmov %vm15548_vm0 }
 0x416   : > { %11347 = vmatprep.mubr.bf16.mxu1 %v5506_v3  ;;  %11376 = vmatpush3.bf16.msra.mxu1 %v12409_v42  ;;  %v5526_v42 = vrot.slane %v14278_v13, 4  ;;  %v5104_v3 = vld [vmem:[#allocation3 + $0x10] sm:$0xf8]  ;;  %v5141_v56 = vor.u32 %v5140_v38, %v5137_v49  ;;  %v5186_v49 = vshrl.u32 %v5108_v7, 16  ;;  %v5189_v9 = vshll.u32 %v5108_v7, 16  ;;  %vm15555_vm13 = vmmov %vm15548_vm0 }
 0x417   : > { %11377 = vmatprep.subr.bf16.mxu1 %v12410_v5  ;;  %v5194_v38 = vshrl.u32 %v14204_v47, 16  ;;  %vm15556_vm14 = vmmov %vm15548_vm0 }
 0x418   : > { %v5527_v18 = vsel %vm15544_vm10, %v5525_v28, %v5526_v42  ;;  %v5182_v28 = vrot.slane %v5180_v6, 4  ;;  %v5110_v42 = vld [vmem:[#allocation3 + $0x40] sm:$0xf8]  ;;  %vm15557_vm15 = vmmov %vm15548_vm0 }
 0x419   : > { %vm15558_vm7 = vmmov %vm15548_vm0 }
 0x41a   : > { %11378 = vmatpush3.bf16.msra.mxu1 %v12410_v5  ;;  %v5145_v5 = vrot.slane %v5143_v41, 3  ;;  %v5533_v41 = vsel %vm15547_vm2, %v5531_v12, %v5532_v29  ;;  %v5196_v12 = vrot.slane %v5194_v38, 3  ;;  %v12416_v38 = vld [vmem:[#allocation4 + $0x98] sm:$0xff]   ;;  %vm15559_vm9 = vmmov %vm15548_vm0 }
 0x41b   : > { %11379 = vmatprep.subr.bf16.mxu1 %v12411_v40  ;;  %vm15560_vm10 = vmmov %vm15548_vm0 }
 0x41c   : > { %v5149_v43 = vor.u32 %v5148_v16, %v5145_v5  ;;  %v5197_v5 = vshll.u32 %v14204_v47, 16  ;;  %v5203_v16 = vshrl.u32 %v5110_v42, 16  ;;  %vm15563_vm2 = vmmov %vm15548_vm0 }
 0x41d   : > { %11348 = vmatmul.mubr.bf16.gmra.mrb[28].mxu1 %v5509_v55  ;;  %v5152_v55 = vshrl.u32 %v5104_v3, 16 }
 0x41e   : > { %11351 = vmatprep.mubr.bf16.mxu1 %v5512_v15  ;;  %11380 = vmatpush3.bf16.msra.mxu1 %v12411_v40  ;;  %v5530_v40 = vsel %vm15545_vm11, %v5528_v39, %v5529_v2  ;;  %v5155_v15 = vshll.u32 %v5104_v3, 16  ;;  %v5150_v61 = vsel %vm15546_vm1, %v5141_v56, %v5149_v43  ;;  %v5211_v56 = vshrl.u32 %v14209_v46, 16  ;;  %vm15561_vm11 = vmmov %vm15548_vm0 }
 0x41f   : > { %11381 = vmatprep.subr.bf16.mxu1 %v12412_v30  ;;  %v5154_v24 = vrot.slane %v5152_v55, 3  ;;  %v5214_v43 = vshll.u32 %v14209_v46, 16  ;;  %v12414_v55 = vld [vmem:[#allocation4 + $0x88] sm:$0xff]   ;;  %v5199_v29 = vrot.slane %v5197_v5, 4  ;;  %vm15562_vm1 = vsmask.f32 3328 }
 0x420   : > { %v5157_v32 = vrot.slane %v5155_v15, 4  ;;  %v5188_v15 = vrot.slane %v5186_v49, 3  ;;  %v5213_v27 = vrot.slane %v5211_v56, 3 }
 0x421   : > { %v5216_v6 = vrot.slane %v5214_v43, 4  ;;  %v5200_v7 = vor.u32 %v5199_v29, %v5196_v12  ;;  %v5118_v43 = vld [vmem:[#allocation3 + $0x80] sm:$0xf8] }
 0x422   : > { %11382 = vmatpush3.bf16.msra.mxu1 %v12412_v30  ;;  %v5106_v30 = vld [vmem:[#allocation3 + $0x20] sm:$0xf8]  ;;  %v5158_v39 = vor.u32 %v5157_v32, %v5154_v24  ;;  %v5228_v32 = vshrl.u32 %v14219_v57, 16  ;;  %v5271_v29 = vshrl.u32 %v5118_v43, 16 }
 0x423   : > { %11415 = vmatprep.subr.bf16.mxu1 %v14255_v31  ;;  %v12417_v12 = vld [vmem:[#allocation4 + $0xa0] sm:$0xff]  }
 0x424   : > { %v5230_v49 = vrot.slane %v5228_v32, 3 }
 0x425   : > { %11352 = vmatmul.mubr.bf16.gmra.mrb[32].mxu1 %v5515_v35  ;;  %v5169_v35 = vshrl.u32 %v5106_v30, 16 }
 0x426   : > { %11355 = vmatprep.mubr.bf16.mxu1 %v5518_v50  ;;  %v5172_v50 = vshll.u32 %v5106_v30, 16 }
 0x427   : > { %v5171_v48 = vrot.slane %v5169_v35, 3  ;;  %v5205_v35 = vrot.slane %v5203_v16, 3  ;;  %v5116_v16 = vld [vmem:[#allocation3 + $0x70] sm:$0xf8] }
 0x428   : > { %v5174_v53 = vrot.slane %v5172_v50, 4 }
 0x42a   : > { %v5175_v3 = vor.u32 %v5174_v53, %v5171_v48 }
 0x42d   : > { %11356 = vmatmul.mubr.bf16.gmra.mrb[36].mxu1 %v5521_v10  ;;  %v5162_v10 = vrot.slane %v5160_v26, 3  ;;  %v5191_v26 = vrot.slane %v5189_v9, 4 }
 0x42e   : > { %11359 = vmatprep.mubr.bf16.mxu1 %v5524_v62  ;;  %v5165_v62 = vrot.slane %v5163_v11, 4  ;;  %v5112_v11 = vld [vmem:[#allocation3 + $0x50] sm:$0xf8] }
 0x42f   : > { %v5220_v46 = vshrl.u32 %v5112_v11, 16  ;;  %v5223_v24 = vshll.u32 %v5112_v11, 16  ;;  %v5265_v11 = vshll.u32 %v14233_v8, 16 }
 0x430   : > { %v5166_v2 = vor.u32 %v5165_v62, %v5162_v10  ;;  %v5231_v10 = vshll.u32 %v14219_v57, 16  ;;  %v12415_v62 = vld [vmem:[#allocation4 + $0x90] sm:$0xff]  }
 0x432   : > { %v5167_v30 = vsel %vm15548_vm0, %v5158_v39, %v5166_v2  ;;  %v5248_v39 = vshll.u32 %v14223_v58, 16  ;;  %v5225_v2 = vrot.slane %v5223_v24, 4  ;;  %v5233_v9 = vrot.slane %v5231_v10, 4  ;;  %vm15564_vm0 = vmmov %vm15562_vm1 }
 0x434   : > { %v5250_v56 = vrot.slane %v5248_v39, 4  ;;  %v5299_v39 = vshll.u32 %v14247_v59, 16 }
 0x435   : > { %11360 = vmatmul.mubr.bf16.gmra.mrb[40].mxu1 %v5527_v18  ;;  %v5206_v18 = vshll.u32 %v5110_v42, 16  ;;  %v5245_v42 = vshrl.u32 %v14223_v58, 16 }
 0x436   : > { %11363 = vmatprep.mubr.bf16.mxu1 %v5530_v40  ;;  %v5183_v40 = vor.u32 %v5182_v28, %v5179_v63  ;;  %v5217_v63 = vor.u32 %v5216_v6, %v5213_v27 }
 0x437   : > { %v5208_v50 = vrot.slane %v5206_v18, 4 }
 0x438   : > { %v5184_v47 = vsel %vm15549_vm3, %v5175_v3, %v5183_v40  ;;  %v5247_v40 = vrot.slane %v5245_v42, 3  ;;  %v5296_v42 = vshrl.u32 %v14247_v59, 16  ;;  %v12420_v59 = vld [vmem:[#allocation4 + $0xb8] sm:$0xff]   ;;  %vm15565_vm3 = vmmov %vm15564_vm0 }
 0x439   : > { %v5209_v48 = vor.u32 %v5208_v50, %v5205_v35  ;;  %v5274_v35 = vshll.u32 %v5118_v43, 16  ;;  %v5279_v50 = vshrl.u32 %v14237_v23, 16 }
 0x43a   : > { %v5251_v6 = vor.u32 %v5250_v56, %v5247_v40  ;;  %v5298_v43 = vrot.slane %v5296_v42, 3 }
 0x43b   : > { %v5218_v18 = vsel %vm15551_vm5, %v5209_v48, %v5217_v63  ;;  %v5281_v48 = vrot.slane %v5279_v50, 3  ;;  %vm15567_vm5 = vmmov %vm15564_vm0 }
 0x43d   : > { %11364 = vmatmul.mubr.bf16.gmra.mrb[44].mxu1 %v5533_v41  ;;  %v5192_v41 = vor.u32 %v5191_v26, %v5188_v15  ;;  %v5257_v15 = vshll.u32 %v5116_v16, 16  ;;  %v5262_v26 = vshrl.u32 %v14233_v8, 16  ;;  %v5273_v8 = vrot.slane %v5271_v29, 3 }
 0x43e   : > { %11383 = vmatprep.mubr.bf16.mxu1 %v5150_v61  ;;  %v5114_v61 = vld [vmem:[#allocation3 + $0x60] sm:$0xf8] }
 0x43f   : > { %v5237_v53 = vshrl.u32 %v5114_v61, 16  ;;  %v5240_v28 = vshll.u32 %v5114_v61, 16  ;;  %v5201_v57 = vsel %vm15550_vm4, %v5192_v41, %v5200_v7  ;;  %v5259_v32 = vrot.slane %v5257_v15, 4  ;;  %v5120_v41 = vld [vmem:[#allocation3 + $0x90] sm:$0xf8]  ;;  %vm15566_vm4 = vmmov %vm15564_vm0 }
 0x440   : > { %v5264_v10 = vrot.slane %v5262_v26, 3  ;;  %v5276_v7 = vrot.slane %v5274_v35, 4  ;;  %v5124_v15 = vld [vmem:[#allocation3 + $0xb0] sm:$0xf8]  ;;  %v5126_v35 = vld [vmem:[#allocation3 + $0xc0] sm:$0xf8] }
 0x441   : > { %v5239_v5 = vrot.slane %v5237_v53, 3  ;;  %v5242_v3 = vrot.slane %v5240_v28, 4  ;;  %v5291_v28 = vshll.u32 %v5120_v41, 16 }
 0x443   : > { %v5243_v27 = vor.u32 %v5242_v3, %v5239_v5  ;;  %v5316_v3 = vshll.u32 %v14251_v19, 16  ;;  %v5293_v56 = vrot.slane %v5291_v28, 4 }
 0x445   : > { %11384 = vmatmul.mubr.bf16.vlgmr.msra.gmra.mrb[16].mxu1 %v5167_v30  ;;  %v5234_v30 = vor.u32 %v5233_v9, %v5230_v49  ;;  %v5252_v63 = vsel %vm15553_vm8, %v5243_v27, %v5251_v6  ;;  %v5318_v29 = vrot.slane %v5316_v3, 4  ;;  %v5325_v27 = vshll.u32 %v5124_v15, 16  ;;  %vm15569_vm8 = vmmov %vm15564_vm0 }
 0x446   : > { %11416 = vmatpush3.bf16.msra.mxu1 %v14255_v31  ;;  %11387 = vmatprep.mubr.bf16.mxu1 %v5184_v47  ;;  %v5222_v31 = vrot.slane %v5220_v46, 3  ;;  %v5282_v47 = vshll.u32 %v14237_v23, 16  ;;  %v12418_v46 = vld [vmem:[#allocation4 + $0xa8] sm:$0xff]   ;;  %v5288_v23 = vshrl.u32 %v5120_v41, 16  ;;  %v5330_v6 = vshrl.u32 %v14264_v45, 16 }
 0x447   : > { %11417 = vmatprep.subr.bf16.mxu1 %v12414_v55  ;;  %v5367_v3 = vshll.u32 %v14278_v13, 16 }
 0x448   : > { %v5226_v58 = vor.u32 %v5225_v2, %v5222_v31  ;;  %v5284_v53 = vrot.slane %v5282_v47, 4  ;;  %v5122_v31 = vld [vmem:[#allocation3 + $0xa0] sm:$0xf8]  ;;  %v12419_v2 = vld [vmem:[#allocation4 + $0xb0] sm:$0xff]   ;;  %v5290_v40 = vrot.slane %v5288_v23, 3  ;;  %v5322_v47 = vshrl.u32 %v5124_v15, 16 }
 0x449   : > { %v5305_v5 = vshrl.u32 %v5122_v31, 16 }
 0x44a   : > { %11418 = vmatpush3.bf16.msra.mxu1 %v12414_v55  ;;  %v5254_v55 = vshrl.u32 %v5116_v16, 16  ;;  %v5235_v61 = vsel %vm15552_vm6, %v5226_v58, %v5234_v30  ;;  %v5308_v16 = vshll.u32 %v5122_v31, 16  ;;  %v5301_v58 = vrot.slane %v5299_v39, 4  ;;  %v5128_v31 = vld [vmem:[#allocation3 + $0xd0] sm:$0xf8]  ;;  %vm15568_vm6 = vmmov %vm15564_vm0 }
 0x44b   : > { %11419 = vmatprep.subr.bf16.mxu1 %v12415_v62  ;;  %v5307_v26 = vrot.slane %v5305_v5, 3 }
 0x44c   : > { %v5256_v24 = vrot.slane %v5254_v55, 3  ;;  %v5302_v50 = vor.u32 %v5301_v58, %v5298_v43  ;;  %v5381_v43 = vshrl.u32 %v14284_v54, 16  ;;  %v5384_v58 = vshll.u32 %v14284_v54, 16 }
 0x44d   : > { %11388 = vmatmul.mubr.bf16.gmra.mrb[20].mxu1 %v5201_v57  ;;  %v5285_v57 = vor.u32 %v5284_v53, %v5281_v48  ;;  %v5324_v48 = vrot.slane %v5322_v47, 3  ;;  %v5327_v53 = vrot.slane %v5325_v27, 4  ;;  %v12505_v47 = vld [vmem:[#allocation3] sm:$0xf0] }
 0x44e   : > { %11391 = vmatprep.mubr.bf16.mxu1 %v5218_v18  ;;  %11420 = vmatpush3.bf16.msra.mxu1 %v12415_v62  ;;  %v5267_v62 = vrot.slane %v5265_v11, 4  ;;  %v5260_v49 = vor.u32 %v5259_v32, %v5256_v24  ;;  %v5313_v18 = vshrl.u32 %v14251_v19, 16  ;;  %v5310_v11 = vrot.slane %v5308_v16, 4 }
 0x44f   : > { %11421 = vmatprep.subr.bf16.mxu1 %v12416_v38  ;;  %v5294_v19 = vor.u32 %v5293_v56, %v5290_v40  ;;  %v5339_v24 = vshrl.u32 %v5126_v35, 16  ;;  %v5342_v32 = vshll.u32 %v5126_v35, 16  ;;  %v6002_v27 = vshrl.u32 %v12505_v47, 16 }
 0x450   : > { %v5268_v9 = vor.u32 %v5267_v62, %v5264_v10  ;;  %v5347_v10 = vshrl.u32 %v14268_v34, 16  ;;  %v5350_v62 = vshll.u32 %v14268_v34, 16  ;;  %v5311_v41 = vor.u32 %v5310_v11, %v5307_v26  ;;  %v5130_v34 = vld [vmem:[#allocation3 + $0xe0] sm:$0xf8] }
 0x451   : > { %v5344_v28 = vrot.slane %v5342_v32, 4  ;;  %v5373_v40 = vshrl.u32 %v5130_v34, 16  ;;  %v5376_v56 = vshll.u32 %v5130_v34, 16  ;;  %v5986_v34 = vld [vmem:[#allocation3 + $0x18] sm:$0x1f] }
 0x452   : > { %11422 = vmatpush3.bf16.msra.mxu1 %v12416_v38  ;;  %v5277_v38 = vor.u32 %v5276_v7, %v5273_v8  ;;  %v5269_v30 = vsel %vm15554_vm12, %v5260_v49, %v5268_v9  ;;  %v5303_v7 = vsel %vm15556_vm14, %v5294_v19, %v5302_v50  ;;  %v5349_v42 = vrot.slane %v5347_v10, 3  ;;  %vm15570_vm12 = vmmov %vm15564_vm0 }
 0x453   : > { %11423 = vmatprep.subr.bf16.mxu1 %v12417_v12  ;;  %v5352_v39 = vrot.slane %v5350_v62, 4  ;;  %v5328_v49 = vor.u32 %v5327_v53, %v5324_v48  ;;  %v5375_v35 = vrot.slane %v5373_v40, 3  ;;  %v5378_v19 = vrot.slane %v5376_v56, 4  ;;  %vm15572_vm14 = vmmov %vm15564_vm0 }
 0x454   : > { %v5286_v55 = vsel %vm15555_vm13, %v5277_v38, %v5285_v57  ;;  %v5356_v38 = vshrl.u32 %v5128_v31, 16  ;;  %v5359_v57 = vshll.u32 %v5128_v31, 16  ;;  %v5386_v50 = vrot.slane %v5384_v58, 4  ;;  %vm15571_vm13 = vmmov %vm15564_vm0 }
 0x455   : > { %11392 = vmatmul.mubr.bf16.gmra.mrb[24].mxu1 %v5235_v61  ;;  %v5333_v61 = vshll.u32 %v14264_v45, 16  ;;  %v5341_v45 = vrot.slane %v5339_v24, 3  ;;  %v5353_v16 = vor.u32 %v5352_v39, %v5349_v42  ;;  %v6004_v53 = vrot.slane %v6002_v27, 4 }
 0x456   : > { %11395 = vmatprep.mubr.bf16.mxu1 %v5252_v63  ;;  %11424 = vmatpush3.bf16.msra.mxu1 %v12417_v12  ;;  %v5315_v12 = vrot.slane %v5313_v18, 3  ;;  %v5332_v63 = vrot.slane %v5330_v6, 3  ;;  %v5364_v18 = vshrl.u32 %v14278_v13, 16  ;;  %v5361_v26 = vrot.slane %v5359_v57, 4 }
 0x457   : > { %11425 = vmatprep.subr.bf16.mxu1 %v12418_v46  ;;  %v5335_v23 = vrot.slane %v5333_v61, 4  ;;  %v5345_v5 = vor.u32 %v5344_v28, %v5341_v45  ;;  %v5383_v13 = vrot.slane %v5381_v43, 3  ;;  %v6005_v6 = vshll.u32 %v12505_v47, 16 }
 0x458   : > { %v5319_v8 = vor.u32 %v5318_v29, %v5315_v12  ;;  %v5366_v11 = vrot.slane %v5364_v18, 3  ;;  %v5369_v12 = vrot.slane %v5367_v3, 4  ;;  %v5985_v29 = vld [vmem:[#allocation3 + $0x8] sm:$0x1f]  ;;  %v6030_v18 = vshll.u32 %v5986_v34, 16 }
 0x459   : > { %v5336_v9 = vor.u32 %v5335_v23, %v5332_v63  ;;  %v5354_v15 = vsel %vm15559_vm9, %v5345_v5, %v5353_v16  ;;  %v6010_v24 = vshrl.u32 %v5985_v29, 16  ;;  %v6013_v32 = vshll.u32 %v5985_v29, 16  ;;  %vm15575_vm9 = vmmov %vm15564_vm0 }
 0x45a   : > { %11426 = vmatpush3.bf16.msra.mxu1 %v12418_v46  ;;  %v14333_v46 = vld [vmem:[#allocation4 + $0xc0] sm:$0xff]   ;;  %v5370_v62 = vor.u32 %v5369_v12, %v5366_v11  ;;  %v5387_v48 = vor.u32 %v5386_v50, %v5383_v13  ;;  %v6007_v63 = vrot.slane %v6005_v6, 5  ;;  %v6022_v5 = vshll.u32 %v14192_v44, 16  ;;  %v5988_v13 = vld [vmem:[#allocation3 + $0x38] sm:$0x1f] }
 0x45b   : > { %11427 = vmatprep.subr.bf16.mxu1 %v12419_v2  ;;  %v6012_v45 = vrot.slane %v6010_v24, 4  ;;  %v6015_v28 = vrot.slane %v6013_v32, 5  ;;  %v6027_v16 = vshrl.u32 %v5986_v34, 16  ;;  %v6036_v56 = vshrl.u32 %v14198_v25, 16  ;;  %v5989_v50 = vld [vmem:[#allocation3 + $0x48] sm:$0x1f] }
 0x45c   : > { %v6039_v43 = vshll.u32 %v14198_v25, 16  ;;  %v6032_v11 = vrot.slane %v6030_v18, 5  ;;  %v6053_v27 = vshrl.u32 %v14206_v17, 16  ;;  %v6056_v6 = vshll.u32 %v14206_v17, 16  ;;  %v5990_v17 = vld [vmem:[#allocation3 + $0x58] sm:$0x1f] }
 0x45d   : > { %11396 = vmatmul.mubr.bf16.gmra.mrb[28].mxu1 %v5269_v30  ;;  %v5358_v30 = vrot.slane %v5356_v38, 3  ;;  %v5987_v38 = vld [vmem:[#allocation3 + $0x28] sm:$0x1f]  ;;  %v6016_v57 = vor.u32 %v6015_v28, %v6012_v45  ;;  %v6070_v24 = vshrl.u32 %v14211_v4, 16  ;;  %v6073_v32 = vshll.u32 %v14211_v4, 16  ;;  %v12423_v34 = vld [vmem:[#allocation4 + $0xd0] sm:$0xff]  }
 0x45e   : > { %11399 = vmatprep.mubr.bf16.mxu1 %v5286_v55  ;;  %11428 = vmatpush3.bf16.msra.mxu1 %v12419_v2  ;;  %v5320_v2 = vsel %vm15557_vm15, %v5311_v41, %v5319_v8  ;;  %v5132_v55 = vld [vmem:[#allocation3 + $0xf0] sm:$0xf8]  ;;  %v5398_v41 = vshrl.u32 %v14294_v20, 16  ;;  %v5401_v8 = vshll.u32 %v14294_v20, 16  ;;  %v6019_v20 = vshrl.u32 %v14192_v44, 16  ;;  %vm15573_vm15 = vmmov %vm15564_vm0 }
 0x45f   : > { %11429 = vmatprep.subr.bf16.mxu1 %v12420_v59  ;;  %v5390_v54 = vshrl.u32 %v5132_v55, 16  ;;  %v5393_v61 = vshll.u32 %v5132_v55, 16  ;;  %v5362_v10 = vor.u32 %v5361_v26, %v5358_v30  ;;  %v6044_v58 = vshrl.u32 %v5987_v38, 16  ;;  %v5991_v4 = vld [vmem:[#allocation3 + $0x68] sm:$0x1f] }
 0x460   : > { %v5400_v31 = vrot.slane %v5398_v41, 3  ;;  %v6021_v30 = vrot.slane %v6019_v20, 4  ;;  %v6029_v26 = vrot.slane %v6027_v16, 4  ;;  %v6038_v44 = vrot.slane %v6036_v56, 4 }
 0x461   : > { %v5392_v23 = vrot.slane %v5390_v54, 3  ;;  %v5371_v42 = vsel %vm15560_vm10, %v5362_v10, %v5370_v62  ;;  %v5395_v39 = vrot.slane %v5393_v61, 4  ;;  %v6041_v29 = vrot.slane %v6039_v43, 5  ;;  %vm15576_vm10 = vmmov %vm15564_vm0 }
 0x462   : > { %11430 = vmatpush3.bf16.msra.mxu1 %v12420_v59  ;;  %v5337_v59 = vsel %vm15558_vm7, %v5328_v49, %v5336_v9  ;;  %v6008_v9 = vor.u32 %v6007_v63, %v6004_v53  ;;  %v6033_v25 = vor.u32 %v6032_v11, %v6029_v26  ;;  %v6061_v54 = vshrl.u32 %v5988_v13, 16  ;;  %vm15574_vm7 = vmmov %vm15564_vm0 }
 0x463   : > { %11463 = vmatprep.subr.bf16.mxu1 %v14333_v46  ;;  %v5396_v3 = vor.u32 %v5395_v39, %v5392_v23  ;;  %v6064_v61 = vshll.u32 %v5988_v13, 16  ;;  %v6042_v10 = vor.u32 %v6041_v29, %v6038_v44  ;;  %v6078_v41 = vshrl.u32 %v5989_v50, 16  ;;  %v5992_v29 = vld [vmem:[#allocation3 + $0x78] sm:$0x1f] }
 0x464   : > { %v6017_v55 = vsel %vm15562_vm1, %v6008_v9, %v6016_v57  ;;  %v6055_v53 = vrot.slane %v6053_v27, 4  ;;  %v6058_v63 = vrot.slane %v6056_v6, 5  ;;  %v6063_v23 = vrot.slane %v6061_v54, 4  ;;  %vm15578_vm1 = vmmov %vm15564_vm0 }
 0x465   : > { %11400 = vmatmul.mubr.bf16.gmra.mrb[32].mxu1 %v5303_v7  ;;  %v5379_v7 = vor.u32 %v5378_v19, %v5375_v35  ;;  %v6046_v35 = vrot.slane %v6044_v58, 4  ;;  %v6066_v45 = vrot.slane %v6064_v61, 5  ;;  %v6072_v28 = vrot.slane %v6070_v24, 4 }
 0x466   : > { %11403 = vmatprep.mubr.bf16.mxu1 %v5320_v2  ;;  %v5403_v2 = vrot.slane %v5401_v8, 4  ;;  %v6081_v8 = vshll.u32 %v5989_v50, 16  ;;  %v6090_v9 = vshll.u32 %v14221_v52, 16  ;;  %v6095_v20 = vshrl.u32 %v5990_v17, 16 }
 0x467   : > { %v5388_v49 = vsel %vm15561_vm11, %v5379_v7, %v5387_v48  ;;  %v12422_v48 = vld [vmem:[#allocation4 + $0xc8] sm:$0xff]   ;;  %v6059_v57 = vor.u32 %v6058_v63, %v6055_v53  ;;  %v6104_v18 = vshrl.u32 %v14225_v37, 16  ;;  %v6112_v56 = vshrl.u32 %v5991_v4, 16  ;;  %vm15577_vm11 = vmmov %vm15564_vm0 }
 0x468   : > { %v5404_v40 = vor.u32 %v5403_v2, %v5400_v31  ;;  %v6080_v31 = vrot.slane %v6078_v41, 4  ;;  %v6083_v2 = vrot.slane %v6081_v8, 5  ;;  %v6092_v58 = vrot.slane %v6090_v9, 5 }
 0x469   : > { %v6121_v13 = vshrl.u32 %v14235_v21, 16  ;;  %v6124_v50 = vshll.u32 %v14235_v21, 16  ;;  %v6132_v27 = vshll.u32 %v5992_v29, 16  ;;  %v6138_v6 = vshrl.u32 %v14239_v36, 16 }
 0x46a   : > { %v5405_v12 = vsel %vm15563_vm2, %v5396_v3, %v5404_v40  ;;  %v6084_v3 = vor.u32 %v6083_v2, %v6080_v31  ;;  %v6107_v40 = vshll.u32 %v14225_v37, 16  ;;  %v5993_v37 = vld [vmem:[#allocation3 + $0x88] sm:$0x1f]  ;;  %v6141_v54 = vshll.u32 %v14239_v36, 16 }
 0x46b   : > { %v6123_v41 = vrot.slane %v6121_v13, 4  ;;  %v6126_v8 = vrot.slane %v6124_v50, 5  ;;  %v6134_v21 = vrot.slane %v6132_v27, 5  ;;  %v6140_v53 = vrot.slane %v6138_v6, 4 }
 0x46c   : > { %v6109_v11 = vrot.slane %v6107_v40, 5  ;;  %v6143_v63 = vrot.slane %v6141_v54, 5 }
 0x46d   : > { %11404 = vmatmul.mubr.bf16.gmra.mrb[36].mxu1 %v5337_v59  ;;  %v6047_v59 = vshll.u32 %v5987_v38, 16  ;;  %v6098_v38 = vshll.u32 %v5990_v17, 16  ;;  %v6155_v17 = vshrl.u32 %v14249_v33, 16 }
 0x46e   : > { %11407 = vmatprep.mubr.bf16.mxu1 %v5354_v15  ;;  %v6024_v15 = vrot.slane %v6022_v5, 5  ;;  %v6067_v5 = vor.u32 %v6066_v45, %v6063_v23  ;;  %v5994_v23 = vld [vmem:[#allocation3 + $0x98] sm:$0x1f]  ;;  %v6144_v9 = vor.u32 %v6143_v63, %v6140_v53 }
 0x46f   : > { %v6049_v19 = vrot.slane %v6047_v59, 5  ;;  %v6097_v59 = vrot.slane %v6095_v20, 4  ;;  %v6163_v31 = vshrl.u32 %v5994_v23, 16  ;;  %v6166_v2 = vshll.u32 %v5994_v23, 16 }
 0x470   : > { %v6025_v47 = vor.u32 %v6024_v15, %v6021_v30  ;;  %v6100_v30 = vrot.slane %v6098_v38, 5  ;;  %v6106_v15 = vrot.slane %v6104_v18, 4  ;;  %v6172_v20 = vshrl.u32 %v14253_v14, 16 }
 0x471   : > { %v6050_v62 = vor.u32 %v6049_v19, %v6046_v35  ;;  %v6157_v18 = vrot.slane %v6155_v17, 4  ;;  %v6165_v40 = vrot.slane %v6163_v31, 4 }
 0x472   : > { %v6034_v7 = vsel %vm15564_vm0, %v6025_v47, %v6033_v25  ;;  %v6101_v19 = vor.u32 %v6100_v30, %v6097_v59  ;;  %v12425_v47 = vld [vmem:[#allocation4 + $0xe0] sm:$0xff]   ;;  %v6129_v25 = vshrl.u32 %v5992_v29, 16  ;;  %v6110_v61 = vor.u32 %v6109_v11, %v6106_v15  ;;  %vm15579_vm0 = vmmov %vm15563_vm2 }
 0x473   : > { %v6051_v39 = vsel %vm15565_vm3, %v6042_v10, %v6050_v62  ;;  %v6149_v10 = vshll.u32 %v5993_v37, 16  ;;  %v6189_v11 = vshrl.u32 %v14266_v22, 16  ;;  %vm15580_vm3 = vmmov %vm15579_vm0 }
 0x475   : > { %11408 = vmatmul.mubr.bf16.gmra.mrb[40].mxu1 %v5371_v42  ;;  %v6075_v42 = vrot.slane %v6073_v32, 5  ;;  %v6146_v32 = vshrl.u32 %v5993_v37, 16  ;;  %v6191_v6 = vrot.slane %v6189_v11, 4  ;;  %v6549_v11 = vld [vmem:[#allocation3 + $0x20] sm:$0xf8] }
 0x476   : > { %11411 = vmatprep.mubr.bf16.mxu1 %v5388_v49  ;;  %v6087_v49 = vshrl.u32 %v14221_v52, 16  ;;  %v6068_v52 = vsel %vm15566_vm4, %v6059_v57, %v6067_v5  ;;  %v6175_v57 = vshll.u32 %v14253_v14, 16  ;;  %v5997_v14 = vld [vmem:[#allocation3 + $0xc8] sm:$0x1f]  ;;  %vm15581_vm4 = vmmov %vm15579_vm0 }
 0x477   : > { %v6076_v16 = vor.u32 %v6075_v42, %v6072_v28  ;;  %v6148_v36 = vrot.slane %v6146_v32, 4  ;;  %v6151_v28 = vrot.slane %v6149_v10, 5  ;;  %v5995_v42 = vld [vmem:[#allocation3 + $0xa8] sm:$0x1f]  ;;  %v5998_v10 = vld [vmem:[#allocation3 + $0xd8] sm:$0x1f] }
 0x478   : > { %v6089_v43 = vrot.slane %v6087_v49, 4  ;;  %v6180_v5 = vshrl.u32 %v5995_v42, 16  ;;  %v6177_v59 = vrot.slane %v6175_v57, 5  ;;  %v6234_v53 = vshll.u32 %v5998_v10, 16 }
 0x479   : > { %v6085_v26 = vsel %vm15567_vm5, %v6076_v16, %v6084_v3  ;;  %v6152_v38 = vor.u32 %v6151_v28, %v6148_v36  ;;  %v6183_v16 = vshll.u32 %v5995_v42, 16  ;;  %v6240_v36 = vshrl.u32 %v14286_v1, 16  ;;  %vm15582_vm5 = vmmov %vm15579_vm0 }
 0x47a   : > { %v6093_v35 = vor.u32 %v6092_v58, %v6089_v43  ;;  %v6174_v43 = vrot.slane %v6172_v20, 4  ;;  %v6182_v30 = vrot.slane %v6180_v5, 4  ;;  %v6243_v42 = vshll.u32 %v14286_v1, 16 }
 0x47b   : > { %v6153_v58 = vsel %vm15571_vm13, %v6144_v9, %v6152_v38  ;;  %v6242_v9 = vrot.slane %v6240_v36, 4  ;;  %v14413_v36 = vld [vmem:[#allocation3 + $0x48] sm:$0xf]  ;;  %vm15586_vm13 = vmmov %vm15579_vm0 }
 0x47c   : > { %v6102_v62 = vsel %vm15568_vm6, %v6093_v35, %v6101_v19  ;;  %v6206_v35 = vshrl.u32 %v14270_v51, 16  ;;  %v6209_v19 = vshll.u32 %v14270_v51, 16  ;;  %v6178_v13 = vor.u32 %v6177_v59, %v6174_v43  ;;  %vm15583_vm6 = vmmov %vm15579_vm0 }
 0x47d   : > { %11412 = vmatmul.mubr.bf16.gmra.mrb[44].mxu1 %v5405_v12  ;;  %v6114_v12 = vrot.slane %v6112_v56, 4  ;;  %v6168_v56 = vrot.slane %v6166_v2, 5  ;;  %v6245_v38 = vrot.slane %v6243_v42, 5 }
 0x47e   : > { %11431 = vmatprep.mubr.bf16.mxu1 %v6017_v55  ;;  %v12424_v55 = vld [vmem:[#allocation4 + $0xd8] sm:$0xff]   ;;  %v6211_v32 = vrot.slane %v6209_v19, 5 }
 0x47f   : > { %v6246_v59 = vor.u32 %v6245_v38, %v6242_v9 }
 0x485   : > { %11432 = vmatmul.mubr.bf16.vlgmr.msra.gmra.mrb[16].mxu1 %v6034_v7  ;;  %v12426_v7 = vld [vmem:[#allocation4 + $0xe8] sm:$0xff]  }
 0x486   : > { %11464 = vmatpush3.bf16.msra.mxu1 %v14333_v46  ;;  %11435 = vmatprep.mubr.bf16.mxu1 %v6051_v39  ;;  %v6115_v46 = vshll.u32 %v5991_v4, 16  ;;  %v6158_v39 = vshll.u32 %v14249_v33, 16  ;;  %v12427_v4 = vld [vmem:[#allocation4 + $0xf0] sm:$0xff]   ;;  %v12428_v33 = vld [vmem:[#allocation4 + $0xf8] sm:$0xff]  }
 0x487   : > { %11465 = vmatprep.subr.bf16.mxu1 %v12422_v48 }
 0x488   : > { %v6117_v44 = vrot.slane %v6115_v46, 5  ;;  %v6160_v3 = vrot.slane %v6158_v39, 5 }
 0x48a   : > { %11466 = vmatpush3.bf16.msra.mxu1 %v12422_v48  ;;  %v6118_v24 = vor.u32 %v6117_v44, %v6114_v12  ;;  %v6131_v48 = vrot.slane %v6129_v25, 4  ;;  %v6161_v15 = vor.u32 %v6160_v3, %v6157_v18  ;;  %v6192_v12 = vshll.u32 %v14266_v22, 16  ;;  %v14383_v44 = vld [vmem:[#allocation4 + $0x100] sm:$0xff]   ;;  %v14396_v18 = vld [vmem:[#allocation3 + $0x18] sm:$0xf] }
 0x48b   : > { %11467 = vmatprep.subr.bf16.mxu1 %v12423_v34  ;;  %v6217_v25 = vshll.u32 %v5997_v14, 16 }
 0x48c   : > { %v6119_v45 = vsel %vm15569_vm8, %v6110_v61, %v6118_v24  ;;  %v6135_v49 = vor.u32 %v6134_v21, %v6131_v48  ;;  %v6194_v54 = vrot.slane %v6192_v12, 5  ;;  %v6208_v24 = vrot.slane %v6206_v35, 4  ;;  %v14403_v12 = vld [vmem:[#allocation3 + $0x28] sm:$0xf]  ;;  %vm15584_vm8 = vmmov %vm15579_vm0 }
 0x48d   : > { %11436 = vmatmul.mubr.bf16.gmra.mrb[20].mxu1 %v6068_v52  ;;  %v5996_v52 = vld [vmem:[#allocation3 + $0xb8] sm:$0x1f]  ;;  %v6226_v48 = vshll.u32 %v14280_v60, 16  ;;  %v6231_v21 = vshrl.u32 %v5998_v10, 16 }
 0x48e   : > { %11439 = vmatprep.mubr.bf16.mxu1 %v6085_v26  ;;  %11468 = vmatpush3.bf16.msra.mxu1 %v12423_v34  ;;  %v6127_v34 = vor.u32 %v6126_v8, %v6123_v41  ;;  %v6169_v26 = vor.u32 %v6168_v56, %v6165_v40  ;;  %v6197_v29 = vshrl.u32 %v5996_v52, 16  ;;  %v6200_v37 = vshll.u32 %v5996_v52, 16  ;;  %v5999_v8 = vld [vmem:[#allocation3 + $0xe8] sm:$0x1f] }
 0x48f   : > { %11469 = vmatprep.subr.bf16.mxu1 %v12424_v55  ;;  %v6219_v41 = vrot.slane %v6217_v25, 5  ;;  %v6195_v63 = vor.u32 %v6194_v54, %v6191_v6  ;;  %v6248_v17 = vshrl.u32 %v5999_v8, 16  ;;  %v6251_v39 = vshll.u32 %v5999_v8, 16 }
 0x490   : > { %v6136_v46 = vsel %vm15570_vm12, %v6127_v34, %v6135_v49  ;;  %v6170_v27 = vsel %vm15572_vm14, %v6161_v15, %v6169_v26  ;;  %v6199_v22 = vrot.slane %v6197_v29, 4  ;;  %v6202_v61 = vrot.slane %v6200_v37, 5  ;;  %vm15585_vm12 = vmmov %vm15579_vm0 }
 0x491   : > { %v6228_v2 = vrot.slane %v6226_v48, 5  ;;  %v6236_v34 = vrot.slane %v6234_v53, 5  ;;  %v6250_v57 = vrot.slane %v6248_v17, 4  ;;  %v6253_v5 = vrot.slane %v6251_v39, 5  ;;  %vm15587_vm14 = vmmov %vm15579_vm0 }
 0x492   : > { %11470 = vmatpush3.bf16.msra.mxu1 %v12424_v55  ;;  %v6185_v55 = vrot.slane %v6183_v16, 5  ;;  %v6203_v23 = vor.u32 %v6202_v61, %v6199_v22  ;;  %v6547_v16 = vld [vmem:[#allocation3 + $0x10] sm:$0xf8]  ;;  %v6257_v40 = vshrl.u32 %v14296_v0, 16  ;;  %v6260_v56 = vshll.u32 %v14296_v0, 16 }
 0x493   : > { %11471 = vmatprep.subr.bf16.mxu1 %v12425_v47  ;;  %v6580_v43 = vshrl.u32 %v6547_v16, 16  ;;  %v6591_v52 = vshll.u32 %v14396_v18, 16  ;;  %v6597_v25 = vshrl.u32 %v6549_v11, 16  ;;  %v6605_v6 = vshrl.u32 %v14403_v12, 16  ;;  %v14408_v22 = vld [vmem:[#allocation3 + $0x38] sm:$0xf] }
 0x494   : > { %v6186_v50 = vor.u32 %v6185_v55, %v6182_v30  ;;  %v6204_v49 = vsel %vm15574_vm7, %v6195_v63, %v6203_v23  ;;  %v6254_v30 = vor.u32 %v6253_v5, %v6250_v57  ;;  %v6588_v55 = vshrl.u32 %v14396_v18, 16  ;;  %v6553_v63 = vld [vmem:[#allocation3 + $0x40] sm:$0xf8]  ;;  %vm15589_vm7 = vmmov %vm15579_vm0 }
 0x495   : > { %11440 = vmatmul.mubr.bf16.gmra.mrb[24].mxu1 %v6102_v62  ;;  %v6259_v15 = vrot.slane %v6257_v40, 4  ;;  %v6262_v26 = vrot.slane %v6260_v56, 5  ;;  %v6582_v0 = vrot.slane %v6580_v43, 3  ;;  %v6608_v54 = vshll.u32 %v14403_v12, 16  ;;  %v6557_v56 = vld [vmem:[#allocation3 + $0x60] sm:$0xf8] }
 0x496   : > { %11443 = vmatprep.mubr.bf16.mxu1 %v6119_v45  ;;  %11472 = vmatpush3.bf16.msra.mxu1 %v12425_v47  ;;  %v6214_v47 = vshrl.u32 %v5997_v14, 16  ;;  %v6187_v62 = vsel %vm15573_vm15, %v6178_v13, %v6186_v50  ;;  %v6212_v45 = vor.u32 %v6211_v32, %v6208_v24  ;;  %v6255_v19 = vsel %vm15577_vm11, %v6246_v59, %v6254_v30  ;;  %vm15588_vm15 = vmmov %vm15579_vm0 }
 0x497   : > { %11473 = vmatprep.subr.bf16.mxu1 %v12426_v7  ;;  %v6590_v13 = vrot.slane %v6588_v55, 3  ;;  %v6593_v50 = vrot.slane %v6591_v52, 4  ;;  %v6263_v61 = vor.u32 %v6262_v26, %v6259_v15  ;;  %v6625_v8 = vshll.u32 %v14408_v22, 16  ;;  %vm15592_vm11 = vmmov %vm15579_vm0 }
 0x498   : > { %v6216_v51 = vrot.slane %v6214_v47, 4  ;;  %v6551_v47 = vld [vmem:[#allocation3 + $0x30] sm:$0xf8]  ;;  %v6610_v53 = vrot.slane %v6608_v54, 4  ;;  %v6634_v9 = vshll.u32 %v6553_v63, 16 }
 0x499   : > { %v6614_v10 = vshrl.u32 %v6551_v47, 16 }
 0x49a   : > { %11474 = vmatpush3.bf16.msra.mxu1 %v12426_v7  ;;  %v6223_v7 = vshrl.u32 %v14280_v60, 16  ;;  %v6220_v28 = vor.u32 %v6219_v41, %v6216_v51  ;;  %v6000_v60 = vld [vmem:[#allocation3 + $0xf8] sm:$0x1f]  ;;  %v6617_v51 = vshll.u32 %v6551_v47, 16  ;;  %v6622_v41 = vshrl.u32 %v14408_v22, 16 }
 0x49b   : > { %11475 = vmatprep.subr.bf16.mxu1 %v12427_v4 }
 0x49c   : > { %v6225_v31 = vrot.slane %v6223_v7, 4  ;;  %v6221_v20 = vsel %vm15575_vm9, %v6212_v45, %v6220_v28  ;;  %v6599_v7 = vrot.slane %v6597_v25, 3  ;;  %v6616_v45 = vrot.slane %v6614_v10, 3  ;;  %v6555_v28 = vld [vmem:[#allocation3 + $0x50] sm:$0xf8]  ;;  %vm15590_vm9 = vmmov %vm15579_vm0 }
 0x49d   : > { %11444 = vmatmul.mubr.bf16.gmra.mrb[28].mxu1 %v6136_v46  ;;  %v6268_v46 = vshll.u32 %v6000_v60, 16  ;;  %v6619_v17 = vrot.slane %v6617_v51, 4  ;;  %v6624_v39 = vrot.slane %v6622_v41, 3  ;;  %v6648_v38 = vshrl.u32 %v6555_v28, 16  ;;  %v12432_v51 = vld [vmem:[#allocation4 + $0x118] sm:$0xff]  }
 0x49e   : > { %11447 = vmatprep.mubr.bf16.mxu1 %v6153_v58  ;;  %11476 = vmatpush3.bf16.msra.mxu1 %v12427_v4  ;;  %v6233_v4 = vrot.slane %v6231_v21, 4  ;;  %v6229_v1 = vor.u32 %v6228_v2, %v6225_v31  ;;  %v6583_v58 = vshll.u32 %v6547_v16, 16  ;;  %v6607_v21 = vrot.slane %v6605_v6, 3  ;;  %v14416_v2 = vld [vmem:[#allocation3 + $0x58] sm:$0xf] }
 0x49f   : > { %11477 = vmatprep.subr.bf16.mxu1 %v12428_v33  ;;  %v6270_v37 = vrot.slane %v6268_v46, 5  ;;  %v6627_v31 = vrot.slane %v6625_v8, 4  ;;  %v6651_v57 = vshll.u32 %v6555_v28, 16  ;;  %v6656_v5 = vshrl.u32 %v14416_v2, 16  ;;  %v12430_v46 = vld [vmem:[#allocation4 + $0x108] sm:$0xff]  }
 0x4a0   : > { %v6237_v3 = vor.u32 %v6236_v34, %v6233_v4  ;;  %v6585_v35 = vrot.slane %v6583_v58, 4  ;;  %v6611_v34 = vor.u32 %v6610_v53, %v6607_v21  ;;  %v6659_v16 = vshll.u32 %v14416_v2, 16  ;;  %v6563_v21 = vld [vmem:[#allocation3 + $0x90] sm:$0xf8]  ;;  %v14437_v28 = vld [vmem:[#allocation3 + $0x98] sm:$0xf] }
 0x4a1   : > { %v6636_v58 = vrot.slane %v6634_v9, 4  ;;  %v6650_v55 = vrot.slane %v6648_v38, 3  ;;  %v6653_v52 = vrot.slane %v6651_v57, 4  ;;  %v6716_v9 = vshrl.u32 %v6563_v21, 16 }
 0x4a2   : > { %11478 = vmatpush3.bf16.msra.mxu1 %v12428_v33  ;;  %v6265_v33 = vshrl.u32 %v6000_v60, 16  ;;  %v6238_v14 = vsel %vm15576_vm10, %v6229_v1, %v6237_v3  ;;  %v6586_v32 = vor.u32 %v6585_v35, %v6582_v0  ;;  %v6639_v60 = vshrl.u32 %v14413_v36, 16  ;;  %vm15591_vm10 = vmmov %vm15579_vm0 }
 0x4a3   : > { %11511 = vmatprep.subr.bf16.mxu1 %v14383_v44  ;;  %v6620_v1 = vor.u32 %v6619_v17, %v6616_v45  ;;  %v6628_v3 = vor.u32 %v6627_v31, %v6624_v39  ;;  %v6661_v15 = vrot.slane %v6659_v16, 4  ;;  %v6654_v25 = vor.u32 %v6653_v52, %v6650_v55 }
 0x4a4   : > { %v6267_v29 = vrot.slane %v6265_v33, 4  ;;  %v14423_v33 = vld [vmem:[#allocation3 + $0x68] sm:$0xf]  ;;  %v6641_v59 = vrot.slane %v6639_v60, 3  ;;  %v6719_v60 = vshll.u32 %v6563_v21, 16  ;;  %v6727_v38 = vshll.u32 %v14437_v28, 16 }
 0x4a5   : > { %11448 = vmatmul.mubr.bf16.gmra.mrb[32].mxu1 %v6170_v27  ;;  %v6600_v27 = vshll.u32 %v6549_v11, 16  ;;  %v6629_v26 = vsel %vm15580_vm3, %v6620_v1, %v6628_v3  ;;  %v6559_v11 = vld [vmem:[#allocation3 + $0x70] sm:$0xf8]  ;;  %v6673_v0 = vshrl.u32 %v14423_v33, 16  ;;  %v6676_v35 = vshll.u32 %v14423_v33, 16 }
 0x4a6   : > { %11451 = vmatprep.mubr.bf16.mxu1 %v6187_v62  ;;  %v6271_v24 = vor.u32 %v6270_v37, %v6267_v29  ;;  %v6594_v62 = vor.u32 %v6593_v50, %v6590_v13  ;;  %v6665_v29 = vshrl.u32 %v6557_v56, 16  ;;  %v6668_v37 = vshll.u32 %v6557_v56, 16  ;;  %v12431_v13 = vld [vmem:[#allocation4 + $0x110] sm:$0xff]   ;;  %v6565_v1 = vld [vmem:[#allocation3 + $0xa0] sm:$0xf8] }
 0x4a7   : > { %v6602_v48 = vrot.slane %v6600_v27, 4  ;;  %v6682_v6 = vshrl.u32 %v6559_v11, 16  ;;  %v6685_v54 = vshll.u32 %v6559_v11, 16  ;;  %v6675_v10 = vrot.slane %v6673_v0, 3  ;;  %v14444_v3 = vld [vmem:[#allocation3 + $0xa8] sm:$0xf] }
 0x4a8   : > { %v6272_v23 = vsel %vm15578_vm1, %v6263_v61, %v6271_v24  ;;  %v6595_v42 = vsel %vm15563_vm2, %v6586_v32, %v6594_v62  ;;  %v6667_v24 = vrot.slane %v6665_v29, 3  ;;  %v6670_v32 = vrot.slane %v6668_v37, 4  ;;  %v14449_v0 = vld [vmem:[#allocation3 + $0xb8] sm:$0xf]  ;;  %v6571_v21 = vld [vmem:[#allocation3 + $0xd0] sm:$0xf8]  ;;  %vm15593_vm1 = vmmov %vm15579_vm0 }
 0x4a9   : > { %v6603_v4 = vor.u32 %v6602_v48, %v6599_v7  ;;  %v6678_v62 = vrot.slane %v6676_v35, 4  ;;  %v6561_v7 = vld [vmem:[#allocation3 + $0x80] sm:$0xf8]  ;;  %v14435_v48 = vld [vmem:[#allocation3 + $0x88] sm:$0xf]  ;;  %v6684_v53 = vrot.slane %v6682_v6, 3 }
 0x4aa   : > { %v6699_v39 = vshrl.u32 %v6561_v7, 16  ;;  %v6702_v31 = vshll.u32 %v6561_v7, 16  ;;  %v6729_v52 = vrot.slane %v6727_v38, 4  ;;  %v6736_v11 = vshll.u32 %v6565_v1, 16  ;;  %v12435_v35 = vld [vmem:[#allocation4 + $0x130] sm:$0xff]  }
 0x4ab   : > { %v6612_v40 = vsel %vm15579_vm0, %v6603_v4, %v6611_v34  ;;  %v6679_v17 = vor.u32 %v6678_v62, %v6675_v10  ;;  %v6707_v4 = vshrl.u32 %v14435_v48, 16  ;;  %v6710_v34 = vshll.u32 %v14435_v48, 16  ;;  %v12436_v62 = vld [vmem:[#allocation4 + $0x138] sm:$0xff]   ;;  %v14455_v7 = vld [vmem:[#allocation3 + $0xc8] sm:$0xf] }
 0x4ac   : > { %v6704_v56 = vrot.slane %v6702_v31, 4  ;;  %v6741_v29 = vshrl.u32 %v14444_v3, 16  ;;  %v6744_v37 = vshll.u32 %v14444_v3, 16  ;;  %vm15594_vm2 = vcmask 1043456  }
 0x4ad   : > { %11452 = vmatmul.mubr.bf16.gmra.mrb[36].mxu1 %v6204_v49  ;;  %v6631_v49 = vshrl.u32 %v6553_v63, 16  ;;  %v6687_v63 = vrot.slane %v6685_v54, 4  ;;  %v6758_v54 = vshrl.u32 %v14449_v0, 16  ;;  %vm15595_vm0 = vmmov %vm15594_vm2 }
 0x4ae   : > { %11455 = vmatprep.mubr.bf16.mxu1 %v6221_v20  ;;  %v6642_v20 = vshll.u32 %v14413_v36, 16  ;;  %v6746_v10 = vrot.slane %v6744_v37, 4  ;;  %vm15596_vm3 = vmmov %vm15595_vm0 }
 0x4af   : > { %v6633_v43 = vrot.slane %v6631_v49, 3  ;;  %v12433_v49 = vld [vmem:[#allocation4 + $0x120] sm:$0xff]   ;;  %v6688_v57 = vor.u32 %v6687_v63, %v6684_v53 }
 0x4b0   : > { %v6644_v30 = vrot.slane %v6642_v20, 4  ;;  %v6724_v20 = vshrl.u32 %v14437_v28, 16 }
 0x4b1   : > { %v6637_v50 = vor.u32 %v6636_v58, %v6633_v43  ;;  %v6712_v43 = vrot.slane %v6710_v34, 4  ;;  %v12434_v58 = vld [vmem:[#allocation4 + $0x128] sm:$0xff]   ;;  %v6775_v34 = vshrl.u32 %v14455_v7, 16 }
 0x4b2   : > { %v6645_v47 = vor.u32 %v6644_v30, %v6641_v59  ;;  %v6718_v59 = vrot.slane %v6716_v9, 3  ;;  %v6721_v30 = vrot.slane %v6719_v60, 4  ;;  %v6726_v55 = vrot.slane %v6724_v20, 3  ;;  %v14461_v9 = vld [vmem:[#allocation4 + $0x140] sm:$0xff]  }
 0x4b3   : > { %v6784_v60 = vshrl.u32 %v6571_v21, 16  ;;  %v6787_v20 = vshll.u32 %v6571_v21, 16 }
 0x4b4   : > { %v6646_v41 = vsel %vm15581_vm4, %v6637_v50, %v6645_v47  ;;  %v6722_v47 = vor.u32 %v6721_v30, %v6718_v59  ;;  %vm15597_vm4 = vmmov %vm15595_vm0 }
 0x4b5   : > { %11456 = vmatmul.mubr.bf16.gmra.mrb[40].mxu1 %v6238_v14  ;;  %v6658_v14 = vrot.slane %v6656_v5, 3  ;;  %v6786_v59 = vrot.slane %v6784_v60, 3  ;;  %v6789_v30 = vrot.slane %v6787_v20, 4 }
 0x4b6   : > { %11459 = vmatprep.mubr.bf16.mxu1 %v6255_v19  ;;  %v14429_v19 = vld [vmem:[#allocation3 + $0x78] sm:$0xf] }
 0x4b7   : > { %v6662_v27 = vor.u32 %v6661_v15, %v6658_v14  ;;  %v6690_v61 = vshrl.u32 %v14429_v19, 16  ;;  %v6567_v15 = vld [vmem:[#allocation3 + $0xb0] sm:$0xf8] }
 0x4b8   : > { %v6753_v6 = vshll.u32 %v6567_v15, 16 }
 0x4b9   : > { %v6663_v8 = vsel %vm15582_vm5, %v6654_v25, %v6662_v27  ;;  %v6730_v25 = vor.u32 %v6729_v52, %v6726_v55  ;;  %v6750_v27 = vshrl.u32 %v6567_v15, 16  ;;  %vm15598_vm5 = vmmov %vm15595_vm0 }
 0x4ba   : > { %v6755_v63 = vrot.slane %v6753_v6, 4 }
 0x4bb   : > { %v6752_v53 = vrot.slane %v6750_v27, 3 }
 0x4bd   : > { %11460 = vmatmul.mubr.bf16.gmra.mrb[44].mxu1 %v6272_v23  ;;  %v6692_v23 = vrot.slane %v6690_v61, 3  ;;  %v6761_v61 = vshll.u32 %v14449_v0, 16 }
 0x4be   : > { %11479 = vmatprep.mubr.bf16.mxu1 %v6595_v42  ;;  %v6671_v42 = vor.u32 %v6670_v32, %v6667_v24  ;;  %v6738_v24 = vrot.slane %v6736_v11, 4  ;;  %v6743_v32 = vrot.slane %v6741_v29, 3  ;;  %v14470_v11 = vld [vmem:[#allocation3 + $0xf8] sm:$0xf] }
 0x4c0   : > { %v6680_v16 = vsel %vm15583_vm6, %v6671_v42, %v6679_v17  ;;  %v14457_v42 = vld [vmem:[#allocation3 + $0xd8] sm:$0xf]  ;;  %vm15599_vm6 = vmmov %vm15595_vm0 }
 0x4c1   : > { %v6792_v38 = vshrl.u32 %v14457_v42, 16 }
 0x4c3   : > { %v6794_v55 = vrot.slane %v6792_v38, 3 }
 0x4c5   : > { %11480 = vmatmul.mubr.bf16.vlgmr.msra.gmra.mrb[16].mxu1 %v6612_v40  ;;  %v6701_v40 = vrot.slane %v6699_v39, 3  ;;  %v6747_v39 = vor.u32 %v6746_v10, %v6743_v32 }
 0x4c6   : > { %11512 = vmatpush3.bf16.msra.mxu1 %v14383_v44  ;;  %11483 = vmatprep.mubr.bf16.mxu1 %v6629_v26  ;;  %v6693_v44 = vshll.u32 %v14429_v19, 16  ;;  %v6733_v26 = vshrl.u32 %v6565_v1, 16 }
 0x4c7   : > { %11513 = vmatprep.subr.bf16.mxu1 %v12430_v46 }
 0x4c8   : > { %v6695_v45 = vrot.slane %v6693_v44, 4  ;;  %v6735_v44 = vrot.slane %v6733_v26, 3  ;;  %v6575_v26 = vld [vmem:[#allocation3 + $0xf0] sm:$0xf8] }
 0x4c9   : > { %v6818_v6 = vshrl.u32 %v6575_v26, 16 }
 0x4ca   : > { %11514 = vmatpush3.bf16.msra.mxu1 %v12430_v46  ;;  %v6696_v5 = vor.u32 %v6695_v45, %v6692_v23  ;;  %v6709_v46 = vrot.slane %v6707_v4, 3  ;;  %v6760_v23 = vrot.slane %v6758_v54, 3  ;;  %v6763_v45 = vrot.slane %v6761_v61, 4 }
 0x4cb   : > { %11515 = vmatprep.subr.bf16.mxu1 %v12431_v13  ;;  %v6739_v17 = vor.u32 %v6738_v24, %v6735_v44  ;;  %v6821_v54 = vshll.u32 %v6575_v26, 16  ;;  %v6826_v61 = vshrl.u32 %v14470_v11, 16  ;;  %v6829_v44 = vshll.u32 %v14470_v11, 16 }
 0x4cc   : > { %v6697_v14 = vsel %vm15584_vm8, %v6688_v57, %v6696_v5  ;;  %v6713_v50 = vor.u32 %v6712_v43, %v6709_v46  ;;  %v6795_v57 = vshll.u32 %v14457_v42, 16  ;;  %v6756_v5 = vor.u32 %v6755_v63, %v6752_v53  ;;  %vm15600_vm8 = vmmov %vm15595_vm0 }
 0x4cd   : > { %11484 = vmatmul.mubr.bf16.gmra.mrb[20].mxu1 %v6646_v41  ;;  %v6731_v41 = vsel %vm15586_vm13, %v6722_v47, %v6730_v25  ;;  %v6748_v1 = vsel %vm15587_vm14, %v6739_v17, %v6747_v39  ;;  %v6777_v46 = vrot.slane %v6775_v34, 3  ;;  %v6790_v25 = vor.u32 %v6789_v30, %v6786_v59  ;;  %vm15602_vm13 = vmmov %vm15595_vm0 }
 0x4ce   : > { %11487 = vmatprep.mubr.bf16.mxu1 %v6663_v8  ;;  %11516 = vmatpush3.bf16.msra.mxu1 %v12431_v13  ;;  %v6705_v13 = vor.u32 %v6704_v56, %v6701_v40  ;;  %v6569_v8 = vld [vmem:[#allocation3 + $0xc0] sm:$0xf8]  ;;  %v6797_v52 = vrot.slane %v6795_v57, 4  ;;  %v6820_v21 = vrot.slane %v6818_v6, 3  ;;  %v6823_v53 = vrot.slane %v6821_v54, 4  ;;  %vm15603_vm14 = vmmov %vm15595_vm0 }
 0x4cf   : > { %11517 = vmatprep.subr.bf16.mxu1 %v12432_v51  ;;  %v6767_v31 = vshrl.u32 %v6569_v8, 16  ;;  %v6770_v4 = vshll.u32 %v6569_v8, 16  ;;  %v6577_v8 = vld [vmem:[#allocation3 + $0x100] sm:$0xf8]  ;;  %v6828_v63 = vrot.slane %v6826_v61, 3  ;;  %v7174_v59 = vrot.slane %v14396_v18, 4 }
 0x4d0   : > { %v6798_v27 = vor.u32 %v6797_v52, %v6794_v55  ;;  %v6824_v60 = vor.u32 %v6823_v53, %v6820_v21  ;;  %v14490_v52 = vld [vmem:[#allocation3 + $0x20] sm:$0xf0]  ;;  %v7183_v6 = vrot.slane %v14413_v36, 4  ;;  %v7186_v54 = vrot.slane %v14416_v2, 4  ;;  %v12440_v61 = vld [vmem:[#allocation4 + $0x158] sm:$0xff]  }
 0x4d1   : > { %v6769_v40 = vrot.slane %v6767_v31, 3  ;;  %v6772_v56 = vrot.slane %v6770_v4, 4  ;;  %v6835_v31 = vshrl.u32 %v6577_v8, 16  ;;  %v6838_v4 = vshll.u32 %v6577_v8, 16  ;;  %v12441_v36 = vld [vmem:[#allocation4 + $0x160] sm:$0xff]  }
 0x4d2   : > { %11518 = vmatpush3.bf16.msra.mxu1 %v12432_v51  ;;  %v6714_v51 = vsel %vm15585_vm12, %v6705_v13, %v6713_v50  ;;  %v7176_v26 = vrot.slane %v14490_v52, 4  ;;  %v7189_v2 = vrot.slane %v14423_v33, 4  ;;  %v14521_v53 = vld [vmem:[#allocation3 + $0x80] sm:$0xf0]  ;;  %v12443_v33 = vld [vmem:[#allocation4 + $0x170] sm:$0xff]   ;;  %vm15601_vm12 = vmmov %vm15595_vm0 }
 0x4d3   : > { %11519 = vmatprep.subr.bf16.mxu1 %v12433_v49  ;;  %v6773_v50 = vor.u32 %v6772_v56, %v6769_v40  ;;  %v6837_v57 = vrot.slane %v6835_v31, 3  ;;  %v14484_v56 = vld [vmem:[#allocation3 + $0x10] sm:$0xf0]  ;;  %v12444_v31 = vld [vmem:[#allocation4 + $0x178] sm:$0xff]  }
 0x4d5   : > { %11488 = vmatmul.mubr.bf16.gmra.mrb[24].mxu1 %v6680_v16  ;;  %v6764_v16 = vor.u32 %v6763_v45, %v6760_v23  ;;  %v6831_v23 = vrot.slane %v6829_v44, 4  ;;  %v14478_v45 = vld [vmem:[#allocation3 + $0x108] sm:$0xf] }
 0x4d6   : > { %11491 = vmatprep.mubr.bf16.mxu1 %v6697_v14  ;;  %11520 = vmatpush3.bf16.msra.mxu1 %v12433_v49  ;;  %v6778_v49 = vshll.u32 %v14455_v7, 16  ;;  %v14467_v14 = vld [vmem:[#allocation3 + $0xe8] sm:$0xf]  ;;  %v6843_v34 = vshrl.u32 %v14478_v45, 16 }
 0x4d7   : > { %11521 = vmatprep.subr.bf16.mxu1 %v12434_v58  ;;  %v6765_v15 = vsel %vm15588_vm15, %v6756_v5, %v6764_v16  ;;  %v6812_v13 = vshll.u32 %v14467_v14, 16  ;;  %v6832_v20 = vor.u32 %v6831_v23, %v6828_v63  ;;  %v6840_v5 = vrot.slane %v6838_v4, 4  ;;  %v14523_v63 = vld [vmem:[#allocation3 + $0x90] sm:$0xf0]  ;;  %vm15604_vm15 = vmmov %vm15595_vm0 }
 0x4d8   : > { %v6780_v43 = vrot.slane %v6778_v49, 4  ;;  %v6846_v49 = vshll.u32 %v14478_v45, 16  ;;  %v6845_v16 = vrot.slane %v6843_v34, 3  ;;  %v7194_v23 = vrot.slane %v14521_v53, 4 }
 0x4d9   : > { %v6833_v40 = vsel %vm15592_vm11, %v6824_v60, %v6832_v20  ;;  %v14533_v60 = vld [vmem:[#allocation3 + $0xb0] sm:$0xf0]  ;;  %vm15608_vm11 = vmmov %vm15595_vm0 }
 0x4da   : > { %11522 = vmatpush3.bf16.msra.mxu1 %v12434_v58  ;;  %v6573_v58 = vld [vmem:[#allocation3 + $0xe0] sm:$0xf8]  ;;  %v6781_v47 = vor.u32 %v6780_v43, %v6777_v46  ;;  %v6841_v46 = vor.u32 %v6840_v5, %v6837_v57  ;;  %v7204_v57 = vrot.slane %v14449_v0, 4  ;;  %v7210_v0 = vrot.slane %v14457_v42, 4 }
 0x4db   : > { %11523 = vmatprep.subr.bf16.mxu1 %v12435_v35  ;;  %v6801_v29 = vshrl.u32 %v6573_v58, 16  ;;  %v6804_v37 = vshll.u32 %v6573_v58, 16  ;;  %v7173_v58 = vrot.slane %v14484_v56, 4 }
 0x4dd   : > { %11492 = vmatmul.mubr.bf16.gmra.mrb[28].mxu1 %v6714_v51  ;;  %v6803_v24 = vrot.slane %v6801_v29, 3  ;;  %v6806_v32 = vrot.slane %v6804_v37, 4  ;;  %v6782_v51 = vsel %vm15589_vm7, %v6773_v50, %v6781_v47  ;;  %v7175_v55 = vsel %vm15594_vm2, %v7173_v58, %v7174_v59  ;;  %v14500_v47 = vld [vmem:[#allocation3 + $0x40] sm:$0xf0]  ;;  %vm15605_vm7 = vmmov %vm15595_vm0 }
 0x4de   : > { %11495 = vmatprep.mubr.bf16.mxu1 %v6731_v41  ;;  %11524 = vmatpush3.bf16.msra.mxu1 %v12435_v35  ;;  %v6809_v35 = vshrl.u32 %v14467_v14, 16  ;;  %v6799_v41 = vsel %vm15590_vm9, %v6790_v25, %v6798_v27  ;;  %v7177_v29 = vrot.slane %v14403_v12, 4  ;;  %v14503_v25 = vld [vmem:[#allocation3 + $0x50] sm:$0xf0]  ;;  %v7182_v12 = vrot.slane %v14500_v47, 4  ;;  %vm15606_vm9 = vmmov %vm15595_vm0 }
 0x4df   : > { %11525 = vmatprep.subr.bf16.mxu1 %v12436_v62  ;;  %v6807_v17 = vor.u32 %v6806_v32, %v6803_v24  ;;  %v12439_v27 = vld [vmem:[#allocation4 + $0x150] sm:$0xff]   ;;  %v14511_v24 = vld [vmem:[#allocation3 + $0x60] sm:$0xf0]  ;;  %vm15610_vm2 = vsmask.f32 3328 }
 0x4e0   : > { %v6811_v10 = vrot.slane %v6809_v35, 3  ;;  %v7180_v35 = vrot.slane %v14408_v22, 4  ;;  %v7178_v18 = vsel %vm15595_vm0, %v7176_v26, %v7177_v29  ;;  %v7185_v22 = vrot.slane %v14503_v25, 4  ;;  %v14513_v32 = vld [vmem:[#allocation3 + $0x70] sm:$0xf0] }
 0x4e1   : > { %v7184_v44 = vsel %vm15597_vm4, %v7182_v12, %v7183_v6  ;;  %v7495_v26 = vld [vmem:[#allocation3 + $0x18] sm:$0x1f] }
 0x4e2   : > { %11526 = vmatpush3.bf16.msra.mxu1 %v12436_v62  ;;  %v6814_v62 = vrot.slane %v6812_v13, 4  ;;  %v12438_v13 = vld [vmem:[#allocation4 + $0x148] sm:$0xff]  }
 0x4e3   : > { %11559 = vmatprep.subr.bf16.mxu1 %v14461_v9 }
 0x4e4   : > { %v6815_v39 = vor.u32 %v6814_v62, %v6811_v10  ;;  %v7188_v10 = vrot.slane %v14511_v24, 4  ;;  %v7191_v62 = vrot.slane %v14513_v32, 4 }
 0x4e5   : > { %11496 = vmatmul.mubr.bf16.gmra.mrb[32].mxu1 %v6748_v1  ;;  %v6848_v1 = vrot.slane %v6846_v49, 4  ;;  %v14531_v49 = vld [vmem:[#allocation3 + $0xa0] sm:$0xf0] }
 0x4e6   : > { %11499 = vmatprep.mubr.bf16.mxu1 %v6765_v15  ;;  %v6816_v38 = vsel %vm15591_vm10, %v6807_v17, %v6815_v39  ;;  %v14492_v15 = vld [vmem:[#allocation3 + $0x30] sm:$0xf0]  ;;  %v7190_v8 = vsel %vm15599_vm6, %v7188_v10, %v7189_v2  ;;  %v7197_v17 = vrot.slane %v14523_v63, 4  ;;  %v7198_v39 = vrot.slane %v14437_v28, 4  ;;  %vm15607_vm10 = vmmov %vm15595_vm0 }
 0x4e7   : > { %v6849_v43 = vor.u32 %v6848_v1, %v6845_v16  ;;  %v7179_v37 = vrot.slane %v14492_v15, 4  ;;  %v7200_v20 = vrot.slane %v14531_v49, 4  ;;  %v7201_v28 = vrot.slane %v14444_v3, 4  ;;  %v14544_v1 = vld [vmem:[#allocation3 + $0xc0] sm:$0xf0] }
 0x4e8   : > { %v7199_v34 = vsel %vm15602_vm13, %v7197_v17, %v7198_v39  ;;  %v7207_v3 = vrot.slane %v14455_v7, 4  ;;  %v7512_v7 = vshrl.u32 %v14484_v56, 16 }
 0x4e9   : > { %v6850_v30 = vsel %vm15593_vm1, %v6841_v46, %v6849_v43  ;;  %v7181_v50 = vsel %vm15596_vm3, %v7179_v37, %v7180_v35  ;;  %v7202_v5 = vsel %vm15603_vm14, %v7200_v20, %v7201_v28  ;;  %v7206_v46 = vrot.slane %v14544_v1, 4  ;;  %vm15609_vm1 = vmmov %vm15595_vm0 }
 0x4ea   : > { %v7213_v37 = vrot.slane %v14467_v14, 4  ;;  %v7515_v35 = vshll.u32 %v14484_v56, 16  ;;  %v7514_v12 = vrot.slane %v7512_v7, 4  ;;  %v7497_v56 = vld [vmem:[#allocation3 + $0x38] sm:$0x1f]  ;;  %vm15611_vm0 = vmmov %vm15610_vm2 }
 0x4eb   : > { %v7208_v58 = vsel %vm15605_vm7, %v7206_v46, %v7207_v3  ;;  %v7566_v46 = vshll.u32 %v14500_v47, 16  ;;  %vm15612_vm3 = vmmov %vm15611_vm0 }
 0x4ec   : > { %v7517_v6 = vrot.slane %v7515_v35, 5  ;;  %v12446_v35 = vld [vmem:[#allocation4 + $0x188] sm:$0xff]   ;;  %vm15613_vm4 = vmmov %vm15611_vm0 }
 0x4ed   : > { %11500 = vmatmul.mubr.bf16.gmra.mrb[36].mxu1 %v6782_v51  ;;  %v7192_v51 = vrot.slane %v14429_v19, 4  ;;  %v7195_v19 = vrot.slane %v14435_v48, 4  ;;  %v14535_v48 = vld [vmem:[#allocation4 + $0x180] sm:$0xff]   ;;  %vm15615_vm6 = vmmov %vm15611_vm0 }
 0x4ee   : > { %11503 = vmatprep.mubr.bf16.mxu1 %v6799_v41  ;;  %v12442_v41 = vld [vmem:[#allocation4 + $0x168] sm:$0xff]   ;;  %vm15618_vm13 = vmmov %vm15611_vm0 }
 0x4ef   : > { %v7193_v21 = vsel %vm15600_vm8, %v7191_v62, %v7192_v51  ;;  %v7196_v4 = vsel %vm15601_vm12, %v7194_v23, %v7195_v19  ;;  %v7219_v62 = vrot.slane %v14478_v45, 4  ;;  %v7518_v51 = vor.u32 %v7517_v6, %v7514_v12  ;;  %vm15616_vm8 = vmmov %vm15611_vm0 }
 0x4f0   : > { %v7557_v23 = vshll.u32 %v7497_v56, 16  ;;  %vm15617_vm12 = vmmov %vm15611_vm0 }
 0x4f1   : > { %vm15619_vm14 = vmmov %vm15611_vm0 }
 0x4f2   : > { %v7559_v28 = vrot.slane %v7557_v23, 5  ;;  %vm15621_vm7 = vmmov %vm15611_vm0 }
 0x4f5   : > { %11504 = vmatmul.mubr.bf16.gmra.mrb[40].mxu1 %v6816_v38  ;;  %v7203_v38 = vrot.slane %v14533_v60, 4 }
 0x4f6   : > { %11507 = vmatprep.mubr.bf16.mxu1 %v6833_v40  ;;  %v14546_v40 = vld [vmem:[#allocation3 + $0xd0] sm:$0xf0] }
 0x4f7   : > { %v7205_v16 = vsel %vm15604_vm15, %v7203_v38, %v7204_v57  ;;  %v7209_v43 = vrot.slane %v14546_v40, 4  ;;  %v7498_v38 = vld [vmem:[#allocation3 + $0x48] sm:$0x1f]  ;;  %v7499_v57 = vld [vmem:[#allocation3 + $0x58] sm:$0x1f]  ;;  %vm15620_vm15 = vmmov %vm15611_vm0 }
 0x4f8   : > { %v7571_v3 = vshrl.u32 %v7498_v38, 16 }
 0x4f9   : > { %v7211_v59 = vsel %vm15606_vm9, %v7209_v43, %v7210_v0  ;;  %v7574_v43 = vshll.u32 %v7498_v38, 16  ;;  %v7580_v0 = vshrl.u32 %v14503_v25, 16  ;;  %v7631_v38 = vshrl.u32 %v14521_v53, 16  ;;  %vm15622_vm9 = vmmov %vm15611_vm0 }
 0x4fb   : > { %v7582_v12 = vrot.slane %v7580_v0, 4 }
 0x4fd   : > { %11508 = vmatmul.mubr.bf16.gmra.mrb[44].mxu1 %v6850_v30  ;;  %v14554_v30 = vld [vmem:[#allocation3 + $0xe0] sm:$0xf0] }
 0x4fe   : > { %11527 = vmatprep.mubr.bf16.mxu1 %v7175_v55  ;;  %v14556_v55 = vld [vmem:[#allocation3 + $0xf0] sm:$0xf0]  ;;  %v7212_v29 = vrot.slane %v14554_v30, 4 }
 0x4ff   : > { %v7215_v42 = vrot.slane %v14556_v55, 4 }
 0x505   : > { %11528 = vmatmul.mubr.bf16.vlgmr.msra.gmra.mrb[16].mxu1 %v7178_v18  ;;  %v7520_v18 = vshrl.u32 %v7495_v26, 16 }
 0x506   : > { %11560 = vmatpush3.bf16.msra.mxu1 %v14461_v9  ;;  %11531 = vmatprep.mubr.bf16.mxu1 %v7181_v50  ;;  %v7187_v9 = vsel %vm15598_vm5, %v7185_v22, %v7186_v54  ;;  %v7523_v50 = vshll.u32 %v7495_v26, 16  ;;  %v7496_v22 = vld [vmem:[#allocation3 + $0x28] sm:$0x1f]  ;;  %vm15614_vm5 = vmmov %vm15611_vm0 }
 0x507   : > { %11561 = vmatprep.subr.bf16.mxu1 %v12438_v13  ;;  %v7522_v14 = vrot.slane %v7520_v18, 4  ;;  %v7540_v10 = vshll.u32 %v7496_v22, 16  ;;  %v7500_v18 = vld [vmem:[#allocation3 + $0x68] sm:$0x1f] }
 0x50a   : > { %11562 = vmatpush3.bf16.msra.mxu1 %v12438_v13  ;;  %v7216_v13 = vrot.slane %v14470_v11, 4  ;;  %v7532_v11 = vshll.u32 %v14490_v52, 16 }
 0x50b   : > { %11563 = vmatprep.subr.bf16.mxu1 %v12439_v27 }
 0x50c   : > { %v7217_v54 = vsel %vm15608_vm11, %v7215_v42, %v7216_v13  ;;  %v7534_v17 = vrot.slane %v7532_v11, 5  ;;  %v7568_v13 = vrot.slane %v7566_v46, 5  ;;  %v12447_v11 = vld [vmem:[#allocation4 + $0x190] sm:$0xff]   ;;  %v7648_v46 = vshrl.u32 %v14523_v63, 16  ;;  %vm15624_vm11 = vmmov %vm15611_vm0 }
 0x50d   : > { %11532 = vmatmul.mubr.bf16.gmra.mrb[20].mxu1 %v7184_v44  ;;  %v7525_v44 = vrot.slane %v7523_v50, 5  ;;  %v7573_v50 = vrot.slane %v7571_v3, 4  ;;  %v7651_v3 = vshll.u32 %v14523_v63, 16 }
 0x50e   : > { %11535 = vmatprep.mubr.bf16.mxu1 %v7187_v9  ;;  %11564 = vmatpush3.bf16.msra.mxu1 %v12439_v27  ;;  %v7214_v27 = vsel %vm15607_vm10, %v7212_v29, %v7213_v37  ;;  %v7529_v9 = vshrl.u32 %v14490_v52, 16  ;;  %v7588_v29 = vshrl.u32 %v7499_v57, 16  ;;  %v7591_v37 = vshll.u32 %v7499_v57, 16  ;;  %vm15623_vm10 = vmmov %vm15611_vm0 }
 0x50f   : > { %11565 = vmatprep.subr.bf16.mxu1 %v12440_v61  ;;  %v7634_v57 = vshll.u32 %v14521_v53, 16  ;;  %v12450_v53 = vld [vmem:[#allocation4 + $0x1a8] sm:$0xff]  }
 0x510   : > { %v7531_v19 = vrot.slane %v7529_v9, 4  ;;  %v7501_v9 = vld [vmem:[#allocation3 + $0x78] sm:$0x1f] }
 0x512   : > { %11566 = vmatpush3.bf16.msra.mxu1 %v12440_v61  ;;  %v14566_v61 = vld [vmem:[#allocation3 + $0x100] sm:$0xf0] }
 0x513   : > { %11567 = vmatprep.subr.bf16.mxu1 %v12441_v36  ;;  %v7218_v2 = vrot.slane %v14566_v61, 4 }
 0x515   : > { %11536 = vmatmul.mubr.bf16.gmra.mrb[24].mxu1 %v7190_v8  ;;  %v7526_v8 = vor.u32 %v7525_v44, %v7522_v14  ;;  %v7220_v52 = vsel %vm15609_vm1, %v7218_v2, %v7219_v62  ;;  %v7600_v14 = vshll.u32 %v14511_v24, 16  ;;  %v7605_v44 = vshrl.u32 %v7500_v18, 16  ;;  %vm15625_vm1 = vmmov %vm15611_vm0 }
 0x516   : > { %11539 = vmatprep.mubr.bf16.mxu1 %v7193_v21  ;;  %11568 = vmatpush3.bf16.msra.mxu1 %v12441_v36  ;;  %v7537_v36 = vshrl.u32 %v7496_v22, 16  ;;  %v7549_v21 = vshll.u32 %v14492_v15, 16  ;;  %v7590_v22 = vrot.slane %v7588_v29, 4  ;;  %v7614_v62 = vshrl.u32 %v14513_v32, 16  ;;  %v7504_v29 = vld [vmem:[#allocation3 + $0xa8] sm:$0x1f] }
 0x517   : > { %11569 = vmatprep.subr.bf16.mxu1 %v12442_v41  ;;  %v7607_v23 = vrot.slane %v7605_v44, 4 }
 0x518   : > { %v7539_v39 = vrot.slane %v7537_v36, 4  ;;  %v7551_v20 = vrot.slane %v7549_v21, 5 }
 0x51a   : > { %11570 = vmatpush3.bf16.msra.mxu1 %v12442_v41  ;;  %v7546_v41 = vshrl.u32 %v14492_v15, 16 }
 0x51b   : > { %11571 = vmatprep.subr.bf16.mxu1 %v12443_v33 }
 0x51d   : > { %11540 = vmatmul.mubr.bf16.gmra.mrb[28].mxu1 %v7196_v4  ;;  %v7548_v4 = vrot.slane %v7546_v41, 4  ;;  %v7617_v41 = vshll.u32 %v14513_v32, 16  ;;  %v7503_v32 = vld [vmem:[#allocation3 + $0x98] sm:$0x1f] }
 0x51e   : > { %11543 = vmatprep.mubr.bf16.mxu1 %v7199_v34  ;;  %11572 = vmatpush3.bf16.msra.mxu1 %v12443_v33  ;;  %v7554_v33 = vshrl.u32 %v7497_v56, 16  ;;  %v7527_v34 = vsel %vm15610_vm2, %v7518_v51, %v7526_v8  ;;  %v7608_v56 = vshll.u32 %v7500_v18, 16  ;;  %v7622_v8 = vshrl.u32 %v7501_v9, 16 }
 0x51f   : > { %11573 = vmatprep.subr.bf16.mxu1 %v12444_v31  ;;  %v7659_v0 = vshll.u32 %v7503_v32, 16  ;;  %v7653_v18 = vrot.slane %v7651_v3, 5  ;;  %vm15626_vm2 = vsmask.f32 4352 }
 0x520   : > { %v7556_v45 = vrot.slane %v7554_v33, 4  ;;  %v7602_v33 = vrot.slane %v7600_v14, 5 }
 0x522   : > { %11574 = vmatpush3.bf16.msra.mxu1 %v12444_v31  ;;  %v7542_v31 = vrot.slane %v7540_v10, 5  ;;  %v7560_v26 = vor.u32 %v7559_v28, %v7556_v45 }
 0x523   : > { %11607 = vmatprep.subr.bf16.mxu1 %v14535_v48 }
 0x524   : > { %v7543_v15 = vor.u32 %v7542_v31, %v7539_v39  ;;  %v7616_v39 = vrot.slane %v7614_v62, 4  ;;  %v7502_v31 = vld [vmem:[#allocation3 + $0x88] sm:$0x1f] }
 0x525   : > { %11544 = vmatmul.mubr.bf16.gmra.mrb[32].mxu1 %v7202_v5  ;;  %v7535_v5 = vor.u32 %v7534_v17, %v7531_v19  ;;  %v12448_v19 = vld [vmem:[#allocation4 + $0x198] sm:$0xff]  }
 0x526   : > { %11547 = vmatprep.mubr.bf16.mxu1 %v7205_v16  ;;  %v7563_v16 = vshrl.u32 %v14500_v47, 16 }
 0x527   : > { %v7544_v7 = vsel %vm15611_vm0, %v7535_v5, %v7543_v15  ;;  %v7639_v5 = vshrl.u32 %v7502_v31, 16  ;;  %v7642_v15 = vshll.u32 %v7502_v31, 16  ;;  %vm15627_vm0 = vmmov %vm15626_vm2 }
 0x528   : > { %v7565_v42 = vrot.slane %v7563_v16, 4  ;;  %v12449_v16 = vld [vmem:[#allocation4 + $0x1a0] sm:$0xff]  }
 0x52a   : > { %v7569_v36 = vor.u32 %v7568_v13, %v7565_v42  ;;  %v7644_v42 = vrot.slane %v7642_v15, 5  ;;  %v7650_v13 = vrot.slane %v7648_v46, 4 }
 0x52d   : > { %11548 = vmatmul.mubr.bf16.gmra.mrb[36].mxu1 %v7208_v58  ;;  %v7583_v58 = vshll.u32 %v14503_v25, 16  ;;  %v7597_v25 = vshrl.u32 %v14511_v24, 16  ;;  %v7610_v24 = vrot.slane %v7608_v56, 5  ;;  %v7654_v56 = vor.u32 %v7653_v18, %v7650_v13 }
 0x52e   : > { %11551 = vmatprep.mubr.bf16.mxu1 %v7211_v59  ;;  %v7552_v59 = vor.u32 %v7551_v20, %v7548_v4  ;;  %v7619_v4 = vrot.slane %v7617_v41, 5 }
 0x52f   : > { %v7585_v47 = vrot.slane %v7583_v58, 5  ;;  %v7599_v21 = vrot.slane %v7597_v25, 4  ;;  %v7611_v28 = vor.u32 %v7610_v24, %v7607_v23  ;;  %v12451_v25 = vld [vmem:[#allocation4 + $0x1b0] sm:$0xff]  }
 0x530   : > { %v7561_v6 = vsel %vm15612_vm3, %v7552_v59, %v7560_v26  ;;  %v7620_v58 = vor.u32 %v7619_v4, %v7616_v39  ;;  %v7702_v4 = vshll.u32 %v14544_v1, 16  ;;  %vm15628_vm3 = vmmov %vm15627_vm0 }
 0x531   : > { %v7586_v2 = vor.u32 %v7585_v47, %v7582_v12  ;;  %v7603_v45 = vor.u32 %v7602_v33, %v7599_v21  ;;  %v7665_v12 = vshrl.u32 %v14531_v49, 16  ;;  %v7668_v47 = vshll.u32 %v14531_v49, 16  ;;  %v7506_v33 = vld [vmem:[#allocation3 + $0xc8] sm:$0x1f] }
 0x532   : > { %v7704_v3 = vrot.slane %v7702_v4, 5 }
 0x533   : > { %v7612_v26 = vsel %vm15615_vm6, %v7603_v45, %v7611_v28  ;;  %v7667_v62 = vrot.slane %v7665_v12, 4  ;;  %v7716_v45 = vshrl.u32 %v14546_v40, 16  ;;  %v7719_v28 = vshll.u32 %v14546_v40, 16  ;;  %vm15631_vm6 = vmmov %vm15627_vm0 }
 0x534   : > { %v7753_v12 = vshll.u32 %v14556_v55, 16 }
 0x535   : > { %11552 = vmatmul.mubr.bf16.gmra.mrb[40].mxu1 %v7214_v27  ;;  %v7576_v27 = vrot.slane %v7574_v43, 5  ;;  %v7656_v43 = vshrl.u32 %v7503_v32, 16  ;;  %v14603_v32 = vld [vmem:[#allocation4 + $0x1c0] sm:$0xff]  }
 0x536   : > { %11555 = vmatprep.mubr.bf16.mxu1 %v7217_v54  ;;  %v7593_v54 = vrot.slane %v7591_v37, 5  ;;  %v7633_v37 = vrot.slane %v7631_v38, 4 }
 0x537   : > { %v7577_v10 = vor.u32 %v7576_v27, %v7573_v50  ;;  %v7658_v50 = vrot.slane %v7656_v43, 4  ;;  %v7661_v27 = vrot.slane %v7659_v0, 5  ;;  %v7508_v0 = vld [vmem:[#allocation3 + $0xe8] sm:$0x1f] }
 0x538   : > { %v7594_v51 = vor.u32 %v7593_v54, %v7590_v22  ;;  %v7676_v22 = vshll.u32 %v7504_v29, 16  ;;  %v7505_v54 = vld [vmem:[#allocation3 + $0xb8] sm:$0x1f] }
 0x539   : > { %v7578_v17 = vsel %vm15613_vm4, %v7569_v36, %v7577_v10  ;;  %v7685_v36 = vshll.u32 %v14533_v60, 16  ;;  %v7690_v10 = vshrl.u32 %v7505_v54, 16  ;;  %vm15629_vm4 = vmmov %vm15627_vm0 }
 0x53a   : > { %v7678_v49 = vrot.slane %v7676_v22, 5 }
 0x53b   : > { %v7687_v24 = vrot.slane %v7685_v36, 5  ;;  %v7755_v36 = vrot.slane %v7753_v12, 5 }
 0x53d   : > { %11556 = vmatmul.mubr.bf16.gmra.mrb[44].mxu1 %v7220_v52  ;;  %v7595_v52 = vsel %vm15614_vm5, %v7586_v2, %v7594_v51  ;;  %v7693_v2 = vshll.u32 %v7505_v54, 16  ;;  %v7670_v51 = vrot.slane %v7668_v47, 5  ;;  %vm15630_vm5 = vmmov %vm15627_vm0 }
 0x53e   : > { %11575 = vmatprep.mubr.bf16.mxu1 %v7527_v34  ;;  %v7624_v34 = vrot.slane %v7622_v8, 4  ;;  %v12452_v8 = vld [vmem:[#allocation4 + $0x1b8] sm:$0xff]  }
 0x53f   : > { %v7671_v39 = vor.u32 %v7670_v51, %v7667_v62  ;;  %v14616_v62 = vld [vmem:[#allocation3 + $0x28] sm:$0xf] }
 0x545   : > { %11576 = vmatmul.mubr.bf16.vlgmr.msra.gmra.mrb[16].mxu1 %v7544_v7  ;;  %v7636_v7 = vrot.slane %v7634_v57, 5 }
 0x546   : > { %11608 = vmatpush3.bf16.msra.mxu1 %v14535_v48  ;;  %11579 = vmatprep.mubr.bf16.mxu1 %v7561_v6  ;;  %v7625_v48 = vshll.u32 %v7501_v9, 16  ;;  %v7673_v6 = vshrl.u32 %v7504_v29, 16  ;;  %v7662_v9 = vor.u32 %v7661_v27, %v7658_v50 }
 0x547   : > { %11609 = vmatprep.subr.bf16.mxu1 %v12446_v35  ;;  %v7637_v14 = vor.u32 %v7636_v7, %v7633_v37  ;;  %v7733_v37 = vshrl.u32 %v14554_v30, 16  ;;  %v7736_v7 = vshll.u32 %v14554_v30, 16 }
 0x548   : > { %v7627_v20 = vrot.slane %v7625_v48, 5  ;;  %v7675_v41 = vrot.slane %v7673_v6, 4  ;;  %v7663_v21 = vsel %vm15618_vm13, %v7654_v56, %v7662_v9  ;;  %v7510_v56 = vld [vmem:[#allocation3 + $0x108] sm:$0x1f]  ;;  %v8058_v9 = vld [vmem:[#allocation3 + $0x20] sm:$0xf8]  ;;  %vm15634_vm13 = vmmov %vm15627_vm0 }
 0x549   : > { %v7735_v22 = vrot.slane %v7733_v37, 4  ;;  %v7738_v54 = vrot.slane %v7736_v7, 5 }
 0x54a   : > { %11610 = vmatpush3.bf16.msra.mxu1 %v12446_v35  ;;  %v7628_v59 = vor.u32 %v7627_v20, %v7624_v34  ;;  %v7641_v35 = vrot.slane %v7639_v5, 4  ;;  %v7679_v31 = vor.u32 %v7678_v49, %v7675_v41  ;;  %v7707_v34 = vshrl.u32 %v7506_v33, 16 }
 0x54b   : > { %11611 = vmatprep.subr.bf16.mxu1 %v12447_v11  ;;  %v7710_v20 = vshll.u32 %v7506_v33, 16  ;;  %v7767_v41 = vshrl.u32 %v14566_v61, 16  ;;  %v7770_v49 = vshll.u32 %v14566_v61, 16  ;;  %v8094_v33 = vshll.u32 %v8058_v9, 16 }
 0x54c   : > { %v7629_v63 = vsel %vm15616_vm8, %v7620_v58, %v7628_v59  ;;  %v7645_v44 = vor.u32 %v7644_v42, %v7641_v35  ;;  %v7709_v43 = vrot.slane %v7707_v34, 4  ;;  %v7718_v58 = vrot.slane %v7716_v45, 4  ;;  %vm15632_vm8 = vmmov %vm15627_vm0 }
 0x54d   : > { %11580 = vmatmul.mubr.bf16.gmra.mrb[20].mxu1 %v7578_v17  ;;  %v7695_v17 = vrot.slane %v7693_v2, 5  ;;  %v7721_v59 = vrot.slane %v7719_v28, 5  ;;  %v7741_v35 = vshrl.u32 %v7508_v0, 16  ;;  %v7744_v42 = vshll.u32 %v7508_v0, 16 }
 0x54e   : > { %11583 = vmatprep.mubr.bf16.mxu1 %v7595_v52  ;;  %11612 = vmatpush3.bf16.msra.mxu1 %v12447_v11  ;;  %v7682_v11 = vshrl.u32 %v14533_v60, 16  ;;  %v7646_v48 = vsel %vm15617_vm12, %v7637_v14, %v7645_v44  ;;  %v7507_v60 = vld [vmem:[#allocation3 + $0xd8] sm:$0x1f]  ;;  %v7699_v52 = vshrl.u32 %v14544_v1, 16  ;;  %v7712_v1 = vrot.slane %v7710_v20, 5  ;;  %vm15633_vm12 = vmmov %vm15627_vm0 }
 0x54f   : > { %11613 = vmatprep.subr.bf16.mxu1 %v12448_v19  ;;  %v7724_v38 = vshrl.u32 %v7507_v60, 16  ;;  %v7727_v57 = vshll.u32 %v7507_v60, 16  ;;  %v7722_v50 = vor.u32 %v7721_v59, %v7718_v58  ;;  %v7746_v14 = vrot.slane %v7744_v42, 5  ;;  %v14623_v20 = vld [vmem:[#allocation3 + $0x38] sm:$0xf] }
 0x550   : > { %v7684_v23 = vrot.slane %v7682_v11, 4  ;;  %v7701_v46 = vrot.slane %v7699_v52, 4  ;;  %v7713_v18 = vor.u32 %v7712_v1, %v7709_v43  ;;  %v7772_v52 = vrot.slane %v7770_v49, 5  ;;  %v14628_v43 = vld [vmem:[#allocation3 + $0x48] sm:$0xf] }
 0x551   : > { %v7729_v29 = vrot.slane %v7727_v57, 5  ;;  %v8096_v45 = vrot.slane %v8094_v33, 4  ;;  %v8136_v37 = vshll.u32 %v14628_v43, 16  ;;  %v8068_v49 = vld [vmem:[#allocation3 + $0x70] sm:$0xf8] }
 0x552   : > { %11614 = vmatpush3.bf16.msra.mxu1 %v12448_v19  ;;  %v7692_v19 = vrot.slane %v7690_v10, 4  ;;  %v7688_v5 = vor.u32 %v7687_v24, %v7684_v23  ;;  %v7705_v13 = vor.u32 %v7704_v3, %v7701_v46  ;;  %v8099_v23 = vshrl.u32 %v14616_v62, 16 }
 0x553   : > { %11615 = vmatprep.subr.bf16.mxu1 %v12449_v16  ;;  %v8102_v24 = vshll.u32 %v14616_v62, 16  ;;  %v8116_v46 = vshrl.u32 %v14623_v20, 16  ;;  %v8119_v3 = vshll.u32 %v14623_v20, 16 }
 0x554   : > { %v7696_v15 = vor.u32 %v7695_v17, %v7692_v19  ;;  %v7714_v44 = vsel %vm15621_vm7, %v7705_v13, %v7713_v18  ;;  %v8101_v28 = vrot.slane %v8099_v23, 3  ;;  %vm15637_vm7 = vmmov %vm15627_vm0 }
 0x555   : > { %11584 = vmatmul.mubr.bf16.gmra.mrb[24].mxu1 %v7612_v26  ;;  %v7726_v26 = vrot.slane %v7724_v38, 4  ;;  %v8104_v38 = vrot.slane %v8102_v24, 4  ;;  %v8118_v42 = vrot.slane %v8116_v46, 3 }
 0x556   : > { %11587 = vmatprep.mubr.bf16.mxu1 %v7629_v63  ;;  %11616 = vmatpush3.bf16.msra.mxu1 %v12449_v16  ;;  %v7680_v16 = vsel %vm15619_vm14, %v7671_v39, %v7679_v31  ;;  %v7697_v40 = vsel %vm15620_vm15, %v7688_v5, %v7696_v15  ;;  %v7750_v63 = vshrl.u32 %v14556_v55, 16  ;;  %v7739_v55 = vor.u32 %v7738_v54, %v7735_v22  ;;  %v8060_v39 = vld [vmem:[#allocation3 + $0x30] sm:$0xf8]  ;;  %v8062_v5 = vld [vmem:[#allocation3 + $0x40] sm:$0xf8]  ;;  %vm15635_vm14 = vmmov %vm15627_vm0 }
 0x557   : > { %11617 = vmatprep.subr.bf16.mxu1 %v12450_v53  ;;  %v7730_v27 = vor.u32 %v7729_v29, %v7726_v26  ;;  %v7769_v31 = vrot.slane %v7767_v41, 4  ;;  %v8108_v15 = vshrl.u32 %v8060_v39, 16  ;;  %v8105_v59 = vor.u32 %v8104_v38, %v8101_v28  ;;  %v14636_v54 = vld [vmem:[#allocation3 + $0x68] sm:$0xf]  ;;  %v12455_v38 = vld [vmem:[#allocation4 + $0x1d0] sm:$0xff]   ;;  %vm15636_vm15 = vmmov %vm15627_vm0 }
 0x558   : > { %v7752_v11 = vrot.slane %v7750_v63, 4  ;;  %v8125_v26 = vshrl.u32 %v8062_v5, 16  ;;  %v8128_v29 = vshll.u32 %v8062_v5, 16  ;;  %v8066_v63 = vld [vmem:[#allocation3 + $0x60] sm:$0xf8]  ;;  %v8138_v22 = vrot.slane %v8136_v37, 4 }
 0x559   : > { %v7731_v30 = vsel %vm15622_vm9, %v7722_v50, %v7730_v27  ;;  %v7773_v1 = vor.u32 %v7772_v52, %v7769_v31  ;;  %v8110_v7 = vrot.slane %v8108_v15, 3  ;;  %v8064_v50 = vld [vmem:[#allocation3 + $0x50] sm:$0xf8]  ;;  %v14634_v27 = vld [vmem:[#allocation3 + $0x58] sm:$0xf]  ;;  %vm15638_vm9 = vmmov %vm15627_vm0 }
 0x55a   : > { %11618 = vmatpush3.bf16.msra.mxu1 %v12450_v53  ;;  %v7509_v53 = vld [vmem:[#allocation3 + $0xf8] sm:$0x1f]  ;;  %v7756_v19 = vor.u32 %v7755_v36, %v7752_v11  ;;  %v8127_v12 = vrot.slane %v8125_v26, 3  ;;  %v8159_v11 = vshrl.u32 %v8066_v63, 16  ;;  %v8162_v36 = vshll.u32 %v8066_v63, 16 }
 0x55b   : > { %11619 = vmatprep.subr.bf16.mxu1 %v12451_v25  ;;  %v7758_v47 = vshrl.u32 %v7509_v53, 16  ;;  %v7761_v6 = vshll.u32 %v7509_v53, 16  ;;  %v8121_v53 = vrot.slane %v8119_v3, 4  ;;  %v8070_v52 = vld [vmem:[#allocation3 + $0x80] sm:$0xf8] }
 0x55c   : > { %v14649_v28 = vld [vmem:[#allocation3 + $0x88] sm:$0xf]  ;;  %v8193_v46 = vshrl.u32 %v8070_v52, 16  ;;  %v8196_v3 = vshll.u32 %v8070_v52, 16 }
 0x55d   : > { %11588 = vmatmul.mubr.bf16.gmra.mrb[28].mxu1 %v7646_v48  ;;  %v7760_v10 = vrot.slane %v7758_v47, 4  ;;  %v7763_v2 = vrot.slane %v7761_v6, 5  ;;  %v7778_v48 = vshll.u32 %v7510_v56, 16  ;;  %v8130_v47 = vrot.slane %v8128_v29, 4  ;;  %v12456_v29 = vld [vmem:[#allocation4 + $0x1d8] sm:$0xff]  }
 0x55e   : > { %11591 = vmatprep.mubr.bf16.mxu1 %v7663_v21  ;;  %11620 = vmatpush3.bf16.msra.mxu1 %v12451_v25  ;;  %v7743_v25 = vrot.slane %v7741_v35, 4  ;;  %v8091_v21 = vshrl.u32 %v8058_v9, 16  ;;  %v8153_v9 = vshll.u32 %v14634_v27, 16  ;;  %v14657_v63 = vld [vmem:[#allocation3 + $0xa8] sm:$0xf] }
 0x55f   : > { %11621 = vmatprep.subr.bf16.mxu1 %v12452_v8  ;;  %v7764_v17 = vor.u32 %v7763_v2, %v7760_v10  ;;  %v7780_v34 = vrot.slane %v7778_v48, 5  ;;  %v8167_v10 = vshrl.u32 %v14636_v54, 16  ;;  %v8170_v2 = vshll.u32 %v14636_v54, 16  ;;  %v12454_v48 = vld [vmem:[#allocation4 + $0x1c8] sm:$0xff]  }
 0x560   : > { %v7747_v51 = vor.u32 %v7746_v14, %v7743_v25  ;;  %v8093_v61 = vrot.slane %v8091_v21, 3  ;;  %v8122_v14 = vor.u32 %v8121_v53, %v8118_v42  ;;  %v8155_v24 = vrot.slane %v8153_v9, 4  ;;  %v8074_v42 = vld [vmem:[#allocation3 + $0xa0] sm:$0xf8] }
 0x561   : > { %v7765_v57 = vsel %vm15624_vm11, %v7756_v19, %v7764_v17  ;;  %v8161_v19 = vrot.slane %v8159_v11, 3  ;;  %v8164_v17 = vrot.slane %v8162_v36, 4  ;;  %v8195_v53 = vrot.slane %v8193_v46, 3  ;;  %vm15640_vm11 = vmmov %vm15627_vm0 }
 0x562   : > { %11622 = vmatpush3.bf16.msra.mxu1 %v12452_v8  ;;  %v7775_v8 = vshrl.u32 %v7510_v56, 16  ;;  %v7748_v60 = vsel %vm15623_vm10, %v7739_v55, %v7747_v51  ;;  %v8097_v58 = vor.u32 %v8096_v45, %v8093_v61  ;;  %v8150_v56 = vshrl.u32 %v14634_v27, 16  ;;  %vm15639_vm10 = vmmov %vm15627_vm0 }
 0x563   : > { %11655 = vmatprep.subr.bf16.mxu1 %v14603_v32  ;;  %v8131_v55 = vor.u32 %v8130_v47, %v8127_v12  ;;  %v8165_v15 = vor.u32 %v8164_v17, %v8161_v19  ;;  %v8235_v9 = vshrl.u32 %v14657_v63, 16  ;;  %v8238_v11 = vshll.u32 %v14657_v63, 16 }
 0x564   : > { %v7777_v4 = vrot.slane %v7775_v8, 4  ;;  %v8106_v18 = vsel %vm15626_vm2, %v8097_v58, %v8105_v59  ;;  %v14643_v8 = vld [vmem:[#allocation3 + $0x78] sm:$0xf]  ;;  %v8152_v23 = vrot.slane %v8150_v56, 3  ;;  %v8230_v56 = vshll.u32 %v8074_v42, 16 }
 0x565   : > { %11592 = vmatmul.mubr.bf16.gmra.mrb[32].mxu1 %v7680_v16  ;;  %v8111_v16 = vshll.u32 %v8060_v39, 16  ;;  %v8172_v39 = vrot.slane %v8170_v2, 4  ;;  %v8184_v61 = vshrl.u32 %v14643_v8, 16  ;;  %v8187_v45 = vshll.u32 %v14643_v8, 16 }
 0x566   : > { %11595 = vmatprep.mubr.bf16.mxu1 %v7697_v40  ;;  %v7781_v0 = vor.u32 %v7780_v34, %v7777_v4  ;;  %v8133_v40 = vshrl.u32 %v14628_v43, 16  ;;  %v8176_v4 = vshrl.u32 %v8068_v49, 16  ;;  %v8179_v34 = vshll.u32 %v8068_v49, 16 }
 0x567   : > { %v8113_v35 = vrot.slane %v8111_v16, 4  ;;  %v8156_v5 = vor.u32 %v8155_v24, %v8152_v23  ;;  %v8186_v59 = vrot.slane %v8184_v61, 3  ;;  %v8189_v26 = vrot.slane %v8187_v45, 4  ;;  %v14669_v61 = vld [vmem:[#allocation3 + $0xc8] sm:$0xf]  ;;  %v12459_v45 = vld [vmem:[#allocation4 + $0x1f0] sm:$0xff]  }
 0x568   : > { %v7782_v13 = vsel %vm15625_vm1, %v7773_v1, %v7781_v0  ;;  %v8135_v6 = vrot.slane %v8133_v40, 3  ;;  %v8201_v1 = vshrl.u32 %v14649_v28, 16  ;;  %v8178_v0 = vrot.slane %v8176_v4, 3 }
 0x569   : > { %v8114_v25 = vor.u32 %v8113_v35, %v8110_v7  ;;  %v8181_v58 = vrot.slane %v8179_v34, 4  ;;  %v8072_v7 = vld [vmem:[#allocation3 + $0x90] sm:$0xf8]  ;;  %v14655_v35 = vld [vmem:[#allocation3 + $0x98] sm:$0xf]  ;;  %v8190_v47 = vor.u32 %v8189_v26, %v8186_v59  ;;  %v8232_v24 = vrot.slane %v8230_v56, 4 }
 0x56a   : > { %v8139_v51 = vor.u32 %v8138_v22, %v8135_v6  ;;  %v8210_v6 = vshrl.u32 %v8072_v7, 16  ;;  %v8213_v22 = vshll.u32 %v8072_v7, 16  ;;  %v8237_v19 = vrot.slane %v8235_v9, 3  ;;  %v12460_v26 = vld [vmem:[#allocation4 + $0x1f8] sm:$0xff]  }
 0x56b   : > { %v8123_v41 = vsel %vm15627_vm0, %v8114_v25, %v8122_v14  ;;  %v8182_v12 = vor.u32 %v8181_v58, %v8178_v0  ;;  %v8218_v25 = vshrl.u32 %v14655_v35, 16  ;;  %v8221_v14 = vshll.u32 %v14655_v35, 16  ;;  %v14675_v7 = vld [vmem:[#allocation3 + $0xd8] sm:$0xf] }
 0x56c   : > { %v8140_v31 = vsel %vm15628_vm3, %v8131_v55, %v8139_v51  ;;  %v8076_v55 = vld [vmem:[#allocation3 + $0xb0] sm:$0xf8]  ;;  %v14664_v51 = vld [vmem:[#allocation3 + $0xb8] sm:$0xf]  ;;  %v8215_v49 = vrot.slane %v8213_v22, 4  ;;  %v8240_v17 = vrot.slane %v8238_v11, 4 }
 0x56d   : > { %11596 = vmatmul.mubr.bf16.gmra.mrb[36].mxu1 %v7714_v44  ;;  %v8142_v44 = vshrl.u32 %v8064_v50, 16  ;;  %v8191_v2 = vsel %vm15631_vm6, %v8182_v12, %v8190_v47  ;;  %v8247_v52 = vshll.u32 %v8076_v55, 16  ;;  %v8252_v4 = vshrl.u32 %v14664_v51, 16  ;;  %v14677_v12 = vld [vmem:[#allocation3 + $0xe8] sm:$0xf] }
 0x56e   : > { %11599 = vmatprep.mubr.bf16.mxu1 %v7731_v30  ;;  %v8145_v30 = vshll.u32 %v8064_v50, 16  ;;  %v8255_v34 = vshll.u32 %v14664_v51, 16  ;;  %v8303_v11 = vshrl.u32 %v14677_v12, 16  ;;  %vm15641_vm1 = vcmask 1043456  }
 0x56f   : > { %v8144_v21 = vrot.slane %v8142_v44, 3  ;;  %v12457_v44 = vld [vmem:[#allocation4 + $0x1e0] sm:$0xff]   ;;  %v8249_v0 = vrot.slane %v8247_v52, 4  ;;  %v8254_v58 = vrot.slane %v8252_v4, 3  ;;  %v14690_v52 = vld [vmem:[#allocation3 + $0x108] sm:$0xf]  ;;  %vm15642_vm2 = vmmov %vm15641_vm1 }
 0x570   : > { %v8147_v33 = vrot.slane %v8145_v30, 4  ;;  %v8227_v30 = vshrl.u32 %v8074_v42, 16  ;;  %v8257_v59 = vrot.slane %v8255_v34, 4  ;;  %v8082_v42 = vld [vmem:[#allocation3 + $0xe0] sm:$0xf8]  ;;  %vm15643_vm3 = vmmov %vm15641_vm1 }
 0x571   : > { %v8295_v56 = vshrl.u32 %v8082_v42, 16  ;;  %v8298_v9 = vshll.u32 %v8082_v42, 16 }
 0x572   : > { %v8229_v23 = vrot.slane %v8227_v30, 3  ;;  %v14681_v30 = vld [vmem:[#allocation4 + $0x200] sm:$0xff]  }
 0x575   : > { %11600 = vmatmul.mubr.bf16.gmra.mrb[40].mxu1 %v7748_v60  ;;  %v8169_v60 = vrot.slane %v8167_v10, 3 }
 0x576   : > { %11603 = vmatprep.mubr.bf16.mxu1 %v7765_v57  ;;  %v8148_v57 = vor.u32 %v8147_v33, %v8144_v21  ;;  %v8223_v21 = vrot.slane %v8221_v14, 4  ;;  %v12458_v33 = vld [vmem:[#allocation4 + $0x1e8] sm:$0xff]   ;;  %v8286_v14 = vshrl.u32 %v14675_v7, 16 }
 0x577   : > { %v8173_v16 = vor.u32 %v8172_v39, %v8169_v60  ;;  %v8078_v39 = vld [vmem:[#allocation3 + $0xc0] sm:$0xf8] }
 0x578   : > { %v8157_v40 = vsel %vm15629_vm4, %v8148_v57, %v8156_v5  ;;  %v8233_v5 = vor.u32 %v8232_v24, %v8229_v23  ;;  %v8264_v46 = vshll.u32 %v8078_v39, 16  ;;  %v8300_v23 = vrot.slane %v8298_v9, 4 }
 0x579   : > { %v8174_v37 = vsel %vm15630_vm5, %v8165_v15, %v8173_v16  ;;  %v8241_v15 = vor.u32 %v8240_v17, %v8237_v19  ;;  %v8261_v16 = vshrl.u32 %v8078_v39, 16  ;;  %v8305_v24 = vrot.slane %v8303_v11, 3  ;;  %v8084_v17 = vld [vmem:[#allocation3 + $0xf0] sm:$0xf8]  ;;  %v14688_v39 = vld [vmem:[#allocation3 + $0xf8] sm:$0xf] }
 0x57a   : > { %vm15644_vm4 = vcmask 64512  }
 0x57b   : > { %vm15645_vm5 = vmmov %vm15644_vm4 }
 0x57c   : > { %vm15646_vm6 = vmmov %vm15644_vm4 }
 0x57d   : > { %11604 = vmatmul.mubr.bf16.gmra.mrb[44].mxu1 %v7782_v13  ;;  %v8198_v13 = vrot.slane %v8196_v3, 4  ;;  %v8269_v3 = vshrl.u32 %v14669_v61, 16 }
 0x57e   : > { %11623 = vmatprep.mubr.bf16.mxu1 %v8106_v18  ;;  %v8203_v18 = vrot.slane %v8201_v1, 3  ;;  %v8272_v1 = vshll.u32 %v14669_v61, 16 }
 0x57f   : > { %v8199_v36 = vor.u32 %v8198_v13, %v8195_v53  ;;  %v8263_v53 = vrot.slane %v8261_v16, 3  ;;  %v8266_v13 = vrot.slane %v8264_v46, 4  ;;  %v8323_v16 = vshll.u32 %v14688_v39, 16 }
 0x581   : > { %v8325_v42 = vrot.slane %v8323_v16, 4  ;;  %v12462_v16 = vld [vmem:[#allocation4 + $0x208] sm:$0xff]  }
 0x585   : > { %11624 = vmatmul.mubr.bf16.vlgmr.msra.gmra.mrb[16].mxu1 %v8123_v41  ;;  %v8212_v41 = vrot.slane %v8210_v6, 3  ;;  %v8258_v6 = vor.u32 %v8257_v59, %v8254_v58  ;;  %v8088_v59 = vld [vmem:[#allocation3 + $0x110] sm:$0xf8] }
 0x586   : > { %11656 = vmatpush3.bf16.msra.mxu1 %v14603_v32  ;;  %11627 = vmatprep.mubr.bf16.mxu1 %v8140_v31  ;;  %v8204_v32 = vshll.u32 %v14649_v28, 16  ;;  %v8244_v31 = vshrl.u32 %v8076_v55, 16 }
 0x587   : > { %11657 = vmatprep.subr.bf16.mxu1 %v12454_v48 }
 0x588   : > { %v8206_v50 = vrot.slane %v8204_v32, 4  ;;  %v8246_v32 = vrot.slane %v8244_v31, 3  ;;  %v8086_v31 = vld [vmem:[#allocation3 + $0x100] sm:$0xf8] }
 0x589   : > { %v8329_v46 = vshrl.u32 %v8086_v31, 16 }
 0x58a   : > { %11658 = vmatpush3.bf16.msra.mxu1 %v12454_v48  ;;  %v8207_v10 = vor.u32 %v8206_v50, %v8203_v18  ;;  %v8220_v48 = vrot.slane %v8218_v25, 3  ;;  %v8271_v18 = vrot.slane %v8269_v3, 3  ;;  %v8274_v50 = vrot.slane %v8272_v1, 4 }
 0x58b   : > { %11659 = vmatprep.subr.bf16.mxu1 %v12455_v38  ;;  %v8250_v47 = vor.u32 %v8249_v0, %v8246_v32  ;;  %v8332_v3 = vshll.u32 %v8086_v31, 16  ;;  %v8337_v1 = vshrl.u32 %v14690_v52, 16  ;;  %v8340_v32 = vshll.u32 %v14690_v52, 16 }
 0x58c   : > { %v8208_v60 = vsel %vm15632_vm8, %v8199_v36, %v8207_v10  ;;  %v8224_v57 = vor.u32 %v8223_v21, %v8220_v48  ;;  %v8306_v36 = vshll.u32 %v14677_v12, 16  ;;  %v8267_v10 = vor.u32 %v8266_v13, %v8263_v53  ;;  %vm15647_vm8 = vmmov %vm15641_vm1 }
 0x58d   : > { %11628 = vmatmul.mubr.bf16.gmra.mrb[20].mxu1 %v8157_v40  ;;  %v8242_v40 = vsel %vm15634_vm13, %v8233_v5, %v8241_v15  ;;  %v8259_v55 = vsel %vm15635_vm14, %v8250_v47, %v8258_v6  ;;  %v8288_v48 = vrot.slane %v8286_v14, 3  ;;  %v8320_v15 = vshrl.u32 %v14688_v39, 16  ;;  %vm15649_vm13 = vmmov %vm15644_vm4 }
 0x58e   : > { %11631 = vmatprep.mubr.bf16.mxu1 %v8174_v37  ;;  %11660 = vmatpush3.bf16.msra.mxu1 %v12455_v38  ;;  %v8216_v38 = vor.u32 %v8215_v49, %v8212_v41  ;;  %v8080_v37 = vld [vmem:[#allocation3 + $0xd0] sm:$0xf8]  ;;  %v8308_v19 = vrot.slane %v8306_v36, 4  ;;  %v8331_v53 = vrot.slane %v8329_v46, 3  ;;  %v8334_v13 = vrot.slane %v8332_v3, 4  ;;  %v12472_v3 = vld [vmem:[%s12849_s9 + $0x18] sm:$0xff]   ;;  %vm15650_vm14 = vmmov %vm15644_vm4 }
 0x58f   : > { %11661 = vmatprep.subr.bf16.mxu1 %v12456_v29  ;;  %v8278_v22 = vshrl.u32 %v8080_v37, 16  ;;  %v8281_v25 = vshll.u32 %v8080_v37, 16  ;;  %v8322_v37 = vrot.slane %v8320_v15, 3  ;;  %v8346_v47 = vshrl.u32 %v8088_v59, 16 }
 0x590   : > { %v8309_v5 = vor.u32 %v8308_v19, %v8305_v24  ;;  %v8349_v6 = vshll.u32 %v8088_v59, 16  ;;  %v8685_v19 = vrot.slane %v14616_v62, 4  ;;  %v8688_v62 = vrot.slane %v14623_v20, 4  ;;  %v14736_v20 = vld [vmem:[#allocation3 + $0x60] sm:$0xf0] }
 0x591   : > { %v8280_v41 = vrot.slane %v8278_v22, 3  ;;  %v8283_v49 = vrot.slane %v8281_v25, 4  ;;  %v8348_v11 = vrot.slane %v8346_v47, 3  ;;  %v8691_v15 = vrot.slane %v14628_v43, 4  ;;  %v12463_v43 = vld [vmem:[#allocation4 + $0x210] sm:$0xff]  }
 0x592   : > { %11662 = vmatpush3.bf16.msra.mxu1 %v12456_v29  ;;  %v8225_v29 = vsel %vm15633_vm12, %v8216_v38, %v8224_v57  ;;  %v8315_v38 = vshll.u32 %v8084_v17, 16  ;;  %v8351_v36 = vrot.slane %v8349_v6, 4  ;;  %vm15648_vm12 = vmmov %vm15641_vm1  ;;  %v8694_v59 = vrot.slane %v14634_v27, 4  ;;  %v12475_v27 = vld [vmem:[%s12849_s9 + $0x30] sm:$0xff]  }
 0x593   : > { %11663 = vmatprep.subr.bf16.mxu1 %v12457_v44  ;;  %v8284_v4 = vor.u32 %v8283_v49, %v8280_v41  ;;  %v9774_v49 = vld [vmem:[%s15493_s3] sm:$0xf]  ;;  %v8700_v47 = vrot.slane %v14643_v8, 4 }
 0x594   : > { %12309 = vmatprep.subr.msk.bf16.mxu0 %vm15641_vm1, %v9774_v49  ;;  %v12477_v8 = vld [vmem:[%s12849_s9 + $0x40] sm:$0xff]  }
 0x595   : > { %11632 = vmatmul.mubr.bf16.gmra.mrb[24].mxu1 %v8191_v2  ;;  %v8275_v2 = vor.u32 %v8274_v50, %v8271_v18  ;;  %v8339_v18 = vrot.slane %v8337_v1, 3  ;;  %v8342_v50 = vrot.slane %v8340_v32, 4  ;;  %v14732_v32 = vld [vmem:[#allocation3 + $0x50] sm:$0xf0] }
 0x596   : > { %11635 = vmatprep.mubr.bf16.mxu1 %v8208_v60  ;;  %11664 = vmatpush3.bf16.msra.mxu1 %v12457_v44  ;;  %v8289_v44 = vshll.u32 %v14675_v7, 16 }
 0x597   : > { %11665 = vmatprep.subr.bf16.mxu1 %v12458_v33  ;;  %v8276_v60 = vsel %vm15636_vm15, %v8267_v10, %v8275_v2  ;;  %v8343_v9 = vor.u32 %v8342_v50, %v8339_v18  ;;  %vm15651_vm15 = vmmov %vm15641_vm1  ;;  %v14750_v18 = vld [vmem:[#allocation3 + $0x80] sm:$0xf0] }
 0x598   : > { %v8291_v21 = vrot.slane %v8289_v44, 4  ;;  %v8326_v44 = vor.u32 %v8325_v42, %v8322_v37  ;;  %v12474_v42 = vld [vmem:[%s12849_s9 + $0x28] sm:$0xff]   ;;  %v8702_v6 = vrot.slane %v14750_v18, 4 }
 0x59a   : > { %11666 = vmatpush3.bf16.msra.mxu1 %v12458_v33  ;;  %v8297_v33 = vrot.slane %v8295_v56, 3  ;;  %v8292_v34 = vor.u32 %v8291_v21, %v8288_v48  ;;  %v8335_v56 = vor.u32 %v8334_v13, %v8331_v53  ;;  %v8352_v48 = vor.u32 %v8351_v36, %v8348_v11  ;;  %v14747_v13 = vld [vmem:[#allocation3 + $0x70] sm:$0xf0]  ;;  %v14764_v11 = vld [vmem:[#allocation3 + $0xa0] sm:$0xf0] }
 0x59b   : > { %11667 = vmatprep.subr.bf16.mxu1 %v12459_v45  ;;  %v8699_v50 = vrot.slane %v14747_v13, 4 }
 0x59c   : > { %v8301_v57 = vor.u32 %v8300_v23, %v8297_v33  ;;  %v8293_v0 = vsel %vm15637_vm7, %v8284_v4, %v8292_v34  ;;  %v8344_v41 = vsel %vm15640_vm11, %v8335_v56, %v8343_v9  ;;  %v14707_v33 = vld [vmem:[#allocation3 + $0x20] sm:$0xf0]  ;;  %v9911_v23 = vsel %vm15642_vm2, %v9774_v49, 0  ;;  %v12470_v34 = vld [vmem:[%s12849_s9 + $0x8] sm:$0xff]   ;;  %vm15652_vm7 = vmmov %vm15641_vm1 }
 0x59d   : > { %11636 = vmatmul.mubr.bf16.gmra.mrb[28].mxu1 %v8225_v29  ;;  %11752 = vmatpush3.bf16.msra.mxu0 %v9911_v23  ;;  %v8684_v24 = vrot.slane %v14707_v33, 4  ;;  %v12469_v4 = vld [vmem:[%s12849_s9] sm:$0xff]   ;;  %vm15655_vm11 = vmmov %vm15641_vm1  ;;  %v14761_v9 = vld [vmem:[#allocation3 + $0x90] sm:$0xf0] }
 0x59e   : > { %11639 = vmatprep.mubr.bf16.mxu1 %v8242_v40  ;;  %11668 = vmatpush3.bf16.msra.mxu1 %v12459_v45  ;;  %v8312_v45 = vshrl.u32 %v8084_v17, 16  ;;  %v8310_v29 = vsel %vm15638_vm9, %v8301_v57, %v8309_v5  ;;  %v8317_v40 = vrot.slane %v8315_v38, 4  ;;  %v14720_v38 = vld [vmem:[#allocation3 + $0x40] sm:$0xf0]  ;;  %vm15653_vm9 = vmmov %vm15644_vm4  ;;  %v8705_v36 = vrot.slane %v14761_v9, 4 }
 0x59f   : > { %11669 = vmatprep.subr.bf16.mxu1 %v12460_v26  ;;  %v8686_v31 = vsel %vm15643_vm3, %v8684_v24, %v8685_v19  ;;  %11753 = vmatprep.mubr.msk.bf16.mxu0 %vm15644_vm4, %v12469_v4  ;;  %v8690_v5 = vrot.slane %v14720_v38, 4  ;;  %vm15656_vm2 = vmmov %vm15644_vm4  ;;  %v14775_v23 = vld [vmem:[#allocation3 + $0xb0] sm:$0xf0]  ;;  %v14778_v24 = vld [vmem:[#allocation3 + $0xc0] sm:$0xf0]  ;;  %v8712_v19 = vrot.slane %v14664_v51, 4 }
 0x5a0   : > { %v8314_v58 = vrot.slane %v8312_v45, 3  ;;  %v12471_v45 = vld [vmem:[%s12849_s9 + $0x10] sm:$0xff]   ;;  %11754 = vmatmul.mubr.msk.bf16.vlgmr.msra.gmra.mrb[32].mxu0 %vm15645_vm5, %v12470_v34  ;;  %vm15658_vm3 = vmmov %vm15641_vm1  ;;  %v12480_v34 = vld [vmem:[%s12849_s9 + $0x58] sm:$0xff]  }
 0x5a1   : > { %11757 = vmatprep.mubr.msk.bf16.mxu0 %vm15646_vm6, %v12471_v45  ;;  %v8692_v1 = vsel %vm15648_vm12, %v8690_v5, %v8691_v15  ;;  %vm15663_vm12 = vmmov %vm15641_vm1  ;;  %v12481_v51 = vld [vmem:[%s12849_s9 + $0x60] sm:$0xff]  }
 0x5a2   : > { %11670 = vmatpush3.bf16.msra.mxu1 %v12460_v26  ;;  %v14697_v26 = vld [vmem:[#allocation3 + $0x118] sm:$0xf]  ;;  %v8318_v14 = vor.u32 %v8317_v40, %v8314_v58  ;;  %v8693_v58 = vrot.slane %v14732_v32, 4  ;;  %v8697_v40 = vrot.slane %v14636_v54, 4  ;;  %v12465_v54 = vld [vmem:[#allocation4 + $0x220] sm:$0xff]  }
 0x5a3   : > { %11703 = vmatprep.subr.bf16.mxu1 %v14681_v30  ;;  %v8354_v22 = vshrl.u32 %v14697_v26, 16  ;;  %v8357_v25 = vshll.u32 %v14697_v26, 16 }
 0x5a4   : > { %v8695_v37 = vsel %vm15651_vm15, %v8693_v58, %v8694_v59  ;;  %vm15666_vm15 = vmmov %vm15641_vm1  ;;  %v14806_v58 = vld [vmem:[#allocation3 + $0x100] sm:$0xf0] }
 0x5a5   : > { %11640 = vmatmul.mubr.bf16.gmra.mrb[32].mxu1 %v8259_v55  ;;  %v8356_v10 = vrot.slane %v8354_v22, 3  ;;  %v8359_v2 = vrot.slane %v8357_v25, 4  ;;  %v8327_v55 = vsel %vm15639_vm10, %v8318_v14, %v8326_v44  ;;  %v8703_v22 = vrot.slane %v14649_v28, 4  ;;  %vm15654_vm10 = vmmov %vm15644_vm4  ;;  %v12466_v25 = vld [vmem:[#allocation4 + $0x228] sm:$0xff]   ;;  %v12476_v44 = vld [vmem:[%s12849_s9 + $0x38] sm:$0xff]  }
 0x5a6   : > { %11643 = vmatprep.mubr.bf16.mxu1 %v8276_v60  ;;  %v14714_v60 = vld [vmem:[#allocation3 + $0x30] sm:$0xf0]  ;;  %v8701_v14 = vsel %vm15655_vm11, %v8699_v50, %v8700_v47  ;;  %vm15659_vm4 = vmmov %vm15641_vm1  ;;  %v9007_v47 = vld [vmem:[#allocation3 + $0x38] sm:$0x1f] }
 0x5a7   : > { %v8360_v21 = vor.u32 %v8359_v2, %v8356_v10  ;;  %v8687_v57 = vrot.slane %v14714_v60, 4  ;;  %v8704_v56 = vsel %vm15641_vm1, %v8702_v6, %v8703_v22  ;;  %v12467_v28 = vld [vmem:[#allocation4 + $0x230] sm:$0xff]   ;;  %v8706_v10 = vrot.slane %v14655_v35, 4  ;;  %vm15670_vm11 = vmmov %vm15641_vm1  ;;  %v12484_v6 = vld [vmem:[%s12849_s9 + $0x78] sm:$0xff]  }
 0x5a8   : > { %11758 = vmatmul.mubr.msk.bf16.gmra.mrb[36].mxu0 %vm15649_vm13, %v12472_v3  ;;  %v8708_v2 = vrot.slane %v14764_v11, 4  ;;  %v12479_v35 = vld [vmem:[%s12849_s9 + $0x50] sm:$0xff]   ;;  %v12482_v3 = vld [vmem:[%s12849_s9 + $0x68] sm:$0xff]  }
 0x5a9   : > { %v8361_v17 = vsel %vm15627_vm0, %v8352_v48, %v8360_v21  ;;  %v8689_v46 = vsel %vm15647_vm8, %v8687_v57, %v8688_v62  ;;  %vm15657_vm0 = vmmov %vm15656_vm2  ;;  %v8707_v49 = vsel %vm15658_vm3, %v8705_v36, %v8706_v10  ;;  %v12478_v48 = vld [vmem:[%s12849_s9 + $0x48] sm:$0xff]   ;;  %v14789_v57 = vld [vmem:[#allocation3 + $0xd0] sm:$0xf0]  ;;  %v9051_v36 = vshll.u32 %v9007_v47, 16 }
 0x5aa   : > { %vm15660_vm5 = vmmov %vm15657_vm0  ;;  %v14792_v62 = vld [vmem:[#allocation3 + $0xe0] sm:$0xf0]  ;;  %v8717_v5 = vrot.slane %v14789_v57, 4  ;;  %vm15673_vm3 = vsmask.f32 3328 }
 0x5ab   : > { %vm15661_vm6 = vmmov %vm15657_vm0  ;;  %v8720_v15 = vrot.slane %v14792_v62, 4 }
 0x5ac   : > { %vm15662_vm8 = vmmov %vm15641_vm1 }
 0x5ad   : > { %11644 = vmatmul.mubr.bf16.gmra.mrb[36].mxu1 %v8293_v0  ;;  %v12473_v0 = vld [vmem:[%s12849_s9 + $0x20] sm:$0xff]   ;;  %vm15664_vm13 = vmmov %vm15657_vm0 }
 0x5ae   : > { %11647 = vmatprep.mubr.bf16.mxu1 %v8310_v29  ;;  %v8696_v29 = vrot.slane %v14736_v20, 4  ;;  %11761 = vmatprep.mubr.msk.bf16.mxu0 %vm15650_vm14, %v12473_v0  ;;  %vm15665_vm14 = vmmov %vm15657_vm0  ;;  %v14803_v0 = vld [vmem:[#allocation3 + $0xf0] sm:$0xf0] }
 0x5af   : > { %v8723_v59 = vrot.slane %v14803_v0, 4 }
 0x5b0   : > { %v8698_v53 = vsel %vm15652_vm7, %v8696_v29, %v8697_v40  ;;  %11762 = vmatmul.mubr.msk.bf16.gmra.mrb[40].mxu0 %vm15653_vm9, %v12474_v42  ;;  %vm15667_vm7 = vmmov %vm15641_vm1  ;;  %v9023_v29 = vshrl.u32 %v14707_v33, 16  ;;  %v9026_v40 = vshll.u32 %v14707_v33, 16 }
 0x5b1   : > { %11765 = vmatprep.mubr.msk.bf16.mxu0 %vm15654_vm10, %v12475_v27  ;;  %vm15668_vm9 = vmmov %vm15657_vm0  ;;  %v14816_v27 = vld [vmem:[#allocation3 + $0x110] sm:$0xf0] }
 0x5b2   : > { %vm15669_vm10 = vmmov %vm15657_vm0  ;;  %v9025_v50 = vrot.slane %v9023_v29, 4 }
 0x5b5   : > { %11648 = vmatmul.mubr.bf16.gmra.mrb[40].mxu1 %v8327_v55  ;;  %v8709_v55 = vrot.slane %v14657_v63, 4  ;;  %v8711_v63 = vrot.slane %v14775_v23, 4 }
 0x5b6   : > { %11651 = vmatprep.mubr.bf16.mxu1 %v8344_v41  ;;  %v12468_v41 = vld [vmem:[#allocation4 + $0x238] sm:$0xff]  }
 0x5b7   : > { %v8710_v21 = vsel %vm15659_vm4, %v8708_v2, %v8709_v55  ;;  %v8713_v4 = vsel %vm15662_vm8, %v8711_v63, %v8712_v19  ;;  %v9057_v2 = vshrl.u32 %v14720_v38, 16  ;;  %v9053_v19 = vrot.slane %v9051_v36, 5  ;;  %vm15674_vm4 = vmmov %vm15673_vm3 }
 0x5b8   : > { %11766 = vmatmul.mubr.msk.bf16.gmra.mrb[44].mxu0 %vm15656_vm2, %v12476_v44  ;;  %v9008_v44 = vld [vmem:[#allocation3 + $0x48] sm:$0x1f]  ;;  %vm15671_vm2 = vmmov %vm15657_vm0 }
 0x5b9   : > { %11769 = vmatprep.mubr.msk.bf16.mxu0 %vm15657_vm0, %v12477_v8  ;;  %v9043_v8 = vshll.u32 %v14714_v60, 16  ;;  %vm15672_vm0 = vmmov %vm15641_vm1 }
 0x5ba   : > { %vm15677_vm8 = vmmov %vm15673_vm3 }
 0x5bd   : > { %11652 = vmatmul.mubr.bf16.gmra.mrb[44].mxu1 %v8361_v17  ;;  %v8714_v17 = vrot.slane %v14778_v24, 4 }
 0x5be   : > { %11671 = vmatprep.mubr.bf16.mxu1 %v8686_v31  ;;  %v8715_v31 = vrot.slane %v14669_v61, 4  ;;  %v8718_v61 = vrot.slane %v14675_v7, 4  ;;  %v9006_v7 = vld [vmem:[#allocation3 + $0x28] sm:$0x1f] }
 0x5bf   : > { %v9031_v42 = vshrl.u32 %v9006_v7, 16 }
 0x5c0   : > { %11770 = vmatmul.mubr.msk.bf16.gmra.mrb[48].mxu0 %vm15660_vm5, %v12478_v48  ;;  %v8716_v45 = vsel %vm15663_vm12, %v8714_v17, %v8715_v31  ;;  %v9068_v48 = vshll.u32 %v9008_v44, 16  ;;  %v9059_v17 = vrot.slane %v9057_v2, 4  ;;  %vm15675_vm5 = vmmov %vm15673_vm3 }
 0x5c1   : > { %11773 = vmatprep.mubr.msk.bf16.mxu0 %vm15661_vm6, %v12479_v35  ;;  %v9033_v22 = vrot.slane %v9031_v42, 4  ;;  %v9045_v35 = vrot.slane %v9043_v8, 5  ;;  %vm15676_vm6 = vmmov %vm15673_vm3 }
 0x5c2   : > { %vm15678_vm12 = vmmov %vm15673_vm3 }
 0x5c5   : > { %11672 = vmatmul.mubr.bf16.vlgmr.msra.gmra.mrb[16].mxu1 %v8689_v46  ;;  %v8719_v46 = vsel %vm15666_vm15, %v8717_v5, %v8718_v61  ;;  %v9074_v61 = vshrl.u32 %v14732_v32, 16  ;;  %vm15681_vm15 = vmmov %vm15673_vm3 }
 0x5c6   : > { %11704 = vmatpush3.bf16.msra.mxu1 %v14681_v30  ;;  %11675 = vmatprep.mubr.bf16.mxu1 %v8692_v1  ;;  %v12464_v30 = vld [vmem:[#allocation4 + $0x218] sm:$0xff]  }
 0x5c7   : > { %11705 = vmatprep.subr.bf16.mxu1 %v12462_v16 }
 0x5c8   : > { %11774 = vmatmul.mubr.msk.bf16.gmra.mrb[52].mxu0 %vm15664_vm13, %v12480_v34  ;;  %v9070_v34 = vrot.slane %v9068_v48, 5  ;;  %vm15679_vm13 = vmmov %vm15673_vm3 }
 0x5c9   : > { %11777 = vmatprep.mubr.msk.bf16.mxu0 %vm15665_vm14, %v12481_v51  ;;  %v9010_v51 = vld [vmem:[#allocation3 + $0x68] sm:$0x1f]  ;;  %vm15680_vm14 = vmmov %vm15673_vm3 }
 0x5ca   : > { %11706 = vmatpush3.bf16.msra.mxu1 %v12462_v16  ;;  %v8721_v16 = vrot.slane %v14677_v12, 4  ;;  %v8724_v12 = vrot.slane %v14688_v39, 4  ;;  %v9028_v39 = vrot.slane %v9026_v40, 5  ;;  %v9076_v40 = vrot.slane %v9074_v61, 4 }
 0x5cb   : > { %11707 = vmatprep.subr.bf16.mxu1 %v12463_v43 }
 0x5cc   : > { %v8722_v1 = vsel %vm15667_vm7, %v8720_v15, %v8721_v16  ;;  %v9029_v10 = vor.u32 %v9028_v39, %v9025_v50  ;;  %v9077_v15 = vshll.u32 %v14732_v32, 16  ;;  %v9011_v50 = vld [vmem:[#allocation3 + $0x78] sm:$0x1f]  ;;  %vm15682_vm7 = vmmov %vm15673_vm3 }
 0x5cd   : > { %11676 = vmatmul.mubr.bf16.gmra.mrb[20].mxu1 %v8695_v37  ;;  %v8727_v37 = vrot.slane %v14690_v52, 4  ;;  %v8729_v52 = vrot.slane %v14816_v27, 4 }
 0x5ce   : > { %11679 = vmatprep.mubr.bf16.mxu1 %v8698_v53  ;;  %11708 = vmatpush3.bf16.msra.mxu1 %v12463_v43  ;;  %v12483_v43 = vld [vmem:[%s12849_s9 + $0x70] sm:$0xff]   ;;  %v9034_v53 = vshll.u32 %v9006_v7, 16 }
 0x5cf   : > { %11709 = vmatprep.subr.bf16.mxu1 %v12464_v30 }
 0x5d0   : > { %11778 = vmatmul.mubr.msk.bf16.gmra.mrb[56].mxu0 %vm15668_vm9, %v12482_v3  ;;  %v9091_v3 = vshrl.u32 %v14736_v20, 16  ;;  %vm15683_vm9 = vmmov %vm15673_vm3 }
 0x5d1   : > { %11781 = vmatprep.mubr.msk.bf16.mxu0 %vm15669_vm10, %v12483_v43  ;;  %vm15684_vm10 = vmmov %vm15673_vm3 }
 0x5d2   : > { %11710 = vmatpush3.bf16.msra.mxu1 %v12464_v30  ;;  %v8726_v30 = vrot.slane %v14806_v58, 4 }
 0x5d3   : > { %11711 = vmatprep.subr.bf16.mxu1 %v12465_v54 }
 0x5d4   : > { %v8728_v33 = vsel %vm15641_vm1, %v8726_v30, %v8727_v37  ;;  %v9079_v30 = vrot.slane %v9077_v15, 5  ;;  %vm15686_vm1 = vmmov %vm15673_vm3 }
 0x5d5   : > { %11680 = vmatmul.mubr.bf16.gmra.mrb[24].mxu1 %v8701_v14  ;;  %v8730_v14 = vrot.slane %v14697_v26, 4 }
 0x5d6   : > { %11683 = vmatprep.mubr.bf16.mxu1 %v8704_v56  ;;  %11712 = vmatpush3.bf16.msra.mxu1 %v12465_v54  ;;  %v8725_v54 = vsel %vm15670_vm11, %v8723_v59, %v8724_v12  ;;  %v9040_v56 = vshrl.u32 %v14714_v60, 16  ;;  %v9099_v59 = vshrl.u32 %v9010_v51, 16  ;;  %v9102_v12 = vshll.u32 %v9010_v51, 16  ;;  %vm15685_vm11 = vmmov %vm15673_vm3 }
 0x5d7   : > { %11713 = vmatprep.subr.bf16.mxu1 %v12466_v25  ;;  %v9159_v51 = vshrl.u32 %v14764_v11, 16 }
 0x5d8   : > { %11782 = vmatmul.mubr.msk.bf16.gmra.mrb[60].mxu0 %vm15671_vm2, %v12484_v6  ;;  %v9042_v26 = vrot.slane %v9040_v56, 4  ;;  %v9101_v39 = vrot.slane %v9099_v59, 4  ;;  %v9111_v6 = vshll.u32 %v14747_v13, 16  ;;  %v9125_v56 = vshrl.u32 %v14750_v18, 16  ;;  %vm15687_vm2 = vmmov %vm15686_vm1 }
 0x5d9   : > { %v9161_v59 = vrot.slane %v9159_v51, 4 }
 0x5da   : > { %11714 = vmatpush3.bf16.msra.mxu1 %v12466_v25  ;;  %v9036_v25 = vrot.slane %v9034_v53, 5  ;;  %v9046_v5 = vor.u32 %v9045_v35, %v9042_v26  ;;  %v9093_v53 = vrot.slane %v9091_v3, 4 }
 0x5db   : > { %11715 = vmatprep.subr.bf16.mxu1 %v12467_v28 }
 0x5dc   : > { %v9037_v55 = vor.u32 %v9036_v25, %v9033_v22  ;;  %v9116_v22 = vshrl.u32 %v9011_v50, 16  ;;  %v9119_v25 = vshll.u32 %v9011_v50, 16 }
 0x5dd   : > { %11684 = vmatmul.mubr.bf16.gmra.mrb[28].mxu1 %v8707_v49  ;;  %v9065_v49 = vshrl.u32 %v9008_v44, 16 }
 0x5de   : > { %11687 = vmatprep.mubr.bf16.mxu1 %v8710_v21  ;;  %11716 = vmatpush3.bf16.msra.mxu1 %v12467_v28  ;;  %v9048_v28 = vshrl.u32 %v9007_v47, 16  ;;  %v8731_v21 = vsel %vm15672_vm0, %v8729_v52, %v8730_v14  ;;  %v9038_v60 = vsel %vm15673_vm3, %v9029_v10, %v9037_v55  ;;  %v9104_v47 = vrot.slane %v9102_v12, 5  ;;  %vm15688_vm0 = vmmov %vm15686_vm1 }
 0x5df   : > { %11717 = vmatprep.subr.bf16.mxu1 %v12468_v41  ;;  %v9080_v52 = vor.u32 %v9079_v30, %v9076_v40  ;;  %v9113_v55 = vrot.slane %v9111_v6, 5  ;;  %v9015_v40 = vld [vmem:[#allocation3 + $0xb8] sm:$0x1f]  ;;  %v9196_v6 = vshll.u32 %v14778_v24, 16 }
 0x5e0   : > { %v9050_v63 = vrot.slane %v9048_v28, 4  ;;  %v9105_v8 = vor.u32 %v9104_v47, %v9101_v39  ;;  %v9128_v28 = vshll.u32 %v14750_v18, 16  ;;  %v9142_v18 = vshrl.u32 %v14761_v9, 16 }
 0x5e2   : > { %11718 = vmatpush3.bf16.msra.mxu1 %v12468_v41  ;;  %v9060_v41 = vshll.u32 %v14720_v38, 16  ;;  %v9054_v38 = vor.u32 %v9053_v19, %v9050_v63  ;;  %v9130_v35 = vrot.slane %v9128_v28, 5 }
 0x5e4   : > { %v9062_v31 = vrot.slane %v9060_v41, 5  ;;  %v9055_v29 = vsel %vm15674_vm4, %v9046_v5, %v9054_v38  ;;  %v9118_v41 = vrot.slane %v9116_v22, 4  ;;  %v9162_v5 = vshll.u32 %v14764_v11, 16 }
 0x5e5   : > { %11688 = vmatmul.mubr.bf16.gmra.mrb[32].mxu1 %v8713_v4  ;;  %v9067_v4 = vrot.slane %v9065_v49, 4  ;;  %v9121_v49 = vrot.slane %v9119_v25, 5  ;;  %v9176_v11 = vshrl.u32 %v14775_v23, 16 }
 0x5e6   : > { %11691 = vmatprep.mubr.bf16.mxu1 %v8716_v45  ;;  %v9009_v45 = vld [vmem:[#allocation3 + $0x58] sm:$0x1f]  ;;  %v9063_v43 = vor.u32 %v9062_v31, %v9059_v17  ;;  %v9014_v17 = vld [vmem:[#allocation3 + $0xa8] sm:$0x1f]  ;;  %v9164_v12 = vrot.slane %v9162_v5, 5 }
 0x5e7   : > { %v9082_v16 = vshrl.u32 %v9009_v45, 16  ;;  %v9071_v7 = vor.u32 %v9070_v34, %v9067_v4  ;;  %v9122_v31 = vor.u32 %v9121_v49, %v9118_v41  ;;  %v9145_v4 = vshll.u32 %v14761_v9, 16 }
 0x5e8   : > { %v9167_v38 = vshrl.u32 %v9014_v17, 16  ;;  %v9170_v61 = vshll.u32 %v9014_v17, 16  ;;  %v9165_v39 = vor.u32 %v9164_v12, %v9161_v59  ;;  %v9178_v25 = vrot.slane %v9176_v11, 4 }
 0x5e9   : > { %v9084_v37 = vrot.slane %v9082_v16, 4  ;;  %v9072_v32 = vsel %vm15675_vm5, %v9063_v43, %v9071_v7 }
 0x5ea   : > { %v9172_v9 = vrot.slane %v9170_v61, 5 }
 0x5ed   : > { %11692 = vmatmul.mubr.bf16.gmra.mrb[36].mxu1 %v8719_v46  ;;  %v9085_v46 = vshll.u32 %v9009_v45, 16 }
 0x5ee   : > { %11695 = vmatprep.mubr.bf16.mxu1 %v8722_v1  ;;  %v9094_v1 = vshll.u32 %v14736_v20, 16  ;;  %v9108_v20 = vshrl.u32 %v14747_v13, 16  ;;  %v9127_v13 = vrot.slane %v9125_v56, 4 }
 0x5ef   : > { %v9087_v42 = vrot.slane %v9085_v46, 5  ;;  %v9144_v46 = vrot.slane %v9142_v18, 4 }
 0x5f0   : > { %v9110_v2 = vrot.slane %v9108_v20, 4  ;;  %v9131_v15 = vor.u32 %v9130_v35, %v9127_v13  ;;  %v9193_v20 = vshrl.u32 %v14778_v24, 16  ;;  %v9210_v24 = vshrl.u32 %v14789_v57, 16 }
 0x5f1   : > { %v9088_v14 = vor.u32 %v9087_v42, %v9084_v37  ;;  %v9179_v37 = vshll.u32 %v14775_v23, 16  ;;  %v9016_v42 = vld [vmem:[#allocation3 + $0xc8] sm:$0x1f]  ;;  %v9230_v35 = vshll.u32 %v14792_v62, 16 }
 0x5f2   : > { %v9204_v22 = vshll.u32 %v9016_v42, 16  ;;  %v9195_v28 = vrot.slane %v9193_v20, 4  ;;  %v9212_v18 = vrot.slane %v9210_v24, 4 }
 0x5f3   : > { %v9089_v48 = vsel %vm15676_vm6, %v9080_v52, %v9088_v14  ;;  %v9181_v52 = vrot.slane %v9179_v37, 5  ;;  %v9232_v5 = vrot.slane %v9230_v35, 5 }
 0x5f5   : > { %11696 = vmatmul.mubr.bf16.gmra.mrb[40].mxu1 %v8725_v54  ;;  %v9096_v54 = vrot.slane %v9094_v1, 5  ;;  %v9147_v1 = vrot.slane %v9145_v4, 5  ;;  %v9182_v41 = vor.u32 %v9181_v52, %v9178_v25 }
 0x5f6   : > { %11699 = vmatprep.mubr.bf16.mxu1 %v8728_v33  ;;  %v9012_v33 = vld [vmem:[#allocation3 + $0x88] sm:$0x1f] }
 0x5f7   : > { %v9097_v44 = vor.u32 %v9096_v54, %v9093_v53  ;;  %v9133_v36 = vshrl.u32 %v9012_v33, 16  ;;  %v9136_v10 = vshll.u32 %v9012_v33, 16  ;;  %v9184_v53 = vshrl.u32 %v9015_v40, 16 }
 0x5f8   : > { %v9187_v54 = vshll.u32 %v9015_v40, 16  ;;  %v9148_v50 = vor.u32 %v9147_v1, %v9144_v46  ;;  %v9201_v33 = vshrl.u32 %v9016_v42, 16  ;;  %v9247_v1 = vshll.u32 %v14803_v0, 16  ;;  %v9021_v42 = vld [vmem:[#allocation3 + $0x118] sm:$0x1f] }
 0x5f9   : > { %v9106_v26 = vsel %vm15677_vm8, %v9097_v44, %v9105_v8  ;;  %v9135_v63 = vrot.slane %v9133_v36, 4  ;;  %v9138_v19 = vrot.slane %v9136_v10, 5  ;;  %v9186_v14 = vrot.slane %v9184_v53, 4  ;;  %v9017_v8 = vld [vmem:[#allocation3 + $0xd8] sm:$0x1f] }
 0x5fa   : > { %v9189_v44 = vrot.slane %v9187_v54, 5  ;;  %v9198_v36 = vrot.slane %v9196_v6, 5  ;;  %v9203_v10 = vrot.slane %v9201_v33, 4  ;;  %v9218_v13 = vshrl.u32 %v9017_v8, 16 }
 0x5fb   : > { %v9139_v16 = vor.u32 %v9138_v19, %v9135_v63  ;;  %v9249_v54 = vrot.slane %v9247_v1, 5  ;;  %v9278_v6 = vshrl.u32 %v14816_v27, 16  ;;  %v9286_v33 = vshrl.u32 %v9021_v42, 16 }
 0x5fc   : > { %v9190_v49 = vor.u32 %v9189_v44, %v9186_v14  ;;  %v9199_v17 = vor.u32 %v9198_v36, %v9195_v28 }
 0x5fd   : > { %11700 = vmatmul.mubr.bf16.gmra.mrb[44].mxu1 %v8731_v21  ;;  %v9013_v21 = vld [vmem:[#allocation3 + $0x98] sm:$0x1f]  ;;  %v9140_v30 = vsel %vm15679_vm13, %v9131_v15, %v9139_v16 }
 0x5fe   : > { %11719 = vmatprep.mubr.bf16.mxu1 %v9038_v60  ;;  %v9114_v60 = vor.u32 %v9113_v55, %v9110_v2  ;;  %v9150_v34 = vshrl.u32 %v9013_v21, 16  ;;  %v9153_v45 = vshll.u32 %v9013_v21, 16  ;;  %v9206_v2 = vrot.slane %v9204_v22, 5  ;;  %v9018_v55 = vld [vmem:[#allocation3 + $0xe8] sm:$0x1f] }
 0x5ff   : > { %v9221_v21 = vshll.u32 %v9017_v8, 16  ;;  %v9235_v63 = vshrl.u32 %v9018_v55, 16  ;;  %v9238_v19 = vshll.u32 %v9018_v55, 16  ;;  %v9019_v15 = vld [vmem:[#allocation3 + $0xf8] sm:$0x1f]  ;;  %v9289_v22 = vshll.u32 %v9021_v42, 16 }
 0x600   : > { %v9123_v3 = vsel %vm15678_vm12, %v9114_v60, %v9122_v31  ;;  %v9152_v43 = vrot.slane %v9150_v34, 4  ;;  %v9155_v7 = vrot.slane %v9153_v45, 5  ;;  %v9207_v60 = vor.u32 %v9206_v2, %v9203_v10 }
 0x601   : > { %v9191_v31 = vsel %vm15682_vm7, %v9182_v41, %v9190_v49  ;;  %v9220_v34 = vrot.slane %v9218_v13, 4  ;;  %v9223_v45 = vrot.slane %v9221_v21, 5  ;;  %v9252_v59 = vshrl.u32 %v9019_v15, 16 }
 0x602   : > { %v9208_v61 = vsel %vm15683_vm9, %v9199_v17, %v9207_v60  ;;  %v9255_v12 = vshll.u32 %v9019_v15, 16  ;;  %v9288_v8 = vrot.slane %v9286_v33, 4  ;;  %v9291_v28 = vrot.slane %v9289_v22, 5 }
 0x603   : > { %v9224_v46 = vor.u32 %v9223_v45, %v9220_v34 }
 0x604   : > { %v9292_v55 = vor.u32 %v9291_v28, %v9288_v8 }
 0x605   : > { %11720 = vmatmul.mubr.bf16.vlgmr.msra.gmra.mrb[16].mxu1 %v9055_v29  ;;  %v9169_v29 = vrot.slane %v9167_v38, 4  ;;  %v9237_v38 = vrot.slane %v9235_v63, 4 }
 0x606   : > { %11723 = vmatprep.mubr.bf16.mxu1 %v9072_v32  ;;  %v9156_v32 = vor.u32 %v9155_v7, %v9152_v43 }
 0x607   : > { %v9173_v47 = vor.u32 %v9172_v9, %v9169_v29  ;;  %v9261_v29 = vshrl.u32 %v14806_v58, 16  ;;  %v9264_v9 = vshll.u32 %v14806_v58, 16  ;;  %v9281_v58 = vshll.u32 %v14816_v27, 16 }
 0x608   : > { %v9157_v56 = vsel %vm15680_vm14, %v9148_v50, %v9156_v32  ;;  %v9254_v50 = vrot.slane %v9252_v59, 4  ;;  %v9257_v32 = vrot.slane %v9255_v12, 5 }
 0x609   : > { %v9174_v23 = vsel %vm15681_vm15, %v9165_v39, %v9173_v47  ;;  %v9266_v39 = vrot.slane %v9264_v9, 5 }
 0x60a   : > { %v9258_v52 = vor.u32 %v9257_v32, %v9254_v50 }
 0x60d   : > { %11724 = vmatmul.mubr.bf16.gmra.mrb[20].mxu1 %v9089_v48  ;;  %v9213_v48 = vshll.u32 %v14789_v57, 16  ;;  %v9240_v57 = vrot.slane %v9238_v19, 5 }
 0x60e   : > { %11727 = vmatprep.mubr.bf16.mxu1 %v9106_v26  ;;  %v9227_v26 = vshrl.u32 %v14792_v62, 16  ;;  %v9020_v62 = vld [vmem:[#allocation3 + $0x108] sm:$0x1f] }
 0x60f   : > { %v9215_v4 = vrot.slane %v9213_v48, 5  ;;  %v9241_v7 = vor.u32 %v9240_v57, %v9237_v38  ;;  %v9269_v40 = vshrl.u32 %v9020_v62, 16 }
 0x610   : > { %v9229_v51 = vrot.slane %v9227_v26, 4 }
 0x611   : > { %v9216_v16 = vor.u32 %v9215_v4, %v9212_v18  ;;  %v9271_v47 = vrot.slane %v9269_v40, 4 }
 0x612   : > { %v9233_v43 = vor.u32 %v9232_v5, %v9229_v51 }
 0x613   : > { %v9225_v11 = vsel %vm15684_vm10, %v9216_v16, %v9224_v46 }
 0x614   : > { %v9242_v53 = vsel %vm15685_vm11, %v9233_v43, %v9241_v7 }
 0x615   : > { %11728 = vmatmul.mubr.bf16.gmra.mrb[24].mxu1 %v9123_v3  ;;  %v9244_v3 = vshrl.u32 %v14803_v0, 16  ;;  %v9263_v0 = vrot.slane %v9261_v29, 4 }
 0x616   : > { %11731 = vmatprep.mubr.bf16.mxu1 %v9140_v30  ;;  %v9272_v30 = vshll.u32 %v9020_v62, 16 }
 0x617   : > { %v9246_v37 = vrot.slane %v9244_v3, 4  ;;  %v9267_v14 = vor.u32 %v9266_v39, %v9263_v0 }
 0x618   : > { %v9274_v20 = vrot.slane %v9272_v30, 5 }
 0x619   : > { %v9250_v25 = vor.u32 %v9249_v54, %v9246_v37 }
 0x61a   : > { %v9275_v44 = vor.u32 %v9274_v20, %v9271_v47 }
 0x61b   : > { %v9259_v36 = vsel %vm15686_vm1, %v9250_v25, %v9258_v52 }
 0x61c   : > { %v9276_v10 = vsel %vm15687_vm2, %v9267_v14, %v9275_v44 }
 0x61d   : > { %11732 = vmatmul.mubr.bf16.gmra.mrb[28].mxu1 %v9157_v56  ;;  %v9280_v56 = vrot.slane %v9278_v6, 4 }
 0x61e   : > { %11735 = vmatprep.mubr.bf16.mxu1 %v9174_v23  ;;  %v9283_v23 = vrot.slane %v9281_v58, 5 }
 0x620   : > { %v9284_v2 = vor.u32 %v9283_v23, %v9280_v56 }
 0x622   : > { %v9293_v27 = vsel %vm15688_vm0, %v9284_v2, %v9292_v55 }
 0x625   : > { %11736 = vmatmul.mubr.bf16.gmra.mrb[32].mxu1 %v9191_v31 }
 0x626   : > { %11739 = vmatprep.mubr.bf16.mxu1 %v9208_v61 }
 0x62d   : > { %11740 = vmatmul.mubr.bf16.gmra.mrb[36].mxu1 %v9225_v11 }
 0x62e   : > { %11743 = vmatprep.mubr.bf16.mxu1 %v9242_v53 }
 0x635   : > { %11744 = vmatmul.mubr.bf16.gmra.mrb[40].mxu1 %v9259_v36 }
 0x636   : > { %11747 = vmatprep.mubr.bf16.mxu1 %v9276_v10 }
 0x63d   : > { %11748 = vmatmul.mubr.bf16.gmra.mrb[44].mxu1 %v9293_v27 }
 0x673   : > { %v14955_v27 = vpop.f32.mrb[32].mxu0 }
 0x6d8   : > { %v14871_v41 = vpop.f32.mrb[16].mxu1 }
 0x6d9   : > { %v14873_v24 = vpop.f32.mrb[17].mxu1 }
 0x6da   : > { %v14875_v49 = vpop.f32.mrb[18].mxu1 }
 0x6db   : > { %v14877_v48 = vpop.f32.mrb[19].mxu1 }
 0x6dc   : > { %v9568_v13 = vadd.f32 %v14877_v48, %v14873_v24 }
 0x6de   : > { %v9569_v21 = vadd.f32 %v14871_v41, %v9568_v13 }
 0x6e0   : > { %v14882_v26 = vpop.f32.mrb[20].mxu1  ;;  %v9570_v35 = vadd.f32 %v14875_v49, %v9569_v21 }
 0x6e1   : > { %v14885_v63 = vpop.f32.mrb[21].mxu1 }
 0x6e2   : > { %v9571_v19 = vadd.f32 %v9570_v35, %v14885_v63  ;;  %v14888_v17 = vpop.f32.mrb[22].mxu1 }
 0x6e3   : > { %v14890_v60 = vpop.f32.mrb[23].mxu1 }
 0x6e4   : > { %v9572_v18 = vadd.f32 %v9571_v19, %v14890_v60  ;;  %v14957_v19 = vpop.f32.mrb[33].mxu0 }
 0x6e6   : > { %v9573_v31 = vadd.f32 %v14882_v26, %v9572_v18  ;;  %v14959_v18 = vpop.f32.mrb[34].mxu0 }
 0x6e8   : > { %v14894_v4 = vpop.f32.mrb[24].mxu1  ;;  %v9574_v34 = vadd.f32 %v14888_v17, %v9573_v31 }
 0x6e9   : > { %v14897_v45 = vpop.f32.mrb[25].mxu1 }
 0x6ea   : > { %v9575_v51 = vadd.f32 %v9574_v34, %v14897_v45  ;;  %v14900_v5 = vpop.f32.mrb[26].mxu1  ;;  %v14961_v34 = vpop.f32.mrb[35].mxu0 }
 0x6eb   : > { %v14902_v38 = vpop.f32.mrb[27].mxu1 }
 0x6ec   : > { %v9576_v57 = vadd.f32 %v9575_v51, %v14902_v38  ;;  %v14963_v51 = vpop.f32.mrb[36].mxu0 }
 0x6ee   : > { %v9577_v61 = vadd.f32 %v14894_v4, %v9576_v57 }
 0x6f0   : > { %v14906_v15 = vpop.f32.mrb[28].mxu1  ;;  %v9578_v62 = vadd.f32 %v14900_v5, %v9577_v61  ;;  %v14965_v61 = vpop.f32.mrb[37].mxu0 }
 0x6f1   : > { %v14909_v16 = vpop.f32.mrb[29].mxu1 }
 0x6f2   : > { %v9579_v46 = vadd.f32 %v9578_v62, %v14909_v16  ;;  %v14912_v3 = vpop.f32.mrb[30].mxu1  ;;  %v14967_v62 = vpop.f32.mrb[38].mxu0 }
 0x6f3   : > { %v14914_v1 = vpop.f32.mrb[31].mxu1 }
 0x6f4   : > { %v9580_v43 = vadd.f32 %v9579_v46, %v14914_v1 }
 0x6f6   : > { %v9581_v7 = vadd.f32 %v14906_v15, %v9580_v43  ;;  %v14969_v43 = vpop.f32.mrb[39].mxu0 }
 0x6f8   : > { %v14918_v59 = vpop.f32.mrb[32].mxu1  ;;  %v9582_v12 = vadd.f32 %v14912_v3, %v9581_v7  ;;  %v14971_v7 = vpop.f32.mrb[40].mxu0 }
 0x6f9   : > { %v14921_v29 = vpop.f32.mrb[33].mxu1 }
 0x6fa   : > { %v9583_v9 = vadd.f32 %v9582_v12, %v14921_v29  ;;  %v14924_v40 = vpop.f32.mrb[34].mxu1 }
 0x6fb   : > { %v14926_v30 = vpop.f32.mrb[35].mxu1 }
 0x6fc   : > { %v9584_v11 = vadd.f32 %v9583_v9, %v14926_v30  ;;  %v14973_v9 = vpop.f32.mrb[41].mxu0 }
 0x6fe   : > { %v9585_v37 = vadd.f32 %v14918_v59, %v9584_v11  ;;  %v14975_v11 = vpop.f32.mrb[42].mxu0 }
 0x700   : > { %v14930_v42 = vpop.f32.mrb[36].mxu1  ;;  %v9586_v53 = vadd.f32 %v14924_v40, %v9585_v37 }
 0x701   : > { %v14933_v54 = vpop.f32.mrb[37].mxu1 }
 0x702   : > { %v9587_v50 = vadd.f32 %v9586_v53, %v14933_v54  ;;  %v14936_v32 = vpop.f32.mrb[38].mxu1 }
 0x703   : > { %v14938_v0 = vpop.f32.mrb[39].mxu1 }
 0x704   : > { %v9588_v39 = vadd.f32 %v9587_v50, %v14938_v0 }
 0x706   : > { %v9589_v47 = vadd.f32 %v14930_v42, %v9588_v39 }
 0x708   : > { %v14942_v20 = vpop.f32.mrb[40].mxu1  ;;  %v9590_v6 = vadd.f32 %v14936_v32, %v9589_v47  ;;  %v14989_v47 = vpop.f32.mrb[43].mxu0 }
 0x709   : > { %v14945_v58 = vpop.f32.mrb[41].mxu1 }
 0x70a   : > { %v9591_v33 = vadd.f32 %v9590_v6, %v14945_v58  ;;  %v14948_v22 = vpop.f32.mrb[42].mxu1 }
 0x70b   : > { %v9508_v25 = vpop.f32.mrb[43].mxu1 }
 0x70c   : > { %v9592_v52 = vadd.f32 %v9591_v33, %v9508_v25 }
 0x70e   : > { %v9593_v14 = vadd.f32 %v14942_v20, %v9592_v52  ;;  %v15003_v52 = vpop.f32.mrb[44].mxu0 }
 0x710   : > { %v14951_v44 = vpop.f32.mrb[44].mxu1  ;;  %v9594_v56 = vadd.f32 %v14948_v22, %v9593_v14  ;;  %v15017_v14 = vpop.f32.mrb[45].mxu0 }
 0x711   : > { %v9521_v23 = vpop.f32.mrb[45].mxu1 }
 0x712   : > { %v9595_v8 = vadd.f32 %v9594_v56, %v9521_v23  ;;  %v11750_v28 = vpop.f32.mrb[46].mxu1  ;;  %v15031_v56 = vpop.f32.mrb[46].mxu0 }
 0x713   : > { %v9524_v36 = vpop.f32.mrb[47].mxu1 }
 0x714   : > { %v9596_v10 = vadd.f32 %v9595_v8, %v9524_v36  ;;  %v15045_v8 = vpop.f32.mrb[47].mxu0 }
 0x716   : > { %v9597_v2 = vadd.f32 %v14951_v44, %v9596_v10  ;;  %v15059_v10 = vpop.f32.mrb[48].mxu0 }
 0x718   : > { %v9598_v55 = vadd.f32 %v11750_v28, %v9597_v2 }
 0x71a   : > { %v9599_v13 = vrot.slane %v9598_v55, 4 }
 0x71c   : > { %v9600_v21 = vadd.f32 %v9599_v13, %v9598_v55 }
 0x71e   : > { %v9601_v35 = vrot.slane %v9600_v21, 2 }
 0x720   : > { %v9602_v31 = vadd.f32 %v9601_v35, %v9600_v21 }
 0x722   : > { %v9603_v57 = vrot.slane %v9602_v31, 1 }
 0x724   : > { %v9604_v46 = vadd.f32 %v9603_v57, %v9602_v31 }
 0x726   : > { %v9605_v12 = vmul.f32 0.00390625, %v9604_v46 }
 0x728   : > { %v14978_v37 = vsub.f32 %v14873_v24, %v9605_v12  ;;  %v14981_v53 = vsub.f32 %v14877_v48, %v9605_v12  ;;  %v14984_v50 = vsub.f32 %v14871_v41, %v9605_v12  ;;  %v14987_v39 = vsub.f32 %v14875_v49, %v9605_v12 }
 0x729   : > { %v14992_v6 = vsub.f32 %v14885_v63, %v9605_v12  ;;  %v14995_v33 = vsub.f32 %v14890_v60, %v9605_v12  ;;  %v14998_v24 = vsub.f32 %v14882_v26, %v9605_v12  ;;  %v15001_v48 = vsub.f32 %v14888_v17, %v9605_v12 }
 0x72a   : > { %15689 = vst [vmem:[#allocation10_spill] sm:$0xff] %v14978_v37  ;;  %15690 = vst [vmem:[#allocation11_spill] sm:$0xff] %v14981_v53  ;;  %v15006_v41 = vsub.f32 %v14897_v45, %v9605_v12  ;;  %v15009_v49 = vsub.f32 %v14902_v38, %v9605_v12  ;;  %v15012_v63 = vsub.f32 %v14894_v4, %v9605_v12 }
 0x72b   : > { %15691 = vst [vmem:[#allocation12_spill] sm:$0xff] %v14984_v50  ;;  %15692 = vst [vmem:[#allocation13_spill] sm:$0xff] %v14987_v39  ;;  %v15015_v60 = vsub.f32 %v14900_v5, %v9605_v12  ;;  %v15020_v26 = vsub.f32 %v14909_v16, %v9605_v12  ;;  %v15023_v17 = vsub.f32 %v14914_v1, %v9605_v12 }
 0x72c   : > { %15693 = vst [vmem:[#allocation14_spill] sm:$0xff] %v14995_v33  ;;  %v15026_v45 = vsub.f32 %v14906_v15, %v9605_v12  ;;  %v15029_v38 = vsub.f32 %v14912_v3, %v9605_v12  ;;  %v15034_v4 = vsub.f32 %v14921_v29, %v9605_v12  ;;  %v15037_v5 = vsub.f32 %v14926_v30, %v9605_v12 }
 0x72d   : > { %v15040_v16 = vsub.f32 %v14918_v59, %v9605_v12  ;;  %v15043_v1 = vsub.f32 %v14924_v40, %v9605_v12  ;;  %v15048_v15 = vsub.f32 %v14933_v54, %v9605_v12  ;;  %v15051_v3 = vsub.f32 %v14938_v0, %v9605_v12  ;;  %v15072_v0 = vpop.f32.mrb[49].mxu0 }
 0x72e   : > { %v15054_v29 = vsub.f32 %v14930_v42, %v9605_v12  ;;  %v15057_v30 = vsub.f32 %v14936_v32, %v9605_v12  ;;  %v15062_v59 = vsub.f32 %v14945_v58, %v9605_v12  ;;  %v15064_v40 = vsub.f32 %v9508_v25, %v9605_v12  ;;  %v15083_v58 = vpop.f32.mrb[50].mxu0 }
 0x72f   : > { %v15067_v2 = vsub.f32 %v14942_v20, %v9605_v12  ;;  %v15070_v54 = vsub.f32 %v14948_v22, %v9605_v12  ;;  %v15074_v42 = vsub.f32 %v9521_v23, %v9605_v12  ;;  %v15076_v55 = vsub.f32 %v9524_v36, %v9605_v12  ;;  %v15085_v25 = vpop.f32.mrb[51].mxu0 }
 0x730   : > { %15694 = vst [vmem:[#allocation15_spill] sm:$0xff] %v15064_v40  ;;  %v15079_v32 = vsub.f32 %v14951_v44, %v9605_v12  ;;  %v15081_v13 = vsub.f32 %v11750_v28, %v9605_v12  ;;  %v15087_v20 = vpop.f32.mrb[52].mxu0  ;;  %v9638_v23 = vmul.f32 %v14978_v37, %v14978_v37  ;;  %v9639_v36 = vmul.f32 %v14981_v53, %v14981_v53 }
 0x731   : > { %15695 = vst [vmem:[#allocation16_spill] sm:$0xff] %v15067_v2  ;;  %15696 = vst [vmem:[#allocation17_spill] sm:$0xff] %v15070_v54  ;;  %v15089_v21 = vpop.f32.mrb[53].mxu0  ;;  %v9640_v57 = vmul.f32 %v14984_v50, %v14984_v50  ;;  %v9641_v37 = vmul.f32 %v14987_v39, %v14987_v39  ;;  %v9644_v50 = vmul.f32 %v14998_v24, %v14998_v24 }
 0x732   : > { %15697 = vst [vmem:[#allocation18_spill] sm:$0xff] %v15074_v42  ;;  %15698 = vst [vmem:[#allocation19_spill] sm:$0xff] %v15089_v21  ;;  %v15091_v22 = vpop.f32.mrb[54].mxu0  ;;  %v9670_v46 = vadd.f32 %v9639_v36, %v9638_v23  ;;  %v9643_v23 = vmul.f32 %v14995_v33, %v14995_v33  ;;  %v9646_v39 = vmul.f32 %v15006_v41, %v15006_v41 }
 0x733   : > { %15699 = vst [vmem:[#allocation20_spill] sm:$0xff] %v15091_v22  ;;  %v15097_v44 = vpop.f32.mrb[55].mxu0  ;;  %v9648_v33 = vmul.f32 %v15012_v63, %v15012_v63 }
 0x734   : > { %15700 = vst [vmem:[#allocation21_spill] sm:$0xff] %v15097_v44  ;;  %v15099_v28 = vpop.f32.mrb[56].mxu0  ;;  %v9671_v53 = vadd.f32 %v9670_v46, %v9640_v57  ;;  %v9645_v57 = vmul.f32 %v15001_v48, %v15001_v48 }
 0x735   : > { %15701 = vst [vmem:[#allocation22_spill] sm:$0xff] %v15099_v28  ;;  %v15101_v35 = vpop.f32.mrb[57].mxu0 }
 0x736   : > { %15702 = vst [vmem:[#allocation23_spill] sm:$0xff] %v15101_v35  ;;  %v15103_v31 = vpop.f32.mrb[58].mxu0  ;;  %v9642_v35 = vmul.f32 %v14992_v6, %v14992_v6 }
 0x737   : > { %15703 = vst [vmem:[#allocation24_spill] sm:$0xff] %v15103_v31  ;;  %v15107_v12 = vpop.f32.mrb[59].mxu0  ;;  %v9672_v31 = vadd.f32 %v9671_v53, %v9641_v37  ;;  %v9647_v37 = vmul.f32 %v15009_v49, %v15009_v49 }
 0x738   : > { %v15109_v22 = vpop.f32.mrb[60].mxu0 }
 0x739   : > { %15704 = vst [vmem:[#allocation25_spill] sm:$0xff] %v15109_v22  ;;  %v15113_v21 = vpop.f32.mrb[61].mxu0  ;;  %v9673_v36 = vadd.f32 %v9672_v31, %v9642_v35  ;;  %v9649_v31 = vmul.f32 %v15015_v60, %v15015_v60 }
 0x73a   : > { %v15115_v44 = vpop.f32.mrb[62].mxu0 }
 0x73b   : > { %15705 = vst [vmem:[#allocation26_spill] sm:$0xff] %v15115_v44  ;;  %v15119_v28 = vpop.f32.mrb[63].mxu0  ;;  %v9674_v22 = vadd.f32 %v9673_v36, %v9643_v23  ;;  %v9650_v36 = vmul.f32 %v15020_v26, %v15020_v26 }
 0x73d   : > { %v9675_v46 = vadd.f32 %v9674_v22, %v9644_v50  ;;  %v9651_v22 = vmul.f32 %v15023_v17, %v15023_v17 }
 0x73f   : > { %v9676_v44 = vadd.f32 %v9675_v46, %v9645_v57  ;;  %v9652_v46 = vmul.f32 %v15026_v45, %v15026_v45 }
 0x741   : > { %v9677_v53 = vadd.f32 %v9676_v44, %v9646_v39  ;;  %v9653_v44 = vmul.f32 %v15029_v38, %v15029_v38 }
 0x743   : > { %v9678_v35 = vadd.f32 %v9677_v53, %v9647_v37  ;;  %v9654_v53 = vmul.f32 %v15034_v4, %v15034_v4 }
 0x745   : > { %v9679_v23 = vadd.f32 %v9678_v35, %v9648_v33  ;;  %v9655_v35 = vmul.f32 %v15037_v5, %v15037_v5 }
 0x747   : > { %v9680_v50 = vadd.f32 %v9679_v23, %v9649_v31  ;;  %v9656_v23 = vmul.f32 %v15040_v16, %v15040_v16 }
 0x749   : > { %v9681_v57 = vadd.f32 %v9680_v50, %v9650_v36  ;;  %v9657_v50 = vmul.f32 %v15043_v1, %v15043_v1 }
 0x74b   : > { %v9682_v39 = vadd.f32 %v9681_v57, %v9651_v22  ;;  %v9658_v57 = vmul.f32 %v15048_v15, %v15048_v15 }
 0x74d   : > { %v9683_v37 = vadd.f32 %v9682_v39, %v9652_v46  ;;  %v9659_v39 = vmul.f32 %v15051_v3, %v15051_v3 }
 0x74f   : > { %v9684_v33 = vadd.f32 %v9683_v37, %v9653_v44  ;;  %v9660_v37 = vmul.f32 %v15054_v29, %v15054_v29 }
 0x751   : > { %v9685_v31 = vadd.f32 %v9684_v33, %v9654_v53  ;;  %v9661_v33 = vmul.f32 %v15057_v30, %v15057_v30 }
 0x753   : > { %v9686_v36 = vadd.f32 %v9685_v31, %v9655_v35  ;;  %v9662_v31 = vmul.f32 %v15062_v59, %v15062_v59 }
 0x755   : > { %v9687_v22 = vadd.f32 %v9686_v36, %v9656_v23  ;;  %v9663_v36 = vmul.f32 %v15064_v40, %v15064_v40 }
 0x757   : > { %v9688_v46 = vadd.f32 %v9687_v22, %v9657_v50  ;;  %v9664_v22 = vmul.f32 %v15067_v2, %v15067_v2 }
 0x759   : > { %v9689_v44 = vadd.f32 %v9688_v46, %v9658_v57  ;;  %v9665_v46 = vmul.f32 %v15070_v54, %v15070_v54 }
 0x75b   : > { %v9690_v53 = vadd.f32 %v9689_v44, %v9659_v39  ;;  %v9666_v44 = vmul.f32 %v15074_v42, %v15074_v42 }
 0x75d   : > { %v9691_v35 = vadd.f32 %v9690_v53, %v9660_v37  ;;  %v9667_v53 = vmul.f32 %v15076_v55, %v15076_v55 }
 0x75f   : > { %v9692_v23 = vadd.f32 %v9691_v35, %v9661_v33  ;;  %v9668_v35 = vmul.f32 %v15079_v32, %v15079_v32 }
 0x761   : > { %v9693_v50 = vadd.f32 %v9692_v23, %v9662_v31  ;;  %v9669_v23 = vmul.f32 %v15081_v13, %v15081_v13 }
 0x763   : > { %v9694_v57 = vadd.f32 %v9693_v50, %v9663_v36 }
 0x765   : > { %v9695_v39 = vadd.f32 %v9694_v57, %v9664_v22 }
 0x767   : > { %v9696_v37 = vadd.f32 %v9695_v39, %v9665_v46 }
 0x769   : > { %v9697_v33 = vadd.f32 %v9696_v37, %v9666_v44  ;;  %v10587_v44 = vld [vmem:[%s15494_s4] ss:$0 sm:$0xff] }
 0x76a   : > { %v15179_v37 = vadd.f32 %v14955_v27, %v10587_v44  ;;  %v15200_v27 = vadd.f32 %v10587_v44, %v14969_v43  ;;  %v15221_v43 = vadd.f32 %v15031_v56, %v10587_v44  ;;  %v15706_v56 = vld [vmem:[#allocation19_spill] sm:$0xff] }
 0x76b   : > { %v9698_v31 = vadd.f32 %v9697_v33, %v9667_v53  ;;  %v15182_v53 = vadd.f32 %v10587_v44, %v14957_v19  ;;  %v15185_v33 = vadd.f32 %v14959_v18, %v10587_v44  ;;  %v15203_v19 = vadd.f32 %v14971_v7, %v10587_v44 }
 0x76c   : > { %v15206_v18 = vadd.f32 %v10587_v44, %v14973_v9  ;;  %v15224_v7 = vadd.f32 %v10587_v44, %v15045_v8  ;;  %v15227_v9 = vadd.f32 %v15059_v10, %v10587_v44  ;;  %v15707_v8 = vld [vmem:[#allocation20_spill] sm:$0xff]  ;;  %v15708_v10 = vld [vmem:[#allocation21_spill] sm:$0xff] }
 0x76d   : > { %v9699_v36 = vadd.f32 %v9698_v31, %v9668_v35  ;;  %v15242_v35 = vadd.f32 %v10587_v44, %v15706_v56  ;;  %v15245_v31 = vadd.f32 %v15707_v8, %v10587_v44  ;;  %v15266_v56 = vadd.f32 %v10587_v44, %v15113_v21  ;;  %v15719_v8 = vld [vmem:[#allocation26_spill] sm:$0xff] }
 0x76f   : > { %v9700_v50 = vadd.f32 %v9699_v36, %v9669_v23  ;;  %v15248_v23 = vadd.f32 %v10587_v44, %v15708_v10  ;;  %v15269_v10 = vadd.f32 %v15719_v8, %v10587_v44 }
 0x771   : > { %v9701_v2 = vrot.slane %v9700_v50, 4 }
 0x773   : > { %v9702_v54 = vadd.f32 %v9701_v2, %v9700_v50  ;;  %v15188_v2 = vadd.f32 %v10587_v44, %v14961_v34  ;;  %v15209_v34 = vadd.f32 %v14975_v11, %v10587_v44  ;;  %v15230_v11 = vadd.f32 %v10587_v44, %v15072_v0  ;;  %v15709_v0 = vld [vmem:[#allocation22_spill] sm:$0xff] }
 0x774   : > { %v15251_v36 = vadd.f32 %v15709_v0, %v10587_v44  ;;  %v15272_v0 = vadd.f32 %v10587_v44, %v15119_v28 }
 0x775   : > { %v9703_v22 = vrot.slane %v9702_v54, 2 }
 0x776   : > { %15710 = vst [vmem:[#allocation19_spill] sm:$0xff] %v15251_v36  ;;  %15721 = vst [vmem:[#allocation26_spill] sm:$0xff] %v15272_v0 }
 0x777   : > { %v9704_v57 = vadd.f32 %v9703_v22, %v9702_v54  ;;  %v15194_v54 = vadd.f32 %v10587_v44, %v14965_v61  ;;  %v15215_v61 = vadd.f32 %v15003_v52, %v10587_v44  ;;  %v15236_v52 = vadd.f32 %v10587_v44, %v15085_v25  ;;  %v15713_v25 = vld [vmem:[#allocation24_spill] sm:$0xff] }
 0x778   : > { %v15257_v22 = vadd.f32 %v15713_v25, %v10587_v44  ;;  %15718 = vst [vmem:[#allocation24_spill] sm:$0xff] %v15266_v56  ;;  %v15723_v25 = vld [vmem:[#allocation10_spill] sm:$0xff] }
 0x779   : > { %v9705_v40 = vrot.slane %v9704_v57, 1  ;;  %v15727_v56 = vld [vmem:[#allocation14_spill] sm:$0xff] }
 0x77a   : > { %15714 = vst [vmem:[#allocation21_spill] sm:$0xff] %v15257_v22 }
 0x77b   : > { %v9706_v42 = vadd.f32 %v9705_v40, %v9704_v57  ;;  %v15191_v40 = vadd.f32 %v14963_v51, %v10587_v44  ;;  %v15212_v51 = vadd.f32 %v10587_v44, %v14989_v47  ;;  %v15233_v47 = vadd.f32 %v15083_v58, %v10587_v44  ;;  %v15711_v58 = vld [vmem:[#allocation23_spill] sm:$0xff] }
 0x77c   : > { %v15254_v50 = vadd.f32 %v10587_v44, %v15711_v58 }
 0x77d   : > { %v9707_v46 = vmul.f32 0.00390625, %v9706_v42  ;;  %v15197_v42 = vadd.f32 %v14967_v62, %v10587_v44  ;;  %v15218_v62 = vadd.f32 %v10587_v44, %v15017_v14  ;;  %v15239_v14 = vadd.f32 %v15087_v20, %v10587_v44 }
 0x77e   : > { %15712 = vst [vmem:[#allocation20_spill] sm:$0xff] %v15254_v50  ;;  %v15260_v20 = vadd.f32 %v10587_v44, %v15107_v12  ;;  %v15725_v50 = vld [vmem:[#allocation12_spill] sm:$0xff] }
 0x77f   : > { %v9708_v39 = vadd.f32 1e-05, %v9707_v46  ;;  %v15716_v46 = vld [vmem:[#allocation25_spill] sm:$0xff] }
 0x780   : > { %15715 = vst [vmem:[#allocation22_spill] sm:$0xff] %v15260_v20  ;;  %15720 = vst [vmem:[#allocation25_spill] sm:$0xff] %v15269_v10  ;;  %v15724_v20 = vld [vmem:[#allocation11_spill] sm:$0xff] }
 0x781   : > { %12487 = vrsqrt.f32 %v9708_v39  ;;  %v15263_v39 = vadd.f32 %v15716_v46, %v10587_v44 }
 0x783   : > { %15717 = vst [vmem:[#allocation23_spill] sm:$0xff] %v15263_v39  ;;  %v15726_v39 = vld [vmem:[#allocation13_spill] sm:$0xff] }
 0x78b   : > { %v12488_v57 = vpop.eup %12487 }
 0x78c   : > { %v15275_v58 = vmul.f32 %v12488_v57, %v15076_v55  ;;  %v9710_v12 = vmul.f32 %v12488_v57, %v15723_v25  ;;  %v9711_v22 = vmul.f32 %v12488_v57, %v15724_v20  ;;  %v9712_v46 = vmul.f32 %v12488_v57, %v15725_v50 }
 0x78d   : > { %v9713_v36 = vmul.f32 %v12488_v57, %v15726_v39  ;;  %v9714_v21 = vmul.f32 %v12488_v57, %v14992_v6  ;;  %v9715_v8 = vmul.f32 %v12488_v57, %v15727_v56  ;;  %v9716_v10 = vmul.f32 %v12488_v57, %v14998_v24  ;;  %v15732_v56 = vld [vmem:[#allocation18_spill] sm:$0xff] }
 0x78e   : > { %15722 = vst [vmem:[#allocation27_spill] sm:$0xff] %v15275_v58  ;;  %v9717_v28 = vmul.f32 %v12488_v57, %v15001_v48  ;;  %v9718_v55 = vmul.f32 %v12488_v57, %v15006_v41  ;;  %v15287_v44 = vmul.f32 %v12488_v57, %v15009_v49  ;;  %v9720_v25 = vmul.f32 %v12488_v57, %v15012_v63 }
 0x78f   : > { %v15291_v20 = vmul.f32 %v12488_v57, %v15015_v60  ;;  %v15294_v50 = vmul.f32 %v12488_v57, %v15020_v26  ;;  %v15297_v6 = vmul.f32 %v12488_v57, %v15023_v17  ;;  %v9724_v24 = vmul.f32 %v12488_v57, %v15026_v45 }
 0x790   : > { %v15302_v48 = vmul.f32 %v12488_v57, %v15029_v38  ;;  %v15305_v41 = vmul.f32 %v12488_v57, %v15034_v4  ;;  %v15308_v49 = vmul.f32 %v12488_v57, %v15037_v5  ;;  %v15311_v63 = vmul.f32 %v12488_v57, %v15040_v16  ;;  %v15728_v5 = vld [vmem:[#allocation15_spill] sm:$0xff] }
 0x791   : > { %v15314_v60 = vmul.f32 %v12488_v57, %v15043_v1  ;;  %v15317_v26 = vmul.f32 %v12488_v57, %v15048_v15  ;;  %v15320_v17 = vmul.f32 %v12488_v57, %v15051_v3  ;;  %v15323_v45 = vmul.f32 %v12488_v57, %v15054_v29  ;;  %v15730_v1 = vld [vmem:[#allocation16_spill] sm:$0xff]  ;;  %v15731_v15 = vld [vmem:[#allocation17_spill] sm:$0xff] }
 0x792   : > { %v15326_v38 = vmul.f32 %v12488_v57, %v15057_v30  ;;  %v15329_v4 = vmul.f32 %v12488_v57, %v15062_v59  ;;  %v15332_v16 = vmul.f32 %v12488_v57, %v15728_v5  ;;  %v15335_v39 = vmul.f32 %v12488_v57, %v15730_v1 }
 0x793   : > { %v15340_v3 = vmul.f32 %v12488_v57, %v15731_v15  ;;  %v15343_v29 = vmul.f32 %v12488_v57, %v15732_v56  ;;  %v15346_v30 = vmul.f32 %v12488_v57, %v15079_v32  ;;  %v15349_v59 = vmul.f32 %v12488_v57, %v15081_v13 }
 0x794   : > { %15729 = vst [vmem:[#allocation10_spill] sm:$0xff] %v15332_v16  ;;  %v10076_v5 = vadd.f32 %v15179_v37, %v9712_v46  ;;  %v10074_v0 = vadd.f32 %v15182_v53, %v9710_v12  ;;  %v10077_v1 = vadd.f32 %v15185_v33, %v9713_v36  ;;  %v10075_v58 = vadd.f32 %v15188_v2, %v9711_v22 }
 0x795   : > { %15733 = vst [vmem:[#allocation11_spill] sm:$0xff] %v15343_v29  ;;  %v10080_v15 = vadd.f32 %v15191_v40, %v9716_v10  ;;  %v10078_v16 = vadd.f32 %v15194_v54, %v9714_v21  ;;  %v10081_v56 = vadd.f32 %v15197_v42, %v9717_v28  ;;  %v10079_v32 = vadd.f32 %v15200_v27, %v9715_v8 }
 0x796   : > { %vm10108_vm3 = vcmp.gt.f32.partialorder %v10076_v5, 0.0  ;;  %v10140_v29 = vmul.f32 0.2, %v10076_v5  ;;  %vm10106_vm4 = vcmp.gt.f32.partialorder %v10074_v0, 0.0  ;;  %v10138_v13 = vmul.f32 0.2, %v10074_v0 }
 0x797   : > { %vm10109_vm5 = vcmp.gt.f32.partialorder %v10077_v1, 0.0  ;;  %v10141_v37 = vmul.f32 0.2, %v10077_v1  ;;  %vm10107_vm6 = vcmp.gt.f32.partialorder %v10075_v58, 0.0  ;;  %v10139_v53 = vmul.f32 0.2, %v10075_v58 }
 0x798   : > { %v10172_v57 = vsel %vm10108_vm3, %v10076_v5, %v10140_v29  ;;  %v10170_v33 = vsel %vm10106_vm4, %v10074_v0, %v10138_v13  ;;  %vm10112_vm8 = vcmp.gt.f32.partialorder %v10080_v15, 0.0  ;;  %v10144_v2 = vmul.f32 0.2, %v10080_v15 }
 0x799   : > { %10204 = vst [vmem:[%s15359_s23 + $0x10] sm:$0xff] %v10172_v57  ;;  %10202 = vst [vmem:[%s15359_s23] sm:$0xff] %v10170_v33  ;;  %v10173_v40 = vsel %vm10109_vm5, %v10077_v1, %v10141_v37  ;;  %v10171_v54 = vsel %vm10107_vm6, %v10075_v58, %v10139_v53  ;;  %vm10110_vm12 = vcmp.gt.f32.partialorder %v10078_v16, 0.0  ;;  %v10142_v42 = vmul.f32 0.2, %v10078_v16  ;;  %v15734_v33 = vld [vmem:[#allocation19_spill] sm:$0xff] }
 0x79a   : > { %10205 = vst [vmem:[%s15359_s23 + $0x18] sm:$0xff] %v10173_v40  ;;  %10203 = vst [vmem:[%s15359_s23 + $0x8] sm:$0xff] %v10171_v54  ;;  %v10176_v27 = vsel %vm10112_vm8, %v10080_v15, %v10144_v2  ;;  %vm10113_vm13 = vcmp.gt.f32.partialorder %v10081_v56, 0.0  ;;  %v10145_v36 = vmul.f32 0.2, %v10081_v56  ;;  %vm10111_vm14 = vcmp.gt.f32.partialorder %v10079_v32, 0.0 }
 0x79b   : > { %10208 = vst [vmem:[%s15359_s23 + $0x30] sm:$0xff] %v10176_v27  ;;  %v10174_v22 = vsel %vm10110_vm12, %v10078_v16, %v10142_v42  ;;  %v10143_v10 = vmul.f32 0.2, %v10079_v32  ;;  %v10084_v0 = vadd.f32 %v15203_v19, %v9720_v25  ;;  %v10082_v12 = vadd.f32 %v15206_v18, %v9718_v55 }
 0x79c   : > { %10206 = vst [vmem:[%s15359_s23 + $0x20] sm:$0xff] %v10174_v22  ;;  %v10177_v46 = vsel %vm10113_vm13, %v10081_v56, %v10145_v36  ;;  %v10085_v58 = vadd.f32 %v15209_v34, %v15291_v20  ;;  %v10083_v21 = vadd.f32 %v15212_v51, %v15287_v44  ;;  %v10088_v8 = vadd.f32 %v15215_v61, %v9724_v24  ;;  %v15737_v22 = vld [vmem:[#allocation10_spill] sm:$0xff] }
 0x79d   : > { %10209 = vst [vmem:[%s15359_s23 + $0x38] sm:$0xff] %v10177_v46  ;;  %v10175_v28 = vsel %vm10111_vm14, %v10079_v32, %v10143_v10  ;;  %vm10116_vm15 = vcmp.gt.f32.partialorder %v10084_v0, 0.0  ;;  %v10148_v16 = vmul.f32 0.2, %v10084_v0  ;;  %vm10114_vm7 = vcmp.gt.f32.partialorder %v10082_v12, 0.0  ;;  %v15738_v10 = vld [vmem:[#allocation22_spill] sm:$0xff] }
 0x79e   : > { %10207 = vst [vmem:[%s15359_s23 + $0x28] sm:$0xff] %v10175_v28  ;;  %v10146_v19 = vmul.f32 0.2, %v10082_v12  ;;  %vm10117_vm9 = vcmp.gt.f32.partialorder %v10085_v58, 0.0  ;;  %v10149_v18 = vmul.f32 0.2, %v10085_v58  ;;  %v10086_v25 = vadd.f32 %v15218_v62, %v15294_v50 }
 0x79f   : > { %vm10115_vm10 = vcmp.gt.f32.partialorder %v10083_v21, 0.0  ;;  %v10180_v34 = vsel %vm10116_vm15, %v10084_v0, %v10148_v16  ;;  %v10147_v55 = vmul.f32 0.2, %v10083_v21  ;;  %vm10120_vm11 = vcmp.gt.f32.partialorder %v10088_v8, 0.0  ;;  %v15740_v16 = vld [vmem:[#allocation11_spill] sm:$0xff] }
 0x7a0   : > { %v10152_v51 = vmul.f32 0.2, %v10088_v8  ;;  %10212 = vst [vmem:[%s15359_s23 + $0x50] sm:$0xff] %v10180_v34  ;;  %v10178_v61 = vsel %vm10114_vm7, %v10082_v12, %v10146_v19  ;;  %v10181_v44 = vsel %vm10117_vm9, %v10085_v58, %v10149_v18  ;;  %v10089_v20 = vadd.f32 %v15221_v43, %v15302_v48  ;;  %v15739_v12 = vld [vmem:[#allocation23_spill] sm:$0xff]  ;;  %v15741_v19 = vld [vmem:[#allocation24_spill] sm:$0xff]  ;;  %v15742_v18 = vld [vmem:[#allocation25_spill] sm:$0xff] }
 0x7a1   : > { %10210 = vst [vmem:[%s15359_s23 + $0x40] sm:$0xff] %v10178_v61  ;;  %10213 = vst [vmem:[%s15359_s23 + $0x58] sm:$0xff] %v10181_v44  ;;  %v10179_v24 = vsel %vm10115_vm10, %v10083_v21, %v10147_v55  ;;  %v10087_v5 = vadd.f32 %v15224_v7, %v15297_v6  ;;  %v10092_v1 = vadd.f32 %v15227_v9, %v15311_v63  ;;  %vm10118_vm1 = vcmp.gt.f32.partialorder %v10086_v25, 0.0  ;;  %v15743_v61 = vld [vmem:[#allocation27_spill] sm:$0xff]  ;;  %v15744_v44 = vld [vmem:[#allocation26_spill] sm:$0xff] }
 0x7a2   : > { %v10184_v29 = vsel %vm10120_vm11, %v10088_v8, %v10152_v51  ;;  %10211 = vst [vmem:[%s15359_s23 + $0x48] sm:$0xff] %v10179_v24  ;;  %v10150_v15 = vmul.f32 0.2, %v10086_v25  ;;  %vm10121_vm2 = vcmp.gt.f32.partialorder %v10089_v20, 0.0  ;;  %v10153_v62 = vmul.f32 0.2, %v10089_v20 }
 0x7a3   : > { %10216 = vst [vmem:[%s15359_s23 + $0x70] sm:$0xff] %v10184_v29  ;;  %vm10119_vm0 = vcmp.gt.f32.partialorder %v10087_v5, 0.0  ;;  %v10151_v43 = vmul.f32 0.2, %v10087_v5  ;;  %vm10124_vm3 = vcmp.gt.f32.partialorder %v10092_v1, 0.0  ;;  %v10090_v7 = vadd.f32 %v15230_v11, %v15305_v41 }
 0x7a4   : > { %v10156_v50 = vmul.f32 0.2, %v10092_v1  ;;  %v10182_v48 = vsel %vm10118_vm1, %v10086_v25, %v10150_v15  ;;  %v10185_v56 = vsel %vm10121_vm2, %v10089_v20, %v10153_v62  ;;  %v10093_v9 = vadd.f32 %v15233_v47, %v15314_v60 }
 0x7a5   : > { %10214 = vst [vmem:[%s15359_s23 + $0x60] sm:$0xff] %v10182_v48  ;;  %10217 = vst [vmem:[%s15359_s23 + $0x78] sm:$0xff] %v10185_v56  ;;  %v10183_v6 = vsel %vm10119_vm0, %v10087_v5, %v10151_v43  ;;  %v10091_v32 = vadd.f32 %v15236_v52, %v15308_v49  ;;  %v10096_v13 = vadd.f32 %v15239_v14, %v15323_v45  ;;  %vm10122_vm4 = vcmp.gt.f32.partialorder %v10090_v7, 0.0 }
 0x7a6   : > { %v10188_v63 = vsel %vm10124_vm3, %v10092_v1, %v10156_v50  ;;  %10215 = vst [vmem:[%s15359_s23 + $0x68] sm:$0xff] %v10183_v6  ;;  %v10154_v37 = vmul.f32 0.2, %v10090_v7  ;;  %vm10125_vm5 = vcmp.gt.f32.partialorder %v10093_v9, 0.0  ;;  %v10157_v11 = vmul.f32 0.2, %v10093_v9 }
 0x7a7   : > { %10220 = vst [vmem:[%s15359_s23 + $0x90] sm:$0xff] %v10188_v63  ;;  %vm10123_vm6 = vcmp.gt.f32.partialorder %v10091_v32, 0.0  ;;  %v10155_v47 = vmul.f32 0.2, %v10091_v32  ;;  %vm10128_vm8 = vcmp.gt.f32.partialorder %v10096_v13, 0.0  ;;  %v10094_v52 = vadd.f32 %v15242_v35, %v15317_v26 }
 0x7a8   : > { %v10160_v41 = vmul.f32 0.2, %v10096_v13  ;;  %v10186_v60 = vsel %vm10122_vm4, %v10090_v7, %v10154_v37  ;;  %v10189_v53 = vsel %vm10125_vm5, %v10093_v9, %v10157_v11  ;;  %v10097_v14 = vadd.f32 %v15245_v31, %v15326_v38 }
 0x7a9   : > { %10218 = vst [vmem:[%s15359_s23 + $0x80] sm:$0xff] %v10186_v60  ;;  %10221 = vst [vmem:[%s15359_s23 + $0x98] sm:$0xff] %v10189_v53  ;;  %v10187_v49 = vsel %vm10123_vm6, %v10091_v32, %v10155_v47  ;;  %v10095_v57 = vadd.f32 %v15248_v23, %v15320_v17  ;;  %v10100_v2 = vadd.f32 %v15734_v33, %v15335_v39  ;;  %vm10126_vm12 = vcmp.gt.f32.partialorder %v10094_v52, 0.0  ;;  %v15735_v23 = vld [vmem:[#allocation20_spill] sm:$0xff]  ;;  %v15736_v39 = vld [vmem:[#allocation21_spill] sm:$0xff] }
 0x7aa   : > { %v10192_v45 = vsel %vm10128_vm8, %v10096_v13, %v10160_v41  ;;  %10219 = vst [vmem:[%s15359_s23 + $0x88] sm:$0xff] %v10187_v49  ;;  %v10158_v40 = vmul.f32 0.2, %v10094_v52  ;;  %vm10129_vm13 = vcmp.gt.f32.partialorder %v10097_v14, 0.0  ;;  %v10161_v35 = vmul.f32 0.2, %v10097_v14 }
 0x7ab   : > { %10224 = vst [vmem:[%s15359_s23 + $0xb0] sm:$0xff] %v10192_v45  ;;  %vm10127_vm14 = vcmp.gt.f32.partialorder %v10095_v57, 0.0  ;;  %v10159_v31 = vmul.f32 0.2, %v10095_v57  ;;  %vm10132_vm15 = vcmp.gt.f32.partialorder %v10100_v2, 0.0  ;;  %v10098_v17 = vadd.f32 %v15735_v23, %v15329_v4 }
 0x7ac   : > { %v10164_v26 = vmul.f32 0.2, %v10100_v2  ;;  %v10190_v38 = vsel %vm10126_vm12, %v10094_v52, %v10158_v40  ;;  %v10193_v54 = vsel %vm10129_vm13, %v10097_v14, %v10161_v35  ;;  %v10101_v42 = vadd.f32 %v15736_v39, %v15340_v3 }
 0x7ad   : > { %10222 = vst [vmem:[%s15359_s23 + $0xa0] sm:$0xff] %v10190_v38  ;;  %10225 = vst [vmem:[%s15359_s23 + $0xb8] sm:$0xff] %v10193_v54  ;;  %v10191_v27 = vsel %vm10127_vm14, %v10095_v57, %v10159_v31  ;;  %v10099_v0 = vadd.f32 %v15738_v10, %v15737_v22  ;;  %v10104_v46 = vadd.f32 %v15739_v12, %v15346_v30  ;;  %vm10130_vm7 = vcmp.gt.f32.partialorder %v10098_v17, 0.0 }
 0x7ae   : > { %v10196_v36 = vsel %vm10132_vm15, %v10100_v2, %v10164_v26  ;;  %10223 = vst [vmem:[%s15359_s23 + $0xa8] sm:$0xff] %v10191_v27  ;;  %v10162_v4 = vmul.f32 0.2, %v10098_v17  ;;  %vm10133_vm9 = vcmp.gt.f32.partialorder %v10101_v42, 0.0  ;;  %v10165_v3 = vmul.f32 0.2, %v10101_v42 }
 0x7af   : > { %10228 = vst [vmem:[%s15359_s23 + $0xd0] sm:$0xff] %v10196_v36  ;;  %vm10131_vm10 = vcmp.gt.f32.partialorder %v10099_v0, 0.0  ;;  %v10163_v58 = vmul.f32 0.2, %v10099_v0  ;;  %vm10136_vm11 = vcmp.gt.f32.partialorder %v10104_v46, 0.0  ;;  %v10102_v30 = vadd.f32 %v15741_v19, %v15740_v16 }
 0x7b0   : > { %v10168_v21 = vmul.f32 0.2, %v10104_v46  ;;  %v10194_v8 = vsel %vm10130_vm7, %v10098_v17, %v10162_v4  ;;  %v10197_v28 = vsel %vm10133_vm9, %v10101_v42, %v10165_v3  ;;  %v10105_v34 = vadd.f32 %v15742_v18, %v15349_v59 }
 0x7b1   : > { %10226 = vst [vmem:[%s15359_s23 + $0xc0] sm:$0xff] %v10194_v8  ;;  %10229 = vst [vmem:[%s15359_s23 + $0xd8] sm:$0xff] %v10197_v28  ;;  %v10195_v55 = vsel %vm10131_vm10, %v10099_v0, %v10163_v58  ;;  %v10103_v25 = vadd.f32 %v15744_v44, %v15743_v61  ;;  %vm10134_vm1 = vcmp.gt.f32.partialorder %v10102_v30, 0.0  ;;  %v10166_v20 = vmul.f32 0.2, %v10102_v30 }
 0x7b2   : > { %v10200_v51 = vsel %vm10136_vm11, %v10104_v46, %v10168_v21  ;;  %10227 = vst [vmem:[%s15359_s23 + $0xc8] sm:$0xff] %v10195_v55  ;;  %vm10137_vm2 = vcmp.gt.f32.partialorder %v10105_v34, 0.0  ;;  %v10169_v59 = vmul.f32 0.2, %v10105_v34 }
 0x7b3   : > { %10232 = vst [vmem:[%s15359_s23 + $0xf0] sm:$0xff] %v10200_v51  ;;  %vm10135_vm0 = vcmp.gt.f32.partialorder %v10103_v25, 0.0  ;;  %v10167_v24 = vmul.f32 0.2, %v10103_v25  ;;  %v10198_v29 = vsel %vm10134_vm1, %v10102_v30, %v10166_v20 }
 0x7b4   : > { %v10201_v5 = vsel %vm10137_vm2, %v10105_v34, %v10169_v59  ;;  %10230 = vst [vmem:[%s15359_s23 + $0xe0] sm:$0xff] %v10198_v29 }
 0x7b5   : > { %10233 = vst [vmem:[%s15359_s23 + $0xf8] sm:$0xff] %v10201_v5  ;;  %v10199_v1 = vsel %vm10135_vm0, %v10103_v25, %v10167_v24 }
 0x7b6   : > { %10231 = vst [vmem:[%s15359_s23 + $0xe8] sm:$0xff] %v10199_v1 }
 0x7b7   : > { %12547 = shalt.err (!%p12544_p7)
}
 0x7b8   : > { %s12548_s13 = scalar_lea.hbm %s15440_s6, 4096  ;;  %s12552_s15 = scalar_lea.hbm %s15495_s5, 8192 }
 0x7b9   : > { %p12549_p8 = scmp.ne.s32.totalorder %s15440_s6, %s12548_s13  ;;  %p12553_p1 = scmp.lt.u32.totalorder %s15440_s6, %s15495_s5 }
 0x7ba   : > { %p12554_p0 = scmp.lt.u32.totalorder %s12552_s15, %s12548_s13  ;;  %p12556_p6 = scmp.lt.u32.totalorder %s12548_s13, %s15440_s6 }
 0x7bb   : > { %p12550_p11 = pnand %p12549_p8, %p15745_p9 }
 0x7bc   : > { %p12555_p5 = por %p12554_p0, %p12553_p1 }
 0x7bd   : > { %p12551_p13 = pneg %p12550_p11 }
 0x7be   : > { %p12557_p10 = por %p12556_p6, %p12555_p5 }
 0x7c0   : > { %p12558_p12 = pnand %p12557_p10, %p12551_p13 }
 0x7c2   : > { %12561 = shalt.err (!%p12558_p12)
}
 0x7c3   : > { %s12607_s23 = smov 128   ;;  %s12608_s25 = smov 8  }
 0x7c4   : > { %12314 = dma.vmem_to_hbm [thread:$0]  (%p15745_p9), %s15442_s26, 4096, %s15440_s6, %s15449_s7, %s12607_s23, %s12607_s23, %s12608_s25  }
 0x7c5 PF: > { %p12326_p2 = scmp.ge.s32.totalorder %s12600_s21, 2  ;;  %s10263_s22 = sand.u32 1, %s12588_s18  }
 0x7c6   : > { %p15746_p3 = scmp.ne.s32.totalorder %s15513_s29, 0  ;;  %s10264_s30 = scalar_lea.sflag [#allocation6], %s10263_s22 }
 0x7c8   : > { %p12321_p4 = pnand %p12326_p2, %p15746_p3 }
 0x7ca   : > { %12583 = dma.done.wait (!%p12321_p4), %s10264_s30, 4096  }
 0x7cb   : > { %12585 = vsyncadd (!%p12321_p4), %s10264_s30, 4294963200  ;;  %p16_p7 = scmp.ge.s32.totalorder %s12664_s24, 4   ;;  %s15747_s18 = smov %s12592_s19 }
 0x7cc   : > { %s15748_s19 = smov %s12596_s20  ;;  %s15749_s20 = smov %s12675_s27 }
 0x7cd   : > { %s15750_s21 = smov %s12664_s24  ;;  %18 = sbr.rel (!%p16_p7) target bundleno = 4 (0x4), region = 102 }
 0x7d4   :  { %10269 = vsyncpa [#allocation5], 1 }
 0x7d5   :  { %10271 = vsyncpa [#allocation5 + $0x1], 1 }
 0x7d6   :  { %10272 = vsyncpa [#allocation6], 1 }
 0x7d7   :  { %10274 = vsyncpa [#allocation6 + $0x1], 1 }

</bundles_post_ra>
